<compile_context>
chip_gen: v7x
topology: tpu7x:2x2x1
jax: 0.10.0
libtpu: 0.0.40
codegen_flags: <defaults>
</compile_context>

<pallas_src>
import functools

import jax
import jax.numpy as jnp
from jax import lax
from jax.experimental import pallas as pl
from jax.experimental.pallas import tpu as pltpu

# ---- synthetic hyper-params / constants (stand-ins for DO / vrbot globals) ----
EMBED = 16        # embed_size
HIDDEN = 32       # hidden_size
VOCAB = 64        # vocab_size
TMAX = 8          # target_max_len == s_max_len
LSENT = 8         # history sentence length
SNUM = 4          # DO.state_num
ANUM = 4          # DO.action_num
SOS_ID = 1        # DO.PreventWord.SOS_ID
EOS_ID = 2        # DO.PreventWord.EOS_ID
S_COPY_LAMBDA = 0.5   # vrbot_train_stage.s_copy_lambda
A_COPY_LAMBDA = 0.3   # vrbot_train_stage.a_copy_lambda (train_stage == 'action')
NEG_INF = -1e24
RNN_IN = EMBED + HIDDEN + EMBED + EMBED   # rnn_input_size = embed + hist_ctx + state_ctx + action_ctx


# ---------------------------------------------------------------------------
# Pallas kernel: the whole teacher-forced decode loop in one invocation.
# Per step: 3 MLP attentions (memory projections pre-computed), GRU cell,
# fused output/copy-query projection, joint softmax over
# [gene | history | state | action] logits, copy mixing + scatter (via a
# precomputed one-hot), log, masked commit of hidden state and output row.
# ---------------------------------------------------------------------------
def _decoder_kernel(
    emb_seq_ref, dmask_ref,
    hs_ref, hs_proj_ref, wmask_ref,
    sge_ref, sge_proj_ref, age_ref, age_proj_ref,
    sge_cp_ref, age_cp_ref,
    sgp_ref, agp_ref, oh_ref, h0_ref,
    vh_ref, vs_ref, va_ref, vsp_ref,
    w_h_all_ref, b_h_all_ref,
    w_ih_emb_ref, w_ih_his_ref, w_ih_st_ref, w_ih_ac_ref, bih_ref,
    w_hn_all_ref, b_hn_all_ref,
    out_ref,
):
    T = emb_seq_ref.shape[0]
    B, L, H = hs_ref.shape
    V = oh_ref.shape[2]
    f32 = jnp.float32

    def dot(a, b):
        return jnp.dot(a, b, preferred_element_type=f32)

    # ---- loop-invariant VMEM loads (hoisted out of the decode loop) ----
    hs, hs_proj, wmask = hs_ref[...], hs_proj_ref[...], wmask_ref[...]
    sge, sge_proj = sge_ref[...], sge_proj_ref[...]
    age, age_proj = age_ref[...], age_proj_ref[...]
    sge_cp, age_cp = sge_cp_ref[...], age_cp_ref[...]
    sgp, agp, oh = sgp_ref[...], agp_ref[...], oh_ref[...]
    vh, vs, va, vsp = vh_ref[...], vs_ref[...], va_ref[...], vsp_ref[...]
    w_h_all, b_h_all = w_h_all_ref[...], b_h_all_ref[...]
    w_ih_emb, w_ih_his = w_ih_emb_ref[...], w_ih_his_ref[...]
    w_ih_st, w_ih_ac, bih = w_ih_st_ref[...], w_ih_ac_ref[...], bih_ref[...]
    w_hn_all, b_hn_all = w_hn_all_ref[...], b_hn_all_ref[...]

    def mlp_scores(qp, mem_proj, v):
        # qp: [B,Ah] (already query-projected), mem_proj: [B,M,Ah], v: [1,Ah] -> [B,M]
        feat = jnp.tanh(qp[:, None, :] + mem_proj)
        return (feat * v[None, :, :]).sum(axis=-1)

    def attn_ctx(qp, mem_proj, v, mem, mask_add=None):
        s = mlp_scores(qp, mem_proj, v)
        if mask_add is not None:
            s = s + mask_add
        s = s - jnp.max(s, axis=-1, keepdims=True)
        e = jnp.exp(s)
        w = e / jnp.sum(e, axis=-1, keepdims=True)
        return (w[:, :, None] * mem).sum(axis=1)                  # [B,D]

    def step(t, h):
        inp_emb = emb_seq_ref[t]                                  # [B,E] (precomputed embed)
        dm = dmask_ref[t]                                         # [B,1] float

        # one fused projection of h against [Whh | Wqh | Wqs | Wqa]
        hp = dot(h, w_h_all) + b_h_all                            # [B,6H]
        gh = hp[:, 0:3 * H]                                       # GRU hidden gates (+bhh)
        qh = hp[:, 3 * H:4 * H]
        qs = hp[:, 4 * H:5 * H]
        qa = hp[:, 5 * H:6 * H]

        # --- attention contexts (memory projections precomputed) ---
        c_his = attn_ctx(qh, hs_proj, vh, hs, mask_add=wmask)     # [B,H]
        c_state = attn_ctx(qs, sge_proj, vs, sge)                 # [B,E]
        c_action = attn_ctx(qa, age_proj, va, age)                # [B,E]

        # --- GRU cell (PyTorch gate order r,z,n); split input matmul avoids concat ---
        gi = (dot(inp_emb, w_ih_emb) + dot(c_his, w_ih_his)
              + dot(c_state, w_ih_st) + dot(c_action, w_ih_ac) + bih)   # [B,3H]
        r = jax.nn.sigmoid(gi[:, 0:H] + gh[:, 0:H])
        z = jax.nn.sigmoid(gi[:, H:2 * H] + gh[:, H:2 * H])
        n = jnp.tanh(gi[:, 2 * H:] + r * gh[:, 2 * H:])
        h_new = (1.0 - z) * n + z * h

        # --- fused projection of h_new against [Wout | Wqsp] ---
        hnp = dot(h_new, w_hn_all) + b_hn_all                     # [B,V+H]
        gene = hnp[:, 0:V]                                        # generation logits (+bout)
        qp_sp = hnp[:, V:V + H]                                   # shared sparse-copy query proj

        # --- copy logits ---
        hs_logits = (h_new[:, None, :] * hs).sum(axis=-1)         # [B,L]  dot attention
        st_logits = mlp_scores(qp_sp, sge_cp, vsp)                # [B,S]
        ac_logits = mlp_scores(qp_sp, age_cp, vsp)                # [B,A]

        # --- joint softmax over [gene | hs | state | action] without concatenation ---
        mx = jnp.maximum(jnp.max(gene, -1, keepdims=True),
             jnp.maximum(jnp.max(hs_logits, -1, keepdims=True),
             jnp.maximum(jnp.max(st_logits, -1, keepdims=True),
                         jnp.max(ac_logits, -1, keepdims=True))))
        e_gene = jnp.exp(gene - mx)
        e_hs = jnp.exp(hs_logits - mx)
        e_st = jnp.exp(st_logits - mx)
        e_ac = jnp.exp(ac_logits - mx)
        denom = (e_gene.sum(-1, keepdims=True) + e_hs.sum(-1, keepdims=True)
                 + e_st.sum(-1, keepdims=True) + e_ac.sum(-1, keepdims=True))
        inv = pl.reciprocal(denom, approx=True)                   # EUP; not in recurrence
        p_gene, p_hs = e_gene * inv, e_hs * inv
        p_st, p_ac = e_st * inv, e_ac * inv

        state_copy_prob = (p_st[:, :, None] * sgp).sum(axis=1)    # [B,V]
        action_copy_prob = (p_ac[:, :, None] * agp).sum(axis=1)   # [B,V]
        gene_proba = p_gene + S_COPY_LAMBDA * state_copy_prob + A_COPY_LAMBDA * action_copy_prob

        # history scatter-add via precomputed one-hot (time-invariant, hoisted)
        copy_proba = (p_hs[:, :, None] * oh).sum(axis=1)          # [B,V]

        log_out = jnp.log(gene_proba + copy_proba)                # [B,V]

        # commit: only rows still "valid" at this step get decoded (sorted batch)
        valid = dm > 0.5                                          # [B,1]
        out_ref[t] = jnp.where(valid, log_out, 0.0)
        return jnp.where(valid, h_new, h)

    lax.fori_loop(0, T, step, h0_ref[...], unroll=True)


# ---------------------------------------------------------------------------
# Parameters (deterministic synthetic init)
# ---------------------------------------------------------------------------
def make_params(key):
    ks = jax.random.split(key, 32)

    def w(i, shape, scale=0.1):
        return jax.random.normal(ks[i], shape, jnp.float32) * scale

    return dict(
        emb=w(0, (VOCAB, EMBED), 0.3),                                    # embedder
        wqh=w(1, (HIDDEN, HIDDEN)), wmh=w(2, (HIDDEN, HIDDEN)), vh=w(3, (1, HIDDEN)),   # history_attn_word
        wqs=w(4, (HIDDEN, HIDDEN)), wms=w(5, (EMBED, HIDDEN)), vs=w(6, (1, HIDDEN)),    # init_s_attn
        wqa=w(7, (HIDDEN, HIDDEN)), wma=w(8, (EMBED, HIDDEN)), va=w(9, (1, HIDDEN)),    # init_a_attn
        wqsp=w(10, (HIDDEN, HIDDEN)), wmsp=w(11, (EMBED + 1, HIDDEN)), vsp=w(12, (1, HIDDEN)),  # sparse_copy_attn
        wsl=w(13, (EMBED, HIDDEN)), bsl=w(14, (1, HIDDEN), 0.01),         # s_linear
        wal=w(15, (EMBED, HIDDEN)), bal=w(16, (1, HIDDEN), 0.01),         # a_linear
        wih=w(17, (RNN_IN, 3 * HIDDEN)), whh=w(18, (HIDDEN, 3 * HIDDEN)), # GRU
        bih=w(19, (1, 3 * HIDDEN), 0.01), bhh=w(20, (1, 3 * HIDDEN), 0.01),
        wout=w(21, (HIDDEN, VOCAB)), bout=w(22, (1, VOCAB), 0.01),        # output_layer
    )


# ---------------------------------------------------------------------------
# Shared pure-JAX attention helpers (used by wrapper-side one-time init and by
# the reference implementation).
# ---------------------------------------------------------------------------
def _ref_mlp_scores(q, mem, Wq, Wm, v, mem_bias=None):
    hi = lax.Precision.HIGHEST
    qp = jnp.dot(q, Wq, precision=hi)
    mp = jnp.einsum('bmd,dh->bmh', mem, Wm, precision=hi)
    if mem_bias is not None:
        mp = mp + mem_bias[None, :, :]
    feat = jnp.tanh(qp[:, None, :] + mp)
    return (feat * v[None, :, :]).sum(-1)


def _ref_attn_ctx(q, mem, Wq, Wm, v, mask_add=None):
    s = _ref_mlp_scores(q, mem, Wq, Wm, v)
    if mask_add is not None:
        s = s + mask_add
    w = jax.nn.softmax(s, axis=-1)
    return jnp.einsum('bm,bmd->bd', w, mem, precision=lax.Precision.HIGHEST)


# ---------------------------------------------------------------------------
# Wrapper: training-mode forward (length sort, one-time init, loop-invariant
# precomputes, single Pallas call, unsort)
# ---------------------------------------------------------------------------
def rnn_decoder_forward(params, hidden0, inputs, hs_vectors, history_lens,
                        history_word_indices, state_gumbel_prob, state_gumbel_embed,
                        action_gumbel_prob, action_gumbel_embed):
    B, T = inputs.shape
    E, H, V, L = EMBED, HIDDEN, VOCAB, LSENT
    hi = lax.Precision.HIGHEST

    # valid lengths + descending sort, as in the PyTorch training path
    valid = T - jnp.cumsum((inputs == EOS_ID).astype(jnp.int32), axis=1).sum(axis=1)
    order = jnp.argsort(-valid)
    rev = jnp.argsort(order)
    valid_s = valid[order]

    h0 = hidden0[0][order]                        # [B,H] (num_layers == 1)
    inputs_s = inputs[order]
    hs_s = hs_vectors[order]
    hlens_s = history_lens[order]
    hwi_s = history_word_indices[order].astype(jnp.int32)
    sgp_s = state_gumbel_prob[order]
    sge_s = state_gumbel_embed[order]
    agp_s = action_gumbel_prob[order]
    age_s = action_gumbel_embed[order]

    # ---- one-time init_consult_state_action (tiny; done once outside the kernel) ----
    c_s0 = _ref_attn_ctx(h0, sge_s, params['wqs'], params['wms'], params['vs'])
    c_a0 = _ref_attn_ctx(h0, age_s, params['wqa'], params['wma'], params['va'])
    h_init = h0 + 0.5 * ((jnp.dot(c_s0, params['wsl'], precision=hi) + params['bsl'])
                         + (jnp.dot(c_a0, params['wal'], precision=hi) + params['bal']))

    # ---- loop-invariant precomputes (hoisted out of the decode loop) ----
    hs_proj = jnp.einsum('blh,hk->blk', hs_s, params['wmh'], precision=hi)       # [B,L,H]
    sge_proj = jnp.einsum('bsd,dk->bsk', sge_s, params['wms'], precision=hi)     # [B,S,H]
    age_proj = jnp.einsum('bad,dk->bak', age_s, params['wma'], precision=hi)     # [B,A,H]
    wmsp_emb = params['wmsp'][:E]                                                # [E,H]
    tag_bias = params['wmsp'][E:E + 1]                                           # [1,H] (tag=1 for action)
    sge_cp = jnp.einsum('bsd,dk->bsk', sge_s, wmsp_emb, precision=hi)            # state tag = 0
    age_cp = jnp.einsum('bad,dk->bak', age_s, wmsp_emb, precision=hi) + tag_bias[None, :, :]

    # reverse_sequence_mask: additive -inf on positions >= history_lens
    wmask_add = jnp.where(jnp.arange(L)[None, :] >= hlens_s[:, None],
                          NEG_INF, 0.0).astype(jnp.float32)                      # [B,L]

    oh = jax.nn.one_hot(hwi_s, V, dtype=jnp.float32)                             # [B,L,V]

    # teacher-forcing token embeddings for all steps (gather, time-major)
    emb_seq = jnp.transpose(params['emb'][inputs_s], (1, 0, 2))                  # [T,B,E]
    dmask = (jnp.arange(T)[:, None] < valid_s[None, :]).astype(jnp.float32)[:, :, None]  # [T,B,1]

    # ---- fused weight layouts (slices in-kernel stay within 128-lane tiles) ----
    zH = jnp.zeros((1, H), jnp.float32)
    w_h_all = jnp.concatenate([params['whh'], params['wqh'], params['wqs'], params['wqa']],
                              axis=1)                                            # [H, 6H]
    b_h_all = jnp.concatenate([params['bhh'], zH, zH, zH], axis=1)               # [1, 6H]
    w_hn_all = jnp.concatenate([params['wout'], params['wqsp']], axis=1)         # [H, V+H]
    b_hn_all = jnp.concatenate([params['bout'], zH], axis=1)                     # [1, V+H]
    wih = params['wih']
    w_ih_emb = wih[0:E]                                                          # [E, 3H]
    w_ih_his = wih[E:E + H]                                                      # [H, 3H]
    w_ih_st = wih[E + H:E + H + E]                                               # [E, 3H]
    w_ih_ac = wih[E + H + E:]                                                    # [E, 3H]

    kernel_inputs = (
        emb_seq, dmask,
        hs_s, hs_proj, wmask_add,
        sge_s, sge_proj, age_s, age_proj,
        sge_cp, age_cp,
        sgp_s, agp_s, oh, h_init,
        params['vh'], params['vs'], params['va'], params['vsp'],
        w_h_all, b_h_all,
        w_ih_emb, w_ih_his, w_ih_st, w_ih_ac, params['bih'],
        w_hn_all, b_hn_all,
    )
    vmem_spec = pl.BlockSpec(memory_space=pltpu.MemorySpace.VMEM)

    # Single invocation (no grid): all operands are whole VMEM blocks; the
    # output is written back to HBM with one DMA at the end.
    out_tbv = pl.pallas_call(
        _decoder_kernel,
        out_shape=jax.ShapeDtypeStruct((T, B, V), jnp.float32),
        in_specs=[vmem_spec] * len(kernel_inputs),
        out_specs=vmem_spec,
    )(*kernel_inputs)

    out_sorted = jnp.transpose(out_tbv, (1, 0, 2))   # [B,T,V]
    return out_sorted[rev]                           # undo length sort


# ---------------------------------------------------------------------------
# Pure-JAX reference (same math, written with gather / concat / scatter_add)
# ---------------------------------------------------------------------------
def rnn_decoder_reference(p, hidden0, inputs, hs, hlens, hwi, sgp, sge, agp, age):
    B, T = inputs.shape
    H, E, V, L, S = HIDDEN, EMBED, VOCAB, LSENT, SNUM
    rdot = functools.partial(jnp.dot, precision=lax.Precision.HIGHEST)

    valid = T - jnp.cumsum((inputs == EOS_ID).astype(jnp.int32), 1).sum(1)
    order = jnp.argsort(-valid)
    rev = jnp.argsort(order)
    valid_s = valid[order]
    h = hidden0[0][order]
    inputs_s, hs_s, hlens_s, hwi_s = inputs[order], hs[order], hlens[order], hwi[order]
    sgp_s, sge_s, agp_s, age_s = sgp[order], sge[order], agp[order], age[order]

    c_s = _ref_attn_ctx(h, sge_s, p['wqs'], p['wms'], p['vs'])
    c_a = _ref_attn_ctx(h, age_s, p['wqa'], p['wma'], p['va'])
    h = h + 0.5 * ((rdot(c_s, p['wsl']) + p['bsl']) + (rdot(c_a, p['wal']) + p['bal']))

    wmask_add = jnp.where(jnp.arange(L)[None, :] >= hlens_s[:, None], NEG_INF, 0.0)

    outs = jnp.zeros((B, T, V), jnp.float32)
    for t in range(T):
        tok = inputs_s[:, t]
        emb = p['emb'][tok]
        c_his = _ref_attn_ctx(h, hs_s, p['wqh'], p['wmh'], p['vh'], wmask_add)
        c_st = _ref_attn_ctx(h, sge_s, p['wqs'], p['wms'], p['vs'])
        c_ac = _ref_attn_ctx(h, age_s, p['wqa'], p['wma'], p['va'])
        x = jnp.concatenate([emb, c_his, c_st, c_ac], -1)
        gi = rdot(x, p['wih']) + p['bih']
        gh = rdot(h, p['whh']) + p['bhh']
        r = jax.nn.sigmoid(gi[:, :H] + gh[:, :H])
        z = jax.nn.sigmoid(gi[:, H:2 * H] + gh[:, H:2 * H])
        n = jnp.tanh(gi[:, 2 * H:] + r * gh[:, 2 * H:])
        h_new = (1 - z) * n + z * h

        gene = rdot(h_new, p['wout']) + p['bout']
        hs_logits = jnp.einsum('bh,blh->bl', h_new, hs_s, precision=lax.Precision.HIGHEST)
        st_logits = _ref_mlp_scores(h_new, sge_s, p['wqsp'], p['wmsp'][:E], p['vsp'])
        ac_logits = _ref_mlp_scores(h_new, age_s, p['wqsp'], p['wmsp'][:E], p['vsp'],
                                    mem_bias=p['wmsp'][E:])
        wp = jax.nn.softmax(jnp.concatenate([gene, hs_logits, st_logits, ac_logits], -1), -1)
        gene_p = wp[:, :V]
        p_hs = wp[:, V:V + L]
        p_st = wp[:, V + L:V + L + S]
        p_ac = wp[:, V + L + S:]
        scp = jnp.einsum('bs,bsv->bv', p_st, sgp_s, precision=lax.Precision.HIGHEST)
        acp = jnp.einsum('ba,bav->bv', p_ac, agp_s, precision=lax.Precision.HIGHEST)
        gene_p = gene_p + S_COPY_LAMBDA * scp + A_COPY_LAMBDA * acp
        copy_p = jax.vmap(lambda wgt, idx: jnp.zeros((V,), jnp.float32).at[idx].add(wgt))(p_hs, hwi_s)
        log_out = jnp.log(gene_p + copy_p)

        dm = (valid_s > t)[:, None]
        outs = outs.at[:, t, :].set(jnp.where(dm, log_out, 0.0))
        h = jnp.where(dm, h_new, h)
    return outs[rev]


if __name__ == "__main__":
    key = jax.random.PRNGKey(0)
    kp, kd = jax.random.split(key)
    params = make_params(kp)
    ks = jax.random.split(kd, 10)
    B = 2

    hidden0 = jax.random.normal(ks[0], (1, B, HIDDEN), jnp.float32) * 0.5
    inputs = jax.random.randint(ks[1], (B, TMAX), 3, VOCAB).astype(jnp.int32)
    inputs = inputs.at[0, 5].set(EOS_ID)      # row 0 terminates early -> exercises sort/mask
    hs_vectors = jax.random.normal(ks[2], (B, LSENT, HIDDEN), jnp.float32) * 0.5
    history_lens = jnp.array([LSENT, LSENT - 2], jnp.int32)
    history_word_indices = jax.random.randint(ks[3], (B, LSENT), 0, VOCAB).astype(jnp.int32)
    state_gumbel_embed = jax.random.normal(ks[4], (B, SNUM, EMBED), jnp.float32) * 0.5
    state_gumbel_prob = jax.nn.softmax(jax.random.normal(ks[5], (B, SNUM, VOCAB), jnp.float32), -1)
    action_gumbel_embed = jax.random.normal(ks[6], (B, ANUM, EMBED), jnp.float32) * 0.5
    action_gumbel_prob = jax.nn.softmax(jax.random.normal(ks[7], (B, ANUM, VOCAB), jnp.float32), -1)

    out = jax.jit(rnn_decoder_forward)(
        params, hidden0, inputs, hs_vectors, history_lens, history_word_indices,
        state_gumbel_prob, state_gumbel_embed, action_gumbel_prob, action_gumbel_embed)
    out = jax.block_until_ready(out)

    ref = rnn_decoder_reference(params, hidden0, inputs, hs_vectors, history_lens,
                                history_word_indices, state_gumbel_prob, state_gumbel_embed,
                                action_gumbel_prob, action_gumbel_embed)

    assert out.shape == (B, TMAX, VOCAB)
    assert bool(jnp.all(jnp.isfinite(out)))
    max_err = float(jnp.max(jnp.abs(out - ref)))
    assert max_err < 5e-2, f"mismatch vs reference: {max_err}"
    print("KERNEL_OK")
</pallas_src>

<mosaic_0001>
module attributes {stable_mosaic.version = 11 : i64} {
  func.func @_decoder_kernel(%arg0: memref<8x2x16xf32, #tpu.memory_space<vmem>>, %arg1: memref<8x2x1xf32, #tpu.memory_space<vmem>>, %arg2: memref<2x8x32xf32, #tpu.memory_space<vmem>>, %arg3: memref<2x8x32xf32, #tpu.memory_space<vmem>>, %arg4: memref<2x8xf32, #tpu.memory_space<vmem>>, %arg5: memref<2x4x16xf32, #tpu.memory_space<vmem>>, %arg6: memref<2x4x32xf32, #tpu.memory_space<vmem>>, %arg7: memref<2x4x16xf32, #tpu.memory_space<vmem>>, %arg8: memref<2x4x32xf32, #tpu.memory_space<vmem>>, %arg9: memref<2x4x32xf32, #tpu.memory_space<vmem>>, %arg10: memref<2x4x32xf32, #tpu.memory_space<vmem>>, %arg11: memref<2x4x64xf32, #tpu.memory_space<vmem>>, %arg12: memref<2x4x64xf32, #tpu.memory_space<vmem>>, %arg13: memref<2x8x64xf32, #tpu.memory_space<vmem>>, %arg14: memref<2x32xf32, #tpu.memory_space<vmem>>, %arg15: memref<1x32xf32, #tpu.memory_space<vmem>>, %arg16: memref<1x32xf32, #tpu.memory_space<vmem>>, %arg17: memref<1x32xf32, #tpu.memory_space<vmem>>, %arg18: memref<1x32xf32, #tpu.memory_space<vmem>>, %arg19: memref<32x192xf32, #tpu.memory_space<vmem>>, %arg20: memref<1x192xf32, #tpu.memory_space<vmem>>, %arg21: memref<16x96xf32, #tpu.memory_space<vmem>>, %arg22: memref<32x96xf32, #tpu.memory_space<vmem>>, %arg23: memref<16x96xf32, #tpu.memory_space<vmem>>, %arg24: memref<16x96xf32, #tpu.memory_space<vmem>>, %arg25: memref<1x96xf32, #tpu.memory_space<vmem>>, %arg26: memref<32x96xf32, #tpu.memory_space<vmem>>, %arg27: memref<1x96xf32, #tpu.memory_space<vmem>>, %arg28: memref<8x2x64xf32, #tpu.memory_space<vmem>>) attributes {dimension_semantics = [], scalar_prefetch = 0 : i64, scratch_operands = 0 : i64, tpu.core_type = #tpu.core_type<tc>} {
    %c0 = arith.constant 0 : index
    %c0_0 = arith.constant 0 : index
    %c0_1 = arith.constant 0 : index
    %0 = vector.load %arg2[%c0, %c0_0, %c0_1] : memref<2x8x32xf32, #tpu.memory_space<vmem>>, vector<2x8x32xf32>
    %c0_2 = arith.constant 0 : index
    %c0_3 = arith.constant 0 : index
    %c0_4 = arith.constant 0 : index
    %1 = vector.load %arg3[%c0_2, %c0_3, %c0_4] : memref<2x8x32xf32, #tpu.memory_space<vmem>>, vector<2x8x32xf32>
    %c0_5 = arith.constant 0 : index
    %c0_6 = arith.constant 0 : index
    %2 = vector.load %arg4[%c0_5, %c0_6] : memref<2x8xf32, #tpu.memory_space<vmem>>, vector<2x8xf32>
    %c0_7 = arith.constant 0 : index
    %c0_8 = arith.constant 0 : index
    %c0_9 = arith.constant 0 : index
    %3 = vector.load %arg5[%c0_7, %c0_8, %c0_9] : memref<2x4x16xf32, #tpu.memory_space<vmem>>, vector<2x4x16xf32>
    %c0_10 = arith.constant 0 : index
    %c0_11 = arith.constant 0 : index
    %c0_12 = arith.constant 0 : index
    %4 = vector.load %arg6[%c0_10, %c0_11, %c0_12] : memref<2x4x32xf32, #tpu.memory_space<vmem>>, vector<2x4x32xf32>
    %c0_13 = arith.constant 0 : index
    %c0_14 = arith.constant 0 : index
    %c0_15 = arith.constant 0 : index
    %5 = vector.load %arg7[%c0_13, %c0_14, %c0_15] : memref<2x4x16xf32, #tpu.memory_space<vmem>>, vector<2x4x16xf32>
    %c0_16 = arith.constant 0 : index
    %c0_17 = arith.constant 0 : index
    %c0_18 = arith.constant 0 : index
    %6 = vector.load %arg8[%c0_16, %c0_17, %c0_18] : memref<2x4x32xf32, #tpu.memory_space<vmem>>, vector<2x4x32xf32>
    %c0_19 = arith.constant 0 : index
    %c0_20 = arith.constant 0 : index
    %c0_21 = arith.constant 0 : index
    %7 = vector.load %arg9[%c0_19, %c0_20, %c0_21] : memref<2x4x32xf32, #tpu.memory_space<vmem>>, vector<2x4x32xf32>
    %c0_22 = arith.constant 0 : index
    %c0_23 = arith.constant 0 : index
    %c0_24 = arith.constant 0 : index
    %8 = vector.load %arg10[%c0_22, %c0_23, %c0_24] : memref<2x4x32xf32, #tpu.memory_space<vmem>>, vector<2x4x32xf32>
    %c0_25 = arith.constant 0 : index
    %c0_26 = arith.constant 0 : index
    %c0_27 = arith.constant 0 : index
    %9 = vector.load %arg11[%c0_25, %c0_26, %c0_27] : memref<2x4x64xf32, #tpu.memory_space<vmem>>, vector<2x4x64xf32>
    %c0_28 = arith.constant 0 : index
    %c0_29 = arith.constant 0 : index
    %c0_30 = arith.constant 0 : index
    %10 = vector.load %arg12[%c0_28, %c0_29, %c0_30] : memref<2x4x64xf32, #tpu.memory_space<vmem>>, vector<2x4x64xf32>
    %c0_31 = arith.constant 0 : index
    %c0_32 = arith.constant 0 : index
    %c0_33 = arith.constant 0 : index
    %11 = vector.load %arg13[%c0_31, %c0_32, %c0_33] : memref<2x8x64xf32, #tpu.memory_space<vmem>>, vector<2x8x64xf32>
    %c0_34 = arith.constant 0 : index
    %c0_35 = arith.constant 0 : index
    %12 = vector.load %arg15[%c0_34, %c0_35] : memref<1x32xf32, #tpu.memory_space<vmem>>, vector<1x32xf32>
    %c0_36 = arith.constant 0 : index
    %c0_37 = arith.constant 0 : index
    %13 = vector.load %arg16[%c0_36, %c0_37] : memref<1x32xf32, #tpu.memory_space<vmem>>, vector<1x32xf32>
    %c0_38 = arith.constant 0 : index
    %c0_39 = arith.constant 0 : index
    %14 = vector.load %arg17[%c0_38, %c0_39] : memref<1x32xf32, #tpu.memory_space<vmem>>, vector<1x32xf32>
    %c0_40 = arith.constant 0 : index
    %c0_41 = arith.constant 0 : index
    %15 = vector.load %arg18[%c0_40, %c0_41] : memref<1x32xf32, #tpu.memory_space<vmem>>, vector<1x32xf32>
    %c0_42 = arith.constant 0 : index
    %c0_43 = arith.constant 0 : index
    %16 = vector.load %arg19[%c0_42, %c0_43] : memref<32x192xf32, #tpu.memory_space<vmem>>, vector<32x192xf32>
    %c0_44 = arith.constant 0 : index
    %c0_45 = arith.constant 0 : index
    %17 = vector.load %arg20[%c0_44, %c0_45] : memref<1x192xf32, #tpu.memory_space<vmem>>, vector<1x192xf32>
    %c0_46 = arith.constant 0 : index
    %c0_47 = arith.constant 0 : index
    %18 = vector.load %arg21[%c0_46, %c0_47] : memref<16x96xf32, #tpu.memory_space<vmem>>, vector<16x96xf32>
    %c0_48 = arith.constant 0 : index
    %c0_49 = arith.constant 0 : index
    %19 = vector.load %arg22[%c0_48, %c0_49] : memref<32x96xf32, #tpu.memory_space<vmem>>, vector<32x96xf32>
    %c0_50 = arith.constant 0 : index
    %c0_51 = arith.constant 0 : index
    %20 = vector.load %arg23[%c0_50, %c0_51] : memref<16x96xf32, #tpu.memory_space<vmem>>, vector<16x96xf32>
    %c0_52 = arith.constant 0 : index
    %c0_53 = arith.constant 0 : index
    %21 = vector.load %arg24[%c0_52, %c0_53] : memref<16x96xf32, #tpu.memory_space<vmem>>, vector<16x96xf32>
    %c0_54 = arith.constant 0 : index
    %c0_55 = arith.constant 0 : index
    %22 = vector.load %arg25[%c0_54, %c0_55] : memref<1x96xf32, #tpu.memory_space<vmem>>, vector<1x96xf32>
    %c0_56 = arith.constant 0 : index
    %c0_57 = arith.constant 0 : index
    %23 = vector.load %arg26[%c0_56, %c0_57] : memref<32x96xf32, #tpu.memory_space<vmem>>, vector<32x96xf32>
    %c0_58 = arith.constant 0 : index
    %c0_59 = arith.constant 0 : index
    %24 = vector.load %arg27[%c0_58, %c0_59] : memref<1x96xf32, #tpu.memory_space<vmem>>, vector<1x96xf32>
    %c0_60 = arith.constant 0 : index
    %c0_61 = arith.constant 0 : index
    %25 = vector.load %arg14[%c0_60, %c0_61] : memref<2x32xf32, #tpu.memory_space<vmem>>, vector<2x32xf32>
    %c0_i32 = arith.constant 0 : i32
    %26 = arith.index_cast %c0_i32 : i32 to index
    %c0_62 = arith.constant 0 : index
    %c0_63 = arith.constant 0 : index
    %27 = vector.load %arg0[%26, %c0_62, %c0_63] : memref<8x2x16xf32, #tpu.memory_space<vmem>>, vector<1x2x16xf32>
    %28 = vector.shape_cast %27 : vector<1x2x16xf32> to vector<2x16xf32>
    %29 = arith.index_cast %c0_i32 : i32 to index
    %c0_64 = arith.constant 0 : index
    %c0_65 = arith.constant 0 : index
    %30 = vector.load %arg1[%29, %c0_64, %c0_65] : memref<8x2x1xf32, #tpu.memory_space<vmem>>, vector<1x2x1xf32>
    %31 = vector.shape_cast %30 : vector<1x2x1xf32> to vector<2x1xf32>
    %cst = arith.constant dense<0.000000e+00> : vector<2x192xf32>
    %32 = tpu.matmul %25, %16, %cst {dimension_numbers = #tpu.dot_dimension_numbers<[1], [0], [0], [1], [0, 0, 1, 1], [], []>} : vector<2x32xf32>, vector<32x192xf32>, vector<2x192xf32> -> vector<2x192xf32>
    %33 = vector.broadcast %17 : vector<1x192xf32> to vector<2x192xf32>
    %34 = arith.addf %32, %33 : vector<2x192xf32>
    %35 = vector.extract_strided_slice %34 {offsets = [0, 0], sizes = [2, 96], strides = [1, 1]} : vector<2x192xf32> to vector<2x96xf32>
    %36 = vector.extract_strided_slice %34 {offsets = [0, 96], sizes = [2, 32], strides = [1, 1]} : vector<2x192xf32> to vector<2x32xf32>
    %37 = vector.extract_strided_slice %34 {offsets = [0, 128], sizes = [2, 32], strides = [1, 1]} : vector<2x192xf32> to vector<2x32xf32>
    %38 = vector.extract_strided_slice %34 {offsets = [0, 160], sizes = [2, 32], strides = [1, 1]} : vector<2x192xf32> to vector<2x32xf32>
    %39 = vector.shape_cast %36 : vector<2x32xf32> to vector<2x1x32xf32>
    %40 = vector.broadcast %39 : vector<2x1x32xf32> to vector<2x8x32xf32>
    %41 = arith.addf %40, %1 : vector<2x8x32xf32>
    %42 = math.tanh %41 : vector<2x8x32xf32>
    %43 = vector.shape_cast %12 : vector<1x32xf32> to vector<1x1x32xf32>
    %44 = vector.broadcast %43 : vector<1x1x32xf32> to vector<2x8x32xf32>
    %45 = arith.mulf %42, %44 : vector<2x8x32xf32>
    %cst_66 = arith.constant dense<0.000000e+00> : vector<2x8xf32>
    %46 = vector.multi_reduction <add>, %45, %cst_66 [2] : vector<2x8x32xf32> to vector<2x8xf32>
    %47 = arith.addf %46, %2 : vector<2x8xf32>
    %cst_67 = arith.constant dense<0xFF800000> : vector<2xf32>
    %48 = vector.multi_reduction <maximumf>, %47, %cst_67 [1] : vector<2x8xf32> to vector<2xf32>
    %49 = vector.shape_cast %48 : vector<2xf32> to vector<2x1xf32>
    %50 = vector.broadcast %49 : vector<2x1xf32> to vector<2x8xf32>
    %51 = arith.subf %47, %50 : vector<2x8xf32>
    %52 = math.exp %51 : vector<2x8xf32>
    %cst_68 = arith.constant dense<0.000000e+00> : vector<2xf32>
    %53 = vector.multi_reduction <add>, %52, %cst_68 [1] : vector<2x8xf32> to vector<2xf32>
    %54 = vector.shape_cast %53 : vector<2xf32> to vector<2x1xf32>
    %55 = vector.broadcast %54 : vector<2x1xf32> to vector<2x8xf32>
    %56 = arith.divf %52, %55 : vector<2x8xf32>
    %57 = vector.shape_cast %56 : vector<2x8xf32> to vector<2x8x1xf32>
    %58 = vector.broadcast %57 : vector<2x8x1xf32> to vector<2x8x32xf32>
    %59 = arith.mulf %58, %0 : vector<2x8x32xf32>
    %cst_69 = arith.constant dense<0.000000e+00> : vector<2x32xf32>
    %60 = vector.multi_reduction <add>, %59, %cst_69 [1] : vector<2x8x32xf32> to vector<2x32xf32>
    %61 = vector.shape_cast %37 : vector<2x32xf32> to vector<2x1x32xf32>
    %62 = vector.broadcast %61 : vector<2x1x32xf32> to vector<2x4x32xf32>
    %63 = arith.addf %62, %4 : vector<2x4x32xf32>
    %64 = math.tanh %63 : vector<2x4x32xf32>
    %65 = vector.shape_cast %13 : vector<1x32xf32> to vector<1x1x32xf32>
    %66 = vector.broadcast %65 : vector<1x1x32xf32> to vector<2x4x32xf32>
    %67 = arith.mulf %64, %66 : vector<2x4x32xf32>
    %cst_70 = arith.constant dense<0.000000e+00> : vector<2x4xf32>
    %68 = vector.multi_reduction <add>, %67, %cst_70 [2] : vector<2x4x32xf32> to vector<2x4xf32>
    %cst_71 = arith.constant dense<0xFF800000> : vector<2xf32>
    %69 = vector.multi_reduction <maximumf>, %68, %cst_71 [1] : vector<2x4xf32> to vector<2xf32>
    %70 = vector.shape_cast %69 : vector<2xf32> to vector<2x1xf32>
    %71 = vector.broadcast %70 : vector<2x1xf32> to vector<2x4xf32>
    %72 = arith.subf %68, %71 : vector<2x4xf32>
    %73 = math.exp %72 : vector<2x4xf32>
    %cst_72 = arith.constant dense<0.000000e+00> : vector<2xf32>
    %74 = vector.multi_reduction <add>, %73, %cst_72 [1] : vector<2x4xf32> to vector<2xf32>
    %75 = vector.shape_cast %74 : vector<2xf32> to vector<2x1xf32>
    %76 = vector.broadcast %75 : vector<2x1xf32> to vector<2x4xf32>
    %77 = arith.divf %73, %76 : vector<2x4xf32>
    %78 = vector.shape_cast %77 : vector<2x4xf32> to vector<2x4x1xf32>
    %79 = vector.broadcast %78 : vector<2x4x1xf32> to vector<2x4x16xf32>
    %80 = arith.mulf %79, %3 : vector<2x4x16xf32>
    %cst_73 = arith.constant dense<0.000000e+00> : vector<2x16xf32>
    %81 = vector.multi_reduction <add>, %80, %cst_73 [1] : vector<2x4x16xf32> to vector<2x16xf32>
    %82 = vector.shape_cast %38 : vector<2x32xf32> to vector<2x1x32xf32>
    %83 = vector.broadcast %82 : vector<2x1x32xf32> to vector<2x4x32xf32>
    %84 = arith.addf %83, %6 : vector<2x4x32xf32>
    %85 = math.tanh %84 : vector<2x4x32xf32>
    %86 = vector.shape_cast %14 : vector<1x32xf32> to vector<1x1x32xf32>
    %87 = vector.broadcast %86 : vector<1x1x32xf32> to vector<2x4x32xf32>
    %88 = arith.mulf %85, %87 : vector<2x4x32xf32>
    %cst_74 = arith.constant dense<0.000000e+00> : vector<2x4xf32>
    %89 = vector.multi_reduction <add>, %88, %cst_74 [2] : vector<2x4x32xf32> to vector<2x4xf32>
    %cst_75 = arith.constant dense<0xFF800000> : vector<2xf32>
    %90 = vector.multi_reduction <maximumf>, %89, %cst_75 [1] : vector<2x4xf32> to vector<2xf32>
    %91 = vector.shape_cast %90 : vector<2xf32> to vector<2x1xf32>
    %92 = vector.broadcast %91 : vector<2x1xf32> to vector<2x4xf32>
    %93 = arith.subf %89, %92 : vector<2x4xf32>
    %94 = math.exp %93 : vector<2x4xf32>
    %cst_76 = arith.constant dense<0.000000e+00> : vector<2xf32>
    %95 = vector.multi_reduction <add>, %94, %cst_76 [1] : vector<2x4xf32> to vector<2xf32>
    %96 = vector.shape_cast %95 : vector<2xf32> to vector<2x1xf32>
    %97 = vector.broadcast %96 : vector<2x1xf32> to vector<2x4xf32>
    %98 = arith.divf %94, %97 : vector<2x4xf32>
    %99 = vector.shape_cast %98 : vector<2x4xf32> to vector<2x4x1xf32>
    %100 = vector.broadcast %99 : vector<2x4x1xf32> to vector<2x4x16xf32>
    %101 = arith.mulf %100, %5 : vector<2x4x16xf32>
    %cst_77 = arith.constant dense<0.000000e+00> : vector<2x16xf32>
    %102 = vector.multi_reduction <add>, %101, %cst_77 [1] : vector<2x4x16xf32> to vector<2x16xf32>
    %cst_78 = arith.constant dense<0.000000e+00> : vector<2x96xf32>
    %103 = tpu.matmul %28, %18, %cst_78 {dimension_numbers = #tpu.dot_dimension_numbers<[1], [0], [0], [1], [0, 0, 1, 1], [], []>} : vector<2x16xf32>, vector<16x96xf32>, vector<2x96xf32> -> vector<2x96xf32>
    %cst_79 = arith.constant dense<0.000000e+00> : vector<2x96xf32>
    %104 = tpu.matmul %60, %19, %cst_79 {dimension_numbers = #tpu.dot_dimension_numbers<[1], [0], [0], [1], [0, 0, 1, 1], [], []>} : vector<2x32xf32>, vector<32x96xf32>, vector<2x96xf32> -> vector<2x96xf32>
    %105 = arith.addf %103, %104 : vector<2x96xf32>
    %cst_80 = arith.constant dense<0.000000e+00> : vector<2x96xf32>
    %106 = tpu.matmul %81, %20, %cst_80 {dimension_numbers = #tpu.dot_dimension_numbers<[1], [0], [0], [1], [0, 0, 1, 1], [], []>} : vector<2x16xf32>, vector<16x96xf32>, vector<2x96xf32> -> vector<2x96xf32>
    %107 = arith.addf %105, %106 : vector<2x96xf32>
    %cst_81 = arith.constant dense<0.000000e+00> : vector<2x96xf32>
    %108 = tpu.matmul %102, %21, %cst_81 {dimension_numbers = #tpu.dot_dimension_numbers<[1], [0], [0], [1], [0, 0, 1, 1], [], []>} : vector<2x16xf32>, vector<16x96xf32>, vector<2x96xf32> -> vector<2x96xf32>
    %109 = arith.addf %107, %108 : vector<2x96xf32>
    %110 = vector.broadcast %22 : vector<1x96xf32> to vector<2x96xf32>
    %111 = arith.addf %109, %110 : vector<2x96xf32>
    %112 = vector.extract_strided_slice %111 {offsets = [0, 0], sizes = [2, 32], strides = [1, 1]} : vector<2x96xf32> to vector<2x32xf32>
    %113 = vector.extract_strided_slice %35 {offsets = [0, 0], sizes = [2, 32], strides = [1, 1]} : vector<2x96xf32> to vector<2x32xf32>
    %114 = arith.addf %112, %113 : vector<2x32xf32>
    %115 = arith.negf %114 : vector<2x32xf32>
    %116 = math.exp %115 : vector<2x32xf32>
    %cst_82 = arith.constant 1.000000e+00 : f32
    %117 = vector.broadcast %cst_82 : f32 to vector<2x32xf32>
    %118 = arith.addf %117, %116 : vector<2x32xf32>
    %119 = arith.divf %117, %118 : vector<2x32xf32>
    %120 = vector.extract_strided_slice %111 {offsets = [0, 32], sizes = [2, 32], strides = [1, 1]} : vector<2x96xf32> to vector<2x32xf32>
    %121 = vector.extract_strided_slice %35 {offsets = [0, 32], sizes = [2, 32], strides = [1, 1]} : vector<2x96xf32> to vector<2x32xf32>
    %122 = arith.addf %120, %121 : vector<2x32xf32>
    %123 = arith.negf %122 : vector<2x32xf32>
    %124 = math.exp %123 : vector<2x32xf32>
    %cst_83 = arith.constant 1.000000e+00 : f32
    %125 = vector.broadcast %cst_83 : f32 to vector<2x32xf32>
    %126 = arith.addf %125, %124 : vector<2x32xf32>
    %127 = arith.divf %125, %126 : vector<2x32xf32>
    %128 = vector.extract_strided_slice %111 {offsets = [0, 64], sizes = [2, 32], strides = [1, 1]} : vector<2x96xf32> to vector<2x32xf32>
    %129 = vector.extract_strided_slice %35 {offsets = [0, 64], sizes = [2, 32], strides = [1, 1]} : vector<2x96xf32> to vector<2x32xf32>
    %130 = arith.mulf %119, %129 : vector<2x32xf32>
    %131 = arith.addf %128, %130 : vector<2x32xf32>
    %132 = math.tanh %131 : vector<2x32xf32>
    %cst_84 = arith.constant 1.000000e+00 : f32
    %133 = vector.broadcast %cst_84 : f32 to vector<2x32xf32>
    %134 = arith.subf %133, %127 : vector<2x32xf32>
    %135 = arith.mulf %134, %132 : vector<2x32xf32>
    %136 = arith.mulf %127, %25 : vector<2x32xf32>
    %137 = arith.addf %135, %136 : vector<2x32xf32>
    %cst_85 = arith.constant dense<0.000000e+00> : vector<2x96xf32>
    %138 = tpu.matmul %137, %23, %cst_85 {dimension_numbers = #tpu.dot_dimension_numbers<[1], [0], [0], [1], [0, 0, 1, 1], [], []>} : vector<2x32xf32>, vector<32x96xf32>, vector<2x96xf32> -> vector<2x96xf32>
    %139 = vector.broadcast %24 : vector<1x96xf32> to vector<2x96xf32>
    %140 = arith.addf %138, %139 : vector<2x96xf32>
    %141 = vector.extract_strided_slice %140 {offsets = [0, 0], sizes = [2, 64], strides = [1, 1]} : vector<2x96xf32> to vector<2x64xf32>
    %142 = vector.extract_strided_slice %140 {offsets = [0, 64], sizes = [2, 32], strides = [1, 1]} : vector<2x96xf32> to vector<2x32xf32>
    %143 = vector.shape_cast %137 : vector<2x32xf32> to vector<2x1x32xf32>
    %144 = vector.broadcast %143 : vector<2x1x32xf32> to vector<2x8x32xf32>
    %145 = arith.mulf %144, %0 : vector<2x8x32xf32>
    %cst_86 = arith.constant dense<0.000000e+00> : vector<2x8xf32>
    %146 = vector.multi_reduction <add>, %145, %cst_86 [2] : vector<2x8x32xf32> to vector<2x8xf32>
    %147 = vector.shape_cast %142 : vector<2x32xf32> to vector<2x1x32xf32>
    %148 = vector.broadcast %147 : vector<2x1x32xf32> to vector<2x4x32xf32>
    %149 = arith.addf %148, %7 : vector<2x4x32xf32>
    %150 = math.tanh %149 : vector<2x4x32xf32>
    %151 = vector.shape_cast %15 : vector<1x32xf32> to vector<1x1x32xf32>
    %152 = vector.broadcast %151 : vector<1x1x32xf32> to vector<2x4x32xf32>
    %153 = arith.mulf %150, %152 : vector<2x4x32xf32>
    %cst_87 = arith.constant dense<0.000000e+00> : vector<2x4xf32>
    %154 = vector.multi_reduction <add>, %153, %cst_87 [2] : vector<2x4x32xf32> to vector<2x4xf32>
    %155 = vector.shape_cast %142 : vector<2x32xf32> to vector<2x1x32xf32>
    %156 = vector.broadcast %155 : vector<2x1x32xf32> to vector<2x4x32xf32>
    %157 = arith.addf %156, %8 : vector<2x4x32xf32>
    %158 = math.tanh %157 : vector<2x4x32xf32>
    %159 = vector.shape_cast %15 : vector<1x32xf32> to vector<1x1x32xf32>
    %160 = vector.broadcast %159 : vector<1x1x32xf32> to vector<2x4x32xf32>
    %161 = arith.mulf %158, %160 : vector<2x4x32xf32>
    %cst_88 = arith.constant dense<0.000000e+00> : vector<2x4xf32>
    %162 = vector.multi_reduction <add>, %161, %cst_88 [2] : vector<2x4x32xf32> to vector<2x4xf32>
    %cst_89 = arith.constant dense<0xFF800000> : vector<2xf32>
    %163 = vector.multi_reduction <maximumf>, %141, %cst_89 [1] : vector<2x64xf32> to vector<2xf32>
    %164 = vector.shape_cast %163 : vector<2xf32> to vector<2x1xf32>
    %cst_90 = arith.constant dense<0xFF800000> : vector<2xf32>
    %165 = vector.multi_reduction <maximumf>, %146, %cst_90 [1] : vector<2x8xf32> to vector<2xf32>
    %166 = vector.shape_cast %165 : vector<2xf32> to vector<2x1xf32>
    %cst_91 = arith.constant dense<0xFF800000> : vector<2xf32>
    %167 = vector.multi_reduction <maximumf>, %154, %cst_91 [1] : vector<2x4xf32> to vector<2xf32>
    %168 = vector.shape_cast %167 : vector<2xf32> to vector<2x1xf32>
    %cst_92 = arith.constant dense<0xFF800000> : vector<2xf32>
    %169 = vector.multi_reduction <maximumf>, %162, %cst_92 [1] : vector<2x4xf32> to vector<2xf32>
    %170 = vector.shape_cast %169 : vector<2xf32> to vector<2x1xf32>
    %171 = arith.maximumf %168, %170 : vector<2x1xf32>
    %172 = arith.maximumf %166, %171 : vector<2x1xf32>
    %173 = arith.maximumf %164, %172 : vector<2x1xf32>
    %174 = vector.broadcast %173 : vector<2x1xf32> to vector<2x64xf32>
    %175 = arith.subf %141, %174 : vector<2x64xf32>
    %176 = math.exp %175 : vector<2x64xf32>
    %177 = vector.broadcast %173 : vector<2x1xf32> to vector<2x8xf32>
    %178 = arith.subf %146, %177 : vector<2x8xf32>
    %179 = math.exp %178 : vector<2x8xf32>
    %180 = vector.broadcast %173 : vector<2x1xf32> to vector<2x4xf32>
    %181 = arith.subf %154, %180 : vector<2x4xf32>
    %182 = math.exp %181 : vector<2x4xf32>
    %183 = vector.broadcast %173 : vector<2x1xf32> to vector<2x4xf32>
    %184 = arith.subf %162, %183 : vector<2x4xf32>
    %185 = math.exp %184 : vector<2x4xf32>
    %cst_93 = arith.constant dense<0.000000e+00> : vector<2xf32>
    %186 = vector.multi_reduction <add>, %176, %cst_93 [1] : vector<2x64xf32> to vector<2xf32>
    %187 = vector.shape_cast %186 : vector<2xf32> to vector<2x1xf32>
    %cst_94 = arith.constant dense<0.000000e+00> : vector<2xf32>
    %188 = vector.multi_reduction <add>, %179, %cst_94 [1] : vector<2x8xf32> to vector<2xf32>
    %189 = vector.shape_cast %188 : vector<2xf32> to vector<2x1xf32>
    %190 = arith.addf %187, %189 : vector<2x1xf32>
    %cst_95 = arith.constant dense<0.000000e+00> : vector<2xf32>
    %191 = vector.multi_reduction <add>, %182, %cst_95 [1] : vector<2x4xf32> to vector<2xf32>
    %192 = vector.shape_cast %191 : vector<2xf32> to vector<2x1xf32>
    %193 = arith.addf %190, %192 : vector<2x1xf32>
    %cst_96 = arith.constant dense<0.000000e+00> : vector<2xf32>
    %194 = vector.multi_reduction <add>, %185, %cst_96 [1] : vector<2x4xf32> to vector<2xf32>
    %195 = vector.shape_cast %194 : vector<2xf32> to vector<2x1xf32>
    %196 = arith.addf %193, %195 : vector<2x1xf32>
    %197 = tpu.reciprocal %196 {approx = true} : vector<2x1xf32> -> vector<2x1xf32>
    %198 = vector.broadcast %197 : vector<2x1xf32> to vector<2x64xf32>
    %199 = arith.mulf %176, %198 : vector<2x64xf32>
    %200 = vector.broadcast %197 : vector<2x1xf32> to vector<2x8xf32>
    %201 = arith.mulf %179, %200 : vector<2x8xf32>
    %202 = vector.broadcast %197 : vector<2x1xf32> to vector<2x4xf32>
    %203 = arith.mulf %182, %202 : vector<2x4xf32>
    %204 = vector.broadcast %197 : vector<2x1xf32> to vector<2x4xf32>
    %205 = arith.mulf %185, %204 : vector<2x4xf32>
    %206 = vector.shape_cast %203 : vector<2x4xf32> to vector<2x4x1xf32>
    %207 = vector.broadcast %206 : vector<2x4x1xf32> to vector<2x4x64xf32>
    %208 = arith.mulf %207, %9 : vector<2x4x64xf32>
    %cst_97 = arith.constant dense<0.000000e+00> : vector<2x64xf32>
    %209 = vector.multi_reduction <add>, %208, %cst_97 [1] : vector<2x4x64xf32> to vector<2x64xf32>
    %210 = vector.shape_cast %205 : vector<2x4xf32> to vector<2x4x1xf32>
    %211 = vector.broadcast %210 : vector<2x4x1xf32> to vector<2x4x64xf32>
    %212 = arith.mulf %211, %10 : vector<2x4x64xf32>
    %cst_98 = arith.constant dense<0.000000e+00> : vector<2x64xf32>
    %213 = vector.multi_reduction <add>, %212, %cst_98 [1] : vector<2x4x64xf32> to vector<2x64xf32>
    %cst_99 = arith.constant 5.000000e-01 : f32
    %214 = vector.broadcast %cst_99 : f32 to vector<2x64xf32>
    %215 = arith.mulf %214, %209 : vector<2x64xf32>
    %216 = arith.addf %199, %215 : vector<2x64xf32>
    %cst_100 = arith.constant 3.000000e-01 : f32
    %217 = vector.broadcast %cst_100 : f32 to vector<2x64xf32>
    %218 = arith.mulf %217, %213 : vector<2x64xf32>
    %219 = arith.addf %216, %218 : vector<2x64xf32>
    %220 = vector.shape_cast %201 : vector<2x8xf32> to vector<2x8x1xf32>
    %221 = vector.broadcast %220 : vector<2x8x1xf32> to vector<2x8x64xf32>
    %222 = arith.mulf %221, %11 : vector<2x8x64xf32>
    %cst_101 = arith.constant dense<0.000000e+00> : vector<2x64xf32>
    %223 = vector.multi_reduction <add>, %222, %cst_101 [1] : vector<2x8x64xf32> to vector<2x64xf32>
    %224 = arith.addf %219, %223 : vector<2x64xf32>
    %225 = math.log %224 : vector<2x64xf32>
    %cst_102 = arith.constant 5.000000e-01 : f32
    %226 = vector.broadcast %cst_102 : f32 to vector<2x1xf32>
    %227 = arith.cmpf ogt, %31, %226 : vector<2x1xf32>
    %cst_103 = arith.constant 0.000000e+00 : f32
    %228 = vector.shape_cast %227 : vector<2x1xi1> to vector<2x1xi1>
    %229 = vector.broadcast %228 : vector<2x1xi1> to vector<2x64xi1>
    %230 = vector.broadcast %cst_103 : f32 to vector<2x64xf32>
    %231 = arith.select %229, %225, %230 : vector<2x64xi1>, vector<2x64xf32>
    %232 = arith.index_cast %c0_i32 : i32 to index
    %c0_104 = arith.constant 0 : index
    %c0_105 = arith.constant 0 : index
    %233 = vector.load %arg28[%232, %c0_104, %c0_105] : memref<8x2x64xf32, #tpu.memory_space<vmem>>, vector<1x2x64xf32>
    %234 = vector.shape_cast %233 : vector<1x2x64xf32> to vector<2x64xf32>
    %235 = vector.shape_cast %231 : vector<2x64xf32> to vector<1x2x64xf32>
    tpu.vector_store %arg28[%232, %c0_104, %c0_105], %235 {strides = array<i32>} : memref<8x2x64xf32, #tpu.memory_space<vmem>>, vector<1x2x64xf32>,
    %236 = vector.shape_cast %227 : vector<2x1xi1> to vector<2x1xi1>
    %237 = vector.broadcast %236 : vector<2x1xi1> to vector<2x32xi1>
    %238 = arith.select %237, %137, %25 : vector<2x32xi1>, vector<2x32xf32>
    %c1_i32 = arith.constant 1 : i32
    %239 = arith.index_cast %c1_i32 : i32 to index
    %c0_106 = arith.constant 0 : index
    %c0_107 = arith.constant 0 : index
    %240 = vector.load %arg0[%239, %c0_106, %c0_107] : memref<8x2x16xf32, #tpu.memory_space<vmem>>, vector<1x2x16xf32>
    %241 = vector.shape_cast %240 : vector<1x2x16xf32> to vector<2x16xf32>
    %242 = arith.index_cast %c1_i32 : i32 to index
    %c0_108 = arith.constant 0 : index
    %c0_109 = arith.constant 0 : index
    %243 = vector.load %arg1[%242, %c0_108, %c0_109] : memref<8x2x1xf32, #tpu.memory_space<vmem>>, vector<1x2x1xf32>
    %244 = vector.shape_cast %243 : vector<1x2x1xf32> to vector<2x1xf32>
    %cst_110 = arith.constant dense<0.000000e+00> : vector<2x192xf32>
    %245 = tpu.matmul %238, %16, %cst_110 {dimension_numbers = #tpu.dot_dimension_numbers<[1], [0], [0], [1], [0, 0, 1, 1], [], []>} : vector<2x32xf32>, vector<32x192xf32>, vector<2x192xf32> -> vector<2x192xf32>
    %246 = vector.broadcast %17 : vector<1x192xf32> to vector<2x192xf32>
    %247 = arith.addf %245, %246 : vector<2x192xf32>
    %248 = vector.extract_strided_slice %247 {offsets = [0, 0], sizes = [2, 96], strides = [1, 1]} : vector<2x192xf32> to vector<2x96xf32>
    %249 = vector.extract_strided_slice %247 {offsets = [0, 96], sizes = [2, 32], strides = [1, 1]} : vector<2x192xf32> to vector<2x32xf32>
    %250 = vector.extract_strided_slice %247 {offsets = [0, 128], sizes = [2, 32], strides = [1, 1]} : vector<2x192xf32> to vector<2x32xf32>
    %251 = vector.extract_strided_slice %247 {offsets = [0, 160], sizes = [2, 32], strides = [1, 1]} : vector<2x192xf32> to vector<2x32xf32>
    %252 = vector.shape_cast %249 : vector<2x32xf32> to vector<2x1x32xf32>
    %253 = vector.broadcast %252 : vector<2x1x32xf32> to vector<2x8x32xf32>
    %254 = arith.addf %253, %1 : vector<2x8x32xf32>
    %255 = math.tanh %254 : vector<2x8x32xf32>
    %256 = vector.shape_cast %12 : vector<1x32xf32> to vector<1x1x32xf32>
    %257 = vector.broadcast %256 : vector<1x1x32xf32> to vector<2x8x32xf32>
    %258 = arith.mulf %255, %257 : vector<2x8x32xf32>
    %cst_111 = arith.constant dense<0.000000e+00> : vector<2x8xf32>
    %259 = vector.multi_reduction <add>, %258, %cst_111 [2] : vector<2x8x32xf32> to vector<2x8xf32>
    %260 = arith.addf %259, %2 : vector<2x8xf32>
    %cst_112 = arith.constant dense<0xFF800000> : vector<2xf32>
    %261 = vector.multi_reduction <maximumf>, %260, %cst_112 [1] : vector<2x8xf32> to vector<2xf32>
    %262 = vector.shape_cast %261 : vector<2xf32> to vector<2x1xf32>
    %263 = vector.broadcast %262 : vector<2x1xf32> to vector<2x8xf32>
    %264 = arith.subf %260, %263 : vector<2x8xf32>
    %265 = math.exp %264 : vector<2x8xf32>
    %cst_113 = arith.constant dense<0.000000e+00> : vector<2xf32>
    %266 = vector.multi_reduction <add>, %265, %cst_113 [1] : vector<2x8xf32> to vector<2xf32>
    %267 = vector.shape_cast %266 : vector<2xf32> to vector<2x1xf32>
    %268 = vector.broadcast %267 : vector<2x1xf32> to vector<2x8xf32>
    %269 = arith.divf %265, %268 : vector<2x8xf32>
    %270 = vector.shape_cast %269 : vector<2x8xf32> to vector<2x8x1xf32>
    %271 = vector.broadcast %270 : vector<2x8x1xf32> to vector<2x8x32xf32>
    %272 = arith.mulf %271, %0 : vector<2x8x32xf32>
    %cst_114 = arith.constant dense<0.000000e+00> : vector<2x32xf32>
    %273 = vector.multi_reduction <add>, %272, %cst_114 [1] : vector<2x8x32xf32> to vector<2x32xf32>
    %274 = vector.shape_cast %250 : vector<2x32xf32> to vector<2x1x32xf32>
    %275 = vector.broadcast %274 : vector<2x1x32xf32> to vector<2x4x32xf32>
    %276 = arith.addf %275, %4 : vector<2x4x32xf32>
    %277 = math.tanh %276 : vector<2x4x32xf32>
    %278 = vector.shape_cast %13 : vector<1x32xf32> to vector<1x1x32xf32>
    %279 = vector.broadcast %278 : vector<1x1x32xf32> to vector<2x4x32xf32>
    %280 = arith.mulf %277, %279 : vector<2x4x32xf32>
    %cst_115 = arith.constant dense<0.000000e+00> : vector<2x4xf32>
    %281 = vector.multi_reduction <add>, %280, %cst_115 [2] : vector<2x4x32xf32> to vector<2x4xf32>
    %cst_116 = arith.constant dense<0xFF800000> : vector<2xf32>
    %282 = vector.multi_reduction <maximumf>, %281, %cst_116 [1] : vector<2x4xf32> to vector<2xf32>
    %283 = vector.shape_cast %282 : vector<2xf32> to vector<2x1xf32>
    %284 = vector.broadcast %283 : vector<2x1xf32> to vector<2x4xf32>
    %285 = arith.subf %281, %284 : vector<2x4xf32>
    %286 = math.exp %285 : vector<2x4xf32>
    %cst_117 = arith.constant dense<0.000000e+00> : vector<2xf32>
    %287 = vector.multi_reduction <add>, %286, %cst_117 [1] : vector<2x4xf32> to vector<2xf32>
    %288 = vector.shape_cast %287 : vector<2xf32> to vector<2x1xf32>
    %289 = vector.broadcast %288 : vector<2x1xf32> to vector<2x4xf32>
    %290 = arith.divf %286, %289 : vector<2x4xf32>
    %291 = vector.shape_cast %290 : vector<2x4xf32> to vector<2x4x1xf32>
    %292 = vector.broadcast %291 : vector<2x4x1xf32> to vector<2x4x16xf32>
    %293 = arith.mulf %292, %3 : vector<2x4x16xf32>
    %cst_118 = arith.constant dense<0.000000e+00> : vector<2x16xf32>
    %294 = vector.multi_reduction <add>, %293, %cst_118 [1] : vector<2x4x16xf32> to vector<2x16xf32>
    %295 = vector.shape_cast %251 : vector<2x32xf32> to vector<2x1x32xf32>
    %296 = vector.broadcast %295 : vector<2x1x32xf32> to vector<2x4x32xf32>
    %297 = arith.addf %296, %6 : vector<2x4x32xf32>
    %298 = math.tanh %297 : vector<2x4x32xf32>
    %299 = vector.shape_cast %14 : vector<1x32xf32> to vector<1x1x32xf32>
    %300 = vector.broadcast %299 : vector<1x1x32xf32> to vector<2x4x32xf32>
    %301 = arith.mulf %298, %300 : vector<2x4x32xf32>
    %cst_119 = arith.constant dense<0.000000e+00> : vector<2x4xf32>
    %302 = vector.multi_reduction <add>, %301, %cst_119 [2] : vector<2x4x32xf32> to vector<2x4xf32>
    %cst_120 = arith.constant dense<0xFF800000> : vector<2xf32>
    %303 = vector.multi_reduction <maximumf>, %302, %cst_120 [1] : vector<2x4xf32> to vector<2xf32>
    %304 = vector.shape_cast %303 : vector<2xf32> to vector<2x1xf32>
    %305 = vector.broadcast %304 : vector<2x1xf32> to vector<2x4xf32>
    %306 = arith.subf %302, %305 : vector<2x4xf32>
    %307 = math.exp %306 : vector<2x4xf32>
    %cst_121 = arith.constant dense<0.000000e+00> : vector<2xf32>
    %308 = vector.multi_reduction <add>, %307, %cst_121 [1] : vector<2x4xf32> to vector<2xf32>
    %309 = vector.shape_cast %308 : vector<2xf32> to vector<2x1xf32>
    %310 = vector.broadcast %309 : vector<2x1xf32> to vector<2x4xf32>
    %311 = arith.divf %307, %310 : vector<2x4xf32>
    %312 = vector.shape_cast %311 : vector<2x4xf32> to vector<2x4x1xf32>
    %313 = vector.broadcast %312 : vector<2x4x1xf32> to vector<2x4x16xf32>
    %314 = arith.mulf %313, %5 : vector<2x4x16xf32>
    %cst_122 = arith.constant dense<0.000000e+00> : vector<2x16xf32>
    %315 = vector.multi_reduction <add>, %314, %cst_122 [1] : vector<2x4x16xf32> to vector<2x16xf32>
    %cst_123 = arith.constant dense<0.000000e+00> : vector<2x96xf32>
    %316 = tpu.matmul %241, %18, %cst_123 {dimension_numbers = #tpu.dot_dimension_numbers<[1], [0], [0], [1], [0, 0, 1, 1], [], []>} : vector<2x16xf32>, vector<16x96xf32>, vector<2x96xf32> -> vector<2x96xf32>
    %cst_124 = arith.constant dense<0.000000e+00> : vector<2x96xf32>
    %317 = tpu.matmul %273, %19, %cst_124 {dimension_numbers = #tpu.dot_dimension_numbers<[1], [0], [0], [1], [0, 0, 1, 1], [], []>} : vector<2x32xf32>, vector<32x96xf32>, vector<2x96xf32> -> vector<2x96xf32>
    %318 = arith.addf %316, %317 : vector<2x96xf32>
    %cst_125 = arith.constant dense<0.000000e+00> : vector<2x96xf32>
    %319 = tpu.matmul %294, %20, %cst_125 {dimension_numbers = #tpu.dot_dimension_numbers<[1], [0], [0], [1], [0, 0, 1, 1], [], []>} : vector<2x16xf32>, vector<16x96xf32>, vector<2x96xf32> -> vector<2x96xf32>
    %320 = arith.addf %318, %319 : vector<2x96xf32>
    %cst_126 = arith.constant dense<0.000000e+00> : vector<2x96xf32>
    %321 = tpu.matmul %315, %21, %cst_126 {dimension_numbers = #tpu.dot_dimension_numbers<[1], [0], [0], [1], [0, 0, 1, 1], [], []>} : vector<2x16xf32>, vector<16x96xf32>, vector<2x96xf32> -> vector<2x96xf32>
    %322 = arith.addf %320, %321 : vector<2x96xf32>
    %323 = vector.broadcast %22 : vector<1x96xf32> to vector<2x96xf32>
    %324 = arith.addf %322, %323 : vector<2x96xf32>
    %325 = vector.extract_strided_slice %324 {offsets = [0, 0], sizes = [2, 32], strides = [1, 1]} : vector<2x96xf32> to vector<2x32xf32>
    %326 = vector.extract_strided_slice %248 {offsets = [0, 0], sizes = [2, 32], strides = [1, 1]} : vector<2x96xf32> to vector<2x32xf32>
    %327 = arith.addf %325, %326 : vector<2x32xf32>
    %328 = arith.negf %327 : vector<2x32xf32>
    %329 = math.exp %328 : vector<2x32xf32>
    %cst_127 = arith.constant 1.000000e+00 : f32
    %330 = vector.broadcast %cst_127 : f32 to vector<2x32xf32>
    %331 = arith.addf %330, %329 : vector<2x32xf32>
    %332 = arith.divf %330, %331 : vector<2x32xf32>
    %333 = vector.extract_strided_slice %324 {offsets = [0, 32], sizes = [2, 32], strides = [1, 1]} : vector<2x96xf32> to vector<2x32xf32>
    %334 = vector.extract_strided_slice %248 {offsets = [0, 32], sizes = [2, 32], strides = [1, 1]} : vector<2x96xf32> to vector<2x32xf32>
    %335 = arith.addf %333, %334 : vector<2x32xf32>
    %336 = arith.negf %335 : vector<2x32xf32>
    %337 = math.exp %336 : vector<2x32xf32>
    %cst_128 = arith.constant 1.000000e+00 : f32
    %338 = vector.broadcast %cst_128 : f32 to vector<2x32xf32>
    %339 = arith.addf %338, %337 : vector<2x32xf32>
    %340 = arith.divf %338, %339 : vector<2x32xf32>
    %341 = vector.extract_strided_slice %324 {offsets = [0, 64], sizes = [2, 32], strides = [1, 1]} : vector<2x96xf32> to vector<2x32xf32>
    %342 = vector.extract_strided_slice %248 {offsets = [0, 64], sizes = [2, 32], strides = [1, 1]} : vector<2x96xf32> to vector<2x32xf32>
    %343 = arith.mulf %332, %342 : vector<2x32xf32>
    %344 = arith.addf %341, %343 : vector<2x32xf32>
    %345 = math.tanh %344 : vector<2x32xf32>
    %cst_129 = arith.constant 1.000000e+00 : f32
    %346 = vector.broadcast %cst_129 : f32 to vector<2x32xf32>
    %347 = arith.subf %346, %340 : vector<2x32xf32>
    %348 = arith.mulf %347, %345 : vector<2x32xf32>
    %349 = arith.mulf %340, %238 : vector<2x32xf32>
    %350 = arith.addf %348, %349 : vector<2x32xf32>
    %cst_130 = arith.constant dense<0.000000e+00> : vector<2x96xf32>
    %351 = tpu.matmul %350, %23, %cst_130 {dimension_numbers = #tpu.dot_dimension_numbers<[1], [0], [0], [1], [0, 0, 1, 1], [], []>} : vector<2x32xf32>, vector<32x96xf32>, vector<2x96xf32> -> vector<2x96xf32>
    %352 = vector.broadcast %24 : vector<1x96xf32> to vector<2x96xf32>
    %353 = arith.addf %351, %352 : vector<2x96xf32>
    %354 = vector.extract_strided_slice %353 {offsets = [0, 0], sizes = [2, 64], strides = [1, 1]} : vector<2x96xf32> to vector<2x64xf32>
    %355 = vector.extract_strided_slice %353 {offsets = [0, 64], sizes = [2, 32], strides = [1, 1]} : vector<2x96xf32> to vector<2x32xf32>
    %356 = vector.shape_cast %350 : vector<2x32xf32> to vector<2x1x32xf32>
    %357 = vector.broadcast %356 : vector<2x1x32xf32> to vector<2x8x32xf32>
    %358 = arith.mulf %357, %0 : vector<2x8x32xf32>
    %cst_131 = arith.constant dense<0.000000e+00> : vector<2x8xf32>
    %359 = vector.multi_reduction <add>, %358, %cst_131 [2] : vector<2x8x32xf32> to vector<2x8xf32>
    %360 = vector.shape_cast %355 : vector<2x32xf32> to vector<2x1x32xf32>
    %361 = vector.broadcast %360 : vector<2x1x32xf32> to vector<2x4x32xf32>
    %362 = arith.addf %361, %7 : vector<2x4x32xf32>
    %363 = math.tanh %362 : vector<2x4x32xf32>
    %364 = vector.shape_cast %15 : vector<1x32xf32> to vector<1x1x32xf32>
    %365 = vector.broadcast %364 : vector<1x1x32xf32> to vector<2x4x32xf32>
    %366 = arith.mulf %363, %365 : vector<2x4x32xf32>
    %cst_132 = arith.constant dense<0.000000e+00> : vector<2x4xf32>
    %367 = vector.multi_reduction <add>, %366, %cst_132 [2] : vector<2x4x32xf32> to vector<2x4xf32>
    %368 = vector.shape_cast %355 : vector<2x32xf32> to vector<2x1x32xf32>
    %369 = vector.broadcast %368 : vector<2x1x32xf32> to vector<2x4x32xf32>
    %370 = arith.addf %369, %8 : vector<2x4x32xf32>
    %371 = math.tanh %370 : vector<2x4x32xf32>
    %372 = vector.shape_cast %15 : vector<1x32xf32> to vector<1x1x32xf32>
    %373 = vector.broadcast %372 : vector<1x1x32xf32> to vector<2x4x32xf32>
    %374 = arith.mulf %371, %373 : vector<2x4x32xf32>
    %cst_133 = arith.constant dense<0.000000e+00> : vector<2x4xf32>
    %375 = vector.multi_reduction <add>, %374, %cst_133 [2] : vector<2x4x32xf32> to vector<2x4xf32>
    %cst_134 = arith.constant dense<0xFF800000> : vector<2xf32>
    %376 = vector.multi_reduction <maximumf>, %354, %cst_134 [1] : vector<2x64xf32> to vector<2xf32>
    %377 = vector.shape_cast %376 : vector<2xf32> to vector<2x1xf32>
    %cst_135 = arith.constant dense<0xFF800000> : vector<2xf32>
    %378 = vector.multi_reduction <maximumf>, %359, %cst_135 [1] : vector<2x8xf32> to vector<2xf32>
    %379 = vector.shape_cast %378 : vector<2xf32> to vector<2x1xf32>
    %cst_136 = arith.constant dense<0xFF800000> : vector<2xf32>
    %380 = vector.multi_reduction <maximumf>, %367, %cst_136 [1] : vector<2x4xf32> to vector<2xf32>
    %381 = vector.shape_cast %380 : vector<2xf32> to vector<2x1xf32>
    %cst_137 = arith.constant dense<0xFF800000> : vector<2xf32>
    %382 = vector.multi_reduction <maximumf>, %375, %cst_137 [1] : vector<2x4xf32> to vector<2xf32>
    %383 = vector.shape_cast %382 : vector<2xf32> to vector<2x1xf32>
    %384 = arith.maximumf %381, %383 : vector<2x1xf32>
    %385 = arith.maximumf %379, %384 : vector<2x1xf32>
    %386 = arith.maximumf %377, %385 : vector<2x1xf32>
    %387 = vector.broadcast %386 : vector<2x1xf32> to vector<2x64xf32>
    %388 = arith.subf %354, %387 : vector<2x64xf32>
    %389 = math.exp %388 : vector<2x64xf32>
    %390 = vector.broadcast %386 : vector<2x1xf32> to vector<2x8xf32>
    %391 = arith.subf %359, %390 : vector<2x8xf32>
    %392 = math.exp %391 : vector<2x8xf32>
    %393 = vector.broadcast %386 : vector<2x1xf32> to vector<2x4xf32>
    %394 = arith.subf %367, %393 : vector<2x4xf32>
    %395 = math.exp %394 : vector<2x4xf32>
    %396 = vector.broadcast %386 : vector<2x1xf32> to vector<2x4xf32>
    %397 = arith.subf %375, %396 : vector<2x4xf32>
    %398 = math.exp %397 : vector<2x4xf32>
    %cst_138 = arith.constant dense<0.000000e+00> : vector<2xf32>
    %399 = vector.multi_reduction <add>, %389, %cst_138 [1] : vector<2x64xf32> to vector<2xf32>
    %400 = vector.shape_cast %399 : vector<2xf32> to vector<2x1xf32>
    %cst_139 = arith.constant dense<0.000000e+00> : vector<2xf32>
    %401 = vector.multi_reduction <add>, %392, %cst_139 [1] : vector<2x8xf32> to vector<2xf32>
    %402 = vector.shape_cast %401 : vector<2xf32> to vector<2x1xf32>
    %403 = arith.addf %400, %402 : vector<2x1xf32>
    %cst_140 = arith.constant dense<0.000000e+00> : vector<2xf32>
    %404 = vector.multi_reduction <add>, %395, %cst_140 [1] : vector<2x4xf32> to vector<2xf32>
    %405 = vector.shape_cast %404 : vector<2xf32> to vector<2x1xf32>
    %406 = arith.addf %403, %405 : vector<2x1xf32>
    %cst_141 = arith.constant dense<0.000000e+00> : vector<2xf32>
    %407 = vector.multi_reduction <add>, %398, %cst_141 [1] : vector<2x4xf32> to vector<2xf32>
    %408 = vector.shape_cast %407 : vector<2xf32> to vector<2x1xf32>
    %409 = arith.addf %406, %408 : vector<2x1xf32>
    %410 = tpu.reciprocal %409 {approx = true} : vector<2x1xf32> -> vector<2x1xf32>
    %411 = vector.broadcast %410 : vector<2x1xf32> to vector<2x64xf32>
    %412 = arith.mulf %389, %411 : vector<2x64xf32>
    %413 = vector.broadcast %410 : vector<2x1xf32> to vector<2x8xf32>
    %414 = arith.mulf %392, %413 : vector<2x8xf32>
    %415 = vector.broadcast %410 : vector<2x1xf32> to vector<2x4xf32>
    %416 = arith.mulf %395, %415 : vector<2x4xf32>
    %417 = vector.broadcast %410 : vector<2x1xf32> to vector<2x4xf32>
    %418 = arith.mulf %398, %417 : vector<2x4xf32>
    %419 = vector.shape_cast %416 : vector<2x4xf32> to vector<2x4x1xf32>
    %420 = vector.broadcast %419 : vector<2x4x1xf32> to vector<2x4x64xf32>
    %421 = arith.mulf %420, %9 : vector<2x4x64xf32>
    %cst_142 = arith.constant dense<0.000000e+00> : vector<2x64xf32>
    %422 = vector.multi_reduction <add>, %421, %cst_142 [1] : vector<2x4x64xf32> to vector<2x64xf32>
    %423 = vector.shape_cast %418 : vector<2x4xf32> to vector<2x4x1xf32>
    %424 = vector.broadcast %423 : vector<2x4x1xf32> to vector<2x4x64xf32>
    %425 = arith.mulf %424, %10 : vector<2x4x64xf32>
    %cst_143 = arith.constant dense<0.000000e+00> : vector<2x64xf32>
    %426 = vector.multi_reduction <add>, %425, %cst_143 [1] : vector<2x4x64xf32> to vector<2x64xf32>
    %cst_144 = arith.constant 5.000000e-01 : f32
    %427 = vector.broadcast %cst_144 : f32 to vector<2x64xf32>
    %428 = arith.mulf %427, %422 : vector<2x64xf32>
    %429 = arith.addf %412, %428 : vector<2x64xf32>
    %cst_145 = arith.constant 3.000000e-01 : f32
    %430 = vector.broadcast %cst_145 : f32 to vector<2x64xf32>
    %431 = arith.mulf %430, %426 : vector<2x64xf32>
    %432 = arith.addf %429, %431 : vector<2x64xf32>
    %433 = vector.shape_cast %414 : vector<2x8xf32> to vector<2x8x1xf32>
    %434 = vector.broadcast %433 : vector<2x8x1xf32> to vector<2x8x64xf32>
    %435 = arith.mulf %434, %11 : vector<2x8x64xf32>
    %cst_146 = arith.constant dense<0.000000e+00> : vector<2x64xf32>
    %436 = vector.multi_reduction <add>, %435, %cst_146 [1] : vector<2x8x64xf32> to vector<2x64xf32>
    %437 = arith.addf %432, %436 : vector<2x64xf32>
    %438 = math.log %437 : vector<2x64xf32>
    %cst_147 = arith.constant 5.000000e-01 : f32
    %439 = vector.broadcast %cst_147 : f32 to vector<2x1xf32>
    %440 = arith.cmpf ogt, %244, %439 : vector<2x1xf32>
    %cst_148 = arith.constant 0.000000e+00 : f32
    %441 = vector.shape_cast %440 : vector<2x1xi1> to vector<2x1xi1>
    %442 = vector.broadcast %441 : vector<2x1xi1> to vector<2x64xi1>
    %443 = vector.broadcast %cst_148 : f32 to vector<2x64xf32>
    %444 = arith.select %442, %438, %443 : vector<2x64xi1>, vector<2x64xf32>
    %445 = arith.index_cast %c1_i32 : i32 to index
    %c0_149 = arith.constant 0 : index
    %c0_150 = arith.constant 0 : index
    %446 = vector.load %arg28[%445, %c0_149, %c0_150] : memref<8x2x64xf32, #tpu.memory_space<vmem>>, vector<1x2x64xf32>
    %447 = vector.shape_cast %446 : vector<1x2x64xf32> to vector<2x64xf32>
    %448 = vector.shape_cast %444 : vector<2x64xf32> to vector<1x2x64xf32>
    tpu.vector_store %arg28[%445, %c0_149, %c0_150], %448 {strides = array<i32>} : memref<8x2x64xf32, #tpu.memory_space<vmem>>, vector<1x2x64xf32>,
    %449 = vector.shape_cast %440 : vector<2x1xi1> to vector<2x1xi1>
    %450 = vector.broadcast %449 : vector<2x1xi1> to vector<2x32xi1>
    %451 = arith.select %450, %350, %238 : vector<2x32xi1>, vector<2x32xf32>
    %c2_i32 = arith.constant 2 : i32
    %452 = arith.index_cast %c2_i32 : i32 to index
    %c0_151 = arith.constant 0 : index
    %c0_152 = arith.constant 0 : index
    %453 = vector.load %arg0[%452, %c0_151, %c0_152] : memref<8x2x16xf32, #tpu.memory_space<vmem>>, vector<1x2x16xf32>
    %454 = vector.shape_cast %453 : vector<1x2x16xf32> to vector<2x16xf32>
    %455 = arith.index_cast %c2_i32 : i32 to index
    %c0_153 = arith.constant 0 : index
    %c0_154 = arith.constant 0 : index
    %456 = vector.load %arg1[%455, %c0_153, %c0_154] : memref<8x2x1xf32, #tpu.memory_space<vmem>>, vector<1x2x1xf32>
    %457 = vector.shape_cast %456 : vector<1x2x1xf32> to vector<2x1xf32>
    %cst_155 = arith.constant dense<0.000000e+00> : vector<2x192xf32>
    %458 = tpu.matmul %451, %16, %cst_155 {dimension_numbers = #tpu.dot_dimension_numbers<[1], [0], [0], [1], [0, 0, 1, 1], [], []>} : vector<2x32xf32>, vector<32x192xf32>, vector<2x192xf32> -> vector<2x192xf32>
    %459 = vector.broadcast %17 : vector<1x192xf32> to vector<2x192xf32>
    %460 = arith.addf %458, %459 : vector<2x192xf32>
    %461 = vector.extract_strided_slice %460 {offsets = [0, 0], sizes = [2, 96], strides = [1, 1]} : vector<2x192xf32> to vector<2x96xf32>
    %462 = vector.extract_strided_slice %460 {offsets = [0, 96], sizes = [2, 32], strides = [1, 1]} : vector<2x192xf32> to vector<2x32xf32>
    %463 = vector.extract_strided_slice %460 {offsets = [0, 128], sizes = [2, 32], strides = [1, 1]} : vector<2x192xf32> to vector<2x32xf32>
    %464 = vector.extract_strided_slice %460 {offsets = [0, 160], sizes = [2, 32], strides = [1, 1]} : vector<2x192xf32> to vector<2x32xf32>
    %465 = vector.shape_cast %462 : vector<2x32xf32> to vector<2x1x32xf32>
    %466 = vector.broadcast %465 : vector<2x1x32xf32> to vector<2x8x32xf32>
    %467 = arith.addf %466, %1 : vector<2x8x32xf32>
    %468 = math.tanh %467 : vector<2x8x32xf32>
    %469 = vector.shape_cast %12 : vector<1x32xf32> to vector<1x1x32xf32>
    %470 = vector.broadcast %469 : vector<1x1x32xf32> to vector<2x8x32xf32>
    %471 = arith.mulf %468, %470 : vector<2x8x32xf32>
    %cst_156 = arith.constant dense<0.000000e+00> : vector<2x8xf32>
    %472 = vector.multi_reduction <add>, %471, %cst_156 [2] : vector<2x8x32xf32> to vector<2x8xf32>
    %473 = arith.addf %472, %2 : vector<2x8xf32>
    %cst_157 = arith.constant dense<0xFF800000> : vector<2xf32>
    %474 = vector.multi_reduction <maximumf>, %473, %cst_157 [1] : vector<2x8xf32> to vector<2xf32>
    %475 = vector.shape_cast %474 : vector<2xf32> to vector<2x1xf32>
    %476 = vector.broadcast %475 : vector<2x1xf32> to vector<2x8xf32>
    %477 = arith.subf %473, %476 : vector<2x8xf32>
    %478 = math.exp %477 : vector<2x8xf32>
    %cst_158 = arith.constant dense<0.000000e+00> : vector<2xf32>
    %479 = vector.multi_reduction <add>, %478, %cst_158 [1] : vector<2x8xf32> to vector<2xf32>
    %480 = vector.shape_cast %479 : vector<2xf32> to vector<2x1xf32>
    %481 = vector.broadcast %480 : vector<2x1xf32> to vector<2x8xf32>
    %482 = arith.divf %478, %481 : vector<2x8xf32>
    %483 = vector.shape_cast %482 : vector<2x8xf32> to vector<2x8x1xf32>
    %484 = vector.broadcast %483 : vector<2x8x1xf32> to vector<2x8x32xf32>
    %485 = arith.mulf %484, %0 : vector<2x8x32xf32>
    %cst_159 = arith.constant dense<0.000000e+00> : vector<2x32xf32>
    %486 = vector.multi_reduction <add>, %485, %cst_159 [1] : vector<2x8x32xf32> to vector<2x32xf32>
    %487 = vector.shape_cast %463 : vector<2x32xf32> to vector<2x1x32xf32>
    %488 = vector.broadcast %487 : vector<2x1x32xf32> to vector<2x4x32xf32>
    %489 = arith.addf %488, %4 : vector<2x4x32xf32>
    %490 = math.tanh %489 : vector<2x4x32xf32>
    %491 = vector.shape_cast %13 : vector<1x32xf32> to vector<1x1x32xf32>
    %492 = vector.broadcast %491 : vector<1x1x32xf32> to vector<2x4x32xf32>
    %493 = arith.mulf %490, %492 : vector<2x4x32xf32>
    %cst_160 = arith.constant dense<0.000000e+00> : vector<2x4xf32>
    %494 = vector.multi_reduction <add>, %493, %cst_160 [2] : vector<2x4x32xf32> to vector<2x4xf32>
    %cst_161 = arith.constant dense<0xFF800000> : vector<2xf32>
    %495 = vector.multi_reduction <maximumf>, %494, %cst_161 [1] : vector<2x4xf32> to vector<2xf32>
    %496 = vector.shape_cast %495 : vector<2xf32> to vector<2x1xf32>
    %497 = vector.broadcast %496 : vector<2x1xf32> to vector<2x4xf32>
    %498 = arith.subf %494, %497 : vector<2x4xf32>
    %499 = math.exp %498 : vector<2x4xf32>
    %cst_162 = arith.constant dense<0.000000e+00> : vector<2xf32>
    %500 = vector.multi_reduction <add>, %499, %cst_162 [1] : vector<2x4xf32> to vector<2xf32>
    %501 = vector.shape_cast %500 : vector<2xf32> to vector<2x1xf32>
    %502 = vector.broadcast %501 : vector<2x1xf32> to vector<2x4xf32>
    %503 = arith.divf %499, %502 : vector<2x4xf32>
    %504 = vector.shape_cast %503 : vector<2x4xf32> to vector<2x4x1xf32>
    %505 = vector.broadcast %504 : vector<2x4x1xf32> to vector<2x4x16xf32>
    %506 = arith.mulf %505, %3 : vector<2x4x16xf32>
    %cst_163 = arith.constant dense<0.000000e+00> : vector<2x16xf32>
    %507 = vector.multi_reduction <add>, %506, %cst_163 [1] : vector<2x4x16xf32> to vector<2x16xf32>
    %508 = vector.shape_cast %464 : vector<2x32xf32> to vector<2x1x32xf32>
    %509 = vector.broadcast %508 : vector<2x1x32xf32> to vector<2x4x32xf32>
    %510 = arith.addf %509, %6 : vector<2x4x32xf32>
    %511 = math.tanh %510 : vector<2x4x32xf32>
    %512 = vector.shape_cast %14 : vector<1x32xf32> to vector<1x1x32xf32>
    %513 = vector.broadcast %512 : vector<1x1x32xf32> to vector<2x4x32xf32>
    %514 = arith.mulf %511, %513 : vector<2x4x32xf32>
    %cst_164 = arith.constant dense<0.000000e+00> : vector<2x4xf32>
    %515 = vector.multi_reduction <add>, %514, %cst_164 [2] : vector<2x4x32xf32> to vector<2x4xf32>
    %cst_165 = arith.constant dense<0xFF800000> : vector<2xf32>
    %516 = vector.multi_reduction <maximumf>, %515, %cst_165 [1] : vector<2x4xf32> to vector<2xf32>
    %517 = vector.shape_cast %516 : vector<2xf32> to vector<2x1xf32>
    %518 = vector.broadcast %517 : vector<2x1xf32> to vector<2x4xf32>
    %519 = arith.subf %515, %518 : vector<2x4xf32>
    %520 = math.exp %519 : vector<2x4xf32>
    %cst_166 = arith.constant dense<0.000000e+00> : vector<2xf32>
    %521 = vector.multi_reduction <add>, %520, %cst_166 [1] : vector<2x4xf32> to vector<2xf32>
    %522 = vector.shape_cast %521 : vector<2xf32> to vector<2x1xf32>
    %523 = vector.broadcast %522 : vector<2x1xf32> to vector<2x4xf32>
    %524 = arith.divf %520, %523 : vector<2x4xf32>
    %525 = vector.shape_cast %524 : vector<2x4xf32> to vector<2x4x1xf32>
    %526 = vector.broadcast %525 : vector<2x4x1xf32> to vector<2x4x16xf32>
    %527 = arith.mulf %526, %5 : vector<2x4x16xf32>
    %cst_167 = arith.constant dense<0.000000e+00> : vector<2x16xf32>
    %528 = vector.multi_reduction <add>, %527, %cst_167 [1] : vector<2x4x16xf32> to vector<2x16xf32>
    %cst_168 = arith.constant dense<0.000000e+00> : vector<2x96xf32>
    %529 = tpu.matmul %454, %18, %cst_168 {dimension_numbers = #tpu.dot_dimension_numbers<[1], [0], [0], [1], [0, 0, 1, 1], [], []>} : vector<2x16xf32>, vector<16x96xf32>, vector<2x96xf32> -> vector<2x96xf32>
    %cst_169 = arith.constant dense<0.000000e+00> : vector<2x96xf32>
    %530 = tpu.matmul %486, %19, %cst_169 {dimension_numbers = #tpu.dot_dimension_numbers<[1], [0], [0], [1], [0, 0, 1, 1], [], []>} : vector<2x32xf32>, vector<32x96xf32>, vector<2x96xf32> -> vector<2x96xf32>
    %531 = arith.addf %529, %530 : vector<2x96xf32>
    %cst_170 = arith.constant dense<0.000000e+00> : vector<2x96xf32>
    %532 = tpu.matmul %507, %20, %cst_170 {dimension_numbers = #tpu.dot_dimension_numbers<[1], [0], [0], [1], [0, 0, 1, 1], [], []>} : vector<2x16xf32>, vector<16x96xf32>, vector<2x96xf32> -> vector<2x96xf32>
    %533 = arith.addf %531, %532 : vector<2x96xf32>
    %cst_171 = arith.constant dense<0.000000e+00> : vector<2x96xf32>
    %534 = tpu.matmul %528, %21, %cst_171 {dimension_numbers = #tpu.dot_dimension_numbers<[1], [0], [0], [1], [0, 0, 1, 1], [], []>} : vector<2x16xf32>, vector<16x96xf32>, vector<2x96xf32> -> vector<2x96xf32>
    %535 = arith.addf %533, %534 : vector<2x96xf32>
    %536 = vector.broadcast %22 : vector<1x96xf32> to vector<2x96xf32>
    %537 = arith.addf %535, %536 : vector<2x96xf32>
    %538 = vector.extract_strided_slice %537 {offsets = [0, 0], sizes = [2, 32], strides = [1, 1]} : vector<2x96xf32> to vector<2x32xf32>
    %539 = vector.extract_strided_slice %461 {offsets = [0, 0], sizes = [2, 32], strides = [1, 1]} : vector<2x96xf32> to vector<2x32xf32>
    %540 = arith.addf %538, %539 : vector<2x32xf32>
    %541 = arith.negf %540 : vector<2x32xf32>
    %542 = math.exp %541 : vector<2x32xf32>
    %cst_172 = arith.constant 1.000000e+00 : f32
    %543 = vector.broadcast %cst_172 : f32 to vector<2x32xf32>
    %544 = arith.addf %543, %542 : vector<2x32xf32>
    %545 = arith.divf %543, %544 : vector<2x32xf32>
    %546 = vector.extract_strided_slice %537 {offsets = [0, 32], sizes = [2, 32], strides = [1, 1]} : vector<2x96xf32> to vector<2x32xf32>
    %547 = vector.extract_strided_slice %461 {offsets = [0, 32], sizes = [2, 32], strides = [1, 1]} : vector<2x96xf32> to vector<2x32xf32>
    %548 = arith.addf %546, %547 : vector<2x32xf32>
    %549 = arith.negf %548 : vector<2x32xf32>
    %550 = math.exp %549 : vector<2x32xf32>
    %cst_173 = arith.constant 1.000000e+00 : f32
    %551 = vector.broadcast %cst_173 : f32 to vector<2x32xf32>
    %552 = arith.addf %551, %550 : vector<2x32xf32>
    %553 = arith.divf %551, %552 : vector<2x32xf32>
    %554 = vector.extract_strided_slice %537 {offsets = [0, 64], sizes = [2, 32], strides = [1, 1]} : vector<2x96xf32> to vector<2x32xf32>
    %555 = vector.extract_strided_slice %461 {offsets = [0, 64], sizes = [2, 32], strides = [1, 1]} : vector<2x96xf32> to vector<2x32xf32>
    %556 = arith.mulf %545, %555 : vector<2x32xf32>
    %557 = arith.addf %554, %556 : vector<2x32xf32>
    %558 = math.tanh %557 : vector<2x32xf32>
    %cst_174 = arith.constant 1.000000e+00 : f32
    %559 = vector.broadcast %cst_174 : f32 to vector<2x32xf32>
    %560 = arith.subf %559, %553 : vector<2x32xf32>
    %561 = arith.mulf %560, %558 : vector<2x32xf32>
    %562 = arith.mulf %553, %451 : vector<2x32xf32>
    %563 = arith.addf %561, %562 : vector<2x32xf32>
    %cst_175 = arith.constant dense<0.000000e+00> : vector<2x96xf32>
    %564 = tpu.matmul %563, %23, %cst_175 {dimension_numbers = #tpu.dot_dimension_numbers<[1], [0], [0], [1], [0, 0, 1, 1], [], []>} : vector<2x32xf32>, vector<32x96xf32>, vector<2x96xf32> -> vector<2x96xf32>
    %565 = vector.broadcast %24 : vector<1x96xf32> to vector<2x96xf32>
    %566 = arith.addf %564, %565 : vector<2x96xf32>
    %567 = vector.extract_strided_slice %566 {offsets = [0, 0], sizes = [2, 64], strides = [1, 1]} : vector<2x96xf32> to vector<2x64xf32>
    %568 = vector.extract_strided_slice %566 {offsets = [0, 64], sizes = [2, 32], strides = [1, 1]} : vector<2x96xf32> to vector<2x32xf32>
    %569 = vector.shape_cast %563 : vector<2x32xf32> to vector<2x1x32xf32>
    %570 = vector.broadcast %569 : vector<2x1x32xf32> to vector<2x8x32xf32>
    %571 = arith.mulf %570, %0 : vector<2x8x32xf32>
    %cst_176 = arith.constant dense<0.000000e+00> : vector<2x8xf32>
    %572 = vector.multi_reduction <add>, %571, %cst_176 [2] : vector<2x8x32xf32> to vector<2x8xf32>
    %573 = vector.shape_cast %568 : vector<2x32xf32> to vector<2x1x32xf32>
    %574 = vector.broadcast %573 : vector<2x1x32xf32> to vector<2x4x32xf32>
    %575 = arith.addf %574, %7 : vector<2x4x32xf32>
    %576 = math.tanh %575 : vector<2x4x32xf32>
    %577 = vector.shape_cast %15 : vector<1x32xf32> to vector<1x1x32xf32>
    %578 = vector.broadcast %577 : vector<1x1x32xf32> to vector<2x4x32xf32>
    %579 = arith.mulf %576, %578 : vector<2x4x32xf32>
    %cst_177 = arith.constant dense<0.000000e+00> : vector<2x4xf32>
    %580 = vector.multi_reduction <add>, %579, %cst_177 [2] : vector<2x4x32xf32> to vector<2x4xf32>
    %581 = vector.shape_cast %568 : vector<2x32xf32> to vector<2x1x32xf32>
    %582 = vector.broadcast %581 : vector<2x1x32xf32> to vector<2x4x32xf32>
    %583 = arith.addf %582, %8 : vector<2x4x32xf32>
    %584 = math.tanh %583 : vector<2x4x32xf32>
    %585 = vector.shape_cast %15 : vector<1x32xf32> to vector<1x1x32xf32>
    %586 = vector.broadcast %585 : vector<1x1x32xf32> to vector<2x4x32xf32>
    %587 = arith.mulf %584, %586 : vector<2x4x32xf32>
    %cst_178 = arith.constant dense<0.000000e+00> : vector<2x4xf32>
    %588 = vector.multi_reduction <add>, %587, %cst_178 [2] : vector<2x4x32xf32> to vector<2x4xf32>
    %cst_179 = arith.constant dense<0xFF800000> : vector<2xf32>
    %589 = vector.multi_reduction <maximumf>, %567, %cst_179 [1] : vector<2x64xf32> to vector<2xf32>
    %590 = vector.shape_cast %589 : vector<2xf32> to vector<2x1xf32>
    %cst_180 = arith.constant dense<0xFF800000> : vector<2xf32>
    %591 = vector.multi_reduction <maximumf>, %572, %cst_180 [1] : vector<2x8xf32> to vector<2xf32>
    %592 = vector.shape_cast %591 : vector<2xf32> to vector<2x1xf32>
    %cst_181 = arith.constant dense<0xFF800000> : vector<2xf32>
    %593 = vector.multi_reduction <maximumf>, %580, %cst_181 [1] : vector<2x4xf32> to vector<2xf32>
    %594 = vector.shape_cast %593 : vector<2xf32> to vector<2x1xf32>
    %cst_182 = arith.constant dense<0xFF800000> : vector<2xf32>
    %595 = vector.multi_reduction <maximumf>, %588, %cst_182 [1] : vector<2x4xf32> to vector<2xf32>
    %596 = vector.shape_cast %595 : vector<2xf32> to vector<2x1xf32>
    %597 = arith.maximumf %594, %596 : vector<2x1xf32>
    %598 = arith.maximumf %592, %597 : vector<2x1xf32>
    %599 = arith.maximumf %590, %598 : vector<2x1xf32>
    %600 = vector.broadcast %599 : vector<2x1xf32> to vector<2x64xf32>
    %601 = arith.subf %567, %600 : vector<2x64xf32>
    %602 = math.exp %601 : vector<2x64xf32>
    %603 = vector.broadcast %599 : vector<2x1xf32> to vector<2x8xf32>
    %604 = arith.subf %572, %603 : vector<2x8xf32>
    %605 = math.exp %604 : vector<2x8xf32>
    %606 = vector.broadcast %599 : vector<2x1xf32> to vector<2x4xf32>
    %607 = arith.subf %580, %606 : vector<2x4xf32>
    %608 = math.exp %607 : vector<2x4xf32>
    %609 = vector.broadcast %599 : vector<2x1xf32> to vector<2x4xf32>
    %610 = arith.subf %588, %609 : vector<2x4xf32>
    %611 = math.exp %610 : vector<2x4xf32>
    %cst_183 = arith.constant dense<0.000000e+00> : vector<2xf32>
    %612 = vector.multi_reduction <add>, %602, %cst_183 [1] : vector<2x64xf32> to vector<2xf32>
    %613 = vector.shape_cast %612 : vector<2xf32> to vector<2x1xf32>
    %cst_184 = arith.constant dense<0.000000e+00> : vector<2xf32>
    %614 = vector.multi_reduction <add>, %605, %cst_184 [1] : vector<2x8xf32> to vector<2xf32>
    %615 = vector.shape_cast %614 : vector<2xf32> to vector<2x1xf32>
    %616 = arith.addf %613, %615 : vector<2x1xf32>
    %cst_185 = arith.constant dense<0.000000e+00> : vector<2xf32>
    %617 = vector.multi_reduction <add>, %608, %cst_185 [1] : vector<2x4xf32> to vector<2xf32>
    %618 = vector.shape_cast %617 : vector<2xf32> to vector<2x1xf32>
    %619 = arith.addf %616, %618 : vector<2x1xf32>
    %cst_186 = arith.constant dense<0.000000e+00> : vector<2xf32>
    %620 = vector.multi_reduction <add>, %611, %cst_186 [1] : vector<2x4xf32> to vector<2xf32>
    %621 = vector.shape_cast %620 : vector<2xf32> to vector<2x1xf32>
    %622 = arith.addf %619, %621 : vector<2x1xf32>
    %623 = tpu.reciprocal %622 {approx = true} : vector<2x1xf32> -> vector<2x1xf32>
    %624 = vector.broadcast %623 : vector<2x1xf32> to vector<2x64xf32>
    %625 = arith.mulf %602, %624 : vector<2x64xf32>
    %626 = vector.broadcast %623 : vector<2x1xf32> to vector<2x8xf32>
    %627 = arith.mulf %605, %626 : vector<2x8xf32>
    %628 = vector.broadcast %623 : vector<2x1xf32> to vector<2x4xf32>
    %629 = arith.mulf %608, %628 : vector<2x4xf32>
    %630 = vector.broadcast %623 : vector<2x1xf32> to vector<2x4xf32>
    %631 = arith.mulf %611, %630 : vector<2x4xf32>
    %632 = vector.shape_cast %629 : vector<2x4xf32> to vector<2x4x1xf32>
    %633 = vector.broadcast %632 : vector<2x4x1xf32> to vector<2x4x64xf32>
    %634 = arith.mulf %633, %9 : vector<2x4x64xf32>
    %cst_187 = arith.constant dense<0.000000e+00> : vector<2x64xf32>
    %635 = vector.multi_reduction <add>, %634, %cst_187 [1] : vector<2x4x64xf32> to vector<2x64xf32>
    %636 = vector.shape_cast %631 : vector<2x4xf32> to vector<2x4x1xf32>
    %637 = vector.broadcast %636 : vector<2x4x1xf32> to vector<2x4x64xf32>
    %638 = arith.mulf %637, %10 : vector<2x4x64xf32>
    %cst_188 = arith.constant dense<0.000000e+00> : vector<2x64xf32>
    %639 = vector.multi_reduction <add>, %638, %cst_188 [1] : vector<2x4x64xf32> to vector<2x64xf32>
    %cst_189 = arith.constant 5.000000e-01 : f32
    %640 = vector.broadcast %cst_189 : f32 to vector<2x64xf32>
    %641 = arith.mulf %640, %635 : vector<2x64xf32>
    %642 = arith.addf %625, %641 : vector<2x64xf32>
    %cst_190 = arith.constant 3.000000e-01 : f32
    %643 = vector.broadcast %cst_190 : f32 to vector<2x64xf32>
    %644 = arith.mulf %643, %639 : vector<2x64xf32>
    %645 = arith.addf %642, %644 : vector<2x64xf32>
    %646 = vector.shape_cast %627 : vector<2x8xf32> to vector<2x8x1xf32>
    %647 = vector.broadcast %646 : vector<2x8x1xf32> to vector<2x8x64xf32>
    %648 = arith.mulf %647, %11 : vector<2x8x64xf32>
    %cst_191 = arith.constant dense<0.000000e+00> : vector<2x64xf32>
    %649 = vector.multi_reduction <add>, %648, %cst_191 [1] : vector<2x8x64xf32> to vector<2x64xf32>
    %650 = arith.addf %645, %649 : vector<2x64xf32>
    %651 = math.log %650 : vector<2x64xf32>
    %cst_192 = arith.constant 5.000000e-01 : f32
    %652 = vector.broadcast %cst_192 : f32 to vector<2x1xf32>
    %653 = arith.cmpf ogt, %457, %652 : vector<2x1xf32>
    %cst_193 = arith.constant 0.000000e+00 : f32
    %654 = vector.shape_cast %653 : vector<2x1xi1> to vector<2x1xi1>
    %655 = vector.broadcast %654 : vector<2x1xi1> to vector<2x64xi1>
    %656 = vector.broadcast %cst_193 : f32 to vector<2x64xf32>
    %657 = arith.select %655, %651, %656 : vector<2x64xi1>, vector<2x64xf32>
    %658 = arith.index_cast %c2_i32 : i32 to index
    %c0_194 = arith.constant 0 : index
    %c0_195 = arith.constant 0 : index
    %659 = vector.load %arg28[%658, %c0_194, %c0_195] : memref<8x2x64xf32, #tpu.memory_space<vmem>>, vector<1x2x64xf32>
    %660 = vector.shape_cast %659 : vector<1x2x64xf32> to vector<2x64xf32>
    %661 = vector.shape_cast %657 : vector<2x64xf32> to vector<1x2x64xf32>
    tpu.vector_store %arg28[%658, %c0_194, %c0_195], %661 {strides = array<i32>} : memref<8x2x64xf32, #tpu.memory_space<vmem>>, vector<1x2x64xf32>,
    %662 = vector.shape_cast %653 : vector<2x1xi1> to vector<2x1xi1>
    %663 = vector.broadcast %662 : vector<2x1xi1> to vector<2x32xi1>
    %664 = arith.select %663, %563, %451 : vector<2x32xi1>, vector<2x32xf32>
    %c3_i32 = arith.constant 3 : i32
    %665 = arith.index_cast %c3_i32 : i32 to index
    %c0_196 = arith.constant 0 : index
    %c0_197 = arith.constant 0 : index
    %666 = vector.load %arg0[%665, %c0_196, %c0_197] : memref<8x2x16xf32, #tpu.memory_space<vmem>>, vector<1x2x16xf32>
    %667 = vector.shape_cast %666 : vector<1x2x16xf32> to vector<2x16xf32>
    %668 = arith.index_cast %c3_i32 : i32 to index
    %c0_198 = arith.constant 0 : index
    %c0_199 = arith.constant 0 : index
    %669 = vector.load %arg1[%668, %c0_198, %c0_199] : memref<8x2x1xf32, #tpu.memory_space<vmem>>, vector<1x2x1xf32>
    %670 = vector.shape_cast %669 : vector<1x2x1xf32> to vector<2x1xf32>
    %cst_200 = arith.constant dense<0.000000e+00> : vector<2x192xf32>
    %671 = tpu.matmul %664, %16, %cst_200 {dimension_numbers = #tpu.dot_dimension_numbers<[1], [0], [0], [1], [0, 0, 1, 1], [], []>} : vector<2x32xf32>, vector<32x192xf32>, vector<2x192xf32> -> vector<2x192xf32>
    %672 = vector.broadcast %17 : vector<1x192xf32> to vector<2x192xf32>
    %673 = arith.addf %671, %672 : vector<2x192xf32>
    %674 = vector.extract_strided_slice %673 {offsets = [0, 0], sizes = [2, 96], strides = [1, 1]} : vector<2x192xf32> to vector<2x96xf32>
    %675 = vector.extract_strided_slice %673 {offsets = [0, 96], sizes = [2, 32], strides = [1, 1]} : vector<2x192xf32> to vector<2x32xf32>
    %676 = vector.extract_strided_slice %673 {offsets = [0, 128], sizes = [2, 32], strides = [1, 1]} : vector<2x192xf32> to vector<2x32xf32>
    %677 = vector.extract_strided_slice %673 {offsets = [0, 160], sizes = [2, 32], strides = [1, 1]} : vector<2x192xf32> to vector<2x32xf32>
    %678 = vector.shape_cast %675 : vector<2x32xf32> to vector<2x1x32xf32>
    %679 = vector.broadcast %678 : vector<2x1x32xf32> to vector<2x8x32xf32>
    %680 = arith.addf %679, %1 : vector<2x8x32xf32>
    %681 = math.tanh %680 : vector<2x8x32xf32>
    %682 = vector.shape_cast %12 : vector<1x32xf32> to vector<1x1x32xf32>
    %683 = vector.broadcast %682 : vector<1x1x32xf32> to vector<2x8x32xf32>
    %684 = arith.mulf %681, %683 : vector<2x8x32xf32>
    %cst_201 = arith.constant dense<0.000000e+00> : vector<2x8xf32>
    %685 = vector.multi_reduction <add>, %684, %cst_201 [2] : vector<2x8x32xf32> to vector<2x8xf32>
    %686 = arith.addf %685, %2 : vector<2x8xf32>
    %cst_202 = arith.constant dense<0xFF800000> : vector<2xf32>
    %687 = vector.multi_reduction <maximumf>, %686, %cst_202 [1] : vector<2x8xf32> to vector<2xf32>
    %688 = vector.shape_cast %687 : vector<2xf32> to vector<2x1xf32>
    %689 = vector.broadcast %688 : vector<2x1xf32> to vector<2x8xf32>
    %690 = arith.subf %686, %689 : vector<2x8xf32>
    %691 = math.exp %690 : vector<2x8xf32>
    %cst_203 = arith.constant dense<0.000000e+00> : vector<2xf32>
    %692 = vector.multi_reduction <add>, %691, %cst_203 [1] : vector<2x8xf32> to vector<2xf32>
    %693 = vector.shape_cast %692 : vector<2xf32> to vector<2x1xf32>
    %694 = vector.broadcast %693 : vector<2x1xf32> to vector<2x8xf32>
    %695 = arith.divf %691, %694 : vector<2x8xf32>
    %696 = vector.shape_cast %695 : vector<2x8xf32> to vector<2x8x1xf32>
    %697 = vector.broadcast %696 : vector<2x8x1xf32> to vector<2x8x32xf32>
    %698 = arith.mulf %697, %0 : vector<2x8x32xf32>
    %cst_204 = arith.constant dense<0.000000e+00> : vector<2x32xf32>
    %699 = vector.multi_reduction <add>, %698, %cst_204 [1] : vector<2x8x32xf32> to vector<2x32xf32>
    %700 = vector.shape_cast %676 : vector<2x32xf32> to vector<2x1x32xf32>
    %701 = vector.broadcast %700 : vector<2x1x32xf32> to vector<2x4x32xf32>
    %702 = arith.addf %701, %4 : vector<2x4x32xf32>
    %703 = math.tanh %702 : vector<2x4x32xf32>
    %704 = vector.shape_cast %13 : vector<1x32xf32> to vector<1x1x32xf32>
    %705 = vector.broadcast %704 : vector<1x1x32xf32> to vector<2x4x32xf32>
    %706 = arith.mulf %703, %705 : vector<2x4x32xf32>
    %cst_205 = arith.constant dense<0.000000e+00> : vector<2x4xf32>
    %707 = vector.multi_reduction <add>, %706, %cst_205 [2] : vector<2x4x32xf32> to vector<2x4xf32>
    %cst_206 = arith.constant dense<0xFF800000> : vector<2xf32>
    %708 = vector.multi_reduction <maximumf>, %707, %cst_206 [1] : vector<2x4xf32> to vector<2xf32>
    %709 = vector.shape_cast %708 : vector<2xf32> to vector<2x1xf32>
    %710 = vector.broadcast %709 : vector<2x1xf32> to vector<2x4xf32>
    %711 = arith.subf %707, %710 : vector<2x4xf32>
    %712 = math.exp %711 : vector<2x4xf32>
    %cst_207 = arith.constant dense<0.000000e+00> : vector<2xf32>
    %713 = vector.multi_reduction <add>, %712, %cst_207 [1] : vector<2x4xf32> to vector<2xf32>
    %714 = vector.shape_cast %713 : vector<2xf32> to vector<2x1xf32>
    %715 = vector.broadcast %714 : vector<2x1xf32> to vector<2x4xf32>
    %716 = arith.divf %712, %715 : vector<2x4xf32>
    %717 = vector.shape_cast %716 : vector<2x4xf32> to vector<2x4x1xf32>
    %718 = vector.broadcast %717 : vector<2x4x1xf32> to vector<2x4x16xf32>
    %719 = arith.mulf %718, %3 : vector<2x4x16xf32>
    %cst_208 = arith.constant dense<0.000000e+00> : vector<2x16xf32>
    %720 = vector.multi_reduction <add>, %719, %cst_208 [1] : vector<2x4x16xf32> to vector<2x16xf32>
    %721 = vector.shape_cast %677 : vector<2x32xf32> to vector<2x1x32xf32>
    %722 = vector.broadcast %721 : vector<2x1x32xf32> to vector<2x4x32xf32>
    %723 = arith.addf %722, %6 : vector<2x4x32xf32>
    %724 = math.tanh %723 : vector<2x4x32xf32>
    %725 = vector.shape_cast %14 : vector<1x32xf32> to vector<1x1x32xf32>
    %726 = vector.broadcast %725 : vector<1x1x32xf32> to vector<2x4x32xf32>
    %727 = arith.mulf %724, %726 : vector<2x4x32xf32>
    %cst_209 = arith.constant dense<0.000000e+00> : vector<2x4xf32>
    %728 = vector.multi_reduction <add>, %727, %cst_209 [2] : vector<2x4x32xf32> to vector<2x4xf32>
    %cst_210 = arith.constant dense<0xFF800000> : vector<2xf32>
    %729 = vector.multi_reduction <maximumf>, %728, %cst_210 [1] : vector<2x4xf32> to vector<2xf32>
    %730 = vector.shape_cast %729 : vector<2xf32> to vector<2x1xf32>
    %731 = vector.broadcast %730 : vector<2x1xf32> to vector<2x4xf32>
    %732 = arith.subf %728, %731 : vector<2x4xf32>
    %733 = math.exp %732 : vector<2x4xf32>
    %cst_211 = arith.constant dense<0.000000e+00> : vector<2xf32>
    %734 = vector.multi_reduction <add>, %733, %cst_211 [1] : vector<2x4xf32> to vector<2xf32>
    %735 = vector.shape_cast %734 : vector<2xf32> to vector<2x1xf32>
    %736 = vector.broadcast %735 : vector<2x1xf32> to vector<2x4xf32>
    %737 = arith.divf %733, %736 : vector<2x4xf32>
    %738 = vector.shape_cast %737 : vector<2x4xf32> to vector<2x4x1xf32>
    %739 = vector.broadcast %738 : vector<2x4x1xf32> to vector<2x4x16xf32>
    %740 = arith.mulf %739, %5 : vector<2x4x16xf32>
    %cst_212 = arith.constant dense<0.000000e+00> : vector<2x16xf32>
    %741 = vector.multi_reduction <add>, %740, %cst_212 [1] : vector<2x4x16xf32> to vector<2x16xf32>
    %cst_213 = arith.constant dense<0.000000e+00> : vector<2x96xf32>
    %742 = tpu.matmul %667, %18, %cst_213 {dimension_numbers = #tpu.dot_dimension_numbers<[1], [0], [0], [1], [0, 0, 1, 1], [], []>} : vector<2x16xf32>, vector<16x96xf32>, vector<2x96xf32> -> vector<2x96xf32>
    %cst_214 = arith.constant dense<0.000000e+00> : vector<2x96xf32>
    %743 = tpu.matmul %699, %19, %cst_214 {dimension_numbers = #tpu.dot_dimension_numbers<[1], [0], [0], [1], [0, 0, 1, 1], [], []>} : vector<2x32xf32>, vector<32x96xf32>, vector<2x96xf32> -> vector<2x96xf32>
    %744 = arith.addf %742, %743 : vector<2x96xf32>
    %cst_215 = arith.constant dense<0.000000e+00> : vector<2x96xf32>
    %745 = tpu.matmul %720, %20, %cst_215 {dimension_numbers = #tpu.dot_dimension_numbers<[1], [0], [0], [1], [0, 0, 1, 1], [], []>} : vector<2x16xf32>, vector<16x96xf32>, vector<2x96xf32> -> vector<2x96xf32>
    %746 = arith.addf %744, %745 : vector<2x96xf32>
    %cst_216 = arith.constant dense<0.000000e+00> : vector<2x96xf32>
    %747 = tpu.matmul %741, %21, %cst_216 {dimension_numbers = #tpu.dot_dimension_numbers<[1], [0], [0], [1], [0, 0, 1, 1], [], []>} : vector<2x16xf32>, vector<16x96xf32>, vector<2x96xf32> -> vector<2x96xf32>
    %748 = arith.addf %746, %747 : vector<2x96xf32>
    %749 = vector.broadcast %22 : vector<1x96xf32> to vector<2x96xf32>
    %750 = arith.addf %748, %749 : vector<2x96xf32>
    %751 = vector.extract_strided_slice %750 {offsets = [0, 0], sizes = [2, 32], strides = [1, 1]} : vector<2x96xf32> to vector<2x32xf32>
    %752 = vector.extract_strided_slice %674 {offsets = [0, 0], sizes = [2, 32], strides = [1, 1]} : vector<2x96xf32> to vector<2x32xf32>
    %753 = arith.addf %751, %752 : vector<2x32xf32>
    %754 = arith.negf %753 : vector<2x32xf32>
    %755 = math.exp %754 : vector<2x32xf32>
    %cst_217 = arith.constant 1.000000e+00 : f32
    %756 = vector.broadcast %cst_217 : f32 to vector<2x32xf32>
    %757 = arith.addf %756, %755 : vector<2x32xf32>
    %758 = arith.divf %756, %757 : vector<2x32xf32>
    %759 = vector.extract_strided_slice %750 {offsets = [0, 32], sizes = [2, 32], strides = [1, 1]} : vector<2x96xf32> to vector<2x32xf32>
    %760 = vector.extract_strided_slice %674 {offsets = [0, 32], sizes = [2, 32], strides = [1, 1]} : vector<2x96xf32> to vector<2x32xf32>
    %761 = arith.addf %759, %760 : vector<2x32xf32>
    %762 = arith.negf %761 : vector<2x32xf32>
    %763 = math.exp %762 : vector<2x32xf32>
    %cst_218 = arith.constant 1.000000e+00 : f32
    %764 = vector.broadcast %cst_218 : f32 to vector<2x32xf32>
    %765 = arith.addf %764, %763 : vector<2x32xf32>
    %766 = arith.divf %764, %765 : vector<2x32xf32>
    %767 = vector.extract_strided_slice %750 {offsets = [0, 64], sizes = [2, 32], strides = [1, 1]} : vector<2x96xf32> to vector<2x32xf32>
    %768 = vector.extract_strided_slice %674 {offsets = [0, 64], sizes = [2, 32], strides = [1, 1]} : vector<2x96xf32> to vector<2x32xf32>
    %769 = arith.mulf %758, %768 : vector<2x32xf32>
    %770 = arith.addf %767, %769 : vector<2x32xf32>
    %771 = math.tanh %770 : vector<2x32xf32>
    %cst_219 = arith.constant 1.000000e+00 : f32
    %772 = vector.broadcast %cst_219 : f32 to vector<2x32xf32>
    %773 = arith.subf %772, %766 : vector<2x32xf32>
    %774 = arith.mulf %773, %771 : vector<2x32xf32>
    %775 = arith.mulf %766, %664 : vector<2x32xf32>
    %776 = arith.addf %774, %775 : vector<2x32xf32>
    %cst_220 = arith.constant dense<0.000000e+00> : vector<2x96xf32>
    %777 = tpu.matmul %776, %23, %cst_220 {dimension_numbers = #tpu.dot_dimension_numbers<[1], [0], [0], [1], [0, 0, 1, 1], [], []>} : vector<2x32xf32>, vector<32x96xf32>, vector<2x96xf32> -> vector<2x96xf32>
    %778 = vector.broadcast %24 : vector<1x96xf32> to vector<2x96xf32>
    %779 = arith.addf %777, %778 : vector<2x96xf32>
    %780 = vector.extract_strided_slice %779 {offsets = [0, 0], sizes = [2, 64], strides = [1, 1]} : vector<2x96xf32> to vector<2x64xf32>
    %781 = vector.extract_strided_slice %779 {offsets = [0, 64], sizes = [2, 32], strides = [1, 1]} : vector<2x96xf32> to vector<2x32xf32>
    %782 = vector.shape_cast %776 : vector<2x32xf32> to vector<2x1x32xf32>
    %783 = vector.broadcast %782 : vector<2x1x32xf32> to vector<2x8x32xf32>
    %784 = arith.mulf %783, %0 : vector<2x8x32xf32>
    %cst_221 = arith.constant dense<0.000000e+00> : vector<2x8xf32>
    %785 = vector.multi_reduction <add>, %784, %cst_221 [2] : vector<2x8x32xf32> to vector<2x8xf32>
    %786 = vector.shape_cast %781 : vector<2x32xf32> to vector<2x1x32xf32>
    %787 = vector.broadcast %786 : vector<2x1x32xf32> to vector<2x4x32xf32>
    %788 = arith.addf %787, %7 : vector<2x4x32xf32>
    %789 = math.tanh %788 : vector<2x4x32xf32>
    %790 = vector.shape_cast %15 : vector<1x32xf32> to vector<1x1x32xf32>
    %791 = vector.broadcast %790 : vector<1x1x32xf32> to vector<2x4x32xf32>
    %792 = arith.mulf %789, %791 : vector<2x4x32xf32>
    %cst_222 = arith.constant dense<0.000000e+00> : vector<2x4xf32>
    %793 = vector.multi_reduction <add>, %792, %cst_222 [2] : vector<2x4x32xf32> to vector<2x4xf32>
    %794 = vector.shape_cast %781 : vector<2x32xf32> to vector<2x1x32xf32>
    %795 = vector.broadcast %794 : vector<2x1x32xf32> to vector<2x4x32xf32>
    %796 = arith.addf %795, %8 : vector<2x4x32xf32>
    %797 = math.tanh %796 : vector<2x4x32xf32>
    %798 = vector.shape_cast %15 : vector<1x32xf32> to vector<1x1x32xf32>
    %799 = vector.broadcast %798 : vector<1x1x32xf32> to vector<2x4x32xf32>
    %800 = arith.mulf %797, %799 : vector<2x4x32xf32>
    %cst_223 = arith.constant dense<0.000000e+00> : vector<2x4xf32>
    %801 = vector.multi_reduction <add>, %800, %cst_223 [2] : vector<2x4x32xf32> to vector<2x4xf32>
    %cst_224 = arith.constant dense<0xFF800000> : vector<2xf32>
    %802 = vector.multi_reduction <maximumf>, %780, %cst_224 [1] : vector<2x64xf32> to vector<2xf32>
    %803 = vector.shape_cast %802 : vector<2xf32> to vector<2x1xf32>
    %cst_225 = arith.constant dense<0xFF800000> : vector<2xf32>
    %804 = vector.multi_reduction <maximumf>, %785, %cst_225 [1] : vector<2x8xf32> to vector<2xf32>
    %805 = vector.shape_cast %804 : vector<2xf32> to vector<2x1xf32>
    %cst_226 = arith.constant dense<0xFF800000> : vector<2xf32>
    %806 = vector.multi_reduction <maximumf>, %793, %cst_226 [1] : vector<2x4xf32> to vector<2xf32>
    %807 = vector.shape_cast %806 : vector<2xf32> to vector<2x1xf32>
    %cst_227 = arith.constant dense<0xFF800000> : vector<2xf32>
    %808 = vector.multi_reduction <maximumf>, %801, %cst_227 [1] : vector<2x4xf32> to vector<2xf32>
    %809 = vector.shape_cast %808 : vector<2xf32> to vector<2x1xf32>
    %810 = arith.maximumf %807, %809 : vector<2x1xf32>
    %811 = arith.maximumf %805, %810 : vector<2x1xf32>
    %812 = arith.maximumf %803, %811 : vector<2x1xf32>
    %813 = vector.broadcast %812 : vector<2x1xf32> to vector<2x64xf32>
    %814 = arith.subf %780, %813 : vector<2x64xf32>
    %815 = math.exp %814 : vector<2x64xf32>
    %816 = vector.broadcast %812 : vector<2x1xf32> to vector<2x8xf32>
    %817 = arith.subf %785, %816 : vector<2x8xf32>
    %818 = math.exp %817 : vector<2x8xf32>
    %819 = vector.broadcast %812 : vector<2x1xf32> to vector<2x4xf32>
    %820 = arith.subf %793, %819 : vector<2x4xf32>
    %821 = math.exp %820 : vector<2x4xf32>
    %822 = vector.broadcast %812 : vector<2x1xf32> to vector<2x4xf32>
    %823 = arith.subf %801, %822 : vector<2x4xf32>
    %824 = math.exp %823 : vector<2x4xf32>
    %cst_228 = arith.constant dense<0.000000e+00> : vector<2xf32>
    %825 = vector.multi_reduction <add>, %815, %cst_228 [1] : vector<2x64xf32> to vector<2xf32>
    %826 = vector.shape_cast %825 : vector<2xf32> to vector<2x1xf32>
    %cst_229 = arith.constant dense<0.000000e+00> : vector<2xf32>
    %827 = vector.multi_reduction <add>, %818, %cst_229 [1] : vector<2x8xf32> to vector<2xf32>
    %828 = vector.shape_cast %827 : vector<2xf32> to vector<2x1xf32>
    %829 = arith.addf %826, %828 : vector<2x1xf32>
    %cst_230 = arith.constant dense<0.000000e+00> : vector<2xf32>
    %830 = vector.multi_reduction <add>, %821, %cst_230 [1] : vector<2x4xf32> to vector<2xf32>
    %831 = vector.shape_cast %830 : vector<2xf32> to vector<2x1xf32>
    %832 = arith.addf %829, %831 : vector<2x1xf32>
    %cst_231 = arith.constant dense<0.000000e+00> : vector<2xf32>
    %833 = vector.multi_reduction <add>, %824, %cst_231 [1] : vector<2x4xf32> to vector<2xf32>
    %834 = vector.shape_cast %833 : vector<2xf32> to vector<2x1xf32>
    %835 = arith.addf %832, %834 : vector<2x1xf32>
    %836 = tpu.reciprocal %835 {approx = true} : vector<2x1xf32> -> vector<2x1xf32>
    %837 = vector.broadcast %836 : vector<2x1xf32> to vector<2x64xf32>
    %838 = arith.mulf %815, %837 : vector<2x64xf32>
    %839 = vector.broadcast %836 : vector<2x1xf32> to vector<2x8xf32>
    %840 = arith.mulf %818, %839 : vector<2x8xf32>
    %841 = vector.broadcast %836 : vector<2x1xf32> to vector<2x4xf32>
    %842 = arith.mulf %821, %841 : vector<2x4xf32>
    %843 = vector.broadcast %836 : vector<2x1xf32> to vector<2x4xf32>
    %844 = arith.mulf %824, %843 : vector<2x4xf32>
    %845 = vector.shape_cast %842 : vector<2x4xf32> to vector<2x4x1xf32>
    %846 = vector.broadcast %845 : vector<2x4x1xf32> to vector<2x4x64xf32>
    %847 = arith.mulf %846, %9 : vector<2x4x64xf32>
    %cst_232 = arith.constant dense<0.000000e+00> : vector<2x64xf32>
    %848 = vector.multi_reduction <add>, %847, %cst_232 [1] : vector<2x4x64xf32> to vector<2x64xf32>
    %849 = vector.shape_cast %844 : vector<2x4xf32> to vector<2x4x1xf32>
    %850 = vector.broadcast %849 : vector<2x4x1xf32> to vector<2x4x64xf32>
    %851 = arith.mulf %850, %10 : vector<2x4x64xf32>
    %cst_233 = arith.constant dense<0.000000e+00> : vector<2x64xf32>
    %852 = vector.multi_reduction <add>, %851, %cst_233 [1] : vector<2x4x64xf32> to vector<2x64xf32>
    %cst_234 = arith.constant 5.000000e-01 : f32
    %853 = vector.broadcast %cst_234 : f32 to vector<2x64xf32>
    %854 = arith.mulf %853, %848 : vector<2x64xf32>
    %855 = arith.addf %838, %854 : vector<2x64xf32>
    %cst_235 = arith.constant 3.000000e-01 : f32
    %856 = vector.broadcast %cst_235 : f32 to vector<2x64xf32>
    %857 = arith.mulf %856, %852 : vector<2x64xf32>
    %858 = arith.addf %855, %857 : vector<2x64xf32>
    %859 = vector.shape_cast %840 : vector<2x8xf32> to vector<2x8x1xf32>
    %860 = vector.broadcast %859 : vector<2x8x1xf32> to vector<2x8x64xf32>
    %861 = arith.mulf %860, %11 : vector<2x8x64xf32>
    %cst_236 = arith.constant dense<0.000000e+00> : vector<2x64xf32>
    %862 = vector.multi_reduction <add>, %861, %cst_236 [1] : vector<2x8x64xf32> to vector<2x64xf32>
    %863 = arith.addf %858, %862 : vector<2x64xf32>
    %864 = math.log %863 : vector<2x64xf32>
    %cst_237 = arith.constant 5.000000e-01 : f32
    %865 = vector.broadcast %cst_237 : f32 to vector<2x1xf32>
    %866 = arith.cmpf ogt, %670, %865 : vector<2x1xf32>
    %cst_238 = arith.constant 0.000000e+00 : f32
    %867 = vector.shape_cast %866 : vector<2x1xi1> to vector<2x1xi1>
    %868 = vector.broadcast %867 : vector<2x1xi1> to vector<2x64xi1>
    %869 = vector.broadcast %cst_238 : f32 to vector<2x64xf32>
    %870 = arith.select %868, %864, %869 : vector<2x64xi1>, vector<2x64xf32>
    %871 = arith.index_cast %c3_i32 : i32 to index
    %c0_239 = arith.constant 0 : index
    %c0_240 = arith.constant 0 : index
    %872 = vector.load %arg28[%871, %c0_239, %c0_240] : memref<8x2x64xf32, #tpu.memory_space<vmem>>, vector<1x2x64xf32>
    %873 = vector.shape_cast %872 : vector<1x2x64xf32> to vector<2x64xf32>
    %874 = vector.shape_cast %870 : vector<2x64xf32> to vector<1x2x64xf32>
    tpu.vector_store %arg28[%871, %c0_239, %c0_240], %874 {strides = array<i32>} : memref<8x2x64xf32, #tpu.memory_space<vmem>>, vector<1x2x64xf32>,
    %875 = vector.shape_cast %866 : vector<2x1xi1> to vector<2x1xi1>
    %876 = vector.broadcast %875 : vector<2x1xi1> to vector<2x32xi1>
    %877 = arith.select %876, %776, %664 : vector<2x32xi1>, vector<2x32xf32>
    %c4_i32 = arith.constant 4 : i32
    %878 = arith.index_cast %c4_i32 : i32 to index
    %c0_241 = arith.constant 0 : index
    %c0_242 = arith.constant 0 : index
    %879 = vector.load %arg0[%878, %c0_241, %c0_242] : memref<8x2x16xf32, #tpu.memory_space<vmem>>, vector<1x2x16xf32>
    %880 = vector.shape_cast %879 : vector<1x2x16xf32> to vector<2x16xf32>
    %881 = arith.index_cast %c4_i32 : i32 to index
    %c0_243 = arith.constant 0 : index
    %c0_244 = arith.constant 0 : index
    %882 = vector.load %arg1[%881, %c0_243, %c0_244] : memref<8x2x1xf32, #tpu.memory_space<vmem>>, vector<1x2x1xf32>
    %883 = vector.shape_cast %882 : vector<1x2x1xf32> to vector<2x1xf32>
    %cst_245 = arith.constant dense<0.000000e+00> : vector<2x192xf32>
    %884 = tpu.matmul %877, %16, %cst_245 {dimension_numbers = #tpu.dot_dimension_numbers<[1], [0], [0], [1], [0, 0, 1, 1], [], []>} : vector<2x32xf32>, vector<32x192xf32>, vector<2x192xf32> -> vector<2x192xf32>
    %885 = vector.broadcast %17 : vector<1x192xf32> to vector<2x192xf32>
    %886 = arith.addf %884, %885 : vector<2x192xf32>
    %887 = vector.extract_strided_slice %886 {offsets = [0, 0], sizes = [2, 96], strides = [1, 1]} : vector<2x192xf32> to vector<2x96xf32>
    %888 = vector.extract_strided_slice %886 {offsets = [0, 96], sizes = [2, 32], strides = [1, 1]} : vector<2x192xf32> to vector<2x32xf32>
    %889 = vector.extract_strided_slice %886 {offsets = [0, 128], sizes = [2, 32], strides = [1, 1]} : vector<2x192xf32> to vector<2x32xf32>
    %890 = vector.extract_strided_slice %886 {offsets = [0, 160], sizes = [2, 32], strides = [1, 1]} : vector<2x192xf32> to vector<2x32xf32>
    %891 = vector.shape_cast %888 : vector<2x32xf32> to vector<2x1x32xf32>
    %892 = vector.broadcast %891 : vector<2x1x32xf32> to vector<2x8x32xf32>
    %893 = arith.addf %892, %1 : vector<2x8x32xf32>
    %894 = math.tanh %893 : vector<2x8x32xf32>
    %895 = vector.shape_cast %12 : vector<1x32xf32> to vector<1x1x32xf32>
    %896 = vector.broadcast %895 : vector<1x1x32xf32> to vector<2x8x32xf32>
    %897 = arith.mulf %894, %896 : vector<2x8x32xf32>
    %cst_246 = arith.constant dense<0.000000e+00> : vector<2x8xf32>
    %898 = vector.multi_reduction <add>, %897, %cst_246 [2] : vector<2x8x32xf32> to vector<2x8xf32>
    %899 = arith.addf %898, %2 : vector<2x8xf32>
    %cst_247 = arith.constant dense<0xFF800000> : vector<2xf32>
    %900 = vector.multi_reduction <maximumf>, %899, %cst_247 [1] : vector<2x8xf32> to vector<2xf32>
    %901 = vector.shape_cast %900 : vector<2xf32> to vector<2x1xf32>
    %902 = vector.broadcast %901 : vector<2x1xf32> to vector<2x8xf32>
    %903 = arith.subf %899, %902 : vector<2x8xf32>
    %904 = math.exp %903 : vector<2x8xf32>
    %cst_248 = arith.constant dense<0.000000e+00> : vector<2xf32>
    %905 = vector.multi_reduction <add>, %904, %cst_248 [1] : vector<2x8xf32> to vector<2xf32>
    %906 = vector.shape_cast %905 : vector<2xf32> to vector<2x1xf32>
    %907 = vector.broadcast %906 : vector<2x1xf32> to vector<2x8xf32>
    %908 = arith.divf %904, %907 : vector<2x8xf32>
    %909 = vector.shape_cast %908 : vector<2x8xf32> to vector<2x8x1xf32>
    %910 = vector.broadcast %909 : vector<2x8x1xf32> to vector<2x8x32xf32>
    %911 = arith.mulf %910, %0 : vector<2x8x32xf32>
    %cst_249 = arith.constant dense<0.000000e+00> : vector<2x32xf32>
    %912 = vector.multi_reduction <add>, %911, %cst_249 [1] : vector<2x8x32xf32> to vector<2x32xf32>
    %913 = vector.shape_cast %889 : vector<2x32xf32> to vector<2x1x32xf32>
    %914 = vector.broadcast %913 : vector<2x1x32xf32> to vector<2x4x32xf32>
    %915 = arith.addf %914, %4 : vector<2x4x32xf32>
    %916 = math.tanh %915 : vector<2x4x32xf32>
    %917 = vector.shape_cast %13 : vector<1x32xf32> to vector<1x1x32xf32>
    %918 = vector.broadcast %917 : vector<1x1x32xf32> to vector<2x4x32xf32>
    %919 = arith.mulf %916, %918 : vector<2x4x32xf32>
    %cst_250 = arith.constant dense<0.000000e+00> : vector<2x4xf32>
    %920 = vector.multi_reduction <add>, %919, %cst_250 [2] : vector<2x4x32xf32> to vector<2x4xf32>
    %cst_251 = arith.constant dense<0xFF800000> : vector<2xf32>
    %921 = vector.multi_reduction <maximumf>, %920, %cst_251 [1] : vector<2x4xf32> to vector<2xf32>
    %922 = vector.shape_cast %921 : vector<2xf32> to vector<2x1xf32>
    %923 = vector.broadcast %922 : vector<2x1xf32> to vector<2x4xf32>
    %924 = arith.subf %920, %923 : vector<2x4xf32>
    %925 = math.exp %924 : vector<2x4xf32>
    %cst_252 = arith.constant dense<0.000000e+00> : vector<2xf32>
    %926 = vector.multi_reduction <add>, %925, %cst_252 [1] : vector<2x4xf32> to vector<2xf32>
    %927 = vector.shape_cast %926 : vector<2xf32> to vector<2x1xf32>
    %928 = vector.broadcast %927 : vector<2x1xf32> to vector<2x4xf32>
    %929 = arith.divf %925, %928 : vector<2x4xf32>
    %930 = vector.shape_cast %929 : vector<2x4xf32> to vector<2x4x1xf32>
    %931 = vector.broadcast %930 : vector<2x4x1xf32> to vector<2x4x16xf32>
    %932 = arith.mulf %931, %3 : vector<2x4x16xf32>
    %cst_253 = arith.constant dense<0.000000e+00> : vector<2x16xf32>
    %933 = vector.multi_reduction <add>, %932, %cst_253 [1] : vector<2x4x16xf32> to vector<2x16xf32>
    %934 = vector.shape_cast %890 : vector<2x32xf32> to vector<2x1x32xf32>
    %935 = vector.broadcast %934 : vector<2x1x32xf32> to vector<2x4x32xf32>
    %936 = arith.addf %935, %6 : vector<2x4x32xf32>
    %937 = math.tanh %936 : vector<2x4x32xf32>
    %938 = vector.shape_cast %14 : vector<1x32xf32> to vector<1x1x32xf32>
    %939 = vector.broadcast %938 : vector<1x1x32xf32> to vector<2x4x32xf32>
    %940 = arith.mulf %937, %939 : vector<2x4x32xf32>
    %cst_254 = arith.constant dense<0.000000e+00> : vector<2x4xf32>
    %941 = vector.multi_reduction <add>, %940, %cst_254 [2] : vector<2x4x32xf32> to vector<2x4xf32>
    %cst_255 = arith.constant dense<0xFF800000> : vector<2xf32>
    %942 = vector.multi_reduction <maximumf>, %941, %cst_255 [1] : vector<2x4xf32> to vector<2xf32>
    %943 = vector.shape_cast %942 : vector<2xf32> to vector<2x1xf32>
    %944 = vector.broadcast %943 : vector<2x1xf32> to vector<2x4xf32>
    %945 = arith.subf %941, %944 : vector<2x4xf32>
    %946 = math.exp %945 : vector<2x4xf32>
    %cst_256 = arith.constant dense<0.000000e+00> : vector<2xf32>
    %947 = vector.multi_reduction <add>, %946, %cst_256 [1] : vector<2x4xf32> to vector<2xf32>
    %948 = vector.shape_cast %947 : vector<2xf32> to vector<2x1xf32>
    %949 = vector.broadcast %948 : vector<2x1xf32> to vector<2x4xf32>
    %950 = arith.divf %946, %949 : vector<2x4xf32>
    %951 = vector.shape_cast %950 : vector<2x4xf32> to vector<2x4x1xf32>
    %952 = vector.broadcast %951 : vector<2x4x1xf32> to vector<2x4x16xf32>
    %953 = arith.mulf %952, %5 : vector<2x4x16xf32>
    %cst_257 = arith.constant dense<0.000000e+00> : vector<2x16xf32>
    %954 = vector.multi_reduction <add>, %953, %cst_257 [1] : vector<2x4x16xf32> to vector<2x16xf32>
    %cst_258 = arith.constant dense<0.000000e+00> : vector<2x96xf32>
    %955 = tpu.matmul %880, %18, %cst_258 {dimension_numbers = #tpu.dot_dimension_numbers<[1], [0], [0], [1], [0, 0, 1, 1], [], []>} : vector<2x16xf32>, vector<16x96xf32>, vector<2x96xf32> -> vector<2x96xf32>
    %cst_259 = arith.constant dense<0.000000e+00> : vector<2x96xf32>
    %956 = tpu.matmul %912, %19, %cst_259 {dimension_numbers = #tpu.dot_dimension_numbers<[1], [0], [0], [1], [0, 0, 1, 1], [], []>} : vector<2x32xf32>, vector<32x96xf32>, vector<2x96xf32> -> vector<2x96xf32>
    %957 = arith.addf %955, %956 : vector<2x96xf32>
    %cst_260 = arith.constant dense<0.000000e+00> : vector<2x96xf32>
    %958 = tpu.matmul %933, %20, %cst_260 {dimension_numbers = #tpu.dot_dimension_numbers<[1], [0], [0], [1], [0, 0, 1, 1], [], []>} : vector<2x16xf32>, vector<16x96xf32>, vector<2x96xf32> -> vector<2x96xf32>
    %959 = arith.addf %957, %958 : vector<2x96xf32>
    %cst_261 = arith.constant dense<0.000000e+00> : vector<2x96xf32>
    %960 = tpu.matmul %954, %21, %cst_261 {dimension_numbers = #tpu.dot_dimension_numbers<[1], [0], [0], [1], [0, 0, 1, 1], [], []>} : vector<2x16xf32>, vector<16x96xf32>, vector<2x96xf32> -> vector<2x96xf32>
    %961 = arith.addf %959, %960 : vector<2x96xf32>
    %962 = vector.broadcast %22 : vector<1x96xf32> to vector<2x96xf32>
    %963 = arith.addf %961, %962 : vector<2x96xf32>
    %964 = vector.extract_strided_slice %963 {offsets = [0, 0], sizes = [2, 32], strides = [1, 1]} : vector<2x96xf32> to vector<2x32xf32>
    %965 = vector.extract_strided_slice %887 {offsets = [0, 0], sizes = [2, 32], strides = [1, 1]} : vector<2x96xf32> to vector<2x32xf32>
    %966 = arith.addf %964, %965 : vector<2x32xf32>
    %967 = arith.negf %966 : vector<2x32xf32>
    %968 = math.exp %967 : vector<2x32xf32>
    %cst_262 = arith.constant 1.000000e+00 : f32
    %969 = vector.broadcast %cst_262 : f32 to vector<2x32xf32>
    %970 = arith.addf %969, %968 : vector<2x32xf32>
    %971 = arith.divf %969, %970 : vector<2x32xf32>
    %972 = vector.extract_strided_slice %963 {offsets = [0, 32], sizes = [2, 32], strides = [1, 1]} : vector<2x96xf32> to vector<2x32xf32>
    %973 = vector.extract_strided_slice %887 {offsets = [0, 32], sizes = [2, 32], strides = [1, 1]} : vector<2x96xf32> to vector<2x32xf32>
    %974 = arith.addf %972, %973 : vector<2x32xf32>
    %975 = arith.negf %974 : vector<2x32xf32>
    %976 = math.exp %975 : vector<2x32xf32>
    %cst_263 = arith.constant 1.000000e+00 : f32
    %977 = vector.broadcast %cst_263 : f32 to vector<2x32xf32>
    %978 = arith.addf %977, %976 : vector<2x32xf32>
    %979 = arith.divf %977, %978 : vector<2x32xf32>
    %980 = vector.extract_strided_slice %963 {offsets = [0, 64], sizes = [2, 32], strides = [1, 1]} : vector<2x96xf32> to vector<2x32xf32>
    %981 = vector.extract_strided_slice %887 {offsets = [0, 64], sizes = [2, 32], strides = [1, 1]} : vector<2x96xf32> to vector<2x32xf32>
    %982 = arith.mulf %971, %981 : vector<2x32xf32>
    %983 = arith.addf %980, %982 : vector<2x32xf32>
    %984 = math.tanh %983 : vector<2x32xf32>
    %cst_264 = arith.constant 1.000000e+00 : f32
    %985 = vector.broadcast %cst_264 : f32 to vector<2x32xf32>
    %986 = arith.subf %985, %979 : vector<2x32xf32>
    %987 = arith.mulf %986, %984 : vector<2x32xf32>
    %988 = arith.mulf %979, %877 : vector<2x32xf32>
    %989 = arith.addf %987, %988 : vector<2x32xf32>
    %cst_265 = arith.constant dense<0.000000e+00> : vector<2x96xf32>
    %990 = tpu.matmul %989, %23, %cst_265 {dimension_numbers = #tpu.dot_dimension_numbers<[1], [0], [0], [1], [0, 0, 1, 1], [], []>} : vector<2x32xf32>, vector<32x96xf32>, vector<2x96xf32> -> vector<2x96xf32>
    %991 = vector.broadcast %24 : vector<1x96xf32> to vector<2x96xf32>
    %992 = arith.addf %990, %991 : vector<2x96xf32>
    %993 = vector.extract_strided_slice %992 {offsets = [0, 0], sizes = [2, 64], strides = [1, 1]} : vector<2x96xf32> to vector<2x64xf32>
    %994 = vector.extract_strided_slice %992 {offsets = [0, 64], sizes = [2, 32], strides = [1, 1]} : vector<2x96xf32> to vector<2x32xf32>
    %995 = vector.shape_cast %989 : vector<2x32xf32> to vector<2x1x32xf32>
    %996 = vector.broadcast %995 : vector<2x1x32xf32> to vector<2x8x32xf32>
    %997 = arith.mulf %996, %0 : vector<2x8x32xf32>
    %cst_266 = arith.constant dense<0.000000e+00> : vector<2x8xf32>
    %998 = vector.multi_reduction <add>, %997, %cst_266 [2] : vector<2x8x32xf32> to vector<2x8xf32>
    %999 = vector.shape_cast %994 : vector<2x32xf32> to vector<2x1x32xf32>
    %1000 = vector.broadcast %999 : vector<2x1x32xf32> to vector<2x4x32xf32>
    %1001 = arith.addf %1000, %7 : vector<2x4x32xf32>
    %1002 = math.tanh %1001 : vector<2x4x32xf32>
    %1003 = vector.shape_cast %15 : vector<1x32xf32> to vector<1x1x32xf32>
    %1004 = vector.broadcast %1003 : vector<1x1x32xf32> to vector<2x4x32xf32>
    %1005 = arith.mulf %1002, %1004 : vector<2x4x32xf32>
    %cst_267 = arith.constant dense<0.000000e+00> : vector<2x4xf32>
    %1006 = vector.multi_reduction <add>, %1005, %cst_267 [2] : vector<2x4x32xf32> to vector<2x4xf32>
    %1007 = vector.shape_cast %994 : vector<2x32xf32> to vector<2x1x32xf32>
    %1008 = vector.broadcast %1007 : vector<2x1x32xf32> to vector<2x4x32xf32>
    %1009 = arith.addf %1008, %8 : vector<2x4x32xf32>
    %1010 = math.tanh %1009 : vector<2x4x32xf32>
    %1011 = vector.shape_cast %15 : vector<1x32xf32> to vector<1x1x32xf32>
    %1012 = vector.broadcast %1011 : vector<1x1x32xf32> to vector<2x4x32xf32>
    %1013 = arith.mulf %1010, %1012 : vector<2x4x32xf32>
    %cst_268 = arith.constant dense<0.000000e+00> : vector<2x4xf32>
    %1014 = vector.multi_reduction <add>, %1013, %cst_268 [2] : vector<2x4x32xf32> to vector<2x4xf32>
    %cst_269 = arith.constant dense<0xFF800000> : vector<2xf32>
    %1015 = vector.multi_reduction <maximumf>, %993, %cst_269 [1] : vector<2x64xf32> to vector<2xf32>
    %1016 = vector.shape_cast %1015 : vector<2xf32> to vector<2x1xf32>
    %cst_270 = arith.constant dense<0xFF800000> : vector<2xf32>
    %1017 = vector.multi_reduction <maximumf>, %998, %cst_270 [1] : vector<2x8xf32> to vector<2xf32>
    %1018 = vector.shape_cast %1017 : vector<2xf32> to vector<2x1xf32>
    %cst_271 = arith.constant dense<0xFF800000> : vector<2xf32>
    %1019 = vector.multi_reduction <maximumf>, %1006, %cst_271 [1] : vector<2x4xf32> to vector<2xf32>
    %1020 = vector.shape_cast %1019 : vector<2xf32> to vector<2x1xf32>
    %cst_272 = arith.constant dense<0xFF800000> : vector<2xf32>
    %1021 = vector.multi_reduction <maximumf>, %1014, %cst_272 [1] : vector<2x4xf32> to vector<2xf32>
    %1022 = vector.shape_cast %1021 : vector<2xf32> to vector<2x1xf32>
    %1023 = arith.maximumf %1020, %1022 : vector<2x1xf32>
    %1024 = arith.maximumf %1018, %1023 : vector<2x1xf32>
    %1025 = arith.maximumf %1016, %1024 : vector<2x1xf32>
    %1026 = vector.broadcast %1025 : vector<2x1xf32> to vector<2x64xf32>
    %1027 = arith.subf %993, %1026 : vector<2x64xf32>
    %1028 = math.exp %1027 : vector<2x64xf32>
    %1029 = vector.broadcast %1025 : vector<2x1xf32> to vector<2x8xf32>
    %1030 = arith.subf %998, %1029 : vector<2x8xf32>
    %1031 = math.exp %1030 : vector<2x8xf32>
    %1032 = vector.broadcast %1025 : vector<2x1xf32> to vector<2x4xf32>
    %1033 = arith.subf %1006, %1032 : vector<2x4xf32>
    %1034 = math.exp %1033 : vector<2x4xf32>
    %1035 = vector.broadcast %1025 : vector<2x1xf32> to vector<2x4xf32>
    %1036 = arith.subf %1014, %1035 : vector<2x4xf32>
    %1037 = math.exp %1036 : vector<2x4xf32>
    %cst_273 = arith.constant dense<0.000000e+00> : vector<2xf32>
    %1038 = vector.multi_reduction <add>, %1028, %cst_273 [1] : vector<2x64xf32> to vector<2xf32>
    %1039 = vector.shape_cast %1038 : vector<2xf32> to vector<2x1xf32>
    %cst_274 = arith.constant dense<0.000000e+00> : vector<2xf32>
    %1040 = vector.multi_reduction <add>, %1031, %cst_274 [1] : vector<2x8xf32> to vector<2xf32>
    %1041 = vector.shape_cast %1040 : vector<2xf32> to vector<2x1xf32>
    %1042 = arith.addf %1039, %1041 : vector<2x1xf32>
    %cst_275 = arith.constant dense<0.000000e+00> : vector<2xf32>
    %1043 = vector.multi_reduction <add>, %1034, %cst_275 [1] : vector<2x4xf32> to vector<2xf32>
    %1044 = vector.shape_cast %1043 : vector<2xf32> to vector<2x1xf32>
    %1045 = arith.addf %1042, %1044 : vector<2x1xf32>
    %cst_276 = arith.constant dense<0.000000e+00> : vector<2xf32>
    %1046 = vector.multi_reduction <add>, %1037, %cst_276 [1] : vector<2x4xf32> to vector<2xf32>
    %1047 = vector.shape_cast %1046 : vector<2xf32> to vector<2x1xf32>
    %1048 = arith.addf %1045, %1047 : vector<2x1xf32>
    %1049 = tpu.reciprocal %1048 {approx = true} : vector<2x1xf32> -> vector<2x1xf32>
    %1050 = vector.broadcast %1049 : vector<2x1xf32> to vector<2x64xf32>
    %1051 = arith.mulf %1028, %1050 : vector<2x64xf32>
    %1052 = vector.broadcast %1049 : vector<2x1xf32> to vector<2x8xf32>
    %1053 = arith.mulf %1031, %1052 : vector<2x8xf32>
    %1054 = vector.broadcast %1049 : vector<2x1xf32> to vector<2x4xf32>
    %1055 = arith.mulf %1034, %1054 : vector<2x4xf32>
    %1056 = vector.broadcast %1049 : vector<2x1xf32> to vector<2x4xf32>
    %1057 = arith.mulf %1037, %1056 : vector<2x4xf32>
    %1058 = vector.shape_cast %1055 : vector<2x4xf32> to vector<2x4x1xf32>
    %1059 = vector.broadcast %1058 : vector<2x4x1xf32> to vector<2x4x64xf32>
    %1060 = arith.mulf %1059, %9 : vector<2x4x64xf32>
    %cst_277 = arith.constant dense<0.000000e+00> : vector<2x64xf32>
    %1061 = vector.multi_reduction <add>, %1060, %cst_277 [1] : vector<2x4x64xf32> to vector<2x64xf32>
    %1062 = vector.shape_cast %1057 : vector<2x4xf32> to vector<2x4x1xf32>
    %1063 = vector.broadcast %1062 : vector<2x4x1xf32> to vector<2x4x64xf32>
    %1064 = arith.mulf %1063, %10 : vector<2x4x64xf32>
    %cst_278 = arith.constant dense<0.000000e+00> : vector<2x64xf32>
    %1065 = vector.multi_reduction <add>, %1064, %cst_278 [1] : vector<2x4x64xf32> to vector<2x64xf32>
    %cst_279 = arith.constant 5.000000e-01 : f32
    %1066 = vector.broadcast %cst_279 : f32 to vector<2x64xf32>
    %1067 = arith.mulf %1066, %1061 : vector<2x64xf32>
    %1068 = arith.addf %1051, %1067 : vector<2x64xf32>
    %cst_280 = arith.constant 3.000000e-01 : f32
    %1069 = vector.broadcast %cst_280 : f32 to vector<2x64xf32>
    %1070 = arith.mulf %1069, %1065 : vector<2x64xf32>
    %1071 = arith.addf %1068, %1070 : vector<2x64xf32>
    %1072 = vector.shape_cast %1053 : vector<2x8xf32> to vector<2x8x1xf32>
    %1073 = vector.broadcast %1072 : vector<2x8x1xf32> to vector<2x8x64xf32>
    %1074 = arith.mulf %1073, %11 : vector<2x8x64xf32>
    %cst_281 = arith.constant dense<0.000000e+00> : vector<2x64xf32>
    %1075 = vector.multi_reduction <add>, %1074, %cst_281 [1] : vector<2x8x64xf32> to vector<2x64xf32>
    %1076 = arith.addf %1071, %1075 : vector<2x64xf32>
    %1077 = math.log %1076 : vector<2x64xf32>
    %cst_282 = arith.constant 5.000000e-01 : f32
    %1078 = vector.broadcast %cst_282 : f32 to vector<2x1xf32>
    %1079 = arith.cmpf ogt, %883, %1078 : vector<2x1xf32>
    %cst_283 = arith.constant 0.000000e+00 : f32
    %1080 = vector.shape_cast %1079 : vector<2x1xi1> to vector<2x1xi1>
    %1081 = vector.broadcast %1080 : vector<2x1xi1> to vector<2x64xi1>
    %1082 = vector.broadcast %cst_283 : f32 to vector<2x64xf32>
    %1083 = arith.select %1081, %1077, %1082 : vector<2x64xi1>, vector<2x64xf32>
    %1084 = arith.index_cast %c4_i32 : i32 to index
    %c0_284 = arith.constant 0 : index
    %c0_285 = arith.constant 0 : index
    %1085 = vector.load %arg28[%1084, %c0_284, %c0_285] : memref<8x2x64xf32, #tpu.memory_space<vmem>>, vector<1x2x64xf32>
    %1086 = vector.shape_cast %1085 : vector<1x2x64xf32> to vector<2x64xf32>
    %1087 = vector.shape_cast %1083 : vector<2x64xf32> to vector<1x2x64xf32>
    tpu.vector_store %arg28[%1084, %c0_284, %c0_285], %1087 {strides = array<i32>} : memref<8x2x64xf32, #tpu.memory_space<vmem>>, vector<1x2x64xf32>,
    %1088 = vector.shape_cast %1079 : vector<2x1xi1> to vector<2x1xi1>
    %1089 = vector.broadcast %1088 : vector<2x1xi1> to vector<2x32xi1>
    %1090 = arith.select %1089, %989, %877 : vector<2x32xi1>, vector<2x32xf32>
    %c5_i32 = arith.constant 5 : i32
    %1091 = arith.index_cast %c5_i32 : i32 to index
    %c0_286 = arith.constant 0 : index
    %c0_287 = arith.constant 0 : index
    %1092 = vector.load %arg0[%1091, %c0_286, %c0_287] : memref<8x2x16xf32, #tpu.memory_space<vmem>>, vector<1x2x16xf32>
    %1093 = vector.shape_cast %1092 : vector<1x2x16xf32> to vector<2x16xf32>
    %1094 = arith.index_cast %c5_i32 : i32 to index
    %c0_288 = arith.constant 0 : index
    %c0_289 = arith.constant 0 : index
    %1095 = vector.load %arg1[%1094, %c0_288, %c0_289] : memref<8x2x1xf32, #tpu.memory_space<vmem>>, vector<1x2x1xf32>
    %1096 = vector.shape_cast %1095 : vector<1x2x1xf32> to vector<2x1xf32>
    %cst_290 = arith.constant dense<0.000000e+00> : vector<2x192xf32>
    %1097 = tpu.matmul %1090, %16, %cst_290 {dimension_numbers = #tpu.dot_dimension_numbers<[1], [0], [0], [1], [0, 0, 1, 1], [], []>} : vector<2x32xf32>, vector<32x192xf32>, vector<2x192xf32> -> vector<2x192xf32>
    %1098 = vector.broadcast %17 : vector<1x192xf32> to vector<2x192xf32>
    %1099 = arith.addf %1097, %1098 : vector<2x192xf32>
    %1100 = vector.extract_strided_slice %1099 {offsets = [0, 0], sizes = [2, 96], strides = [1, 1]} : vector<2x192xf32> to vector<2x96xf32>
    %1101 = vector.extract_strided_slice %1099 {offsets = [0, 96], sizes = [2, 32], strides = [1, 1]} : vector<2x192xf32> to vector<2x32xf32>
    %1102 = vector.extract_strided_slice %1099 {offsets = [0, 128], sizes = [2, 32], strides = [1, 1]} : vector<2x192xf32> to vector<2x32xf32>
    %1103 = vector.extract_strided_slice %1099 {offsets = [0, 160], sizes = [2, 32], strides = [1, 1]} : vector<2x192xf32> to vector<2x32xf32>
    %1104 = vector.shape_cast %1101 : vector<2x32xf32> to vector<2x1x32xf32>
    %1105 = vector.broadcast %1104 : vector<2x1x32xf32> to vector<2x8x32xf32>
    %1106 = arith.addf %1105, %1 : vector<2x8x32xf32>
    %1107 = math.tanh %1106 : vector<2x8x32xf32>
    %1108 = vector.shape_cast %12 : vector<1x32xf32> to vector<1x1x32xf32>
    %1109 = vector.broadcast %1108 : vector<1x1x32xf32> to vector<2x8x32xf32>
    %1110 = arith.mulf %1107, %1109 : vector<2x8x32xf32>
    %cst_291 = arith.constant dense<0.000000e+00> : vector<2x8xf32>
    %1111 = vector.multi_reduction <add>, %1110, %cst_291 [2] : vector<2x8x32xf32> to vector<2x8xf32>
    %1112 = arith.addf %1111, %2 : vector<2x8xf32>
    %cst_292 = arith.constant dense<0xFF800000> : vector<2xf32>
    %1113 = vector.multi_reduction <maximumf>, %1112, %cst_292 [1] : vector<2x8xf32> to vector<2xf32>
    %1114 = vector.shape_cast %1113 : vector<2xf32> to vector<2x1xf32>
    %1115 = vector.broadcast %1114 : vector<2x1xf32> to vector<2x8xf32>
    %1116 = arith.subf %1112, %1115 : vector<2x8xf32>
    %1117 = math.exp %1116 : vector<2x8xf32>
    %cst_293 = arith.constant dense<0.000000e+00> : vector<2xf32>
    %1118 = vector.multi_reduction <add>, %1117, %cst_293 [1] : vector<2x8xf32> to vector<2xf32>
    %1119 = vector.shape_cast %1118 : vector<2xf32> to vector<2x1xf32>
    %1120 = vector.broadcast %1119 : vector<2x1xf32> to vector<2x8xf32>
    %1121 = arith.divf %1117, %1120 : vector<2x8xf32>
    %1122 = vector.shape_cast %1121 : vector<2x8xf32> to vector<2x8x1xf32>
    %1123 = vector.broadcast %1122 : vector<2x8x1xf32> to vector<2x8x32xf32>
    %1124 = arith.mulf %1123, %0 : vector<2x8x32xf32>
    %cst_294 = arith.constant dense<0.000000e+00> : vector<2x32xf32>
    %1125 = vector.multi_reduction <add>, %1124, %cst_294 [1] : vector<2x8x32xf32> to vector<2x32xf32>
    %1126 = vector.shape_cast %1102 : vector<2x32xf32> to vector<2x1x32xf32>
    %1127 = vector.broadcast %1126 : vector<2x1x32xf32> to vector<2x4x32xf32>
    %1128 = arith.addf %1127, %4 : vector<2x4x32xf32>
    %1129 = math.tanh %1128 : vector<2x4x32xf32>
    %1130 = vector.shape_cast %13 : vector<1x32xf32> to vector<1x1x32xf32>
    %1131 = vector.broadcast %1130 : vector<1x1x32xf32> to vector<2x4x32xf32>
    %1132 = arith.mulf %1129, %1131 : vector<2x4x32xf32>
    %cst_295 = arith.constant dense<0.000000e+00> : vector<2x4xf32>
    %1133 = vector.multi_reduction <add>, %1132, %cst_295 [2] : vector<2x4x32xf32> to vector<2x4xf32>
    %cst_296 = arith.constant dense<0xFF800000> : vector<2xf32>
    %1134 = vector.multi_reduction <maximumf>, %1133, %cst_296 [1] : vector<2x4xf32> to vector<2xf32>
    %1135 = vector.shape_cast %1134 : vector<2xf32> to vector<2x1xf32>
    %1136 = vector.broadcast %1135 : vector<2x1xf32> to vector<2x4xf32>
    %1137 = arith.subf %1133, %1136 : vector<2x4xf32>
    %1138 = math.exp %1137 : vector<2x4xf32>
    %cst_297 = arith.constant dense<0.000000e+00> : vector<2xf32>
    %1139 = vector.multi_reduction <add>, %1138, %cst_297 [1] : vector<2x4xf32> to vector<2xf32>
    %1140 = vector.shape_cast %1139 : vector<2xf32> to vector<2x1xf32>
    %1141 = vector.broadcast %1140 : vector<2x1xf32> to vector<2x4xf32>
    %1142 = arith.divf %1138, %1141 : vector<2x4xf32>
    %1143 = vector.shape_cast %1142 : vector<2x4xf32> to vector<2x4x1xf32>
    %1144 = vector.broadcast %1143 : vector<2x4x1xf32> to vector<2x4x16xf32>
    %1145 = arith.mulf %1144, %3 : vector<2x4x16xf32>
    %cst_298 = arith.constant dense<0.000000e+00> : vector<2x16xf32>
    %1146 = vector.multi_reduction <add>, %1145, %cst_298 [1] : vector<2x4x16xf32> to vector<2x16xf32>
    %1147 = vector.shape_cast %1103 : vector<2x32xf32> to vector<2x1x32xf32>
    %1148 = vector.broadcast %1147 : vector<2x1x32xf32> to vector<2x4x32xf32>
    %1149 = arith.addf %1148, %6 : vector<2x4x32xf32>
    %1150 = math.tanh %1149 : vector<2x4x32xf32>
    %1151 = vector.shape_cast %14 : vector<1x32xf32> to vector<1x1x32xf32>
    %1152 = vector.broadcast %1151 : vector<1x1x32xf32> to vector<2x4x32xf32>
    %1153 = arith.mulf %1150, %1152 : vector<2x4x32xf32>
    %cst_299 = arith.constant dense<0.000000e+00> : vector<2x4xf32>
    %1154 = vector.multi_reduction <add>, %1153, %cst_299 [2] : vector<2x4x32xf32> to vector<2x4xf32>
    %cst_300 = arith.constant dense<0xFF800000> : vector<2xf32>
    %1155 = vector.multi_reduction <maximumf>, %1154, %cst_300 [1] : vector<2x4xf32> to vector<2xf32>
    %1156 = vector.shape_cast %1155 : vector<2xf32> to vector<2x1xf32>
    %1157 = vector.broadcast %1156 : vector<2x1xf32> to vector<2x4xf32>
    %1158 = arith.subf %1154, %1157 : vector<2x4xf32>
    %1159 = math.exp %1158 : vector<2x4xf32>
    %cst_301 = arith.constant dense<0.000000e+00> : vector<2xf32>
    %1160 = vector.multi_reduction <add>, %1159, %cst_301 [1] : vector<2x4xf32> to vector<2xf32>
    %1161 = vector.shape_cast %1160 : vector<2xf32> to vector<2x1xf32>
    %1162 = vector.broadcast %1161 : vector<2x1xf32> to vector<2x4xf32>
    %1163 = arith.divf %1159, %1162 : vector<2x4xf32>
    %1164 = vector.shape_cast %1163 : vector<2x4xf32> to vector<2x4x1xf32>
    %1165 = vector.broadcast %1164 : vector<2x4x1xf32> to vector<2x4x16xf32>
    %1166 = arith.mulf %1165, %5 : vector<2x4x16xf32>
    %cst_302 = arith.constant dense<0.000000e+00> : vector<2x16xf32>
    %1167 = vector.multi_reduction <add>, %1166, %cst_302 [1] : vector<2x4x16xf32> to vector<2x16xf32>
    %cst_303 = arith.constant dense<0.000000e+00> : vector<2x96xf32>
    %1168 = tpu.matmul %1093, %18, %cst_303 {dimension_numbers = #tpu.dot_dimension_numbers<[1], [0], [0], [1], [0, 0, 1, 1], [], []>} : vector<2x16xf32>, vector<16x96xf32>, vector<2x96xf32> -> vector<2x96xf32>
    %cst_304 = arith.constant dense<0.000000e+00> : vector<2x96xf32>
    %1169 = tpu.matmul %1125, %19, %cst_304 {dimension_numbers = #tpu.dot_dimension_numbers<[1], [0], [0], [1], [0, 0, 1, 1], [], []>} : vector<2x32xf32>, vector<32x96xf32>, vector<2x96xf32> -> vector<2x96xf32>
    %1170 = arith.addf %1168, %1169 : vector<2x96xf32>
    %cst_305 = arith.constant dense<0.000000e+00> : vector<2x96xf32>
    %1171 = tpu.matmul %1146, %20, %cst_305 {dimension_numbers = #tpu.dot_dimension_numbers<[1], [0], [0], [1], [0, 0, 1, 1], [], []>} : vector<2x16xf32>, vector<16x96xf32>, vector<2x96xf32> -> vector<2x96xf32>
    %1172 = arith.addf %1170, %1171 : vector<2x96xf32>
    %cst_306 = arith.constant dense<0.000000e+00> : vector<2x96xf32>
    %1173 = tpu.matmul %1167, %21, %cst_306 {dimension_numbers = #tpu.dot_dimension_numbers<[1], [0], [0], [1], [0, 0, 1, 1], [], []>} : vector<2x16xf32>, vector<16x96xf32>, vector<2x96xf32> -> vector<2x96xf32>
    %1174 = arith.addf %1172, %1173 : vector<2x96xf32>
    %1175 = vector.broadcast %22 : vector<1x96xf32> to vector<2x96xf32>
    %1176 = arith.addf %1174, %1175 : vector<2x96xf32>
    %1177 = vector.extract_strided_slice %1176 {offsets = [0, 0], sizes = [2, 32], strides = [1, 1]} : vector<2x96xf32> to vector<2x32xf32>
    %1178 = vector.extract_strided_slice %1100 {offsets = [0, 0], sizes = [2, 32], strides = [1, 1]} : vector<2x96xf32> to vector<2x32xf32>
    %1179 = arith.addf %1177, %1178 : vector<2x32xf32>
    %1180 = arith.negf %1179 : vector<2x32xf32>
    %1181 = math.exp %1180 : vector<2x32xf32>
    %cst_307 = arith.constant 1.000000e+00 : f32
    %1182 = vector.broadcast %cst_307 : f32 to vector<2x32xf32>
    %1183 = arith.addf %1182, %1181 : vector<2x32xf32>
    %1184 = arith.divf %1182, %1183 : vector<2x32xf32>
    %1185 = vector.extract_strided_slice %1176 {offsets = [0, 32], sizes = [2, 32], strides = [1, 1]} : vector<2x96xf32> to vector<2x32xf32>
    %1186 = vector.extract_strided_slice %1100 {offsets = [0, 32], sizes = [2, 32], strides = [1, 1]} : vector<2x96xf32> to vector<2x32xf32>
    %1187 = arith.addf %1185, %1186 : vector<2x32xf32>
    %1188 = arith.negf %1187 : vector<2x32xf32>
    %1189 = math.exp %1188 : vector<2x32xf32>
    %cst_308 = arith.constant 1.000000e+00 : f32
    %1190 = vector.broadcast %cst_308 : f32 to vector<2x32xf32>
    %1191 = arith.addf %1190, %1189 : vector<2x32xf32>
    %1192 = arith.divf %1190, %1191 : vector<2x32xf32>
    %1193 = vector.extract_strided_slice %1176 {offsets = [0, 64], sizes = [2, 32], strides = [1, 1]} : vector<2x96xf32> to vector<2x32xf32>
    %1194 = vector.extract_strided_slice %1100 {offsets = [0, 64], sizes = [2, 32], strides = [1, 1]} : vector<2x96xf32> to vector<2x32xf32>
    %1195 = arith.mulf %1184, %1194 : vector<2x32xf32>
    %1196 = arith.addf %1193, %1195 : vector<2x32xf32>
    %1197 = math.tanh %1196 : vector<2x32xf32>
    %cst_309 = arith.constant 1.000000e+00 : f32
    %1198 = vector.broadcast %cst_309 : f32 to vector<2x32xf32>
    %1199 = arith.subf %1198, %1192 : vector<2x32xf32>
    %1200 = arith.mulf %1199, %1197 : vector<2x32xf32>
    %1201 = arith.mulf %1192, %1090 : vector<2x32xf32>
    %1202 = arith.addf %1200, %1201 : vector<2x32xf32>
    %cst_310 = arith.constant dense<0.000000e+00> : vector<2x96xf32>
    %1203 = tpu.matmul %1202, %23, %cst_310 {dimension_numbers = #tpu.dot_dimension_numbers<[1], [0], [0], [1], [0, 0, 1, 1], [], []>} : vector<2x32xf32>, vector<32x96xf32>, vector<2x96xf32> -> vector<2x96xf32>
    %1204 = vector.broadcast %24 : vector<1x96xf32> to vector<2x96xf32>
    %1205 = arith.addf %1203, %1204 : vector<2x96xf32>
    %1206 = vector.extract_strided_slice %1205 {offsets = [0, 0], sizes = [2, 64], strides = [1, 1]} : vector<2x96xf32> to vector<2x64xf32>
    %1207 = vector.extract_strided_slice %1205 {offsets = [0, 64], sizes = [2, 32], strides = [1, 1]} : vector<2x96xf32> to vector<2x32xf32>
    %1208 = vector.shape_cast %1202 : vector<2x32xf32> to vector<2x1x32xf32>
    %1209 = vector.broadcast %1208 : vector<2x1x32xf32> to vector<2x8x32xf32>
    %1210 = arith.mulf %1209, %0 : vector<2x8x32xf32>
    %cst_311 = arith.constant dense<0.000000e+00> : vector<2x8xf32>
    %1211 = vector.multi_reduction <add>, %1210, %cst_311 [2] : vector<2x8x32xf32> to vector<2x8xf32>
    %1212 = vector.shape_cast %1207 : vector<2x32xf32> to vector<2x1x32xf32>
    %1213 = vector.broadcast %1212 : vector<2x1x32xf32> to vector<2x4x32xf32>
    %1214 = arith.addf %1213, %7 : vector<2x4x32xf32>
    %1215 = math.tanh %1214 : vector<2x4x32xf32>
    %1216 = vector.shape_cast %15 : vector<1x32xf32> to vector<1x1x32xf32>
    %1217 = vector.broadcast %1216 : vector<1x1x32xf32> to vector<2x4x32xf32>
    %1218 = arith.mulf %1215, %1217 : vector<2x4x32xf32>
    %cst_312 = arith.constant dense<0.000000e+00> : vector<2x4xf32>
    %1219 = vector.multi_reduction <add>, %1218, %cst_312 [2] : vector<2x4x32xf32> to vector<2x4xf32>
    %1220 = vector.shape_cast %1207 : vector<2x32xf32> to vector<2x1x32xf32>
    %1221 = vector.broadcast %1220 : vector<2x1x32xf32> to vector<2x4x32xf32>
    %1222 = arith.addf %1221, %8 : vector<2x4x32xf32>
    %1223 = math.tanh %1222 : vector<2x4x32xf32>
    %1224 = vector.shape_cast %15 : vector<1x32xf32> to vector<1x1x32xf32>
    %1225 = vector.broadcast %1224 : vector<1x1x32xf32> to vector<2x4x32xf32>
    %1226 = arith.mulf %1223, %1225 : vector<2x4x32xf32>
    %cst_313 = arith.constant dense<0.000000e+00> : vector<2x4xf32>
    %1227 = vector.multi_reduction <add>, %1226, %cst_313 [2] : vector<2x4x32xf32> to vector<2x4xf32>
    %cst_314 = arith.constant dense<0xFF800000> : vector<2xf32>
    %1228 = vector.multi_reduction <maximumf>, %1206, %cst_314 [1] : vector<2x64xf32> to vector<2xf32>
    %1229 = vector.shape_cast %1228 : vector<2xf32> to vector<2x1xf32>
    %cst_315 = arith.constant dense<0xFF800000> : vector<2xf32>
    %1230 = vector.multi_reduction <maximumf>, %1211, %cst_315 [1] : vector<2x8xf32> to vector<2xf32>
    %1231 = vector.shape_cast %1230 : vector<2xf32> to vector<2x1xf32>
    %cst_316 = arith.constant dense<0xFF800000> : vector<2xf32>
    %1232 = vector.multi_reduction <maximumf>, %1219, %cst_316 [1] : vector<2x4xf32> to vector<2xf32>
    %1233 = vector.shape_cast %1232 : vector<2xf32> to vector<2x1xf32>
    %cst_317 = arith.constant dense<0xFF800000> : vector<2xf32>
    %1234 = vector.multi_reduction <maximumf>, %1227, %cst_317 [1] : vector<2x4xf32> to vector<2xf32>
    %1235 = vector.shape_cast %1234 : vector<2xf32> to vector<2x1xf32>
    %1236 = arith.maximumf %1233, %1235 : vector<2x1xf32>
    %1237 = arith.maximumf %1231, %1236 : vector<2x1xf32>
    %1238 = arith.maximumf %1229, %1237 : vector<2x1xf32>
    %1239 = vector.broadcast %1238 : vector<2x1xf32> to vector<2x64xf32>
    %1240 = arith.subf %1206, %1239 : vector<2x64xf32>
    %1241 = math.exp %1240 : vector<2x64xf32>
    %1242 = vector.broadcast %1238 : vector<2x1xf32> to vector<2x8xf32>
    %1243 = arith.subf %1211, %1242 : vector<2x8xf32>
    %1244 = math.exp %1243 : vector<2x8xf32>
    %1245 = vector.broadcast %1238 : vector<2x1xf32> to vector<2x4xf32>
    %1246 = arith.subf %1219, %1245 : vector<2x4xf32>
    %1247 = math.exp %1246 : vector<2x4xf32>
    %1248 = vector.broadcast %1238 : vector<2x1xf32> to vector<2x4xf32>
    %1249 = arith.subf %1227, %1248 : vector<2x4xf32>
    %1250 = math.exp %1249 : vector<2x4xf32>
    %cst_318 = arith.constant dense<0.000000e+00> : vector<2xf32>
    %1251 = vector.multi_reduction <add>, %1241, %cst_318 [1] : vector<2x64xf32> to vector<2xf32>
    %1252 = vector.shape_cast %1251 : vector<2xf32> to vector<2x1xf32>
    %cst_319 = arith.constant dense<0.000000e+00> : vector<2xf32>
    %1253 = vector.multi_reduction <add>, %1244, %cst_319 [1] : vector<2x8xf32> to vector<2xf32>
    %1254 = vector.shape_cast %1253 : vector<2xf32> to vector<2x1xf32>
    %1255 = arith.addf %1252, %1254 : vector<2x1xf32>
    %cst_320 = arith.constant dense<0.000000e+00> : vector<2xf32>
    %1256 = vector.multi_reduction <add>, %1247, %cst_320 [1] : vector<2x4xf32> to vector<2xf32>
    %1257 = vector.shape_cast %1256 : vector<2xf32> to vector<2x1xf32>
    %1258 = arith.addf %1255, %1257 : vector<2x1xf32>
    %cst_321 = arith.constant dense<0.000000e+00> : vector<2xf32>
    %1259 = vector.multi_reduction <add>, %1250, %cst_321 [1] : vector<2x4xf32> to vector<2xf32>
    %1260 = vector.shape_cast %1259 : vector<2xf32> to vector<2x1xf32>
    %1261 = arith.addf %1258, %1260 : vector<2x1xf32>
    %1262 = tpu.reciprocal %1261 {approx = true} : vector<2x1xf32> -> vector<2x1xf32>
    %1263 = vector.broadcast %1262 : vector<2x1xf32> to vector<2x64xf32>
    %1264 = arith.mulf %1241, %1263 : vector<2x64xf32>
    %1265 = vector.broadcast %1262 : vector<2x1xf32> to vector<2x8xf32>
    %1266 = arith.mulf %1244, %1265 : vector<2x8xf32>
    %1267 = vector.broadcast %1262 : vector<2x1xf32> to vector<2x4xf32>
    %1268 = arith.mulf %1247, %1267 : vector<2x4xf32>
    %1269 = vector.broadcast %1262 : vector<2x1xf32> to vector<2x4xf32>
    %1270 = arith.mulf %1250, %1269 : vector<2x4xf32>
    %1271 = vector.shape_cast %1268 : vector<2x4xf32> to vector<2x4x1xf32>
    %1272 = vector.broadcast %1271 : vector<2x4x1xf32> to vector<2x4x64xf32>
    %1273 = arith.mulf %1272, %9 : vector<2x4x64xf32>
    %cst_322 = arith.constant dense<0.000000e+00> : vector<2x64xf32>
    %1274 = vector.multi_reduction <add>, %1273, %cst_322 [1] : vector<2x4x64xf32> to vector<2x64xf32>
    %1275 = vector.shape_cast %1270 : vector<2x4xf32> to vector<2x4x1xf32>
    %1276 = vector.broadcast %1275 : vector<2x4x1xf32> to vector<2x4x64xf32>
    %1277 = arith.mulf %1276, %10 : vector<2x4x64xf32>
    %cst_323 = arith.constant dense<0.000000e+00> : vector<2x64xf32>
    %1278 = vector.multi_reduction <add>, %1277, %cst_323 [1] : vector<2x4x64xf32> to vector<2x64xf32>
    %cst_324 = arith.constant 5.000000e-01 : f32
    %1279 = vector.broadcast %cst_324 : f32 to vector<2x64xf32>
    %1280 = arith.mulf %1279, %1274 : vector<2x64xf32>
    %1281 = arith.addf %1264, %1280 : vector<2x64xf32>
    %cst_325 = arith.constant 3.000000e-01 : f32
    %1282 = vector.broadcast %cst_325 : f32 to vector<2x64xf32>
    %1283 = arith.mulf %1282, %1278 : vector<2x64xf32>
    %1284 = arith.addf %1281, %1283 : vector<2x64xf32>
    %1285 = vector.shape_cast %1266 : vector<2x8xf32> to vector<2x8x1xf32>
    %1286 = vector.broadcast %1285 : vector<2x8x1xf32> to vector<2x8x64xf32>
    %1287 = arith.mulf %1286, %11 : vector<2x8x64xf32>
    %cst_326 = arith.constant dense<0.000000e+00> : vector<2x64xf32>
    %1288 = vector.multi_reduction <add>, %1287, %cst_326 [1] : vector<2x8x64xf32> to vector<2x64xf32>
    %1289 = arith.addf %1284, %1288 : vector<2x64xf32>
    %1290 = math.log %1289 : vector<2x64xf32>
    %cst_327 = arith.constant 5.000000e-01 : f32
    %1291 = vector.broadcast %cst_327 : f32 to vector<2x1xf32>
    %1292 = arith.cmpf ogt, %1096, %1291 : vector<2x1xf32>
    %cst_328 = arith.constant 0.000000e+00 : f32
    %1293 = vector.shape_cast %1292 : vector<2x1xi1> to vector<2x1xi1>
    %1294 = vector.broadcast %1293 : vector<2x1xi1> to vector<2x64xi1>
    %1295 = vector.broadcast %cst_328 : f32 to vector<2x64xf32>
    %1296 = arith.select %1294, %1290, %1295 : vector<2x64xi1>, vector<2x64xf32>
    %1297 = arith.index_cast %c5_i32 : i32 to index
    %c0_329 = arith.constant 0 : index
    %c0_330 = arith.constant 0 : index
    %1298 = vector.load %arg28[%1297, %c0_329, %c0_330] : memref<8x2x64xf32, #tpu.memory_space<vmem>>, vector<1x2x64xf32>
    %1299 = vector.shape_cast %1298 : vector<1x2x64xf32> to vector<2x64xf32>
    %1300 = vector.shape_cast %1296 : vector<2x64xf32> to vector<1x2x64xf32>
    tpu.vector_store %arg28[%1297, %c0_329, %c0_330], %1300 {strides = array<i32>} : memref<8x2x64xf32, #tpu.memory_space<vmem>>, vector<1x2x64xf32>,
    %1301 = vector.shape_cast %1292 : vector<2x1xi1> to vector<2x1xi1>
    %1302 = vector.broadcast %1301 : vector<2x1xi1> to vector<2x32xi1>
    %1303 = arith.select %1302, %1202, %1090 : vector<2x32xi1>, vector<2x32xf32>
    %c6_i32 = arith.constant 6 : i32
    %1304 = arith.index_cast %c6_i32 : i32 to index
    %c0_331 = arith.constant 0 : index
    %c0_332 = arith.constant 0 : index
    %1305 = vector.load %arg0[%1304, %c0_331, %c0_332] : memref<8x2x16xf32, #tpu.memory_space<vmem>>, vector<1x2x16xf32>
    %1306 = vector.shape_cast %1305 : vector<1x2x16xf32> to vector<2x16xf32>
    %1307 = arith.index_cast %c6_i32 : i32 to index
    %c0_333 = arith.constant 0 : index
    %c0_334 = arith.constant 0 : index
    %1308 = vector.load %arg1[%1307, %c0_333, %c0_334] : memref<8x2x1xf32, #tpu.memory_space<vmem>>, vector<1x2x1xf32>
    %1309 = vector.shape_cast %1308 : vector<1x2x1xf32> to vector<2x1xf32>
    %cst_335 = arith.constant dense<0.000000e+00> : vector<2x192xf32>
    %1310 = tpu.matmul %1303, %16, %cst_335 {dimension_numbers = #tpu.dot_dimension_numbers<[1], [0], [0], [1], [0, 0, 1, 1], [], []>} : vector<2x32xf32>, vector<32x192xf32>, vector<2x192xf32> -> vector<2x192xf32>
    %1311 = vector.broadcast %17 : vector<1x192xf32> to vector<2x192xf32>
    %1312 = arith.addf %1310, %1311 : vector<2x192xf32>
    %1313 = vector.extract_strided_slice %1312 {offsets = [0, 0], sizes = [2, 96], strides = [1, 1]} : vector<2x192xf32> to vector<2x96xf32>
    %1314 = vector.extract_strided_slice %1312 {offsets = [0, 96], sizes = [2, 32], strides = [1, 1]} : vector<2x192xf32> to vector<2x32xf32>
    %1315 = vector.extract_strided_slice %1312 {offsets = [0, 128], sizes = [2, 32], strides = [1, 1]} : vector<2x192xf32> to vector<2x32xf32>
    %1316 = vector.extract_strided_slice %1312 {offsets = [0, 160], sizes = [2, 32], strides = [1, 1]} : vector<2x192xf32> to vector<2x32xf32>
    %1317 = vector.shape_cast %1314 : vector<2x32xf32> to vector<2x1x32xf32>
    %1318 = vector.broadcast %1317 : vector<2x1x32xf32> to vector<2x8x32xf32>
    %1319 = arith.addf %1318, %1 : vector<2x8x32xf32>
    %1320 = math.tanh %1319 : vector<2x8x32xf32>
    %1321 = vector.shape_cast %12 : vector<1x32xf32> to vector<1x1x32xf32>
    %1322 = vector.broadcast %1321 : vector<1x1x32xf32> to vector<2x8x32xf32>
    %1323 = arith.mulf %1320, %1322 : vector<2x8x32xf32>
    %cst_336 = arith.constant dense<0.000000e+00> : vector<2x8xf32>
    %1324 = vector.multi_reduction <add>, %1323, %cst_336 [2] : vector<2x8x32xf32> to vector<2x8xf32>
    %1325 = arith.addf %1324, %2 : vector<2x8xf32>
    %cst_337 = arith.constant dense<0xFF800000> : vector<2xf32>
    %1326 = vector.multi_reduction <maximumf>, %1325, %cst_337 [1] : vector<2x8xf32> to vector<2xf32>
    %1327 = vector.shape_cast %1326 : vector<2xf32> to vector<2x1xf32>
    %1328 = vector.broadcast %1327 : vector<2x1xf32> to vector<2x8xf32>
    %1329 = arith.subf %1325, %1328 : vector<2x8xf32>
    %1330 = math.exp %1329 : vector<2x8xf32>
    %cst_338 = arith.constant dense<0.000000e+00> : vector<2xf32>
    %1331 = vector.multi_reduction <add>, %1330, %cst_338 [1] : vector<2x8xf32> to vector<2xf32>
    %1332 = vector.shape_cast %1331 : vector<2xf32> to vector<2x1xf32>
    %1333 = vector.broadcast %1332 : vector<2x1xf32> to vector<2x8xf32>
    %1334 = arith.divf %1330, %1333 : vector<2x8xf32>
    %1335 = vector.shape_cast %1334 : vector<2x8xf32> to vector<2x8x1xf32>
    %1336 = vector.broadcast %1335 : vector<2x8x1xf32> to vector<2x8x32xf32>
    %1337 = arith.mulf %1336, %0 : vector<2x8x32xf32>
    %cst_339 = arith.constant dense<0.000000e+00> : vector<2x32xf32>
    %1338 = vector.multi_reduction <add>, %1337, %cst_339 [1] : vector<2x8x32xf32> to vector<2x32xf32>
    %1339 = vector.shape_cast %1315 : vector<2x32xf32> to vector<2x1x32xf32>
    %1340 = vector.broadcast %1339 : vector<2x1x32xf32> to vector<2x4x32xf32>
    %1341 = arith.addf %1340, %4 : vector<2x4x32xf32>
    %1342 = math.tanh %1341 : vector<2x4x32xf32>
    %1343 = vector.shape_cast %13 : vector<1x32xf32> to vector<1x1x32xf32>
    %1344 = vector.broadcast %1343 : vector<1x1x32xf32> to vector<2x4x32xf32>
    %1345 = arith.mulf %1342, %1344 : vector<2x4x32xf32>
    %cst_340 = arith.constant dense<0.000000e+00> : vector<2x4xf32>
    %1346 = vector.multi_reduction <add>, %1345, %cst_340 [2] : vector<2x4x32xf32> to vector<2x4xf32>
    %cst_341 = arith.constant dense<0xFF800000> : vector<2xf32>
    %1347 = vector.multi_reduction <maximumf>, %1346, %cst_341 [1] : vector<2x4xf32> to vector<2xf32>
    %1348 = vector.shape_cast %1347 : vector<2xf32> to vector<2x1xf32>
    %1349 = vector.broadcast %1348 : vector<2x1xf32> to vector<2x4xf32>
    %1350 = arith.subf %1346, %1349 : vector<2x4xf32>
    %1351 = math.exp %1350 : vector<2x4xf32>
    %cst_342 = arith.constant dense<0.000000e+00> : vector<2xf32>
    %1352 = vector.multi_reduction <add>, %1351, %cst_342 [1] : vector<2x4xf32> to vector<2xf32>
    %1353 = vector.shape_cast %1352 : vector<2xf32> to vector<2x1xf32>
    %1354 = vector.broadcast %1353 : vector<2x1xf32> to vector<2x4xf32>
    %1355 = arith.divf %1351, %1354 : vector<2x4xf32>
    %1356 = vector.shape_cast %1355 : vector<2x4xf32> to vector<2x4x1xf32>
    %1357 = vector.broadcast %1356 : vector<2x4x1xf32> to vector<2x4x16xf32>
    %1358 = arith.mulf %1357, %3 : vector<2x4x16xf32>
    %cst_343 = arith.constant dense<0.000000e+00> : vector<2x16xf32>
    %1359 = vector.multi_reduction <add>, %1358, %cst_343 [1] : vector<2x4x16xf32> to vector<2x16xf32>
    %1360 = vector.shape_cast %1316 : vector<2x32xf32> to vector<2x1x32xf32>
    %1361 = vector.broadcast %1360 : vector<2x1x32xf32> to vector<2x4x32xf32>
    %1362 = arith.addf %1361, %6 : vector<2x4x32xf32>
    %1363 = math.tanh %1362 : vector<2x4x32xf32>
    %1364 = vector.shape_cast %14 : vector<1x32xf32> to vector<1x1x32xf32>
    %1365 = vector.broadcast %1364 : vector<1x1x32xf32> to vector<2x4x32xf32>
    %1366 = arith.mulf %1363, %1365 : vector<2x4x32xf32>
    %cst_344 = arith.constant dense<0.000000e+00> : vector<2x4xf32>
    %1367 = vector.multi_reduction <add>, %1366, %cst_344 [2] : vector<2x4x32xf32> to vector<2x4xf32>
    %cst_345 = arith.constant dense<0xFF800000> : vector<2xf32>
    %1368 = vector.multi_reduction <maximumf>, %1367, %cst_345 [1] : vector<2x4xf32> to vector<2xf32>
    %1369 = vector.shape_cast %1368 : vector<2xf32> to vector<2x1xf32>
    %1370 = vector.broadcast %1369 : vector<2x1xf32> to vector<2x4xf32>
    %1371 = arith.subf %1367, %1370 : vector<2x4xf32>
    %1372 = math.exp %1371 : vector<2x4xf32>
    %cst_346 = arith.constant dense<0.000000e+00> : vector<2xf32>
    %1373 = vector.multi_reduction <add>, %1372, %cst_346 [1] : vector<2x4xf32> to vector<2xf32>
    %1374 = vector.shape_cast %1373 : vector<2xf32> to vector<2x1xf32>
    %1375 = vector.broadcast %1374 : vector<2x1xf32> to vector<2x4xf32>
    %1376 = arith.divf %1372, %1375 : vector<2x4xf32>
    %1377 = vector.shape_cast %1376 : vector<2x4xf32> to vector<2x4x1xf32>
    %1378 = vector.broadcast %1377 : vector<2x4x1xf32> to vector<2x4x16xf32>
    %1379 = arith.mulf %1378, %5 : vector<2x4x16xf32>
    %cst_347 = arith.constant dense<0.000000e+00> : vector<2x16xf32>
    %1380 = vector.multi_reduction <add>, %1379, %cst_347 [1] : vector<2x4x16xf32> to vector<2x16xf32>
    %cst_348 = arith.constant dense<0.000000e+00> : vector<2x96xf32>
    %1381 = tpu.matmul %1306, %18, %cst_348 {dimension_numbers = #tpu.dot_dimension_numbers<[1], [0], [0], [1], [0, 0, 1, 1], [], []>} : vector<2x16xf32>, vector<16x96xf32>, vector<2x96xf32> -> vector<2x96xf32>
    %cst_349 = arith.constant dense<0.000000e+00> : vector<2x96xf32>
    %1382 = tpu.matmul %1338, %19, %cst_349 {dimension_numbers = #tpu.dot_dimension_numbers<[1], [0], [0], [1], [0, 0, 1, 1], [], []>} : vector<2x32xf32>, vector<32x96xf32>, vector<2x96xf32> -> vector<2x96xf32>
    %1383 = arith.addf %1381, %1382 : vector<2x96xf32>
    %cst_350 = arith.constant dense<0.000000e+00> : vector<2x96xf32>
    %1384 = tpu.matmul %1359, %20, %cst_350 {dimension_numbers = #tpu.dot_dimension_numbers<[1], [0], [0], [1], [0, 0, 1, 1], [], []>} : vector<2x16xf32>, vector<16x96xf32>, vector<2x96xf32> -> vector<2x96xf32>
    %1385 = arith.addf %1383, %1384 : vector<2x96xf32>
    %cst_351 = arith.constant dense<0.000000e+00> : vector<2x96xf32>
    %1386 = tpu.matmul %1380, %21, %cst_351 {dimension_numbers = #tpu.dot_dimension_numbers<[1], [0], [0], [1], [0, 0, 1, 1], [], []>} : vector<2x16xf32>, vector<16x96xf32>, vector<2x96xf32> -> vector<2x96xf32>
    %1387 = arith.addf %1385, %1386 : vector<2x96xf32>
    %1388 = vector.broadcast %22 : vector<1x96xf32> to vector<2x96xf32>
    %1389 = arith.addf %1387, %1388 : vector<2x96xf32>
    %1390 = vector.extract_strided_slice %1389 {offsets = [0, 0], sizes = [2, 32], strides = [1, 1]} : vector<2x96xf32> to vector<2x32xf32>
    %1391 = vector.extract_strided_slice %1313 {offsets = [0, 0], sizes = [2, 32], strides = [1, 1]} : vector<2x96xf32> to vector<2x32xf32>
    %1392 = arith.addf %1390, %1391 : vector<2x32xf32>
    %1393 = arith.negf %1392 : vector<2x32xf32>
    %1394 = math.exp %1393 : vector<2x32xf32>
    %cst_352 = arith.constant 1.000000e+00 : f32
    %1395 = vector.broadcast %cst_352 : f32 to vector<2x32xf32>
    %1396 = arith.addf %1395, %1394 : vector<2x32xf32>
    %1397 = arith.divf %1395, %1396 : vector<2x32xf32>
    %1398 = vector.extract_strided_slice %1389 {offsets = [0, 32], sizes = [2, 32], strides = [1, 1]} : vector<2x96xf32> to vector<2x32xf32>
    %1399 = vector.extract_strided_slice %1313 {offsets = [0, 32], sizes = [2, 32], strides = [1, 1]} : vector<2x96xf32> to vector<2x32xf32>
    %1400 = arith.addf %1398, %1399 : vector<2x32xf32>
    %1401 = arith.negf %1400 : vector<2x32xf32>
    %1402 = math.exp %1401 : vector<2x32xf32>
    %cst_353 = arith.constant 1.000000e+00 : f32
    %1403 = vector.broadcast %cst_353 : f32 to vector<2x32xf32>
    %1404 = arith.addf %1403, %1402 : vector<2x32xf32>
    %1405 = arith.divf %1403, %1404 : vector<2x32xf32>
    %1406 = vector.extract_strided_slice %1389 {offsets = [0, 64], sizes = [2, 32], strides = [1, 1]} : vector<2x96xf32> to vector<2x32xf32>
    %1407 = vector.extract_strided_slice %1313 {offsets = [0, 64], sizes = [2, 32], strides = [1, 1]} : vector<2x96xf32> to vector<2x32xf32>
    %1408 = arith.mulf %1397, %1407 : vector<2x32xf32>
    %1409 = arith.addf %1406, %1408 : vector<2x32xf32>
    %1410 = math.tanh %1409 : vector<2x32xf32>
    %cst_354 = arith.constant 1.000000e+00 : f32
    %1411 = vector.broadcast %cst_354 : f32 to vector<2x32xf32>
    %1412 = arith.subf %1411, %1405 : vector<2x32xf32>
    %1413 = arith.mulf %1412, %1410 : vector<2x32xf32>
    %1414 = arith.mulf %1405, %1303 : vector<2x32xf32>
    %1415 = arith.addf %1413, %1414 : vector<2x32xf32>
    %cst_355 = arith.constant dense<0.000000e+00> : vector<2x96xf32>
    %1416 = tpu.matmul %1415, %23, %cst_355 {dimension_numbers = #tpu.dot_dimension_numbers<[1], [0], [0], [1], [0, 0, 1, 1], [], []>} : vector<2x32xf32>, vector<32x96xf32>, vector<2x96xf32> -> vector<2x96xf32>
    %1417 = vector.broadcast %24 : vector<1x96xf32> to vector<2x96xf32>
    %1418 = arith.addf %1416, %1417 : vector<2x96xf32>
    %1419 = vector.extract_strided_slice %1418 {offsets = [0, 0], sizes = [2, 64], strides = [1, 1]} : vector<2x96xf32> to vector<2x64xf32>
    %1420 = vector.extract_strided_slice %1418 {offsets = [0, 64], sizes = [2, 32], strides = [1, 1]} : vector<2x96xf32> to vector<2x32xf32>
    %1421 = vector.shape_cast %1415 : vector<2x32xf32> to vector<2x1x32xf32>
    %1422 = vector.broadcast %1421 : vector<2x1x32xf32> to vector<2x8x32xf32>
    %1423 = arith.mulf %1422, %0 : vector<2x8x32xf32>
    %cst_356 = arith.constant dense<0.000000e+00> : vector<2x8xf32>
    %1424 = vector.multi_reduction <add>, %1423, %cst_356 [2] : vector<2x8x32xf32> to vector<2x8xf32>
    %1425 = vector.shape_cast %1420 : vector<2x32xf32> to vector<2x1x32xf32>
    %1426 = vector.broadcast %1425 : vector<2x1x32xf32> to vector<2x4x32xf32>
    %1427 = arith.addf %1426, %7 : vector<2x4x32xf32>
    %1428 = math.tanh %1427 : vector<2x4x32xf32>
    %1429 = vector.shape_cast %15 : vector<1x32xf32> to vector<1x1x32xf32>
    %1430 = vector.broadcast %1429 : vector<1x1x32xf32> to vector<2x4x32xf32>
    %1431 = arith.mulf %1428, %1430 : vector<2x4x32xf32>
    %cst_357 = arith.constant dense<0.000000e+00> : vector<2x4xf32>
    %1432 = vector.multi_reduction <add>, %1431, %cst_357 [2] : vector<2x4x32xf32> to vector<2x4xf32>
    %1433 = vector.shape_cast %1420 : vector<2x32xf32> to vector<2x1x32xf32>
    %1434 = vector.broadcast %1433 : vector<2x1x32xf32> to vector<2x4x32xf32>
    %1435 = arith.addf %1434, %8 : vector<2x4x32xf32>
    %1436 = math.tanh %1435 : vector<2x4x32xf32>
    %1437 = vector.shape_cast %15 : vector<1x32xf32> to vector<1x1x32xf32>
    %1438 = vector.broadcast %1437 : vector<1x1x32xf32> to vector<2x4x32xf32>
    %1439 = arith.mulf %1436, %1438 : vector<2x4x32xf32>
    %cst_358 = arith.constant dense<0.000000e+00> : vector<2x4xf32>
    %1440 = vector.multi_reduction <add>, %1439, %cst_358 [2] : vector<2x4x32xf32> to vector<2x4xf32>
    %cst_359 = arith.constant dense<0xFF800000> : vector<2xf32>
    %1441 = vector.multi_reduction <maximumf>, %1419, %cst_359 [1] : vector<2x64xf32> to vector<2xf32>
    %1442 = vector.shape_cast %1441 : vector<2xf32> to vector<2x1xf32>
    %cst_360 = arith.constant dense<0xFF800000> : vector<2xf32>
    %1443 = vector.multi_reduction <maximumf>, %1424, %cst_360 [1] : vector<2x8xf32> to vector<2xf32>
    %1444 = vector.shape_cast %1443 : vector<2xf32> to vector<2x1xf32>
    %cst_361 = arith.constant dense<0xFF800000> : vector<2xf32>
    %1445 = vector.multi_reduction <maximumf>, %1432, %cst_361 [1] : vector<2x4xf32> to vector<2xf32>
    %1446 = vector.shape_cast %1445 : vector<2xf32> to vector<2x1xf32>
    %cst_362 = arith.constant dense<0xFF800000> : vector<2xf32>
    %1447 = vector.multi_reduction <maximumf>, %1440, %cst_362 [1] : vector<2x4xf32> to vector<2xf32>
    %1448 = vector.shape_cast %1447 : vector<2xf32> to vector<2x1xf32>
    %1449 = arith.maximumf %1446, %1448 : vector<2x1xf32>
    %1450 = arith.maximumf %1444, %1449 : vector<2x1xf32>
    %1451 = arith.maximumf %1442, %1450 : vector<2x1xf32>
    %1452 = vector.broadcast %1451 : vector<2x1xf32> to vector<2x64xf32>
    %1453 = arith.subf %1419, %1452 : vector<2x64xf32>
    %1454 = math.exp %1453 : vector<2x64xf32>
    %1455 = vector.broadcast %1451 : vector<2x1xf32> to vector<2x8xf32>
    %1456 = arith.subf %1424, %1455 : vector<2x8xf32>
    %1457 = math.exp %1456 : vector<2x8xf32>
    %1458 = vector.broadcast %1451 : vector<2x1xf32> to vector<2x4xf32>
    %1459 = arith.subf %1432, %1458 : vector<2x4xf32>
    %1460 = math.exp %1459 : vector<2x4xf32>
    %1461 = vector.broadcast %1451 : vector<2x1xf32> to vector<2x4xf32>
    %1462 = arith.subf %1440, %1461 : vector<2x4xf32>
    %1463 = math.exp %1462 : vector<2x4xf32>
    %cst_363 = arith.constant dense<0.000000e+00> : vector<2xf32>
    %1464 = vector.multi_reduction <add>, %1454, %cst_363 [1] : vector<2x64xf32> to vector<2xf32>
    %1465 = vector.shape_cast %1464 : vector<2xf32> to vector<2x1xf32>
    %cst_364 = arith.constant dense<0.000000e+00> : vector<2xf32>
    %1466 = vector.multi_reduction <add>, %1457, %cst_364 [1] : vector<2x8xf32> to vector<2xf32>
    %1467 = vector.shape_cast %1466 : vector<2xf32> to vector<2x1xf32>
    %1468 = arith.addf %1465, %1467 : vector<2x1xf32>
    %cst_365 = arith.constant dense<0.000000e+00> : vector<2xf32>
    %1469 = vector.multi_reduction <add>, %1460, %cst_365 [1] : vector<2x4xf32> to vector<2xf32>
    %1470 = vector.shape_cast %1469 : vector<2xf32> to vector<2x1xf32>
    %1471 = arith.addf %1468, %1470 : vector<2x1xf32>
    %cst_366 = arith.constant dense<0.000000e+00> : vector<2xf32>
    %1472 = vector.multi_reduction <add>, %1463, %cst_366 [1] : vector<2x4xf32> to vector<2xf32>
    %1473 = vector.shape_cast %1472 : vector<2xf32> to vector<2x1xf32>
    %1474 = arith.addf %1471, %1473 : vector<2x1xf32>
    %1475 = tpu.reciprocal %1474 {approx = true} : vector<2x1xf32> -> vector<2x1xf32>
    %1476 = vector.broadcast %1475 : vector<2x1xf32> to vector<2x64xf32>
    %1477 = arith.mulf %1454, %1476 : vector<2x64xf32>
    %1478 = vector.broadcast %1475 : vector<2x1xf32> to vector<2x8xf32>
    %1479 = arith.mulf %1457, %1478 : vector<2x8xf32>
    %1480 = vector.broadcast %1475 : vector<2x1xf32> to vector<2x4xf32>
    %1481 = arith.mulf %1460, %1480 : vector<2x4xf32>
    %1482 = vector.broadcast %1475 : vector<2x1xf32> to vector<2x4xf32>
    %1483 = arith.mulf %1463, %1482 : vector<2x4xf32>
    %1484 = vector.shape_cast %1481 : vector<2x4xf32> to vector<2x4x1xf32>
    %1485 = vector.broadcast %1484 : vector<2x4x1xf32> to vector<2x4x64xf32>
    %1486 = arith.mulf %1485, %9 : vector<2x4x64xf32>
    %cst_367 = arith.constant dense<0.000000e+00> : vector<2x64xf32>
    %1487 = vector.multi_reduction <add>, %1486, %cst_367 [1] : vector<2x4x64xf32> to vector<2x64xf32>
    %1488 = vector.shape_cast %1483 : vector<2x4xf32> to vector<2x4x1xf32>
    %1489 = vector.broadcast %1488 : vector<2x4x1xf32> to vector<2x4x64xf32>
    %1490 = arith.mulf %1489, %10 : vector<2x4x64xf32>
    %cst_368 = arith.constant dense<0.000000e+00> : vector<2x64xf32>
    %1491 = vector.multi_reduction <add>, %1490, %cst_368 [1] : vector<2x4x64xf32> to vector<2x64xf32>
    %cst_369 = arith.constant 5.000000e-01 : f32
    %1492 = vector.broadcast %cst_369 : f32 to vector<2x64xf32>
    %1493 = arith.mulf %1492, %1487 : vector<2x64xf32>
    %1494 = arith.addf %1477, %1493 : vector<2x64xf32>
    %cst_370 = arith.constant 3.000000e-01 : f32
    %1495 = vector.broadcast %cst_370 : f32 to vector<2x64xf32>
    %1496 = arith.mulf %1495, %1491 : vector<2x64xf32>
    %1497 = arith.addf %1494, %1496 : vector<2x64xf32>
    %1498 = vector.shape_cast %1479 : vector<2x8xf32> to vector<2x8x1xf32>
    %1499 = vector.broadcast %1498 : vector<2x8x1xf32> to vector<2x8x64xf32>
    %1500 = arith.mulf %1499, %11 : vector<2x8x64xf32>
    %cst_371 = arith.constant dense<0.000000e+00> : vector<2x64xf32>
    %1501 = vector.multi_reduction <add>, %1500, %cst_371 [1] : vector<2x8x64xf32> to vector<2x64xf32>
    %1502 = arith.addf %1497, %1501 : vector<2x64xf32>
    %1503 = math.log %1502 : vector<2x64xf32>
    %cst_372 = arith.constant 5.000000e-01 : f32
    %1504 = vector.broadcast %cst_372 : f32 to vector<2x1xf32>
    %1505 = arith.cmpf ogt, %1309, %1504 : vector<2x1xf32>
    %cst_373 = arith.constant 0.000000e+00 : f32
    %1506 = vector.shape_cast %1505 : vector<2x1xi1> to vector<2x1xi1>
    %1507 = vector.broadcast %1506 : vector<2x1xi1> to vector<2x64xi1>
    %1508 = vector.broadcast %cst_373 : f32 to vector<2x64xf32>
    %1509 = arith.select %1507, %1503, %1508 : vector<2x64xi1>, vector<2x64xf32>
    %1510 = arith.index_cast %c6_i32 : i32 to index
    %c0_374 = arith.constant 0 : index
    %c0_375 = arith.constant 0 : index
    %1511 = vector.load %arg28[%1510, %c0_374, %c0_375] : memref<8x2x64xf32, #tpu.memory_space<vmem>>, vector<1x2x64xf32>
    %1512 = vector.shape_cast %1511 : vector<1x2x64xf32> to vector<2x64xf32>
    %1513 = vector.shape_cast %1509 : vector<2x64xf32> to vector<1x2x64xf32>
    tpu.vector_store %arg28[%1510, %c0_374, %c0_375], %1513 {strides = array<i32>} : memref<8x2x64xf32, #tpu.memory_space<vmem>>, vector<1x2x64xf32>,
    %1514 = vector.shape_cast %1505 : vector<2x1xi1> to vector<2x1xi1>
    %1515 = vector.broadcast %1514 : vector<2x1xi1> to vector<2x32xi1>
    %1516 = arith.select %1515, %1415, %1303 : vector<2x32xi1>, vector<2x32xf32>
    %c7_i32 = arith.constant 7 : i32
    %1517 = arith.index_cast %c7_i32 : i32 to index
    %c0_376 = arith.constant 0 : index
    %c0_377 = arith.constant 0 : index
    %1518 = vector.load %arg0[%1517, %c0_376, %c0_377] : memref<8x2x16xf32, #tpu.memory_space<vmem>>, vector<1x2x16xf32>
    %1519 = vector.shape_cast %1518 : vector<1x2x16xf32> to vector<2x16xf32>
    %1520 = arith.index_cast %c7_i32 : i32 to index
    %c0_378 = arith.constant 0 : index
    %c0_379 = arith.constant 0 : index
    %1521 = vector.load %arg1[%1520, %c0_378, %c0_379] : memref<8x2x1xf32, #tpu.memory_space<vmem>>, vector<1x2x1xf32>
    %1522 = vector.shape_cast %1521 : vector<1x2x1xf32> to vector<2x1xf32>
    %cst_380 = arith.constant dense<0.000000e+00> : vector<2x192xf32>
    %1523 = tpu.matmul %1516, %16, %cst_380 {dimension_numbers = #tpu.dot_dimension_numbers<[1], [0], [0], [1], [0, 0, 1, 1], [], []>} : vector<2x32xf32>, vector<32x192xf32>, vector<2x192xf32> -> vector<2x192xf32>
    %1524 = vector.broadcast %17 : vector<1x192xf32> to vector<2x192xf32>
    %1525 = arith.addf %1523, %1524 : vector<2x192xf32>
    %1526 = vector.extract_strided_slice %1525 {offsets = [0, 0], sizes = [2, 96], strides = [1, 1]} : vector<2x192xf32> to vector<2x96xf32>
    %1527 = vector.extract_strided_slice %1525 {offsets = [0, 96], sizes = [2, 32], strides = [1, 1]} : vector<2x192xf32> to vector<2x32xf32>
    %1528 = vector.extract_strided_slice %1525 {offsets = [0, 128], sizes = [2, 32], strides = [1, 1]} : vector<2x192xf32> to vector<2x32xf32>
    %1529 = vector.extract_strided_slice %1525 {offsets = [0, 160], sizes = [2, 32], strides = [1, 1]} : vector<2x192xf32> to vector<2x32xf32>
    %1530 = vector.shape_cast %1527 : vector<2x32xf32> to vector<2x1x32xf32>
    %1531 = vector.broadcast %1530 : vector<2x1x32xf32> to vector<2x8x32xf32>
    %1532 = arith.addf %1531, %1 : vector<2x8x32xf32>
    %1533 = math.tanh %1532 : vector<2x8x32xf32>
    %1534 = vector.shape_cast %12 : vector<1x32xf32> to vector<1x1x32xf32>
    %1535 = vector.broadcast %1534 : vector<1x1x32xf32> to vector<2x8x32xf32>
    %1536 = arith.mulf %1533, %1535 : vector<2x8x32xf32>
    %cst_381 = arith.constant dense<0.000000e+00> : vector<2x8xf32>
    %1537 = vector.multi_reduction <add>, %1536, %cst_381 [2] : vector<2x8x32xf32> to vector<2x8xf32>
    %1538 = arith.addf %1537, %2 : vector<2x8xf32>
    %cst_382 = arith.constant dense<0xFF800000> : vector<2xf32>
    %1539 = vector.multi_reduction <maximumf>, %1538, %cst_382 [1] : vector<2x8xf32> to vector<2xf32>
    %1540 = vector.shape_cast %1539 : vector<2xf32> to vector<2x1xf32>
    %1541 = vector.broadcast %1540 : vector<2x1xf32> to vector<2x8xf32>
    %1542 = arith.subf %1538, %1541 : vector<2x8xf32>
    %1543 = math.exp %1542 : vector<2x8xf32>
    %cst_383 = arith.constant dense<0.000000e+00> : vector<2xf32>
    %1544 = vector.multi_reduction <add>, %1543, %cst_383 [1] : vector<2x8xf32> to vector<2xf32>
    %1545 = vector.shape_cast %1544 : vector<2xf32> to vector<2x1xf32>
    %1546 = vector.broadcast %1545 : vector<2x1xf32> to vector<2x8xf32>
    %1547 = arith.divf %1543, %1546 : vector<2x8xf32>
    %1548 = vector.shape_cast %1547 : vector<2x8xf32> to vector<2x8x1xf32>
    %1549 = vector.broadcast %1548 : vector<2x8x1xf32> to vector<2x8x32xf32>
    %1550 = arith.mulf %1549, %0 : vector<2x8x32xf32>
    %cst_384 = arith.constant dense<0.000000e+00> : vector<2x32xf32>
    %1551 = vector.multi_reduction <add>, %1550, %cst_384 [1] : vector<2x8x32xf32> to vector<2x32xf32>
    %1552 = vector.shape_cast %1528 : vector<2x32xf32> to vector<2x1x32xf32>
    %1553 = vector.broadcast %1552 : vector<2x1x32xf32> to vector<2x4x32xf32>
    %1554 = arith.addf %1553, %4 : vector<2x4x32xf32>
    %1555 = math.tanh %1554 : vector<2x4x32xf32>
    %1556 = vector.shape_cast %13 : vector<1x32xf32> to vector<1x1x32xf32>
    %1557 = vector.broadcast %1556 : vector<1x1x32xf32> to vector<2x4x32xf32>
    %1558 = arith.mulf %1555, %1557 : vector<2x4x32xf32>
    %cst_385 = arith.constant dense<0.000000e+00> : vector<2x4xf32>
    %1559 = vector.multi_reduction <add>, %1558, %cst_385 [2] : vector<2x4x32xf32> to vector<2x4xf32>
    %cst_386 = arith.constant dense<0xFF800000> : vector<2xf32>
    %1560 = vector.multi_reduction <maximumf>, %1559, %cst_386 [1] : vector<2x4xf32> to vector<2xf32>
    %1561 = vector.shape_cast %1560 : vector<2xf32> to vector<2x1xf32>
    %1562 = vector.broadcast %1561 : vector<2x1xf32> to vector<2x4xf32>
    %1563 = arith.subf %1559, %1562 : vector<2x4xf32>
    %1564 = math.exp %1563 : vector<2x4xf32>
    %cst_387 = arith.constant dense<0.000000e+00> : vector<2xf32>
    %1565 = vector.multi_reduction <add>, %1564, %cst_387 [1] : vector<2x4xf32> to vector<2xf32>
    %1566 = vector.shape_cast %1565 : vector<2xf32> to vector<2x1xf32>
    %1567 = vector.broadcast %1566 : vector<2x1xf32> to vector<2x4xf32>
    %1568 = arith.divf %1564, %1567 : vector<2x4xf32>
    %1569 = vector.shape_cast %1568 : vector<2x4xf32> to vector<2x4x1xf32>
    %1570 = vector.broadcast %1569 : vector<2x4x1xf32> to vector<2x4x16xf32>
    %1571 = arith.mulf %1570, %3 : vector<2x4x16xf32>
    %cst_388 = arith.constant dense<0.000000e+00> : vector<2x16xf32>
    %1572 = vector.multi_reduction <add>, %1571, %cst_388 [1] : vector<2x4x16xf32> to vector<2x16xf32>
    %1573 = vector.shape_cast %1529 : vector<2x32xf32> to vector<2x1x32xf32>
    %1574 = vector.broadcast %1573 : vector<2x1x32xf32> to vector<2x4x32xf32>
    %1575 = arith.addf %1574, %6 : vector<2x4x32xf32>
    %1576 = math.tanh %1575 : vector<2x4x32xf32>
    %1577 = vector.shape_cast %14 : vector<1x32xf32> to vector<1x1x32xf32>
    %1578 = vector.broadcast %1577 : vector<1x1x32xf32> to vector<2x4x32xf32>
    %1579 = arith.mulf %1576, %1578 : vector<2x4x32xf32>
    %cst_389 = arith.constant dense<0.000000e+00> : vector<2x4xf32>
    %1580 = vector.multi_reduction <add>, %1579, %cst_389 [2] : vector<2x4x32xf32> to vector<2x4xf32>
    %cst_390 = arith.constant dense<0xFF800000> : vector<2xf32>
    %1581 = vector.multi_reduction <maximumf>, %1580, %cst_390 [1] : vector<2x4xf32> to vector<2xf32>
    %1582 = vector.shape_cast %1581 : vector<2xf32> to vector<2x1xf32>
    %1583 = vector.broadcast %1582 : vector<2x1xf32> to vector<2x4xf32>
    %1584 = arith.subf %1580, %1583 : vector<2x4xf32>
    %1585 = math.exp %1584 : vector<2x4xf32>
    %cst_391 = arith.constant dense<0.000000e+00> : vector<2xf32>
    %1586 = vector.multi_reduction <add>, %1585, %cst_391 [1] : vector<2x4xf32> to vector<2xf32>
    %1587 = vector.shape_cast %1586 : vector<2xf32> to vector<2x1xf32>
    %1588 = vector.broadcast %1587 : vector<2x1xf32> to vector<2x4xf32>
    %1589 = arith.divf %1585, %1588 : vector<2x4xf32>
    %1590 = vector.shape_cast %1589 : vector<2x4xf32> to vector<2x4x1xf32>
    %1591 = vector.broadcast %1590 : vector<2x4x1xf32> to vector<2x4x16xf32>
    %1592 = arith.mulf %1591, %5 : vector<2x4x16xf32>
    %cst_392 = arith.constant dense<0.000000e+00> : vector<2x16xf32>
    %1593 = vector.multi_reduction <add>, %1592, %cst_392 [1] : vector<2x4x16xf32> to vector<2x16xf32>
    %cst_393 = arith.constant dense<0.000000e+00> : vector<2x96xf32>
    %1594 = tpu.matmul %1519, %18, %cst_393 {dimension_numbers = #tpu.dot_dimension_numbers<[1], [0], [0], [1], [0, 0, 1, 1], [], []>} : vector<2x16xf32>, vector<16x96xf32>, vector<2x96xf32> -> vector<2x96xf32>
    %cst_394 = arith.constant dense<0.000000e+00> : vector<2x96xf32>
    %1595 = tpu.matmul %1551, %19, %cst_394 {dimension_numbers = #tpu.dot_dimension_numbers<[1], [0], [0], [1], [0, 0, 1, 1], [], []>} : vector<2x32xf32>, vector<32x96xf32>, vector<2x96xf32> -> vector<2x96xf32>
    %1596 = arith.addf %1594, %1595 : vector<2x96xf32>
    %cst_395 = arith.constant dense<0.000000e+00> : vector<2x96xf32>
    %1597 = tpu.matmul %1572, %20, %cst_395 {dimension_numbers = #tpu.dot_dimension_numbers<[1], [0], [0], [1], [0, 0, 1, 1], [], []>} : vector<2x16xf32>, vector<16x96xf32>, vector<2x96xf32> -> vector<2x96xf32>
    %1598 = arith.addf %1596, %1597 : vector<2x96xf32>
    %cst_396 = arith.constant dense<0.000000e+00> : vector<2x96xf32>
    %1599 = tpu.matmul %1593, %21, %cst_396 {dimension_numbers = #tpu.dot_dimension_numbers<[1], [0], [0], [1], [0, 0, 1, 1], [], []>} : vector<2x16xf32>, vector<16x96xf32>, vector<2x96xf32> -> vector<2x96xf32>
    %1600 = arith.addf %1598, %1599 : vector<2x96xf32>
    %1601 = vector.broadcast %22 : vector<1x96xf32> to vector<2x96xf32>
    %1602 = arith.addf %1600, %1601 : vector<2x96xf32>
    %1603 = vector.extract_strided_slice %1602 {offsets = [0, 0], sizes = [2, 32], strides = [1, 1]} : vector<2x96xf32> to vector<2x32xf32>
    %1604 = vector.extract_strided_slice %1526 {offsets = [0, 0], sizes = [2, 32], strides = [1, 1]} : vector<2x96xf32> to vector<2x32xf32>
    %1605 = arith.addf %1603, %1604 : vector<2x32xf32>
    %1606 = arith.negf %1605 : vector<2x32xf32>
    %1607 = math.exp %1606 : vector<2x32xf32>
    %cst_397 = arith.constant 1.000000e+00 : f32
    %1608 = vector.broadcast %cst_397 : f32 to vector<2x32xf32>
    %1609 = arith.addf %1608, %1607 : vector<2x32xf32>
    %1610 = arith.divf %1608, %1609 : vector<2x32xf32>
    %1611 = vector.extract_strided_slice %1602 {offsets = [0, 32], sizes = [2, 32], strides = [1, 1]} : vector<2x96xf32> to vector<2x32xf32>
    %1612 = vector.extract_strided_slice %1526 {offsets = [0, 32], sizes = [2, 32], strides = [1, 1]} : vector<2x96xf32> to vector<2x32xf32>
    %1613 = arith.addf %1611, %1612 : vector<2x32xf32>
    %1614 = arith.negf %1613 : vector<2x32xf32>
    %1615 = math.exp %1614 : vector<2x32xf32>
    %cst_398 = arith.constant 1.000000e+00 : f32
    %1616 = vector.broadcast %cst_398 : f32 to vector<2x32xf32>
    %1617 = arith.addf %1616, %1615 : vector<2x32xf32>
    %1618 = arith.divf %1616, %1617 : vector<2x32xf32>
    %1619 = vector.extract_strided_slice %1602 {offsets = [0, 64], sizes = [2, 32], strides = [1, 1]} : vector<2x96xf32> to vector<2x32xf32>
    %1620 = vector.extract_strided_slice %1526 {offsets = [0, 64], sizes = [2, 32], strides = [1, 1]} : vector<2x96xf32> to vector<2x32xf32>
    %1621 = arith.mulf %1610, %1620 : vector<2x32xf32>
    %1622 = arith.addf %1619, %1621 : vector<2x32xf32>
    %1623 = math.tanh %1622 : vector<2x32xf32>
    %cst_399 = arith.constant 1.000000e+00 : f32
    %1624 = vector.broadcast %cst_399 : f32 to vector<2x32xf32>
    %1625 = arith.subf %1624, %1618 : vector<2x32xf32>
    %1626 = arith.mulf %1625, %1623 : vector<2x32xf32>
    %1627 = arith.mulf %1618, %1516 : vector<2x32xf32>
    %1628 = arith.addf %1626, %1627 : vector<2x32xf32>
    %cst_400 = arith.constant dense<0.000000e+00> : vector<2x96xf32>
    %1629 = tpu.matmul %1628, %23, %cst_400 {dimension_numbers = #tpu.dot_dimension_numbers<[1], [0], [0], [1], [0, 0, 1, 1], [], []>} : vector<2x32xf32>, vector<32x96xf32>, vector<2x96xf32> -> vector<2x96xf32>
    %1630 = vector.broadcast %24 : vector<1x96xf32> to vector<2x96xf32>
    %1631 = arith.addf %1629, %1630 : vector<2x96xf32>
    %1632 = vector.extract_strided_slice %1631 {offsets = [0, 0], sizes = [2, 64], strides = [1, 1]} : vector<2x96xf32> to vector<2x64xf32>
    %1633 = vector.extract_strided_slice %1631 {offsets = [0, 64], sizes = [2, 32], strides = [1, 1]} : vector<2x96xf32> to vector<2x32xf32>
    %1634 = vector.shape_cast %1628 : vector<2x32xf32> to vector<2x1x32xf32>
    %1635 = vector.broadcast %1634 : vector<2x1x32xf32> to vector<2x8x32xf32>
    %1636 = arith.mulf %1635, %0 : vector<2x8x32xf32>
    %cst_401 = arith.constant dense<0.000000e+00> : vector<2x8xf32>
    %1637 = vector.multi_reduction <add>, %1636, %cst_401 [2] : vector<2x8x32xf32> to vector<2x8xf32>
    %1638 = vector.shape_cast %1633 : vector<2x32xf32> to vector<2x1x32xf32>
    %1639 = vector.broadcast %1638 : vector<2x1x32xf32> to vector<2x4x32xf32>
    %1640 = arith.addf %1639, %7 : vector<2x4x32xf32>
    %1641 = math.tanh %1640 : vector<2x4x32xf32>
    %1642 = vector.shape_cast %15 : vector<1x32xf32> to vector<1x1x32xf32>
    %1643 = vector.broadcast %1642 : vector<1x1x32xf32> to vector<2x4x32xf32>
    %1644 = arith.mulf %1641, %1643 : vector<2x4x32xf32>
    %cst_402 = arith.constant dense<0.000000e+00> : vector<2x4xf32>
    %1645 = vector.multi_reduction <add>, %1644, %cst_402 [2] : vector<2x4x32xf32> to vector<2x4xf32>
    %1646 = vector.shape_cast %1633 : vector<2x32xf32> to vector<2x1x32xf32>
    %1647 = vector.broadcast %1646 : vector<2x1x32xf32> to vector<2x4x32xf32>
    %1648 = arith.addf %1647, %8 : vector<2x4x32xf32>
    %1649 = math.tanh %1648 : vector<2x4x32xf32>
    %1650 = vector.shape_cast %15 : vector<1x32xf32> to vector<1x1x32xf32>
    %1651 = vector.broadcast %1650 : vector<1x1x32xf32> to vector<2x4x32xf32>
    %1652 = arith.mulf %1649, %1651 : vector<2x4x32xf32>
    %cst_403 = arith.constant dense<0.000000e+00> : vector<2x4xf32>
    %1653 = vector.multi_reduction <add>, %1652, %cst_403 [2] : vector<2x4x32xf32> to vector<2x4xf32>
    %cst_404 = arith.constant dense<0xFF800000> : vector<2xf32>
    %1654 = vector.multi_reduction <maximumf>, %1632, %cst_404 [1] : vector<2x64xf32> to vector<2xf32>
    %1655 = vector.shape_cast %1654 : vector<2xf32> to vector<2x1xf32>
    %cst_405 = arith.constant dense<0xFF800000> : vector<2xf32>
    %1656 = vector.multi_reduction <maximumf>, %1637, %cst_405 [1] : vector<2x8xf32> to vector<2xf32>
    %1657 = vector.shape_cast %1656 : vector<2xf32> to vector<2x1xf32>
    %cst_406 = arith.constant dense<0xFF800000> : vector<2xf32>
    %1658 = vector.multi_reduction <maximumf>, %1645, %cst_406 [1] : vector<2x4xf32> to vector<2xf32>
    %1659 = vector.shape_cast %1658 : vector<2xf32> to vector<2x1xf32>
    %cst_407 = arith.constant dense<0xFF800000> : vector<2xf32>
    %1660 = vector.multi_reduction <maximumf>, %1653, %cst_407 [1] : vector<2x4xf32> to vector<2xf32>
    %1661 = vector.shape_cast %1660 : vector<2xf32> to vector<2x1xf32>
    %1662 = arith.maximumf %1659, %1661 : vector<2x1xf32>
    %1663 = arith.maximumf %1657, %1662 : vector<2x1xf32>
    %1664 = arith.maximumf %1655, %1663 : vector<2x1xf32>
    %1665 = vector.broadcast %1664 : vector<2x1xf32> to vector<2x64xf32>
    %1666 = arith.subf %1632, %1665 : vector<2x64xf32>
    %1667 = math.exp %1666 : vector<2x64xf32>
    %1668 = vector.broadcast %1664 : vector<2x1xf32> to vector<2x8xf32>
    %1669 = arith.subf %1637, %1668 : vector<2x8xf32>
    %1670 = math.exp %1669 : vector<2x8xf32>
    %1671 = vector.broadcast %1664 : vector<2x1xf32> to vector<2x4xf32>
    %1672 = arith.subf %1645, %1671 : vector<2x4xf32>
    %1673 = math.exp %1672 : vector<2x4xf32>
    %1674 = vector.broadcast %1664 : vector<2x1xf32> to vector<2x4xf32>
    %1675 = arith.subf %1653, %1674 : vector<2x4xf32>
    %1676 = math.exp %1675 : vector<2x4xf32>
    %cst_408 = arith.constant dense<0.000000e+00> : vector<2xf32>
    %1677 = vector.multi_reduction <add>, %1667, %cst_408 [1] : vector<2x64xf32> to vector<2xf32>
    %1678 = vector.shape_cast %1677 : vector<2xf32> to vector<2x1xf32>
    %cst_409 = arith.constant dense<0.000000e+00> : vector<2xf32>
    %1679 = vector.multi_reduction <add>, %1670, %cst_409 [1] : vector<2x8xf32> to vector<2xf32>
    %1680 = vector.shape_cast %1679 : vector<2xf32> to vector<2x1xf32>
    %1681 = arith.addf %1678, %1680 : vector<2x1xf32>
    %cst_410 = arith.constant dense<0.000000e+00> : vector<2xf32>
    %1682 = vector.multi_reduction <add>, %1673, %cst_410 [1] : vector<2x4xf32> to vector<2xf32>
    %1683 = vector.shape_cast %1682 : vector<2xf32> to vector<2x1xf32>
    %1684 = arith.addf %1681, %1683 : vector<2x1xf32>
    %cst_411 = arith.constant dense<0.000000e+00> : vector<2xf32>
    %1685 = vector.multi_reduction <add>, %1676, %cst_411 [1] : vector<2x4xf32> to vector<2xf32>
    %1686 = vector.shape_cast %1685 : vector<2xf32> to vector<2x1xf32>
    %1687 = arith.addf %1684, %1686 : vector<2x1xf32>
    %1688 = tpu.reciprocal %1687 {approx = true} : vector<2x1xf32> -> vector<2x1xf32>
    %1689 = vector.broadcast %1688 : vector<2x1xf32> to vector<2x64xf32>
    %1690 = arith.mulf %1667, %1689 : vector<2x64xf32>
    %1691 = vector.broadcast %1688 : vector<2x1xf32> to vector<2x8xf32>
    %1692 = arith.mulf %1670, %1691 : vector<2x8xf32>
    %1693 = vector.broadcast %1688 : vector<2x1xf32> to vector<2x4xf32>
    %1694 = arith.mulf %1673, %1693 : vector<2x4xf32>
    %1695 = vector.broadcast %1688 : vector<2x1xf32> to vector<2x4xf32>
    %1696 = arith.mulf %1676, %1695 : vector<2x4xf32>
    %1697 = vector.shape_cast %1694 : vector<2x4xf32> to vector<2x4x1xf32>
    %1698 = vector.broadcast %1697 : vector<2x4x1xf32> to vector<2x4x64xf32>
    %1699 = arith.mulf %1698, %9 : vector<2x4x64xf32>
    %cst_412 = arith.constant dense<0.000000e+00> : vector<2x64xf32>
    %1700 = vector.multi_reduction <add>, %1699, %cst_412 [1] : vector<2x4x64xf32> to vector<2x64xf32>
    %1701 = vector.shape_cast %1696 : vector<2x4xf32> to vector<2x4x1xf32>
    %1702 = vector.broadcast %1701 : vector<2x4x1xf32> to vector<2x4x64xf32>
    %1703 = arith.mulf %1702, %10 : vector<2x4x64xf32>
    %cst_413 = arith.constant dense<0.000000e+00> : vector<2x64xf32>
    %1704 = vector.multi_reduction <add>, %1703, %cst_413 [1] : vector<2x4x64xf32> to vector<2x64xf32>
    %cst_414 = arith.constant 5.000000e-01 : f32
    %1705 = vector.broadcast %cst_414 : f32 to vector<2x64xf32>
    %1706 = arith.mulf %1705, %1700 : vector<2x64xf32>
    %1707 = arith.addf %1690, %1706 : vector<2x64xf32>
    %cst_415 = arith.constant 3.000000e-01 : f32
    %1708 = vector.broadcast %cst_415 : f32 to vector<2x64xf32>
    %1709 = arith.mulf %1708, %1704 : vector<2x64xf32>
    %1710 = arith.addf %1707, %1709 : vector<2x64xf32>
    %1711 = vector.shape_cast %1692 : vector<2x8xf32> to vector<2x8x1xf32>
    %1712 = vector.broadcast %1711 : vector<2x8x1xf32> to vector<2x8x64xf32>
    %1713 = arith.mulf %1712, %11 : vector<2x8x64xf32>
    %cst_416 = arith.constant dense<0.000000e+00> : vector<2x64xf32>
    %1714 = vector.multi_reduction <add>, %1713, %cst_416 [1] : vector<2x8x64xf32> to vector<2x64xf32>
    %1715 = arith.addf %1710, %1714 : vector<2x64xf32>
    %1716 = math.log %1715 : vector<2x64xf32>
    %cst_417 = arith.constant 5.000000e-01 : f32
    %1717 = vector.broadcast %cst_417 : f32 to vector<2x1xf32>
    %1718 = arith.cmpf ogt, %1522, %1717 : vector<2x1xf32>
    %cst_418 = arith.constant 0.000000e+00 : f32
    %1719 = vector.shape_cast %1718 : vector<2x1xi1> to vector<2x1xi1>
    %1720 = vector.broadcast %1719 : vector<2x1xi1> to vector<2x64xi1>
    %1721 = vector.broadcast %cst_418 : f32 to vector<2x64xf32>
    %1722 = arith.select %1720, %1716, %1721 : vector<2x64xi1>, vector<2x64xf32>
    %1723 = arith.index_cast %c7_i32 : i32 to index
    %c0_419 = arith.constant 0 : index
    %c0_420 = arith.constant 0 : index
    %1724 = vector.load %arg28[%1723, %c0_419, %c0_420] : memref<8x2x64xf32, #tpu.memory_space<vmem>>, vector<1x2x64xf32>
    %1725 = vector.shape_cast %1724 : vector<1x2x64xf32> to vector<2x64xf32>
    %1726 = vector.shape_cast %1722 : vector<2x64xf32> to vector<1x2x64xf32>
    tpu.vector_store %arg28[%1723, %c0_419, %c0_420], %1726 {strides = array<i32>} : memref<8x2x64xf32, #tpu.memory_space<vmem>>, vector<1x2x64xf32>,
    %1727 = vector.shape_cast %1718 : vector<2x1xi1> to vector<2x1xi1>
    %1728 = vector.broadcast %1727 : vector<2x1xi1> to vector<2x32xi1>
    %1729 = arith.select %1728, %1628, %1516 : vector<2x32xi1>, vector<2x32xf32>
    %c8_i32 = arith.constant 8 : i32
    return
  }
}

</mosaic_0001>

<bundles_post_ra>
// kernel: rnn_decoder_forward.1
= control target key start
LH: loop header
LB: loop body
LE: loop exit
PB: predicated region body
PF: predicated region fallthrough
CT: control target
= control target key end

     0   :  { %v15366_v3 = vmov 0.0   ;;  %s12012_s29 = smov 96   ;;  %vm155_vm0 = vcmask 261120   ;;  %v145_v17 = vlaneseq  ;;  %v12013_v19 = vmov 1966171168   ;;  %s12014_s30 = smov 32   ;;  %s15325_s19 = inlined_call_operand.vmem [shape: f32[32,192], index: 19, kind: input, shape index: {}]   ;;  %s15326_s3 = inlined_call_operand.vmem [shape: f32[2,8,32], index: 3, kind: input, shape index: {}]   ;;  %s15327_s15 = inlined_call_operand.vmem [shape: f32[1,32], index: 15, kind: input, shape index: {}]   ;;  %s15328_s14 = inlined_call_operand.vmem [shape: f32[2,32], index: 14, kind: input, shape index: {}]   ;;  %s15329_s20 = inlined_call_operand.vmem [shape: f32[1,192], index: 20, kind: input, shape index: {}]   ;;  %s15330_s8 = inlined_call_operand.vmem [shape: f32[2,4,32], index: 8, kind: input, shape index: {}]   ;;  %s15331_s17 = inlined_call_operand.vmem [shape: f32[1,32], index: 17, kind: input, shape index: {}]   ;;  %s15332_s4 = inlined_call_operand.vmem [shape: f32[2,8], index: 4, kind: input, shape index: {}]   ;;  %s15333_s6 = inlined_call_operand.vmem [shape: f32[2,4,32], index: 6, kind: input, shape index: {}]   ;;  %s15334_s16 = inlined_call_operand.vmem [shape: f32[1,32], index: 16, kind: input, shape index: {}]   ;;  %s15335_s22 = inlined_call_operand.vmem [shape: f32[32,96], index: 22, kind: input, shape index: {}]   ;;  %s15336_s1 = inlined_call_operand.vmem [shape: f32[8,2,1], index: 1, kind: input, shape index: {}]   ;;  %s15337_s24 = inlined_call_operand.vmem [shape: f32[16,96], index: 24, kind: input, shape index: {}]   ;;  %s15338_s2 = inlined_call_operand.vmem [shape: f32[2,8,32], index: 2, kind: input, shape index: {}]   ;;  %s15339_s5 = inlined_call_operand.vmem [shape: f32[2,4,16], index: 5, kind: input, shape index: {}]   ;;  %s15340_s21 = inlined_call_operand.vmem [shape: f32[16,96], index: 21, kind: input, shape index: {}]   ;;  %s15341_s23 = inlined_call_operand.vmem [shape: f32[16,96], index: 23, kind: input, shape index: {}]   ;;  %s15342_s0 = inlined_call_operand.vmem [shape: f32[8,2,16], index: 0, kind: input, shape index: {}]   ;;  %s15343_s7 = inlined_call_operand.vmem [shape: f32[2,4,16], index: 7, kind: input, shape index: {}]   ;;  %s15344_s25 = inlined_call_operand.vmem [shape: f32[1,96], index: 25, kind: input, shape index: {}]   ;;  %s15345_s26 = inlined_call_operand.vmem [shape: f32[32,96], index: 26, kind: input, shape index: {}]   ;;  %s15346_s9 = inlined_call_operand.vmem [shape: f32[2,4,32], index: 9, kind: input, shape index: {}]   ;;  %s15347_s18 = inlined_call_operand.vmem [shape: f32[1,32], index: 18, kind: input, shape index: {}]   ;;  %s15348_s27 = inlined_call_operand.vmem [shape: f32[1,96], index: 27, kind: input, shape index: {}]   ;;  %s15349_s10 = inlined_call_operand.vmem [shape: f32[2,4,32], index: 10, kind: input, shape index: {}]   ;;  %s15350_s11 = inlined_call_operand.vmem [shape: f32[2,4,64], index: 11, kind: input, shape index: {}]   ;;  %s15351_s12 = inlined_call_operand.vmem [shape: f32[2,4,64], index: 12, kind: input, shape index: {}]   ;;  %s15352_s13 = inlined_call_operand.vmem [shape: f32[2,8,64], index: 13, kind: input, shape index: {}]   ;;  %s15353_s28 = inlined_call_operand.vmem [shape: f32[8,2,64], index: 28, kind: output, shape index: {}]  }
   0x1   :  { %15420 = sst [smem:[#allocation39_spill]] %s15325_s19  ;;  %223 = vmatprep.mubr.f32.mxu0 %v15366_v3  ;;  %v232_v20 = vunpack.c.l.s4 %v12013_v19  ;;  %vm467_vm1 = vcmask 257024   ;;  %vm336_vm2 = vcmask 1041409   ;;  %vm486_vm3 = vcmask 25600  }
   0x2   :  { %15421 = sst [smem:[#allocation40_spill]] %s15326_s3  ;;  %v12221_v18 = vshrl.u32 %v145_v17, 7  ;;  %vm339_vm4 = vcmask 58368   ;;  %vm12017_vm5 = vmmov 0   ;;  %vm555_vm7 = vcmask 125952  }
   0x3   :  { %15422 = sst [smem:[#allocation41_spill]] %s15327_s15  ;;  %s15437_s19 = sld [smem:[#allocation40_spill]]  ;;  %v233_v23 = vunpack.c.0.s8 %v232_v20  ;;  %10828 = vmatprep.mubr.msk.f32.mxu1 %vm12017_vm5, %v15366_v3  ;;  %vm775_vm8 = vcmask 130048  }
   0x4   :  { %15423 = sst [smem:[#allocation42_spill]] %s15328_s14  ;;  %s15438_s3 = sld [smem:[#allocation41_spill]]  ;;  %v12224_v21 = vsub.s32 0, %v12221_v18  ;;  %v12270_v48 = vsub.s32 1, %v12221_v18 }
   0x5   :  { %15424 = sst [smem:[#allocation43_spill]] %s15329_s20  ;;  %v12233_v25 = vsub.s32 %v233_v23, %v12221_v18 }
   0x6   :  { %15425 = sst [smem:[#allocation44_spill]] %s15330_s8  ;;  %s15441_s14 = sld [smem:[#allocation43_spill]] }
   0x7   :  { %15426 = sst [smem:[#allocation45_spill]] %s15331_s17 }
   0x8   :  { %15427 = sst [smem:[#allocation46_spill]] %s15332_s4  ;;  %s15444_s15 = sld [smem:[#allocation45_spill]] }
   0x9   :  { %15428 = sst [smem:[#allocation47_spill]] %s15333_s6  ;;  %v91_v12 = vld [vmem:[%s15437_s19] sm:$0xff]  ;;  %v92_v15 = vld [vmem:[%s15437_s19 + $0x8] sm:$0xff]  ;;  %s15440_s6 = sld [smem:[#allocation42_spill]] }
   0xa   :  { %15429 = sst [smem:[#allocation48_spill]] %s15334_s16  ;;  %s15433_s16 = sld [smem:[#allocation39_spill]]  ;;  %v10586_v13 = vld [vmem:[%s15438_s3] ss:$0 sm:$0xff]  ;;  %265 = vrot.lane.b32.xlu0 %v91_v12, %s12012_s29 }
   0xb   :  { %15430 = sst [smem:[#allocation49_spill]] %s15335_s22  ;;  %280 = vrot.lane.b32.xlu1 %v10586_v13, %s12012_s29  ;;  %s15445_s8 = sld [smem:[#allocation46_spill]] }
   0xc   :  { %15431 = sst [smem:[#allocation50_spill]] %s15336_s1  ;;  %v124_v22 = vld [vmem:[%s15441_s14] sm:$0x3]  ;;  %s15443_s1 = sld [smem:[#allocation44_spill]] }
   0xd   :  { %15432 = sst [smem:[#allocation51_spill]] %s15337_s24  ;;  %v12230_v24 = vrot.slane %v124_v22, %v12224_v21  ;;  %v12277_v51 = vrot.slane %v124_v22, %v12270_v48  ;;  %s15450_s17 = sld [smem:[#allocation47_spill]] }
   0xe   :  { %267 = vrot.lane.b32.xlu0 %v92_v15, %s12012_s29  ;;  %v10588_v46 = vld [vmem:[%s15444_s15] ss:$0 sm:$0xff]  ;;  %s15454_s24 = sld [smem:[#allocation49_spill]]  ;;  %s15457_s4 = sld [smem:[#allocation50_spill]] }
   0xf   :  { %v12215_v16 = vld [vmem:[%s15440_s6] sm:$0x3]  ;;  %15446 = vst [vmem:[#allocation7_spill] sm:$0xff] %v12277_v51  ;;  %s12018_s15 = smov 64  }
  0x10   :  { %v117_v0 = vld [vmem:[%s15433_s16 + $0x8] sm:$0xff]  ;;  %v119_v1 = vld [vmem:[%s15433_s16 + $0x18] sm:$0xff]  ;;  %v116_v2 = vld [vmem:[%s15433_s16] sm:$0xff] }
  0x11   :  { %v12174_v4 = vpack.c.bf16 %v119_v1, %v117_v0  ;;  %v118_v5 = vld [vmem:[%s15433_s16 + $0x10] sm:$0xff]  ;;  %v121_v6 = vld [vmem:[%s15433_s16 + $0x28] sm:$0xff]  ;;  %v123_v7 = vld [vmem:[%s15433_s16 + $0x38] sm:$0xff] }
  0x12   :  { %v12185_v8 = vpack.c.bf16 %v118_v5, %v116_v2  ;;  %v12187_v9 = vpack.c.bf16 %v123_v7, %v121_v6  ;;  %v120_v10 = vld [vmem:[%s15433_s16 + $0x20] sm:$0xff]  ;;  %v122_v11 = vld [vmem:[%s15433_s16 + $0x30] sm:$0xff]  ;;  %v15362_v5 = vmov 0   ;;  %s15451_s16 = sld [smem:[#allocation48_spill]] }
  0x13   :  { %15434 = vst [vmem:[#allocation2_spill] sm:$0xff] %v12174_v4  ;;  %11165 = vmatprep.subr.bf16.mxu0 %v12174_v4  ;;  %v12203_v14 = vpack.c.bf16 %v122_v11, %v120_v10  ;;  %v100_v44 = vld [vmem:[%s15443_s1] sm:$0xf]  ;;  %v101_v45 = vld [vmem:[%s15443_s1 + $0x4] sm:$0xf]  ;;  %11404 = vset.pattern.permute.xlu0 %v15362_v5 }
  0x14   :  { %15435 = vst [vmem:[#allocation3_spill] sm:$0xff] %v12185_v8  ;;  %15436 = vst [vmem:[#allocation4_spill] sm:$0xff] %v12187_v9  ;;  %11167 = vmatpush1.bf16.msra.mxu0 %v12185_v8  ;;  %v93_v47 = vld [vmem:[%s15445_s8] sm:$0x3]  ;;  %11405 = vset.pattern.permute.xlu1 %v15362_v5  ;;  %v12304_v13 = vld [vmem:[%s15450_s17 + $0x4] sm:$0xf] }
  0x15   :  { %15439 = vst [vmem:[#allocation5_spill] sm:$0xff] %v12203_v14  ;;  %11169 = vmatprep.subr.bf16.mxu0 %v12187_v9  ;;  %v303_v49 = vrot.slane %v93_v47, %v12224_v21  ;;  %v310_v50 = vrot.slane %v93_v47, %v12270_v48  ;;  %v12309_v15 = vld [vmem:[%s15450_s17] sm:$0xf]  ;;  %s15458_s8 = sld [smem:[#allocation51_spill]] }
  0x18   :  { %11171 = vmatpush1.bf16.msra.mxu0 %v12203_v14  ;;  %v12316_v23 = vld [vmem:[%s15451_s16] ss:$0 sm:$0xff] }
  0x1b   :  { %10585 = vmatmul.mubr.msk.f32.vlgmr.msra.gmra.mrb[0].mxu0 %vm155_vm0, %v12215_v16 }
  0x1c   :  { %10849 = vmatprep.mubr.msk.f32.mxu0 %vm12017_vm5, %v15366_v3 }
  0x7c   :  { %v12238_v29 = vpop.permute.xlu0 %265 }
  0x7d   :  { %v12250_v39 = vpop.permute.xlu1 %280 }
  0x7e   :  { %15442 = vst [vmem:[#allocation6_spill] sm:$0xff] %v12250_v39 }
  0x80   :  { %v12245_v35 = vpop.permute.xlu0 %267 }
  0xee   :  { %v225_v26 = vpop.f32.mrb[0].mxu0 }
  0xef   :  { %v12236_v27 = vadd.f32 %v225_v26, %v12230_v24  ;;  %v227_v28 = vpop.f32.mrb[1].mxu0 }
  0xf0   :  { %v228_v52 = vadd.f32 %v227_v28, %v12277_v51 }
  0xf1   :  { %v237_v30 = vrot.slane %v12236_v27, %v12233_v25 }
  0xf2   :  { %v429_v53 = vrot.slane %v228_v52, %v12233_v25 }
  0xf3   :  { %v238_v31 = vcombine.high %v237_v30, %v237_v30  ;;  %v245_v32 = vrot.slane %v237_v30, %v12233_v25 }
  0xf4   :  { %v430_v54 = vcombine.high %v429_v53, %v429_v53  ;;  %v437_v55 = vrot.slane %v429_v53, %v12233_v25 }
  0xf5   :  { %v252_v33 = vrot.slane %v238_v31, %v12233_v25  ;;  %v256_v34 = vrot.slane %v245_v32, %v12224_v21 }
  0xf6   :  { %v444_v57 = vrot.slane %v430_v54, %v12233_v25  ;;  %v448_v60 = vrot.slane %v437_v55, %v12224_v21 }
  0xf7   :  { %v260_v36 = vrot.slane %v252_v33, %v12224_v21  ;;  %v271_v37 = vadd.f32 %v12238_v29, %v256_v34 }
  0xf8   :  { %v452_v63 = vrot.slane %v444_v57, %v12224_v21  ;;  %v455_v20 = vadd.f32 %v448_v60, %v12309_v15 }
  0xf9   :  { %11406 = vtanh.f32 %v271_v37  ;;  %v272_v38 = vadd.f32 %v12245_v35, %v260_v36 }
  0xfa   :  { %v456_v19 = vadd.f32 %v452_v63, %v12304_v13 }
  0xfb   :  { %11408 = vtanh.f32 %v272_v38 }
 0x103   :  { %v11407_v40 = vpop.eup %11406 }
 0x104   :  { %v283_v41 = vmul.f32 %v11407_v40, %v12250_v39 }
 0x105   :  { %v11409_v42 = vpop.eup %11408 }
 0x106   :  { %287 = vrot.lane.b32.xlu1 %v283_v41, %s12014_s30  ;;  %v284_v43 = vmul.f32 %v11409_v42, %v12250_v39 }
 0x108   :  { %289 = vrot.lane.b32.xlu0 %v284_v43, %s12014_s30 }
 0x10a   :  { %572 = vrot.lane.b32.xlu1 %v100_v44, %s12014_s30 }
 0x10c   :  { %574 = vrot.lane.b32.xlu0 %v101_v45, %s12014_s30  ;;  %v327_v45 = vand.u32 127, %v145_v17 }
 0x10e   :  { %587 = vrot.lane.b32.xlu1 %v10588_v46, %s12014_s30  ;;  %v12332_v46 = vsub.s32 %v327_v45, %v12221_v18 }
 0x110   :  { %305 = vbcast.lane.b32.xlu0 %v303_v49, 256 }
 0x112   :  { %312 = vbcast.lane.b32.xlu1 %v310_v50, 256 }
 0x178   :  { %v288_v56 = vpop.permute.xlu1 %287 }
 0x179   :  { %v293_v58 = vsel %vm155_vm0, %v288_v56, 0.0 }
 0x17a   :  { %294 = vadd.xlane.f32.xlu0 %v293_v58  ;;  %v290_v59 = vpop.permute.xlu0 %289 }
 0x17b   :  { %v296_v61 = vsel %vm155_vm0, %v290_v59, 0.0 }
 0x17c   :  { %v12286_v62 = vpop.permute.xlu1 %572  ;;  %297 = vadd.xlane.f32.xlu1 %v296_v61 }
 0x17d   :  { %15447 = vst [vmem:[#allocation8_spill] sm:$0xff] %v12286_v62  ;;  %v578_v0 = vadd.f32 %v12286_v62, %v448_v60 }
 0x17e   :  { %v12290_v1 = vpop.permute.xlu0 %574 }
 0x17f   :  { %15448 = vst [vmem:[#allocation9_spill] sm:$0xff] %v12290_v1  ;;  %v579_v2 = vadd.f32 %v12290_v1, %v452_v63  ;;  %11410 = vtanh.f32 %v578_v0 }
 0x180   :  { %v12295_v10 = vpop.permute.xlu1 %587 }
 0x181   :  { %11412 = vtanh.f32 %v579_v2  ;;  %15449 = vst [vmem:[#allocation10_spill] sm:$0xff] %v12295_v10 }
 0x182   :  { %11414 = vtanh.f32 %v456_v19  ;;  %v12322_v33 = vpop.permute.xlu0 %305 }
 0x183   :  { %11416 = vtanh.f32 %v455_v20  ;;  %15452 = vst [vmem:[#allocation11_spill] sm:$0xff] %v12322_v33 }
 0x184   :  { %v12324_v34 = vpop.permute.xlu1 %312 }
 0x185   :  { %15453 = vst [vmem:[#allocation12_spill] sm:$0xff] %v12324_v34 }
 0x189   :  { %v11411_v6 = vpop.eup %11410 }
 0x18a   :  { %v590_v12 = vmul.f32 %v11411_v6, %v12295_v10 }
 0x18b   :  { %v11413_v7 = vpop.eup %11412 }
 0x18c   :  { %v591_v11 = vmul.f32 %v11413_v7, %v12295_v10  ;;  %v11415_v22 = vpop.eup %11414 }
 0x18d   :  { %v11417_v26 = vpop.eup %11416  ;;  %v466_v28 = vmul.f32 %v11415_v22, %v12316_v23 }
 0x18e   :  { %596 = vrot.lane.b32.xlu1 %v591_v11, %s12012_s29  ;;  %v465_v30 = vmul.f32 %v11417_v26, %v12316_v23 }
 0x18f   :  { %v471_v31 = vsel %vm467_vm1, %v466_v28, 0.0 }
 0x190   :  { %594 = vrot.lane.b32.xlu0 %v590_v12, %s12012_s29  ;;  %v468_v32 = vsel %vm467_vm1, %v465_v30, 0.0 }
 0x1af   :  { %472 = vadd.xlane.f32.xlu0 %v471_v31 }
 0x1b2   :  { %469 = vadd.xlane.f32.xlu1 %v468_v32 }
 0x207   :  { %v295_v36 = vpop.xlane.xlu0 %294 }
 0x208   :  { %v316_v37 = vadd.f32 %v12322_v33, %v295_v36 }
 0x209   :  { %v298_v38 = vpop.xlane.xlu1 %297 }
 0x20a   :  { %v317_v40 = vadd.f32 %v12324_v34, %v298_v38  ;;  %321 = vperm.xlu0 %11404, %v316_v37  }
 0x20b   :  { %v595_v41 = vpop.permute.xlu0 %594 }
 0x20c   :  { %324 = vperm.xlu1 %11405, %v317_v40   ;;  %v600_v42 = vsel %vm467_vm1, %v595_v41, 0.0 }
 0x20d   :  { %v597_v43 = vpop.permute.xlu1 %596 }
 0x20e   :  { %v603_v44 = vsel %vm467_vm1, %v597_v43, 0.0 }
 0x229   :  { %601 = vadd.xlane.f32.xlu0 %v600_v42 }
 0x230   :  { %604 = vadd.xlane.f32.xlu1 %v603_v44 }
 0x23c   :  { %v473_v47 = vpop.xlane.xlu0 %472 }
 0x23d   :  { %v483_v50 = vrot.slane %v473_v47, %v12332_v46 }
 0x23f   :  { %v470_v49 = vpop.xlane.xlu1 %469 }
 0x240   :  { %v479_v52 = vrot.slane %v470_v49, %v12332_v46 }
 0x242   :  { %v484_v53 = vsel %vm336_vm2, %v483_v50, %v479_v52 }
 0x243   :  { %v487_v54 = vsel %vm486_vm3, %v484_v53, -inf }
 0x244   :  { %488 = vmax.xlane.f32.xlu1 %v487_v54 }
 0x289   :  { %v322_v55 = vpop.permute.xlu0 %321 }
 0x28a   :  { %v331_v17 = vrot.slane %v322_v55, %v12332_v46 }
 0x28b   :  { %v325_v56 = vpop.permute.xlu1 %324 }
 0x28c   :  { %v335_v18 = vrot.slane %v325_v56, %v12332_v46 }
 0x28e   :  { %v337_v57 = vsel %vm336_vm2, %v335_v18, %v331_v17 }
 0x28f   :  { %v340_v58 = vsel %vm339_vm4, %v337_v57, -inf }
 0x290   :  { %341 = vmax.xlane.f32.xlu0 %v340_v58 }
 0x2b6   :  { %v602_v59 = vpop.xlane.xlu0 %601 }
 0x2b7   :  { %v611_v61 = vrot.slane %v602_v59, %v12332_v46 }
 0x2bd   :  { %v605_v60 = vpop.xlane.xlu1 %604 }
 0x2be   :  { %v615_v63 = vrot.slane %v605_v60, %v12332_v46 }
 0x2c0   :  { %v616_v0 = vsel %vm336_vm2, %v615_v63, %v611_v61 }
 0x2c1   :  { %v618_v2 = vsel %vm486_vm3, %v616_v0, -inf }
 0x2c2   :  { %619 = vmax.xlane.f32.xlu0 %v618_v2 }
 0x2d1   :  { %v489_v6 = vpop.xlane.xlu1 %488 }
 0x2d2   :  { %v494_v7 = vrot.slane %v489_v6, %v12224_v21  ;;  %v498_v20 = vrot.slane %v489_v6, %v12270_v48 }
 0x2d4   :  { %v501_v22 = vsub.f32 %v470_v49, %v494_v7  ;;  %v502_v32 = vsub.f32 %v473_v47, %v498_v20 }
 0x2d6   :  { %v503_v36 = vmul.f32 1.442695, %v501_v22  ;;  %v505_v38 = vmul.f32 1.442695, %v502_v32 }
 0x31d   :  { %v342_v11 = vpop.xlane.xlu0 %341 }
 0x31e   :  { %v347_v12 = vrot.slane %v342_v11, %v12224_v21  ;;  %v351_v19 = vrot.slane %v342_v11, %v12270_v48 }
 0x320   :  { %v354_v26 = vsub.f32 %v316_v37, %v347_v12  ;;  %v355_v28 = vsub.f32 %v317_v40, %v351_v19 }
 0x322   :  { %v356_v30 = vmul.f32 1.442695, %v354_v26  ;;  %v358_v31 = vmul.f32 1.442695, %v355_v28 }
 0x324   :  { %11418 = vpow2.f32 %v356_v30 }
 0x325   :  { %11420 = vpow2.f32 %v358_v31 }
 0x326   :  { %11422 = vpow2.f32 %v503_v36 }
 0x327   :  { %11424 = vpow2.f32 %v505_v38 }
 0x32e   :  { %v11419_v41 = vpop.eup %11418 }
 0x32f   :  { %v11421_v42 = vpop.eup %11420  ;;  %363 = vperm.xlu1 %11405, %v11419_v41  }
 0x330   :  { %366 = vperm.xlu0 %11404, %v11421_v42   ;;  %v11423_v43 = vpop.eup %11422 }
 0x331   :  { %v11425_v44 = vpop.eup %11424 }
 0x333   :  { %510 = vperm.xlu1 %11405, %v11423_v43  }
 0x337   :  { %513 = vperm.xlu1 %11405, %v11425_v44  }
 0x34f   :  { %v620_v45 = vpop.xlane.xlu0 %619 }
 0x350   :  { %v625_v37 = vrot.slane %v620_v45, %v12224_v21  ;;  %v629_v40 = vrot.slane %v620_v45, %v12270_v48 }
 0x352   :  { %v632_v47 = vsub.f32 %v602_v59, %v625_v37  ;;  %v633_v49 = vsub.f32 %v605_v60, %v629_v40 }
 0x354   :  { %v634_v50 = vmul.f32 1.442695, %v632_v47  ;;  %v636_v52 = vmul.f32 1.442695, %v633_v49 }
 0x356   :  { %11426 = vpow2.f32 %v634_v50 }
 0x357   :  { %11428 = vpow2.f32 %v636_v52  ;;  %v127_v52 = vld [vmem:[%s15454_s24] sm:$0xff] }
 0x360   :  { %v12352_v53 = vpop.eup %11426 }
 0x361   :  { %v12354_v54 = vpop.eup %11428  ;;  %641 = vperm.xlu0 %11404, %v12352_v53  }
 0x362   :  { %644 = vperm.xlu1 %11405, %v12354_v54  }
 0x3ae   :  { %v364_v55 = vpop.permute.xlu1 %363 }
 0x3af   :  { %v371_v56 = vrot.slane %v364_v55, %v12332_v46  ;;  %v367_v17 = vpop.permute.xlu0 %366  ;;  %v128_v55 = vld [vmem:[%s15454_s24 + $0x8] sm:$0xff] }
 0x3b0   :  { %v375_v18 = vrot.slane %v367_v17, %v12332_v46 }
 0x3b2   :  { %v511_v57 = vpop.permute.xlu1 %510  ;;  %v376_v58 = vsel %vm336_vm2, %v375_v18, %v371_v56  ;;  %v12380_v56 = vpack.c.bf16 %v128_v55, %v127_v52 }
 0x3b3   :  { %v378_v59 = vsel %vm339_vm4, %v376_v58, 0.0  ;;  %v518_v61 = vrot.slane %v511_v57, %v12332_v46 }
 0x3b4   :  { %379 = vadd.xlane.f32.xlu0 %v378_v59  ;;  %15455 = vst [vmem:[#allocation13_spill] sm:$0xff] %v12380_v56 }
 0x3b6   :  { %v514_v60 = vpop.permute.xlu1 %513 }
 0x3b7   :  { %v522_v63 = vrot.slane %v514_v60, %v12332_v46 }
 0x3b9   :  { %v523_v0 = vsel %vm336_vm2, %v522_v63, %v518_v61  ;;  %v143_v63 = vld [vmem:[%s15457_s4] sm:$0x3] }
 0x3ba   :  { %v525_v2 = vsel %vm486_vm3, %v523_v0, 0.0  ;;  %vm1543_vm6 = vcmp.gt.f32.partialorder %v143_v63, 0.5 }
 0x3bb   :  { %526 = vadd.xlane.f32.xlu1 %v525_v2  ;;  %v1544_v0 = vsel %vm1543_vm6, 1, %v15362_v5 }
 0x3e0   :  { %v642_v6 = vpop.permute.xlu0 %641 }
 0x3e1   :  { %v645_v7 = vpop.permute.xlu1 %644  ;;  %v649_v11 = vrot.slane %v642_v6, %v12332_v46  ;;  %v12425_v6 = vld [vmem:[%s15338_s2] sm:$0xff] }
 0x3e2   :  { %v653_v12 = vrot.slane %v645_v7, %v12332_v46  ;;  %v12430_v7 = vld [vmem:[%s15338_s2 + $0x8] sm:$0xff] }
 0x3e4   :  { %v654_v19 = vsel %vm336_vm2, %v653_v12, %v649_v11 }
 0x3e5   :  { %v656_v20 = vsel %vm486_vm3, %v654_v19, 0.0 }
 0x3e6   :  { %657 = vadd.xlane.f32.xlu0 %v656_v20 }
 0x441   :  { %v380_v22 = vpop.xlane.xlu0 %379 }
 0x442   :  { %v385_v26 = vrot.slane %v380_v22, %v12224_v21  ;;  %v389_v28 = vrot.slane %v380_v22, %v12270_v48 }
 0x444   :  { %11430 = vrcp.f32 %v385_v26 }
 0x445   :  { %11432 = vrcp.f32 %v389_v28 }
 0x448   :  { %v527_v30 = vpop.xlane.xlu1 %526 }
 0x449   :  { %v532_v31 = vrot.slane %v527_v30, %v12224_v21  ;;  %v536_v32 = vrot.slane %v527_v30, %v12270_v48  ;;  %v12439_v30 = vld [vmem:[%s15339_s5] sm:$0xf] }
 0x44b   :  { %11434 = vrcp.f32 %v532_v31 }
 0x44c   :  { %11436 = vrcp.f32 %v536_v32  ;;  %v12444_v32 = vld [vmem:[%s15339_s5 + $0x4] sm:$0xf] }
 0x44e   :  { %v11431_v36 = vpop.eup %11430 }
 0x44f   :  { %v11433_v38 = vpop.eup %11432  ;;  %v393_v45 = vmul.f32 %v11431_v36, %v11419_v41  ;;  %v15364_v41 = vmov 0.0|0.0  }
 0x450   :  { %v395_v37 = vmul.f32 %v11433_v38, %v11421_v42  ;;  %11172 = vmatprep.subr.bf16.mxu1 %v15364_v41  ;;  %11184 = vmatprep.subr.bf16.mxu0 %v15364_v41  ;;  %v129_v42 = vld [vmem:[%s15454_s24 + $0x10] sm:$0xff] }
 0x451   :  { %398 = vperm.xlu0 %11404, %v393_v45   ;;  %11174 = vmatpush3.bf16.msra.mxu1 %v12380_v56 }
 0x452   :  { %403 = vperm.xlu1 %11405, %v395_v37   ;;  %11175 = vmatprep.subr.bf16.mxu1 %v15364_v41 }
 0x455   :  { %v11435_v40 = vpop.eup %11434 }
 0x456   :  { %v11437_v47 = vpop.eup %11436  ;;  %v540_v49 = vmul.f32 %v11435_v40, %v11423_v43  ;;  %v130_v43 = vld [vmem:[%s15454_s24 + $0x18] sm:$0xff] }
 0x457   :  { %v542_v50 = vmul.f32 %v11437_v47, %v11425_v44  ;;  %v12392_v44 = vpack.c.bf16 %v130_v43, %v129_v42 }
 0x458   :  { %545 = vperm.xlu1 %11405, %v540_v49  }
 0x459   :  { %550 = vperm.xlu0 %11404, %v542_v50   ;;  %15456 = vst [vmem:[#allocation14_spill] sm:$0xff] %v12392_v44  ;;  %11177 = vmatpush3.bf16.msra.mxu1 %v12392_v44 }
 0x45a   :  { %11178 = vmatprep.subr.bf16.mxu1 %v15364_v41 }
 0x473   :  { %v658_v17 = vpop.xlane.xlu0 %657 }
 0x474   :  { %v663_v18 = vrot.slane %v658_v17, %v12224_v21  ;;  %v667_v57 = vrot.slane %v658_v17, %v12270_v48 }
 0x476   :  { %11438 = vrcp.f32 %v663_v18 }
 0x477   :  { %11440 = vrcp.f32 %v667_v57  ;;  %v125_v57 = vld [vmem:[%s15340_s21] sm:$0xff] }
 0x480   :  { %v11439_v58 = vpop.eup %11438 }
 0x481   :  { %v11441_v59 = vpop.eup %11440  ;;  %v671_v60 = vmul.f32 %v11439_v58, %v12352_v53  ;;  %v133_v53 = vld [vmem:[%s15458_s8] sm:$0xff]  ;;  %v126_v58 = vld [vmem:[%s15340_s21 + $0x8] sm:$0xff] }
 0x482   :  { %v673_v61 = vmul.f32 %v11441_v59, %v12354_v54  ;;  %v134_v54 = vld [vmem:[%s15458_s8 + $0x8] sm:$0xff] }
 0x483   :  { %676 = vperm.xlu1 %11405, %v671_v60   ;;  %v12416_v2 = vpack.c.bf16 %v134_v54, %v133_v53  ;;  %v12456_v54 = vpack.c.bf16 %v126_v58, %v125_v57 }
 0x484   :  { %681 = vperm.xlu0 %11404, %v673_v61  }
 0x485   :  { %15459 = vst [vmem:[#allocation15_spill] sm:$0xff] %v12416_v2  ;;  %11186 = vmatpush3.bf16.msra.mxu0 %v12416_v2  ;;  %15460 = vst [vmem:[#allocation16_spill] sm:$0xff] %v12456_v54 }
 0x486   :  { %11194 = vmatprep.subr.bf16.mxu0 %v12174_v4 }
 0x487   :  { %1015 = vrot.lane.b32.xlu1 %v12236_v27, %s12018_s15 }
 0x48b   :  { %1546 = vperm.xlu1 %11405, %v1544_v0  }
 0x48f   :  { %1031 = vrot.lane.b32.xlu1 %v12215_v16, %s12014_s30 }
 0x4d0   :  { %v399_v11 = vpop.permute.xlu0 %398 }
 0x4d1   :  { %v404_v12 = vpop.permute.xlu1 %403  ;;  %v406_v19 = vmul.f32 %v399_v11, %v12425_v6 }
 0x4d2   :  { %v407_v16 = vmul.f32 %v404_v12, %v12430_v7  ;;  %v131_v12 = vld [vmem:[%s15341_s23] sm:$0xff] }
 0x4d3   :  { %v408_v20 = vsel %vm155_vm0, %v406_v19, 0.0  ;;  %v132_v19 = vld [vmem:[%s15341_s23 + $0x8] sm:$0xff] }
 0x4d4   :  { %v415_v22 = vsel %vm155_vm0, %v407_v16, 0.0  ;;  %v409_v26 = vrot.slane %v408_v20, 4 }
 0x4d5   :  { %v416_v28 = vrot.slane %v415_v22, 4 }
 0x4d6   :  { %v410_v31 = vadd.f32 %v409_v26, %v408_v20 }
 0x4d7   :  { %v417_v36 = vadd.f32 %v416_v28, %v415_v22  ;;  %v546_v38 = vpop.permute.xlu1 %545  ;;  %v142_v28 = vld [vmem:[%s15342_s0] sm:$0x3] }
 0x4d8   :  { %v411_v45 = vrot.slane %v410_v31, 2  ;;  %v553_v37 = vmul.f32 %v546_v38, %v12439_v30  ;;  %v551_v40 = vpop.permute.xlu0 %550 }
 0x4d9   :  { %v418_v47 = vrot.slane %v417_v36, 2  ;;  %v554_v49 = vmul.f32 %v551_v40, %v12444_v32  ;;  %v12487_v40 = vld [vmem:[%s15343_s7] sm:$0xf] }
 0x4da   :  { %v412_v50 = vadd.f32 %v411_v45, %v410_v31  ;;  %v556_v52 = vsel %vm555_vm7, %v553_v37, 0.0  ;;  %v12472_v31 = vpack.c.bf16 %v132_v19, %v131_v12 }
 0x4db   :  { %v419_v55 = vadd.f32 %v418_v47, %v417_v36  ;;  %v557_v42 = vrot.slane %v556_v52, 4  ;;  %v563_v43 = vsel %vm555_vm7, %v554_v49, 0.0  ;;  %v12492_v47 = vld [vmem:[%s15343_s7 + $0x4] sm:$0xf] }
 0x4dc   :  { %v413_v17 = vrot.slane %v412_v50, 1  ;;  %v564_v18 = vrot.slane %v563_v43, 4  ;;  %15461 = vst [vmem:[#allocation17_spill] sm:$0xff] %v12472_v31 }
 0x4dd   :  { %v420_v59 = vrot.slane %v419_v55, 1  ;;  %v558_v60 = vadd.f32 %v557_v42, %v556_v52 }
 0x4de   :  { %v565_v61 = vadd.f32 %v564_v18, %v563_v43  ;;  %v414_v63 = vadd.f32 %v413_v17, %v412_v50 }
 0x4df   :  { %v559_v0 = vrot.slane %v558_v60, 2  ;;  %v421_v53 = vadd.f32 %v420_v59, %v419_v55 }
 0x4e0   :  { %v566_v11 = vrot.slane %v565_v61, 2 }
 0x4e1   :  { %v560_v16 = vadd.f32 %v559_v0, %v558_v60  ;;  %v702_v20 = vsel %vm336_vm2, %v421_v53, %v414_v63 }
 0x4e2   :  { %v567_v22 = vadd.f32 %v566_v11, %v565_v61  ;;  %10829 = vmatmul.mubr.msk.f32.vlgmr.msra.gmra.mrb[0].mxu1 %vm155_vm0, %v702_v20 }
 0x4e3   :  { %v561_v26 = vrot.slane %v560_v16, 1  ;;  %11180 = vmatpush3.bf16.msra.mxu1 %v12456_v54  ;;  %10835 = vmatprep.mubr.msk.f32.mxu1 %vm12017_vm5, %v15366_v3 }
 0x4e4   :  { %v568_v36 = vrot.slane %v567_v22, 1  ;;  %11181 = vmatprep.subr.bf16.mxu1 %v15364_v41 }
 0x4e5   :  { %v562_v38 = vadd.f32 %v561_v26, %v560_v16 }
 0x4e6   :  { %v569_v45 = vadd.f32 %v568_v36, %v567_v22  ;;  %10836 = vmatmul.mubr.msk.f32.vlgmr.msra.gmra.mrb[2].mxu1 %vm775_vm8, %v142_v28 }
 0x4e7   :  { %11183 = vmatpush3.bf16.msra.mxu1 %v12472_v31  ;;  %10842 = vmatprep.mubr.msk.f32.mxu1 %vm12017_vm5, %v15366_v3 }
 0x4e8   :  { %v851_v37 = vsel %vm336_vm2, %v569_v45, %v562_v38  ;;  %11187 = vmatprep.subr.bf16.mxu1 %v15364_v41 }
 0x4ea   :  { %10843 = vmatmul.mubr.msk.f32.vlgmr.msra.gmra.mrb[4].mxu1 %vm775_vm8, %v851_v37  ;;  %v12508_v37 = vld [vmem:[%s15344_s25] ss:$0 sm:$0xff] }
 0x4eb   :  { %10860 = vmatprep.mubr.msk.f32.mxu1 %vm12017_vm5, %v15366_v3 }
 0x502   :  { %v677_v49 = vpop.permute.xlu1 %676 }
 0x503   :  { %v684_v50 = vmul.f32 %v677_v49, %v12487_v40  ;;  %v682_v52 = vpop.permute.xlu0 %681 }
 0x504   :  { %v685_v55 = vmul.f32 %v682_v52, %v12492_v47 }
 0x505   :  { %v686_v42 = vsel %vm555_vm7, %v684_v50, 0.0 }
 0x506   :  { %v687_v43 = vrot.slane %v686_v42, 4  ;;  %v693_v17 = vsel %vm555_vm7, %v685_v55, 0.0 }
 0x507   :  { %v694_v18 = vrot.slane %v693_v17, 4 }
 0x508   :  { %v688_v57 = vadd.f32 %v687_v43, %v686_v42 }
 0x509   :  { %v695_v58 = vadd.f32 %v694_v18, %v693_v17 }
 0x50a   :  { %v689_v59 = vrot.slane %v688_v57, 2 }
 0x50b   :  { %v696_v60 = vrot.slane %v695_v58, 2 }
 0x50c   :  { %v690_v61 = vadd.f32 %v689_v59, %v688_v57 }
 0x50d   :  { %v697_v63 = vadd.f32 %v696_v60, %v695_v58  ;;  %v1016_v58 = vpop.permute.xlu1 %1015 }
 0x50e   :  { %v691_v0 = vrot.slane %v690_v61, 1 }
 0x50f   :  { %v698_v53 = vrot.slane %v697_v63, 1 }
 0x510   :  { %v692_v11 = vadd.f32 %v691_v0, %v690_v61 }
 0x511   :  { %v699_v12 = vadd.f32 %v698_v53, %v697_v63  ;;  %v12514_v0 = vpop.permute.xlu1 %1546 }
 0x512   :  { %15462 = vst [vmem:[#allocation18_spill] sm:$0xff] %v12514_v0  ;;  %vm1548_vm9 = vcmp.eq.s32.totalorder %v12514_v0, 1 }
 0x513   :  { %v927_v19 = vsel %vm336_vm2, %v699_v12, %v692_v11 }
 0x514   :  { %10850 = vmatmul.mubr.msk.f32.vlgmr.msra.gmra.mrb[2].mxu0 %vm775_vm8, %v927_v19 }
 0x515   :  { %11196 = vmatpush1.bf16.msra.mxu0 %v12185_v8  ;;  %1625 = vmatprep.mubr.f32.mxu0 %v15366_v3  ;;  %v1032_v53 = vpop.permute.xlu1 %1031 }
 0x516   :  { %11198 = vmatprep.subr.bf16.mxu0 %v12187_v9 }
 0x519   :  { %11200 = vmatpush1.bf16.msra.mxu0 %v12203_v14 }
 0x51a   :  { %11207 = vmatprep.subr.bf16.mxu0 %v15364_v41 }
 0x5b5   :  { %v771_v16 = vpop.f32.mrb[0].mxu1 }
 0x5b6   :  { %v10830_v20 = vpop.f32.mrb[1].mxu1 }
 0x5b9   :  { %v845_v22 = vpop.f32.mrb[2].mxu1 }
 0x5ba   :  { %v846_v26 = vadd.f32 %v845_v22, %v771_v16  ;;  %v10837_v28 = vpop.f32.mrb[3].mxu1 }
 0x5bd   :  { %v920_v36 = vpop.f32.mrb[4].mxu1 }
 0x5be   :  { %v924_v38 = vadd.f32 %v920_v36, %v846_v26  ;;  %v10844_v45 = vpop.f32.mrb[5].mxu1 }
 0x5e7   :  { %v996_v49 = vpop.f32.mrb[2].mxu0 }
 0x5e8   :  { %v1000_v50 = vadd.f32 %v996_v49, %v924_v38  ;;  %v10851_v52 = vpop.f32.mrb[3].mxu0 }
 0x5ea   :  { %v1007_v55 = vadd.f32 %v12508_v37, %v1000_v50 }
 0x5ec   :  { %v1008_v42 = vadd.f32 %v1007_v55, %v12236_v27 }
 0x5ee   :  { %v10594_v43 = vmul.f32 -1.442695, %v1008_v42 }
 0x5f0   :  { %11442 = vpow2.f32 %v10594_v43 }
 0x5fa   :  { %v11443_v17 = vpop.eup %11442 }
 0x5fb   :  { %v1012_v18 = vadd.f32 1.0, %v11443_v17 }
 0x5fd   :  { %11444 = vrcp.f32 %v1012_v18 }
 0x607   :  { %v11445_v57 = vpop.eup %11444 }
 0x608   :  { %v1018_v59 = vmul.f32 %v11445_v57, %v1016_v58  ;;  %v1025_v27 = vsub.f32 1.0, %v11445_v57  ;;  %v1034_v12 = vmul.f32 %v11445_v57, %v1032_v53 }
 0x60a   :  { %1020 = vrot.lane.b32.xlu0 %v1018_v59, %s12018_s15 }
 0x67c   :  { %v1021_v60 = vpop.permute.xlu0 %1020 }
 0x67d   :  { %v1023_v61 = vadd.f32 %v1021_v60, %v1007_v55 }
 0x67f   :  { %11446 = vtanh.f32 %v1023_v61 }
 0x689   :  { %v11447_v63 = vpop.eup %11446 }
 0x68a   :  { %1027 = vrot.lane.b32.xlu0 %v11447_v63, %s12012_s29 }
 0x6fc   :  { %v1028_v11 = vpop.permute.xlu0 %1027 }
 0x6fd   :  { %v1030_v19 = vmul.f32 %v1028_v11, %v1025_v27 }
 0x6ff   :  { %v12516_v16 = vadd.f32 %v1034_v12, %v1030_v19 }
 0x701   :  { %v12522_v20 = vsel %vm1548_vm9, %v12516_v16, %v1032_v53 }
 0x702   :  { %1557 = vrot.lane.b32.xlu0 %v12522_v20, %s12012_s29 }
 0x774   :  { %v1558_v22 = vpop.permute.xlu0 %1557 }
 0x775   :  { %10600 = vmatmul.mubr.msk.f32.vlgmr.msra.gmra.mrb[4].mxu0 %vm155_vm0, %v1558_v22 }
 0x776   :  { %11209 = vmatpush3.bf16.msra.mxu0 %v12456_v54  ;;  %10878 = vmatprep.mubr.msk.f32.mxu0 %vm12017_vm5, %v15366_v3 }
 0x777   :  { %11210 = vmatprep.subr.bf16.mxu0 %v15364_v41 }
 0x848   :  { %v1627_v26 = vpop.f32.mrb[4].mxu0 }
 0x849   :  { %v12532_v28 = vadd.f32 %v1627_v26, %v12230_v24  ;;  %v1629_v36 = vpop.f32.mrb[5].mxu0 }
 0x84a   :  { %v1630_v59 = vadd.f32 %v1629_v36, %v12277_v51 }
 0x84b   :  { %v1639_v38 = vrot.slane %v12532_v28, %v12233_v25 }
 0x84c   :  { %v1794_v60 = vrot.slane %v1630_v59, %v12233_v25 }
 0x84d   :  { %v1640_v45 = vcombine.high %v1639_v38, %v1639_v38  ;;  %v1647_v49 = vrot.slane %v1639_v38, %v12233_v25 }
 0x84e   :  { %v1795_v61 = vcombine.high %v1794_v60, %v1794_v60  ;;  %v1802_v27 = vrot.slane %v1794_v60, %v12233_v25 }
 0x84f   :  { %v1654_v50 = vrot.slane %v1640_v45, %v12233_v25  ;;  %v1658_v52 = vrot.slane %v1647_v49, %v12224_v21 }
 0x850   :  { %v1809_v63 = vrot.slane %v1795_v61, %v12233_v25  ;;  %v1813_v26 = vrot.slane %v1802_v27, %v12224_v21 }
 0x851   :  { %v1662_v55 = vrot.slane %v1654_v50, %v12224_v21  ;;  %v1665_v42 = vadd.f32 %v1658_v52, %v12238_v29 }
 0x852   :  { %v1817_v53 = vrot.slane %v1809_v63, %v12224_v21  ;;  %v1926_v38 = vadd.f32 %v1813_v26, %v12286_v62 }
 0x853   :  { %v1666_v43 = vadd.f32 %v1662_v55, %v12245_v35  ;;  %11448 = vtanh.f32 %v1665_v42  ;;  %v1820_v55 = vadd.f32 %v1813_v26, %v12309_v15 }
 0x854   :  { %v1927_v11 = vadd.f32 %v1817_v53, %v12290_v1  ;;  %v1821_v42 = vadd.f32 %v1817_v53, %v12304_v13 }
 0x855   :  { %11450 = vtanh.f32 %v1666_v43 }
 0x856   :  { %11452 = vtanh.f32 %v1927_v11 }
 0x857   :  { %11454 = vtanh.f32 %v1926_v38 }
 0x858   :  { %11456 = vtanh.f32 %v1820_v55 }
 0x859   :  { %11458 = vtanh.f32 %v1821_v42 }
 0x85d   :  { %v11449_v17 = vpop.eup %11448 }
 0x85e   :  { %v1669_v18 = vmul.f32 %v11449_v17, %v12250_v39 }
 0x85f   :  { %v11451_v57 = vpop.eup %11450 }
 0x860   :  { %1673 = vrot.lane.b32.xlu1 %v1669_v18, %s12014_s30  ;;  %v1670_v58 = vmul.f32 %v11451_v57, %v12250_v39  ;;  %v11453_v45 = vpop.eup %11452 }
 0x861   :  { %v1931_v49 = vmul.f32 %v11453_v45, %v12295_v10  ;;  %v11455_v50 = vpop.eup %11454 }
 0x862   :  { %1675 = vrot.lane.b32.xlu0 %v1670_v58, %s12014_s30  ;;  %v1930_v52 = vmul.f32 %v11455_v50, %v12295_v10  ;;  %v11457_v43 = vpop.eup %11456 }
 0x863   :  { %v11459_v17 = vpop.eup %11458  ;;  %v1824_v18 = vmul.f32 %v11457_v43, %v12316_v23 }
 0x864   :  { %v1825_v57 = vmul.f32 %v11459_v17, %v12316_v23 }
 0x865   :  { %v1826_v58 = vsel %vm467_vm1, %v1824_v18, 0.0 }
 0x866   :  { %v1829_v59 = vsel %vm467_vm1, %v1825_v57, 0.0 }
 0x8d2   :  { %v1674_v12 = vpop.permute.xlu1 %1673 }
 0x8d3   :  { %v1679_v19 = vsel %vm155_vm0, %v1674_v12, 0.0 }
 0x8d4   :  { %1680 = vadd.xlane.f32.xlu1 %v1679_v19  ;;  %v1676_v22 = vpop.permute.xlu0 %1675 }
 0x8d5   :  { %v1682_v36 = vsel %vm155_vm0, %v1676_v22, 0.0 }
 0x8d6   :  { %1683 = vadd.xlane.f32.xlu0 %v1682_v36 }
 0x8e5   :  { %1936 = vrot.lane.b32.xlu1 %v1931_v49, %s12012_s29 }
 0x8ec   :  { %1934 = vrot.lane.b32.xlu0 %v1930_v52, %s12012_s29 }
 0x909   :  { %1827 = vadd.xlane.f32.xlu1 %v1826_v58 }
 0x90b   :  { %1830 = vadd.xlane.f32.xlu0 %v1829_v59 }
 0x961   :  { %v1681_v60 = vpop.xlane.xlu1 %1680 }
 0x962   :  { %v1685_v23 = vadd.f32 %v1681_v60, %v12322_v33 }
 0x963   :  { %v1684_v61 = vpop.xlane.xlu0 %1683 }
 0x964   :  { %v1686_v27 = vadd.f32 %v1684_v61, %v12324_v34 }
 0x965   :  { %v1937_v63 = vpop.permute.xlu1 %1936 }
 0x966   :  { %v1943_v15 = vsel %vm467_vm1, %v1937_v63, 0.0 }
 0x967   :  { %1944 = vadd.xlane.f32.xlu1 %v1943_v15  ;;  %v1935_v13 = vpop.permute.xlu0 %1934 }
 0x968   :  { %v1940_v53 = vsel %vm467_vm1, %v1935_v13, 0.0 }
 0x969   :  { %1941 = vadd.xlane.f32.xlu0 %v1940_v53 }
 0x978   :  { %1693 = vperm.xlu1 %11405, %v1686_v27  }
 0x97f   :  { %1690 = vperm.xlu0 %11404, %v1685_v23  }
 0x996   :  { %v1828_v11 = vpop.xlane.xlu1 %1827 }
 0x997   :  { %v1837_v19 = vrot.slane %v1828_v11, %v12332_v46 }
 0x998   :  { %v1831_v12 = vpop.xlane.xlu0 %1830 }
 0x999   :  { %v1841_v22 = vrot.slane %v1831_v12, %v12332_v46 }
 0x99b   :  { %v1842_v26 = vsel %vm336_vm2, %v1841_v22, %v1837_v19 }
 0x99c   :  { %v1844_v36 = vsel %vm486_vm3, %v1842_v26, -inf }
 0x99e   :  { %1845 = vmax.xlane.f32.xlu0 %v1844_v36 }
 0x9f4   :  { %v1945_v38 = vpop.xlane.xlu1 %1944 }
 0x9f5   :  { %v1955_v49 = vrot.slane %v1945_v38, %v12332_v46 }
 0x9f6   :  { %v1942_v45 = vpop.xlane.xlu0 %1941 }
 0x9f7   :  { %v1951_v50 = vrot.slane %v1942_v45, %v12332_v46 }
 0x9f8   :  { %v1694_v42 = vpop.permute.xlu1 %1693 }
 0x9f9   :  { %v1956_v52 = vsel %vm336_vm2, %v1955_v49, %v1951_v50  ;;  %v1702_v17 = vrot.slane %v1694_v42, %v12332_v46 }
 0x9fa   :  { %v1958_v55 = vsel %vm486_vm3, %v1956_v52, -inf }
 0x9fb   :  { %1959 = vmax.xlane.f32.xlu0 %v1958_v55 }
 0x9fe   :  { %v1691_v43 = vpop.permute.xlu0 %1690 }
 0x9ff   :  { %v1698_v18 = vrot.slane %v1691_v43, %v12332_v46 }
 0xa01   :  { %v1703_v57 = vsel %vm336_vm2, %v1702_v17, %v1698_v18 }
 0xa02   :  { %v1705_v58 = vsel %vm339_vm4, %v1703_v57, -inf }
 0xa03   :  { %1706 = vmax.xlane.f32.xlu1 %v1705_v58 }
 0xa2b   :  { %v1846_v59 = vpop.xlane.xlu0 %1845 }
 0xa2c   :  { %v1851_v60 = vrot.slane %v1846_v59, %v12224_v21  ;;  %v1855_v61 = vrot.slane %v1846_v59, %v12270_v48 }
 0xa2e   :  { %v1858_v63 = vsub.f32 %v1828_v11, %v1851_v60  ;;  %v1859_v15 = vsub.f32 %v1831_v12, %v1855_v61 }
 0xa30   :  { %v1860_v13 = vmul.f32 1.442695, %v1858_v63  ;;  %v1862_v53 = vmul.f32 1.442695, %v1859_v15 }
 0xa32   :  { %11460 = vpow2.f32 %v1860_v13 }
 0xa33   :  { %11462 = vpow2.f32 %v1862_v53 }
 0xa3c   :  { %v11461_v19 = vpop.eup %11460 }
 0xa3d   :  { %1867 = vperm.xlu1 %11405, %v11461_v19   ;;  %v11463_v22 = vpop.eup %11462 }
 0xa41   :  { %1870 = vperm.xlu1 %11405, %v11463_v22  }
 0xa88   :  { %v1960_v26 = vpop.xlane.xlu0 %1959 }
 0xa89   :  { %v1969_v36 = vrot.slane %v1960_v26, %v12270_v48  ;;  %v1965_v49 = vrot.slane %v1960_v26, %v12224_v21 }
 0xa8b   :  { %v1973_v11 = vsub.f32 %v1945_v38, %v1969_v36  ;;  %v1972_v43 = vsub.f32 %v1942_v45, %v1965_v49 }
 0xa8d   :  { %v1976_v57 = vmul.f32 1.442695, %v1973_v11  ;;  %v1974_v58 = vmul.f32 1.442695, %v1972_v43 }
 0xa90   :  { %v1707_v50 = vpop.xlane.xlu1 %1706 }
 0xa91   :  { %v1712_v52 = vrot.slane %v1707_v50, %v12224_v21  ;;  %v1716_v55 = vrot.slane %v1707_v50, %v12270_v48 }
 0xa93   :  { %v1719_v12 = vsub.f32 %v1685_v23, %v1712_v52  ;;  %v1720_v42 = vsub.f32 %v1686_v27, %v1716_v55 }
 0xa95   :  { %v1721_v17 = vmul.f32 1.442695, %v1719_v12  ;;  %v1723_v18 = vmul.f32 1.442695, %v1720_v42 }
 0xa97   :  { %11464 = vpow2.f32 %v1721_v17 }
 0xa98   :  { %11466 = vpow2.f32 %v1723_v18 }
 0xa99   :  { %11468 = vpow2.f32 %v1976_v57 }
 0xa9a   :  { %11470 = vpow2.f32 %v1974_v58 }
 0xaa1   :  { %v11465_v59 = vpop.eup %11464 }
 0xaa2   :  { %v11467_v60 = vpop.eup %11466  ;;  %1728 = vperm.xlu1 %11405, %v11465_v59  }
 0xaa3   :  { %1731 = vperm.xlu0 %11404, %v11467_v60   ;;  %v12588_v61 = vpop.eup %11468 }
 0xaa4   :  { %v11471_v63 = vpop.eup %11470 }
 0xaa6   :  { %1984 = vperm.xlu1 %11405, %v12588_v61  }
 0xaa7   :  { %1981 = vperm.xlu0 %11404, %v11471_v63  }
 0xabc   :  { %v1868_v27 = vpop.permute.xlu1 %1867 }
 0xabd   :  { %v1875_v45 = vrot.slane %v1868_v27, %v12332_v46 }
 0xac0   :  { %v1871_v23 = vpop.permute.xlu1 %1870 }
 0xac1   :  { %v1879_v38 = vrot.slane %v1871_v23, %v12332_v46 }
 0xac3   :  { %v1880_v15 = vsel %vm336_vm2, %v1879_v38, %v1875_v45 }
 0xac4   :  { %v1882_v13 = vsel %vm486_vm3, %v1880_v15, 0.0  ;;  %v10598_v15 = vld [vmem:[%s15342_s0 + $0x2] sm:$0x3] }
 0xac5   :  { %10879 = vmatmul.mubr.msk.f32.vlgmr.msra.gmra.mrb[6].mxu0 %vm775_vm8, %v10598_v15 }
 0xac6   :  { %11212 = vmatpush3.bf16.msra.mxu0 %v12472_v31  ;;  %10885 = vmatprep.mubr.msk.f32.mxu0 %vm12017_vm5, %v15366_v3 }
 0xac7   :  { %11216 = vmatprep.subr.bf16.mxu0 %v15364_v41 }
 0xaca   :  { %1883 = vadd.xlane.f32.xlu1 %v1882_v13 }
 0xb21   :  { %v1729_v53 = vpop.permute.xlu1 %1728 }
 0xb22   :  { %v1736_v26 = vrot.slane %v1729_v53, %v12332_v46  ;;  %v1732_v36 = vpop.permute.xlu0 %1731 }
 0xb23   :  { %v1740_v49 = vrot.slane %v1732_v36, %v12332_v46 }
 0xb25   :  { %v1985_v50 = vpop.permute.xlu1 %1984  ;;  %v1741_v52 = vsel %vm336_vm2, %v1740_v49, %v1736_v26 }
 0xb26   :  { %v1993_v55 = vrot.slane %v1985_v50, %v12332_v46  ;;  %v1982_v11 = vpop.permute.xlu0 %1981  ;;  %v1743_v12 = vsel %vm339_vm4, %v1741_v52, 0.0 }
 0xb27   :  { %v1989_v42 = vrot.slane %v1982_v11, %v12332_v46  ;;  %1744 = vadd.xlane.f32.xlu0 %v1743_v12  ;;  %v136_v11 = vld [vmem:[%s15345_s26] sm:$0xff]  ;;  %v137_v12 = vld [vmem:[%s15345_s26 + $0x8] sm:$0xff] }
 0xb29   :  { %v1994_v43 = vsel %vm336_vm2, %v1993_v55, %v1989_v42 }
 0xb2a   :  { %v1996_v17 = vsel %vm486_vm3, %v1994_v43, 0.0  ;;  %v12623_v43 = vpack.c.bf16 %v137_v12, %v136_v11 }
 0xb2b   :  { %1997 = vadd.xlane.f32.xlu0 %v1996_v17 }
 0xb2c   :  { %15463 = vst [vmem:[#allocation19_spill] sm:$0xff] %v12623_v43  ;;  %11189 = vmatpush3.bf16.msra.mxu1 %v12623_v43 }
 0xb2d   :  { %11190 = vmatprep.subr.bf16.mxu1 %v15364_v41 }
 0xb57   :  { %v1884_v18 = vpop.xlane.xlu1 %1883 }
 0xb58   :  { %v1889_v57 = vrot.slane %v1884_v18, %v12224_v21  ;;  %v1893_v58 = vrot.slane %v1884_v18, %v12270_v48 }
 0xb5a   :  { %11472 = vrcp.f32 %v1889_v57 }
 0xb5b   :  { %11474 = vrcp.f32 %v1893_v58  ;;  %v139_v58 = vld [vmem:[%s15345_s26 + $0x18] sm:$0xff] }
 0xb64   :  { %v11473_v27 = vpop.eup %11472 }
 0xb65   :  { %v11475_v23 = vpop.eup %11474  ;;  %v1897_v38 = vmul.f32 %v11473_v27, %v11461_v19 }
 0xb66   :  { %v1899_v45 = vmul.f32 %v11475_v23, %v11463_v22 }
 0xb67   :  { %1902 = vperm.xlu1 %11405, %v1897_v38  }
 0xb68   :  { %1907 = vperm.xlu0 %11404, %v1899_v45  }
 0xbb4   :  { %v1745_v13 = vpop.xlane.xlu0 %1744 }
 0xbb5   :  { %v1750_v53 = vrot.slane %v1745_v13, %v12224_v21  ;;  %v1754_v19 = vrot.slane %v1745_v13, %v12270_v48 }
 0xbb7   :  { %11476 = vrcp.f32 %v1750_v53 }
 0xbb8   :  { %11478 = vrcp.f32 %v1754_v19  ;;  %v1998_v22 = vpop.xlane.xlu0 %1997 }
 0xbb9   :  { %v2003_v26 = vrot.slane %v1998_v22, %v12224_v21  ;;  %v2007_v36 = vrot.slane %v1998_v22, %v12270_v48 }
 0xbbb   :  { %11480 = vrcp.f32 %v2003_v26 }
 0xbbc   :  { %11482 = vrcp.f32 %v2007_v36 }
 0xbc1   :  { %v11477_v49 = vpop.eup %11476 }
 0xbc2   :  { %v11479_v50 = vpop.eup %11478  ;;  %v1758_v52 = vmul.f32 %v11477_v49, %v11465_v59  ;;  %v10599_v59 = vld [vmem:[%s15457_s4 + $0x2] sm:$0x3] }
 0xbc3   :  { %v1760_v55 = vmul.f32 %v11479_v50, %v11467_v60  ;;  %v138_v60 = vld [vmem:[%s15345_s26 + $0x10] sm:$0xff]  ;;  %vm2832_vm10 = vcmp.gt.f32.partialorder %v10599_v59, 0.5 }
 0xbc4   :  { %1763 = vperm.xlu0 %11404, %v1758_v52  }
 0xbc5   :  { %v11481_v42 = vpop.eup %11480  ;;  %1768 = vperm.xlu1 %11405, %v1760_v55  }
 0xbc6   :  { %v11483_v17 = vpop.eup %11482  ;;  %v2011_v18 = vmul.f32 %v11481_v42, %v11471_v63  ;;  %v12637_v63 = vpack.c.bf16 %v139_v58, %v138_v60 }
 0xbc7   :  { %v2013_v57 = vmul.f32 %v11483_v17, %v12588_v61  ;;  %v2833_v61 = vsel %vm2832_vm10, 1, %v15362_v5 }
 0xbc8   :  { %15464 = vst [vmem:[#allocation20_spill] sm:$0xff] %v12637_v63  ;;  %11192 = vmatpush3.bf16.msra.mxu1 %v12637_v63 }
 0xbc9   :  { %2021 = vperm.xlu0 %11404, %v2013_v57   ;;  %2016 = vperm.xlu1 %11405, %v2011_v18  }
 0xbca   :  { %11201 = vmatprep.subr.bf16.mxu1 %v15364_v41 }
 0xbcd   :  { %2348 = vrot.lane.b32.xlu0 %v12532_v28, %s12018_s15  ;;  %1043 = vrot.lane.b32.xlu1 %v12516_v16, %s12012_s29 }
 0xbd1   :  { %2835 = vperm.xlu0 %11404, %v2833_v61  }
 0xbe6   :  { %v1903_v27 = vpop.permute.xlu1 %1902 }
 0xbe7   :  { %v1910_v23 = vmul.f32 %v1903_v27, %v12439_v30  ;;  %v1908_v38 = vpop.permute.xlu0 %1907 }
 0xbe8   :  { %v1911_v45 = vmul.f32 %v1908_v38, %v12444_v32 }
 0xbe9   :  { %v1912_v15 = vsel %vm555_vm7, %v1910_v23, 0.0 }
 0xbea   :  { %v1913_v13 = vrot.slane %v1912_v15, 4  ;;  %v1919_v53 = vsel %vm555_vm7, %v1911_v45, 0.0 }
 0xbeb   :  { %v1920_v19 = vrot.slane %v1919_v53, 4 }
 0xbec   :  { %v1914_v22 = vadd.f32 %v1913_v13, %v1912_v15  ;;  %v2184_v13 = vpop.f32.mrb[6].mxu0 }
 0xbed   :  { %v1921_v26 = vadd.f32 %v1920_v19, %v1919_v53  ;;  %v10880_v19 = vpop.f32.mrb[7].mxu0 }
 0xbee   :  { %v1915_v36 = vrot.slane %v1914_v22, 2 }
 0xbef   :  { %v1922_v49 = vrot.slane %v1921_v26, 2 }
 0xbf0   :  { %v1916_v50 = vadd.f32 %v1915_v36, %v1914_v22 }
 0xbf1   :  { %v1923_v52 = vadd.f32 %v1922_v49, %v1921_v26 }
 0xbf2   :  { %v1917_v55 = vrot.slane %v1916_v50, 1 }
 0xbf3   :  { %v1924_v11 = vrot.slane %v1923_v52, 1 }
 0xbf4   :  { %v1918_v12 = vadd.f32 %v1917_v55, %v1916_v50 }
 0xbf5   :  { %v1925_v42 = vadd.f32 %v1924_v11, %v1923_v52 }
 0xbf7   :  { %v2190_v30 = vsel %vm336_vm2, %v1925_v42, %v1918_v12 }
 0xbf8   :  { %10886 = vmatmul.mubr.msk.f32.vlgmr.msra.gmra.mrb[8].mxu0 %vm775_vm8, %v2190_v30 }
 0xbf9   :  { %11218 = vmatpush3.bf16.msra.mxu0 %v12623_v43  ;;  %10903 = vmatprep.mubr.msk.f32.mxu0 %vm12017_vm5, %v15366_v3 }
 0xbfa   :  { %11219 = vmatprep.subr.bf16.mxu0 %v15364_v41 }
 0xbfd   :  { %11221 = vmatpush3.bf16.msra.mxu0 %v12637_v63 }
 0xbfe   :  { %11230 = vmatprep.subr.bf16.mxu0 %v15364_v41 }
 0xc43   :  { %v1764_v32 = vpop.permute.xlu0 %1763 }
 0xc44   :  { %v1769_v17 = vpop.permute.xlu1 %1768  ;;  %v1771_v18 = vmul.f32 %v1764_v32, %v12425_v6 }
 0xc45   :  { %v1772_v57 = vmul.f32 %v1769_v17, %v12430_v7 }
 0xc46   :  { %v1773_v59 = vsel %vm155_vm0, %v1771_v18, 0.0 }
 0xc47   :  { %v1780_v60 = vsel %vm155_vm0, %v1772_v57, 0.0  ;;  %v1774_v58 = vrot.slane %v1773_v59, 4 }
 0xc48   :  { %v1781_v61 = vrot.slane %v1780_v60, 4  ;;  %v2017_v27 = vpop.permute.xlu1 %2016  ;;  %v2022_v23 = vpop.permute.xlu0 %2021 }
 0xc49   :  { %v1775_v38 = vadd.f32 %v1774_v58, %v1773_v59  ;;  %v2024_v45 = vmul.f32 %v2017_v27, %v12487_v40  ;;  %v2025_v15 = vmul.f32 %v2022_v23, %v12492_v47 }
 0xc4a   :  { %v1782_v53 = vadd.f32 %v1781_v61, %v1780_v60 }
 0xc4b   :  { %v1776_v22 = vrot.slane %v1775_v38, 2  ;;  %v2026_v6 = vsel %vm555_vm7, %v2024_v45, 0.0  ;;  %v2033_v7 = vsel %vm555_vm7, %v2025_v15, 0.0 }
 0xc4c   :  { %v1783_v26 = vrot.slane %v1782_v53, 2  ;;  %v2027_v36 = vrot.slane %v2026_v6, 4  ;;  %v2034_v49 = vrot.slane %v2033_v7, 4  ;;  %v1044_v50 = vpop.permute.xlu1 %1043 }
 0xc4d   :  { %v1777_v52 = vadd.f32 %v1776_v22, %v1775_v38  ;;  %10861 = vmatmul.mubr.msk.f32.vlgmr.msra.gmra.mrb[6].mxu1 %vm155_vm0, %v1044_v50 }
 0xc4e   :  { %v1784_v55 = vadd.f32 %v1783_v26, %v1782_v53  ;;  %v2028_v11 = vadd.f32 %v2027_v36, %v2026_v6  ;;  %v2035_v40 = vadd.f32 %v2034_v49, %v2033_v7  ;;  %11203 = vmatpush3.bf16.msra.mxu1 %v12380_v56  ;;  %10871 = vmatprep.mubr.msk.f32.mxu1 %vm12017_vm5, %v15366_v3 }
 0xc4f   :  { %v1778_v47 = vrot.slane %v1777_v52, 1  ;;  %11204 = vmatprep.subr.bf16.mxu1 %v15364_v41 }
 0xc50   :  { %v1785_v12 = vrot.slane %v1784_v55, 1  ;;  %v2029_v42 = vrot.slane %v2028_v11, 2  ;;  %v2036_v30 = vrot.slane %v2035_v40, 2 }
 0xc51   :  { %v1779_v32 = vadd.f32 %v1778_v47, %v1777_v52 }
 0xc52   :  { %v1786_v17 = vadd.f32 %v1785_v12, %v1784_v55  ;;  %v2030_v18 = vadd.f32 %v2029_v42, %v2028_v11  ;;  %v2037_v57 = vadd.f32 %v2036_v30, %v2035_v40  ;;  %11206 = vmatpush3.bf16.msra.mxu1 %v12392_v44  ;;  %v2349_v12 = vpop.permute.xlu0 %2348 }
 0xc53   :  { %11213 = vmatprep.subr.bf16.mxu1 %v15364_v41 }
 0xc54   :  { %v2031_v59 = vrot.slane %v2030_v18, 1  ;;  %v2038_v60 = vrot.slane %v2037_v57, 1  ;;  %v2042_v58 = vsel %vm336_vm2, %v1786_v17, %v1779_v32 }
 0xc55   :  { %10872 = vmatmul.mubr.msk.f32.vlgmr.msra.gmra.mrb[8].mxu1 %vm155_vm0, %v2042_v58 }
 0xc56   :  { %v2032_v61 = vadd.f32 %v2031_v59, %v2030_v18  ;;  %v2039_v27 = vadd.f32 %v2038_v60, %v2037_v57  ;;  %11215 = vmatpush3.bf16.msra.mxu1 %v12416_v2  ;;  %10892 = vmatprep.mubr.msk.f32.mxu1 %vm12017_vm5, %v15366_v3  ;;  %v12692_v18 = vpop.permute.xlu0 %2835 }
 0xc57   :  { %11223 = vmatprep.subr.bf16.mxu1 %v12174_v4  ;;  %15465 = vst [vmem:[#allocation21_spill] sm:$0xff] %v12692_v18  ;;  %vm2837_vm11 = vcmp.eq.s32.totalorder %v12692_v18, 1 }
 0xc58   :  { %v2266_v23 = vsel %vm336_vm2, %v2039_v27, %v2032_v61 }
 0xc59   :  { %10893 = vmatmul.mubr.msk.f32.vlgmr.msra.gmra.mrb[10].mxu1 %vm775_vm8, %v2266_v23 }
 0xc5a   :  { %11225 = vmatpush1.bf16.msra.mxu1 %v12185_v8  ;;  %2915 = vmatprep.mubr.f32.mxu1 %v15366_v3 }
 0xc5b   :  { %11227 = vmatprep.subr.bf16.mxu1 %v12187_v9 }
 0xc5e   :  { %11229 = vmatpush1.bf16.msra.mxu1 %v12203_v14 }
 0xc5f   :  { %11236 = vmatprep.subr.bf16.mxu1 %v15364_v41 }
 0xccb   :  { %v2259_v38 = vpop.f32.mrb[8].mxu0 }
 0xccc   :  { %v10887_v45 = vpop.f32.mrb[9].mxu0 }
 0xd20   :  { %v12686_v15 = vpop.f32.mrb[6].mxu1 }
 0xd21   :  { %v10862_v53 = vpop.f32.mrb[7].mxu1 }
 0xd28   :  { %v2111_v19 = vpop.f32.mrb[8].mxu1 }
 0xd29   :  { %v2185_v22 = vadd.f32 %v2184_v13, %v2111_v19  ;;  %v10873_v6 = vpop.f32.mrb[9].mxu1 }
 0xd2b   :  { %v2263_v7 = vadd.f32 %v2259_v38, %v2185_v22 }
 0xd2c   :  { %v2335_v26 = vpop.f32.mrb[10].mxu1 }
 0xd2d   :  { %v2339_v36 = vadd.f32 %v2335_v26, %v2263_v7  ;;  %v10894_v49 = vpop.f32.mrb[11].mxu1 }
 0xd2f   :  { %v2340_v50 = vadd.f32 %v12508_v37, %v2339_v36 }
 0xd31   :  { %v2341_v52 = vadd.f32 %v2340_v50, %v12532_v28 }
 0xd33   :  { %v10605_v55 = vmul.f32 -1.442695, %v2341_v52 }
 0xd35   :  { %11484 = vpow2.f32 %v10605_v55 }
 0xd3f   :  { %v11485_v11 = vpop.eup %11484 }
 0xd40   :  { %v2345_v40 = vadd.f32 1.0, %v11485_v11 }
 0xd42   :  { %11486 = vrcp.f32 %v2345_v40 }
 0xd4c   :  { %v11487_v47 = vpop.eup %11486 }
 0xd4d   :  { %v2351_v42 = vmul.f32 %v11487_v47, %v2349_v12  ;;  %v2358_v17 = vsub.f32 1.0, %v11487_v47  ;;  %v2364_v28 = vmul.f32 %v11487_v47, %v12522_v20 }
 0xd4f   :  { %2353 = vrot.lane.b32.xlu1 %v2351_v42, %s12018_s15 }
 0xdc1   :  { %v2354_v13 = vpop.permute.xlu1 %2353 }
 0xdc2   :  { %v2356_v30 = vadd.f32 %v2354_v13, %v2340_v50 }
 0xdc4   :  { %11488 = vtanh.f32 %v2356_v30 }
 0xdce   :  { %v11489_v32 = vpop.eup %11488 }
 0xdcf   :  { %2360 = vrot.lane.b32.xlu1 %v11489_v32, %s12012_s29 }
 0xe41   :  { %v2361_v37 = vpop.permute.xlu1 %2360 }
 0xe42   :  { %v2363_v57 = vmul.f32 %v2361_v37, %v2358_v17 }
 0xe44   :  { %v12695_v59 = vadd.f32 %v2364_v28, %v2363_v57 }
 0xe46   :  { %v12702_v60 = vsel %vm2837_vm11, %v12695_v59, %v12522_v20 }
 0xe47   :  { %2847 = vrot.lane.b32.xlu0 %v12702_v60, %s12012_s29 }
 0xeb9   :  { %v2848_v58 = vpop.permute.xlu0 %2847 }
 0xeba   :  { %10610 = vmatmul.mubr.msk.f32.vlgmr.msra.gmra.mrb[12].mxu1 %vm155_vm0, %v2848_v58 }
 0xebb   :  { %11238 = vmatpush3.bf16.msra.mxu1 %v12456_v54  ;;  %10921 = vmatprep.mubr.msk.f32.mxu1 %vm12017_vm5, %v15366_v3 }
 0xebc   :  { %11239 = vmatprep.subr.bf16.mxu1 %v15364_v41 }
 0xf8d   :  { %v2917_v61 = vpop.f32.mrb[12].mxu1 }
 0xf8e   :  { %v12712_v27 = vadd.f32 %v2917_v61, %v12230_v24  ;;  %v2919_v23 = vpop.f32.mrb[13].mxu1 }
 0xf8f   :  { %v2920_v52 = vadd.f32 %v2919_v23, %v12277_v51 }
 0xf90   :  { %v2929_v20 = vrot.slane %v12712_v27, %v12233_v25 }
 0xf91   :  { %v3084_v55 = vrot.slane %v2920_v52, %v12233_v25 }
 0xf92   :  { %v2930_v38 = vcombine.high %v2929_v20, %v2929_v20  ;;  %v2937_v45 = vrot.slane %v2929_v20, %v12233_v25  ;;  %v12743_v20 = vld [vmem:[%s15450_s17] sm:$0xf] }
 0xf93   :  { %v3085_v11 = vcombine.high %v3084_v55, %v3084_v55  ;;  %v3092_v12 = vrot.slane %v3084_v55, %v12233_v25 }
 0xf94   :  { %v2944_v53 = vrot.slane %v2930_v38, %v12233_v25  ;;  %v2948_v19 = vrot.slane %v2937_v45, %v12224_v21  ;;  %v12749_v45 = vld [vmem:[%s15450_s17 + $0x4] sm:$0xf] }
 0xf95   :  { %v3099_v40 = vrot.slane %v3085_v11, %v12233_v25  ;;  %v3103_v17 = vrot.slane %v3092_v12, %v12224_v21 }
 0xf96   :  { %v2952_v22 = vrot.slane %v2944_v53, %v12224_v21  ;;  %v2955_v6 = vadd.f32 %v2948_v19, %v12238_v29 }
 0xf97   :  { %v3107_v47 = vrot.slane %v3099_v40, %v12224_v21  ;;  %v3216_v28 = vadd.f32 %v3103_v17, %v12286_v62  ;;  %v3110_v38 = vadd.f32 %v12743_v20, %v3103_v17 }
 0xf98   :  { %v2956_v7 = vadd.f32 %v2952_v22, %v12245_v35  ;;  %11490 = vtanh.f32 %v2955_v6  ;;  %v12755_v6 = vld [vmem:[%s15451_s16] ss:$0 sm:$0xff] }
 0xf99   :  { %v3217_v42 = vadd.f32 %v3107_v47, %v12290_v1  ;;  %v3111_v53 = vadd.f32 %v12749_v45, %v3107_v47 }
 0xf9a   :  { %11492 = vtanh.f32 %v2956_v7 }
 0xf9b   :  { %11494 = vtanh.f32 %v3217_v42 }
 0xf9c   :  { %11496 = vtanh.f32 %v3216_v28 }
 0xf9d   :  { %11498 = vtanh.f32 %v3110_v38 }
 0xf9e   :  { %11500 = vtanh.f32 %v3111_v53 }
 0xfa2   :  { %v11491_v26 = vpop.eup %11490 }
 0xfa3   :  { %v2959_v36 = vmul.f32 %v11491_v26, %v12250_v39 }
 0xfa4   :  { %v11493_v49 = vpop.eup %11492 }
 0xfa5   :  { %2963 = vrot.lane.b32.xlu1 %v2959_v36, %s12014_s30  ;;  %v2960_v50 = vmul.f32 %v11493_v49, %v12250_v39  ;;  %v11495_v57 = vpop.eup %11494 }
 0xfa6   :  { %v3221_v58 = vmul.f32 %v11495_v57, %v12295_v10  ;;  %v11497_v61 = vpop.eup %11496 }
 0xfa7   :  { %2965 = vrot.lane.b32.xlu0 %v2960_v50, %s12014_s30  ;;  %v3220_v23 = vmul.f32 %v11497_v61, %v12295_v10  ;;  %v11499_v19 = vpop.eup %11498 }
 0xfa8   :  { %v11501_v22 = vpop.eup %11500  ;;  %v3114_v7 = vmul.f32 %v12755_v6, %v11499_v19 }
 0xfa9   :  { %v3115_v26 = vmul.f32 %v12755_v6, %v11501_v22 }
 0xfaa   :  { %v3116_v36 = vsel %vm467_vm1, %v3114_v7, 0.0 }
 0xfab   :  { %v3119_v49 = vsel %vm467_vm1, %v3115_v26, 0.0 }
0x1017   :  { %v2964_v13 = vpop.permute.xlu1 %2963 }
0x1018   :  { %v2969_v30 = vsel %vm155_vm0, %v2964_v13, 0.0 }
0x1019   :  { %2970 = vadd.xlane.f32.xlu1 %v2969_v30  ;;  %v2966_v32 = vpop.permute.xlu0 %2965 }
0x101a   :  { %v2972_v37 = vsel %vm155_vm0, %v2966_v32, 0.0 }
0x101b   :  { %2973 = vadd.xlane.f32.xlu0 %v2972_v37 }
0x102a   :  { %3226 = vrot.lane.b32.xlu1 %v3221_v58, %s12012_s29 }
0x1031   :  { %3224 = vrot.lane.b32.xlu0 %v3220_v23, %s12012_s29 }
0x104e   :  { %3117 = vadd.xlane.f32.xlu1 %v3116_v36 }
0x1050   :  { %3120 = vadd.xlane.f32.xlu0 %v3119_v49 }
0x10a6   :  { %v2971_v50 = vpop.xlane.xlu1 %2970 }
0x10a7   :  { %v2975_v42 = vadd.f32 %v2971_v50, %v12322_v33 }
0x10a8   :  { %v2974_v52 = vpop.xlane.xlu0 %2973 }
0x10a9   :  { %v2976_v12 = vadd.f32 %v2974_v52, %v12324_v34 }
0x10aa   :  { %v3227_v55 = vpop.permute.xlu1 %3226 }
0x10ab   :  { %v3233_v11 = vsel %vm467_vm1, %v3227_v55, 0.0 }
0x10ac   :  { %3234 = vadd.xlane.f32.xlu1 %v3233_v11  ;;  %v3225_v40 = vpop.permute.xlu0 %3224 }
0x10ad   :  { %v3230_v47 = vsel %vm467_vm1, %v3225_v40, 0.0 }
0x10ae   :  { %3231 = vadd.xlane.f32.xlu0 %v3230_v47 }
0x10bd   :  { %2983 = vperm.xlu1 %11405, %v2976_v12  }
0x10c4   :  { %2980 = vperm.xlu0 %11404, %v2975_v42  }
0x10db   :  { %v3118_v13 = vpop.xlane.xlu1 %3117 }
0x10dc   :  { %v3127_v32 = vrot.slane %v3118_v13, %v12332_v46 }
0x10dd   :  { %v3121_v30 = vpop.xlane.xlu0 %3120 }
0x10de   :  { %v3131_v17 = vrot.slane %v3121_v30, %v12332_v46 }
0x10e0   :  { %v3132_v37 = vsel %vm336_vm2, %v3131_v17, %v3127_v32 }
0x10e1   :  { %v3134_v28 = vsel %vm486_vm3, %v3132_v37, -inf }
0x10e3   :  { %3135 = vmax.xlane.f32.xlu0 %v3134_v28 }
0x1139   :  { %v3235_v57 = vpop.xlane.xlu1 %3234 }
0x113a   :  { %v3245_v61 = vrot.slane %v3235_v57, %v12332_v46 }
0x113b   :  { %v3232_v58 = vpop.xlane.xlu0 %3231 }
0x113c   :  { %v3241_v23 = vrot.slane %v3232_v58, %v12332_v46 }
0x113d   :  { %v2984_v19 = vpop.permute.xlu1 %2983 }
0x113e   :  { %v3246_v38 = vsel %vm336_vm2, %v3245_v61, %v3241_v23  ;;  %v2992_v7 = vrot.slane %v2984_v19, %v12332_v46 }
0x113f   :  { %v3248_v53 = vsel %vm486_vm3, %v3246_v38, -inf }
0x1140   :  { %3249 = vmax.xlane.f32.xlu0 %v3248_v53 }
0x1143   :  { %v2981_v22 = vpop.permute.xlu0 %2980 }
0x1144   :  { %v2988_v26 = vrot.slane %v2981_v22, %v12332_v46 }
0x1146   :  { %v2993_v36 = vsel %vm336_vm2, %v2992_v7, %v2988_v26 }
0x1147   :  { %v2995_v49 = vsel %vm339_vm4, %v2993_v36, -inf }
0x1148   :  { %2996 = vmax.xlane.f32.xlu1 %v2995_v49 }
0x1170   :  { %v3136_v50 = vpop.xlane.xlu0 %3135 }
0x1171   :  { %v3141_v52 = vrot.slane %v3136_v50, %v12224_v21  ;;  %v3145_v55 = vrot.slane %v3136_v50, %v12270_v48 }
0x1173   :  { %v3148_v11 = vsub.f32 %v3118_v13, %v3141_v52  ;;  %v3149_v40 = vsub.f32 %v3121_v30, %v3145_v55 }
0x1175   :  { %v3150_v47 = vmul.f32 1.442695, %v3148_v11  ;;  %v3152_v32 = vmul.f32 1.442695, %v3149_v40 }
0x1177   :  { %11502 = vpow2.f32 %v3150_v47 }
0x1178   :  { %11504 = vpow2.f32 %v3152_v32 }
0x1181   :  { %v11503_v17 = vpop.eup %11502 }
0x1182   :  { %3157 = vperm.xlu1 %11405, %v11503_v17   ;;  %v11505_v37 = vpop.eup %11504 }
0x1186   :  { %3160 = vperm.xlu1 %11405, %v11505_v37  }
0x11cd   :  { %v3250_v28 = vpop.xlane.xlu0 %3249 }
0x11ce   :  { %v3259_v61 = vrot.slane %v3250_v28, %v12270_v48  ;;  %v3255_v23 = vrot.slane %v3250_v28, %v12224_v21 }
0x11d0   :  { %v3263_v13 = vsub.f32 %v3235_v57, %v3259_v61  ;;  %v3262_v7 = vsub.f32 %v3232_v58, %v3255_v23 }
0x11d2   :  { %v3266_v49 = vmul.f32 1.442695, %v3263_v13  ;;  %v3264_v50 = vmul.f32 1.442695, %v3262_v7 }
0x11d5   :  { %v2997_v38 = vpop.xlane.xlu1 %2996 }
0x11d6   :  { %v3002_v53 = vrot.slane %v2997_v38, %v12224_v21  ;;  %v3006_v19 = vrot.slane %v2997_v38, %v12270_v48 }
0x11d8   :  { %v3009_v30 = vsub.f32 %v2975_v42, %v3002_v53  ;;  %v3010_v22 = vsub.f32 %v2976_v12, %v3006_v19 }
0x11da   :  { %v3011_v26 = vmul.f32 1.442695, %v3009_v30  ;;  %v3013_v36 = vmul.f32 1.442695, %v3010_v22 }
0x11dc   :  { %11506 = vpow2.f32 %v3011_v26 }
0x11dd   :  { %11508 = vpow2.f32 %v3013_v36 }
0x11de   :  { %11510 = vpow2.f32 %v3266_v49 }
0x11df   :  { %11512 = vpow2.f32 %v3264_v50 }
0x11e6   :  { %v11507_v52 = vpop.eup %11506 }
0x11e7   :  { %v11509_v55 = vpop.eup %11508  ;;  %3018 = vperm.xlu1 %11405, %v11507_v52  }
0x11e8   :  { %3021 = vperm.xlu0 %11404, %v11509_v55   ;;  %v11511_v11 = vpop.eup %11510 }
0x11e9   :  { %v11513_v40 = vpop.eup %11512 }
0x11eb   :  { %3274 = vperm.xlu1 %11405, %v11511_v11  }
0x11ec   :  { %3271 = vperm.xlu0 %11404, %v11513_v40  }
0x1201   :  { %v3158_v57 = vpop.permute.xlu1 %3157 }
0x1202   :  { %v3165_v58 = vrot.slane %v3158_v57, %v12332_v46 }
0x1205   :  { %v3161_v42 = vpop.permute.xlu1 %3160 }
0x1206   :  { %v3169_v12 = vrot.slane %v3161_v42, %v12332_v46 }
0x1208   :  { %v3170_v47 = vsel %vm336_vm2, %v3169_v12, %v3165_v58 }
0x1209   :  { %v3172_v32 = vsel %vm486_vm3, %v3170_v47, 0.0 }
0x120f   :  { %3173 = vadd.xlane.f32.xlu1 %v3172_v32  ;;  %v10608_v32 = vld [vmem:[%s15342_s0 + $0x4] sm:$0x3] }
0x1210   :  { %10922 = vmatmul.mubr.msk.f32.vlgmr.msra.gmra.mrb[14].mxu1 %vm775_vm8, %v10608_v32 }
0x1211   :  { %11241 = vmatpush3.bf16.msra.mxu1 %v12472_v31  ;;  %10928 = vmatprep.mubr.msk.f32.mxu1 %vm12017_vm5, %v15366_v3 }
0x1212   :  { %11245 = vmatprep.subr.bf16.mxu1 %v15364_v41 }
0x1266   :  { %v3019_v28 = vpop.permute.xlu1 %3018 }
0x1267   :  { %v3026_v61 = vrot.slane %v3019_v28, %v12332_v46  ;;  %v3022_v23 = vpop.permute.xlu0 %3021 }
0x1268   :  { %v3030_v38 = vrot.slane %v3022_v23, %v12332_v46 }
0x126a   :  { %v3275_v53 = vpop.permute.xlu1 %3274  ;;  %v3031_v19 = vsel %vm336_vm2, %v3030_v38, %v3026_v61 }
0x126b   :  { %v3283_v13 = vrot.slane %v3275_v53, %v12332_v46  ;;  %v3272_v30 = vpop.permute.xlu0 %3271  ;;  %v3033_v22 = vsel %vm339_vm4, %v3031_v19, 0.0 }
0x126c   :  { %v3279_v7 = vrot.slane %v3272_v30, %v12332_v46  ;;  %3034 = vadd.xlane.f32.xlu0 %v3033_v22 }
0x126e   :  { %v3284_v26 = vsel %vm336_vm2, %v3283_v13, %v3279_v7 }
0x126f   :  { %v3286_v36 = vsel %vm486_vm3, %v3284_v26, 0.0 }
0x1270   :  { %3287 = vadd.xlane.f32.xlu0 %v3286_v36 }
0x129c   :  { %v3174_v49 = vpop.xlane.xlu1 %3173 }
0x129d   :  { %v3179_v50 = vrot.slane %v3174_v49, %v12224_v21  ;;  %v3183_v57 = vrot.slane %v3174_v49, %v12270_v48  ;;  %v10609_v49 = vld [vmem:[%s15457_s4 + $0x4] sm:$0x3] }
0x129e   :  { %vm4122_vm12 = vcmp.gt.f32.partialorder %v10609_v49, 0.5 }
0x129f   :  { %11514 = vrcp.f32 %v3179_v50 }
0x12a0   :  { %11516 = vrcp.f32 %v3183_v57  ;;  %v12826_v57 = vld [vmem:[%s15339_s5 + $0x4] sm:$0xf] }
0x12a9   :  { %v11515_v42 = vpop.eup %11514 }
0x12aa   :  { %v11517_v12 = vpop.eup %11516  ;;  %v3187_v58 = vmul.f32 %v11515_v42, %v11503_v17 }
0x12ab   :  { %v3189_v47 = vmul.f32 %v11517_v12, %v11505_v37 }
0x12ac   :  { %3192 = vperm.xlu1 %11405, %v3187_v58  }
0x12ad   :  { %3197 = vperm.xlu0 %11404, %v3189_v47  }
0x12f9   :  { %v3035_v28 = vpop.xlane.xlu0 %3034 }
0x12fa   :  { %v3040_v61 = vrot.slane %v3035_v28, %v12224_v21  ;;  %v3044_v17 = vrot.slane %v3035_v28, %v12270_v48 }
0x12fc   :  { %11518 = vrcp.f32 %v3040_v61 }
0x12fd   :  { %11520 = vrcp.f32 %v3044_v17  ;;  %v3288_v37 = vpop.xlane.xlu0 %3287 }
0x12fe   :  { %v3293_v23 = vrot.slane %v3288_v37, %v12224_v21  ;;  %v3297_v38 = vrot.slane %v3288_v37, %v12270_v48 }
0x1300   :  { %11522 = vrcp.f32 %v3293_v23 }
0x1301   :  { %11524 = vrcp.f32 %v3297_v38 }
0x1306   :  { %v11519_v53 = vpop.eup %11518 }
0x1307   :  { %v11521_v19 = vpop.eup %11520  ;;  %v3048_v13 = vmul.f32 %v11519_v53, %v11507_v52  ;;  %v4123_v52 = vsel %vm4122_vm12, 1, %v15362_v5  ;;  %vm1270_vm12 = vcmask 517120  }
0x1308   :  { %v3050_v30 = vmul.f32 %v11521_v19, %v11509_v55 }
0x1309   :  { %3053 = vperm.xlu0 %11404, %v3048_v13  }
0x130a   :  { %v11523_v22 = vpop.eup %11522  ;;  %3058 = vperm.xlu1 %11405, %v3050_v30  }
0x130b   :  { %v11525_v7 = vpop.eup %11524  ;;  %v3301_v26 = vmul.f32 %v11523_v22, %v11513_v40 }
0x130c   :  { %v3303_v36 = vmul.f32 %v11525_v7, %v11511_v11  ;;  %v12820_v11 = vld [vmem:[%s15339_s5] sm:$0xf] }
0x130e   :  { %3311 = vperm.xlu0 %11404, %v3303_v36   ;;  %3306 = vperm.xlu1 %11405, %v3301_v26   ;;  %v12842_v36 = vld [vmem:[%s15338_s2] sm:$0xff] }
0x1312   :  { %3638 = vrot.lane.b32.xlu0 %v12712_v27, %s12018_s15  ;;  %2367 = vrot.lane.b32.xlu1 %v12695_v59, %s12012_s29 }
0x1316   :  { %4125 = vperm.xlu0 %11404, %v4123_v52   ;;  %v12848_v52 = vld [vmem:[%s15338_s2 + $0x8] sm:$0xff] }
0x132b   :  { %v3193_v55 = vpop.permute.xlu1 %3192 }
0x132c   :  { %v3200_v40 = vmul.f32 %v12820_v11, %v3193_v55  ;;  %v3198_v50 = vpop.permute.xlu0 %3197 }
0x132d   :  { %v3201_v42 = vmul.f32 %v12826_v57, %v3198_v50 }
0x132e   :  { %v3202_v12 = vsel %vm555_vm7, %v3200_v40, 0.0 }
0x132f   :  { %v3203_v58 = vrot.slane %v3202_v12, 4  ;;  %v3209_v47 = vsel %vm555_vm7, %v3201_v42, 0.0 }
0x1330   :  { %v3210_v32 = vrot.slane %v3209_v47, 4 }
0x1331   :  { %v3204_v28 = vadd.f32 %v3203_v58, %v3202_v12 }
0x1332   :  { %v3211_v61 = vadd.f32 %v3210_v32, %v3209_v47 }
0x1333   :  { %v3205_v17 = vrot.slane %v3204_v28, 2 }
0x1334   :  { %v3212_v37 = vrot.slane %v3211_v61, 2 }
0x1335   :  { %v3206_v23 = vadd.f32 %v3205_v17, %v3204_v28  ;;  %v12856_v28 = vld [vmem:[%s15343_s7] sm:$0xf]  ;;  %v12862_v17 = vld [vmem:[%s15343_s7 + $0x4] sm:$0xf] }
0x1336   :  { %v3213_v38 = vadd.f32 %v3212_v37, %v3211_v61 }
0x1337   :  { %v3207_v53 = vrot.slane %v3206_v23, 1 }
0x1338   :  { %v3214_v19 = vrot.slane %v3213_v38, 1 }
0x1339   :  { %v3208_v13 = vadd.f32 %v3207_v53, %v3206_v23  ;;  %v3474_v23 = vpop.f32.mrb[14].mxu1 }
0x133a   :  { %v3215_v30 = vadd.f32 %v3214_v19, %v3213_v38  ;;  %v10923_v53 = vpop.f32.mrb[15].mxu1 }
0x133c   :  { %v3480_v22 = vsel %vm336_vm2, %v3215_v30, %v3208_v13 }
0x133d   :  { %10929 = vmatmul.mubr.msk.f32.vlgmr.msra.gmra.mrb[16].mxu1 %vm775_vm8, %v3480_v22 }
0x133e   :  { %11247 = vmatpush3.bf16.msra.mxu1 %v12623_v43  ;;  %10946 = vmatprep.mubr.msk.f32.mxu1 %vm12017_vm5, %v15366_v3 }
0x133f   :  { %11248 = vmatprep.subr.bf16.mxu1 %v15364_v41 }
0x1342   :  { %11250 = vmatpush3.bf16.msra.mxu1 %v12637_v63 }
0x1343   :  { %11259 = vmatprep.subr.bf16.mxu1 %v15364_v41 }
0x1388   :  { %v3054_v7 = vpop.permute.xlu0 %3053 }
0x1389   :  { %v3059_v26 = vpop.permute.xlu1 %3058  ;;  %v3061_v49 = vmul.f32 %v12842_v36, %v3054_v7 }
0x138a   :  { %v3062_v55 = vmul.f32 %v12848_v52, %v3059_v26 }
0x138b   :  { %v3063_v40 = vsel %vm155_vm0, %v3061_v49, 0.0 }
0x138c   :  { %v3070_v50 = vsel %vm155_vm0, %v3062_v55, 0.0  ;;  %v3064_v42 = vrot.slane %v3063_v40, 4 }
0x138d   :  { %v3071_v12 = vrot.slane %v3070_v50, 4  ;;  %v3307_v58 = vpop.permute.xlu1 %3306  ;;  %v3312_v47 = vpop.permute.xlu0 %3311 }
0x138e   :  { %v3065_v32 = vadd.f32 %v3064_v42, %v3063_v40  ;;  %v3314_v61 = vmul.f32 %v12856_v28, %v3307_v58  ;;  %v3315_v37 = vmul.f32 %v12862_v17, %v3312_v47 }
0x138f   :  { %v3072_v38 = vadd.f32 %v3071_v12, %v3070_v50 }
0x1390   :  { %v3066_v19 = vrot.slane %v3065_v32, 2  ;;  %v3316_v13 = vsel %vm555_vm7, %v3314_v61, 0.0  ;;  %v3323_v30 = vsel %vm555_vm7, %v3315_v37, 0.0 }
0x1391   :  { %v3073_v22 = vrot.slane %v3072_v38, 2  ;;  %v3317_v7 = vrot.slane %v3316_v13, 4  ;;  %v3324_v26 = vrot.slane %v3323_v30, 4  ;;  %v2368_v49 = vpop.permute.xlu1 %2367 }
0x1392   :  { %v3067_v55 = vadd.f32 %v3066_v19, %v3065_v32  ;;  %10904 = vmatmul.mubr.msk.f32.vlgmr.msra.gmra.mrb[10].mxu0 %vm155_vm0, %v2368_v49 }
0x1393   :  { %v3074_v40 = vadd.f32 %v3073_v22, %v3072_v38  ;;  %v3318_v42 = vadd.f32 %v3317_v7, %v3316_v13  ;;  %v3325_v58 = vadd.f32 %v3324_v26, %v3323_v30  ;;  %11232 = vmatpush3.bf16.msra.mxu0 %v12380_v56  ;;  %10914 = vmatprep.mubr.msk.f32.mxu0 %vm12017_vm5, %v15366_v3 }
0x1394   :  { %v3068_v50 = vrot.slane %v3067_v55, 1  ;;  %11233 = vmatprep.subr.bf16.mxu0 %v15364_v41 }
0x1395   :  { %v3075_v12 = vrot.slane %v3074_v40, 1  ;;  %v3319_v47 = vrot.slane %v3318_v42, 2  ;;  %v3326_v61 = vrot.slane %v3325_v58, 2 }
0x1396   :  { %v3069_v37 = vadd.f32 %v3068_v50, %v3067_v55 }
0x1397   :  { %v3076_v53 = vadd.f32 %v3075_v12, %v3074_v40  ;;  %v3320_v5 = vadd.f32 %v3319_v47, %v3318_v42  ;;  %v3327_v32 = vadd.f32 %v3326_v61, %v3325_v58  ;;  %11235 = vmatpush3.bf16.msra.mxu0 %v12392_v44 }
0x1398   :  { %11242 = vmatprep.subr.bf16.mxu0 %v15364_v41 }
0x1399   :  { %v3321_v38 = vrot.slane %v3320_v5, 1  ;;  %v3328_v19 = vrot.slane %v3327_v32, 1  ;;  %v3332_v13 = vsel %vm336_vm2, %v3076_v53, %v3069_v37  ;;  %v12892_v37 = vld [vmem:[%s15344_s25] ss:$0 sm:$0xff] }
0x139a   :  { %10915 = vmatmul.mubr.msk.f32.vlgmr.msra.gmra.mrb[12].mxu0 %vm155_vm0, %v3332_v13 }
0x139b   :  { %v3322_v30 = vadd.f32 %v3321_v38, %v3320_v5  ;;  %v3329_v22 = vadd.f32 %v3328_v19, %v3327_v32  ;;  %11244 = vmatpush3.bf16.msra.mxu0 %v12416_v2  ;;  %10935 = vmatprep.mubr.msk.f32.mxu0 %vm12017_vm5, %v15366_v3 }
0x139c   :  { %11252 = vmatprep.subr.bf16.mxu0 %v12174_v4 }
0x139d   :  { %v3556_v7 = vsel %vm336_vm2, %v3329_v22, %v3322_v30  ;;  %v3639_v30 = vpop.permute.xlu0 %3638 }
0x139e   :  { %10936 = vmatmul.mubr.msk.f32.vlgmr.msra.gmra.mrb[14].mxu0 %vm775_vm8, %v3556_v7 }
0x139f   :  { %11254 = vmatpush1.bf16.msra.mxu0 %v12185_v8  ;;  %4205 = vmatprep.mubr.f32.mxu0 %v15366_v3 }
0x13a0   :  { %11256 = vmatprep.subr.bf16.mxu0 %v12187_v9 }
0x13a3   :  { %11258 = vmatpush1.bf16.msra.mxu0 %v12203_v14 }
0x13a4   :  { %11265 = vmatprep.subr.bf16.mxu0 %v15364_v41 }
0x1410   :  { %v3549_v5 = vpop.f32.mrb[16].mxu1 }
0x1411   :  { %v10930_v26 = vpop.f32.mrb[17].mxu1 }
0x1465   :  { %v12887_v49 = vpop.f32.mrb[10].mxu0 }
0x1466   :  { %v10905_v55 = vpop.f32.mrb[11].mxu0 }
0x146d   :  { %v3401_v40 = vpop.f32.mrb[12].mxu0 }
0x146e   :  { %v3475_v42 = vadd.f32 %v3474_v23, %v3401_v40  ;;  %v10916_v58 = vpop.f32.mrb[13].mxu0 }
0x1470   :  { %v3553_v50 = vadd.f32 %v3549_v5, %v3475_v42  ;;  %v12898_v42 = vpop.permute.xlu0 %4125 }
0x1471   :  { %v3625_v12 = vpop.f32.mrb[14].mxu0  ;;  %15466 = vst [vmem:[#allocation22_spill] sm:$0xff] %v12898_v42  ;;  %vm4127_vm13 = vcmp.eq.s32.totalorder %v12898_v42, 1 }
0x1472   :  { %v3629_v47 = vadd.f32 %v3625_v12, %v3553_v50  ;;  %v10937_v61 = vpop.f32.mrb[15].mxu0 }
0x1474   :  { %v3630_v53 = vadd.f32 %v12892_v37, %v3629_v47 }
0x1476   :  { %v3631_v32 = vadd.f32 %v3630_v53, %v12712_v27 }
0x1478   :  { %v10615_v38 = vmul.f32 -1.442695, %v3631_v32 }
0x147a   :  { %11526 = vpow2.f32 %v10615_v38 }
0x1484   :  { %v11527_v19 = vpop.eup %11526 }
0x1485   :  { %v3635_v13 = vadd.f32 1.0, %v11527_v19 }
0x1487   :  { %11528 = vrcp.f32 %v3635_v13 }
0x1491   :  { %v11529_v23 = vpop.eup %11528 }
0x1492   :  { %v3641_v22 = vmul.f32 %v11529_v23, %v3639_v30  ;;  %v3648_v55 = vsub.f32 1.0, %v11529_v23  ;;  %v3654_v27 = vmul.f32 %v11529_v23, %v12702_v60 }
0x1494   :  { %3643 = vrot.lane.b32.xlu1 %v3641_v22, %s12018_s15 }
0x1506   :  { %v3644_v7 = vpop.permute.xlu1 %3643 }
0x1507   :  { %v3646_v5 = vadd.f32 %v3644_v7, %v3630_v53 }
0x1509   :  { %11530 = vtanh.f32 %v3646_v5 }
0x1513   :  { %v11531_v26 = vpop.eup %11530 }
0x1514   :  { %3650 = vrot.lane.b32.xlu1 %v11531_v26, %s12012_s29 }
0x1586   :  { %v3651_v40 = vpop.permute.xlu1 %3650 }
0x1587   :  { %v3653_v58 = vmul.f32 %v3651_v40, %v3648_v55 }
0x1589   :  { %v12901_v50 = vadd.f32 %v3654_v27, %v3653_v58 }
0x158b   :  { %15467 = vst [vmem:[#allocation23_spill] sm:$0xff] %v12901_v50  ;;  %v12908_v12 = vsel %vm4127_vm13, %v12901_v50, %v12702_v60 }
0x158c   :  { %4137 = vrot.lane.b32.xlu0 %v12908_v12, %s12012_s29 }
0x15fe   :  { %v4138_v47 = vpop.permute.xlu0 %4137 }
0x15ff   :  { %10620 = vmatmul.mubr.msk.f32.vlgmr.msra.gmra.mrb[16].mxu0 %vm155_vm0, %v4138_v47 }
0x1600   :  { %11267 = vmatpush3.bf16.msra.mxu0 %v12456_v54  ;;  %10964 = vmatprep.mubr.msk.f32.mxu0 %vm12017_vm5, %v15366_v3 }
0x1601   :  { %11268 = vmatprep.subr.bf16.mxu0 %v15364_v41 }
0x16d2   :  { %v4207_v61 = vpop.f32.mrb[16].mxu0 }
0x16d3   :  { %v12918_v53 = vadd.f32 %v4207_v61, %v12230_v24  ;;  %v4209_v32 = vpop.f32.mrb[17].mxu0 }
0x16d4   :  { %v4210_v27 = vadd.f32 %v4209_v32, %v12277_v51 }
0x16d5   :  { %v4219_v60 = vrot.slane %v12918_v53, %v12233_v25 }
0x16d6   :  { %v4374_v58 = vrot.slane %v4210_v27, %v12233_v25 }
0x16d7   :  { %v4220_v38 = vcombine.high %v4219_v60, %v4219_v60  ;;  %v4227_v19 = vrot.slane %v4219_v60, %v12233_v25 }
0x16d8   :  { %v4375_v47 = vcombine.high %v4374_v58, %v4374_v58 }
0x16d9   :  { %v4234_v13 = vrot.slane %v4220_v38, %v12233_v25  ;;  %v4238_v23 = vrot.slane %v4227_v19, %v12224_v21  ;;  %v4382_v38 = vrot.slane %v4374_v58, %v12233_v25 }
0x16da   :  { %v4389_v61 = vrot.slane %v4375_v47, %v12233_v25 }
0x16db   :  { %v4242_v30 = vrot.slane %v4234_v13, %v12224_v21  ;;  %v4245_v22 = vadd.f32 %v4238_v23, %v12238_v29 }
0x16dc   :  { %v4397_v60 = vrot.slane %v4389_v61, %v12224_v21 }
0x16dd   :  { %v4246_v7 = vadd.f32 %v4242_v30, %v12245_v35  ;;  %11532 = vtanh.f32 %v4245_v22  ;;  %v4393_v22 = vrot.slane %v4382_v38, %v12224_v21 }
0x16de   :  { %v4507_v19 = vadd.f32 %v4397_v60, %v12290_v1  ;;  %v4401_v58 = vadd.f32 %v12749_v45, %v4397_v60 }
0x16df   :  { %11534 = vtanh.f32 %v4246_v7  ;;  %v4506_v7 = vadd.f32 %v4393_v22, %v12286_v62  ;;  %v4400_v27 = vadd.f32 %v12743_v20, %v4393_v22 }
0x16e0   :  { %11536 = vtanh.f32 %v4507_v19 }
0x16e1   :  { %11538 = vtanh.f32 %v4506_v7 }
0x16e2   :  { %11540 = vtanh.f32 %v4400_v27 }
0x16e3   :  { %11542 = vtanh.f32 %v4401_v58 }
0x16e7   :  { %v11533_v5 = vpop.eup %11532 }
0x16e8   :  { %v4249_v26 = vmul.f32 %v11533_v5, %v12250_v39 }
0x16e9   :  { %v11535_v55 = vpop.eup %11534 }
0x16ea   :  { %4253 = vrot.lane.b32.xlu1 %v4249_v26, %s12014_s30  ;;  %v4250_v40 = vmul.f32 %v11535_v55, %v12250_v39  ;;  %v11537_v5 = vpop.eup %11536 }
0x16eb   :  { %v4511_v26 = vmul.f32 %v11537_v5, %v12295_v10  ;;  %v11539_v55 = vpop.eup %11538 }
0x16ec   :  { %4255 = vrot.lane.b32.xlu0 %v4250_v40, %s12014_s30  ;;  %v4510_v40 = vmul.f32 %v11539_v55, %v12295_v10  ;;  %v11541_v47 = vpop.eup %11540 }
0x16ed   :  { %v11543_v61 = vpop.eup %11542  ;;  %v4404_v38 = vmul.f32 %v12755_v6, %v11541_v47 }
0x16ee   :  { %v4405_v19 = vmul.f32 %v12755_v6, %v11543_v61 }
0x175c   :  { %v4254_v13 = vpop.permute.xlu1 %4253 }
0x175d   :  { %v4259_v23 = vsel %vm155_vm0, %v4254_v13, 0.0  ;;  %v4406_v13 = vsel %vm467_vm1, %v4404_v38, 0.0 }
0x175e   :  { %4260 = vadd.xlane.f32.xlu1 %v4259_v23  ;;  %v4256_v30 = vpop.permute.xlu0 %4255  ;;  %v4409_v23 = vsel %vm467_vm1, %v4405_v19, 0.0 }
0x175f   :  { %v4262_v32 = vsel %vm155_vm0, %v4256_v30, 0.0 }
0x1760   :  { %4263 = vadd.xlane.f32.xlu0 %v4262_v32 }
0x176f   :  { %4516 = vrot.lane.b32.xlu1 %v4511_v26, %s12012_s29 }
0x1776   :  { %4514 = vrot.lane.b32.xlu0 %v4510_v40, %s12012_s29 }
0x1793   :  { %4407 = vadd.xlane.f32.xlu1 %v4406_v13 }
0x1795   :  { %4410 = vadd.xlane.f32.xlu0 %v4409_v23 }
0x17eb   :  { %v4261_v30 = vpop.xlane.xlu1 %4260 }
0x17ec   :  { %v4265_v6 = vadd.f32 %v4261_v30, %v12322_v33 }
0x17ed   :  { %v4264_v32 = vpop.xlane.xlu0 %4263 }
0x17ee   :  { %v4266_v22 = vadd.f32 %v4264_v32, %v12324_v34 }
0x17ef   :  { %v4517_v7 = vpop.permute.xlu1 %4516 }
0x17f0   :  { %v4523_v20 = vsel %vm467_vm1, %v4517_v7, 0.0 }
0x17f1   :  { %4524 = vadd.xlane.f32.xlu1 %v4523_v20  ;;  %v4515_v45 = vpop.permute.xlu0 %4514 }
0x17f2   :  { %v4520_v60 = vsel %vm467_vm1, %v4515_v45, 0.0 }
0x17f3   :  { %4521 = vadd.xlane.f32.xlu0 %v4520_v60 }
0x1802   :  { %4273 = vperm.xlu1 %11405, %v4266_v22  }
0x1809   :  { %4270 = vperm.xlu0 %11404, %v4265_v6  }
0x1820   :  { %v4408_v5 = vpop.xlane.xlu1 %4407 }
0x1821   :  { %v4417_v55 = vrot.slane %v4408_v5, %v12332_v46 }
0x1822   :  { %v4411_v26 = vpop.xlane.xlu0 %4410 }
0x1823   :  { %v4421_v40 = vrot.slane %v4411_v26, %v12332_v46 }
0x1825   :  { %v4422_v27 = vsel %vm336_vm2, %v4421_v40, %v4417_v55 }
0x1826   :  { %v4424_v58 = vsel %vm486_vm3, %v4422_v27, -inf }
0x1828   :  { %4425 = vmax.xlane.f32.xlu0 %v4424_v58 }
0x187e   :  { %v4525_v47 = vpop.xlane.xlu1 %4524 }
0x187f   :  { %v4535_v38 = vrot.slane %v4525_v47, %v12332_v46 }
0x1880   :  { %v4522_v61 = vpop.xlane.xlu0 %4521 }
0x1881   :  { %v4531_v19 = vrot.slane %v4522_v61, %v12332_v46 }
0x1882   :  { %v4274_v30 = vpop.permute.xlu1 %4273 }
0x1883   :  { %v4536_v13 = vsel %vm336_vm2, %v4535_v38, %v4531_v19  ;;  %v4282_v7 = vrot.slane %v4274_v30, %v12332_v46 }
0x1884   :  { %v4538_v23 = vsel %vm486_vm3, %v4536_v13, -inf }
0x1885   :  { %4539 = vmax.xlane.f32.xlu0 %v4538_v23 }
0x1888   :  { %v4271_v32 = vpop.permute.xlu0 %4270 }
0x1889   :  { %v4278_v20 = vrot.slane %v4271_v32, %v12332_v46 }
0x188b   :  { %v4283_v45 = vsel %vm336_vm2, %v4282_v7, %v4278_v20 }
0x188c   :  { %v4285_v60 = vsel %vm339_vm4, %v4283_v45, -inf }
0x188d   :  { %4286 = vmax.xlane.f32.xlu1 %v4285_v60 }
0x18b5   :  { %v4426_v55 = vpop.xlane.xlu0 %4425 }
0x18b6   :  { %v4431_v40 = vrot.slane %v4426_v55, %v12224_v21  ;;  %v4435_v27 = vrot.slane %v4426_v55, %v12270_v48 }
0x18b8   :  { %v4438_v58 = vsub.f32 %v4408_v5, %v4431_v40  ;;  %v4439_v38 = vsub.f32 %v4411_v26, %v4435_v27 }
0x18ba   :  { %v4440_v19 = vmul.f32 1.442695, %v4438_v58  ;;  %v4442_v13 = vmul.f32 1.442695, %v4439_v38 }
0x18bc   :  { %11544 = vpow2.f32 %v4440_v19 }
0x18bd   :  { %11546 = vpow2.f32 %v4442_v13 }
0x18c6   :  { %v11545_v23 = vpop.eup %11544 }
0x18c7   :  { %4447 = vperm.xlu1 %11405, %v11545_v23   ;;  %v11547_v30 = vpop.eup %11546 }
0x18cb   :  { %4450 = vperm.xlu1 %11405, %v11547_v30  }
0x1912   :  { %v4540_v32 = vpop.xlane.xlu0 %4539 }
0x1913   :  { %v4549_v7 = vrot.slane %v4540_v32, %v12270_v48  ;;  %v4545_v20 = vrot.slane %v4540_v32, %v12224_v21 }
0x1915   :  { %v4553_v5 = vsub.f32 %v4525_v47, %v4549_v7  ;;  %v4552_v27 = vsub.f32 %v4522_v61, %v4545_v20 }
0x1917   :  { %v4556_v19 = vmul.f32 1.442695, %v4553_v5  ;;  %v4554_v13 = vmul.f32 1.442695, %v4552_v27 }
0x191a   :  { %v4287_v45 = vpop.xlane.xlu1 %4286 }
0x191b   :  { %v4292_v60 = vrot.slane %v4287_v45, %v12224_v21  ;;  %v4296_v55 = vrot.slane %v4287_v45, %v12270_v48 }
0x191d   :  { %v4299_v26 = vsub.f32 %v4265_v6, %v4292_v60  ;;  %v4300_v40 = vsub.f32 %v4266_v22, %v4296_v55 }
0x191f   :  { %v4301_v58 = vmul.f32 1.442695, %v4299_v26  ;;  %v4303_v38 = vmul.f32 1.442695, %v4300_v40 }
0x1921   :  { %11548 = vpow2.f32 %v4301_v58 }
0x1922   :  { %11550 = vpow2.f32 %v4303_v38 }
0x1923   :  { %11552 = vpow2.f32 %v4556_v19 }
0x1924   :  { %11554 = vpow2.f32 %v4554_v13 }
0x192b   :  { %v11549_v41 = vpop.eup %11548 }
0x192c   :  { %v11551_v3 = vpop.eup %11550  ;;  %4308 = vperm.xlu1 %11405, %v11549_v41  }
0x192d   :  { %4311 = vperm.xlu0 %11404, %v11551_v3   ;;  %v11553_v32 = vpop.eup %11552 }
0x192e   :  { %v11555_v42 = vpop.eup %11554 }
0x1930   :  { %4564 = vperm.xlu1 %11405, %v11553_v32  }
0x1931   :  { %4561 = vperm.xlu0 %11404, %v11555_v42  }
0x1946   :  { %v4448_v47 = vpop.permute.xlu1 %4447 }
0x1947   :  { %v4455_v61 = vrot.slane %v4448_v47, %v12332_v46 }
0x194a   :  { %v4451_v6 = vpop.permute.xlu1 %4450 }
0x194b   :  { %v4459_v22 = vrot.slane %v4451_v6, %v12332_v46 }
0x194d   :  { %v4460_v7 = vsel %vm336_vm2, %v4459_v22, %v4455_v61 }
0x194e   :  { %v4462_v20 = vsel %vm486_vm3, %v4460_v7, 0.0 }
0x1954   :  { %4463 = vadd.xlane.f32.xlu1 %v4462_v20 }
0x19ab   :  { %v4309_v45 = vpop.permute.xlu1 %4308 }
0x19ac   :  { %v4316_v60 = vrot.slane %v4309_v45, %v12332_v46  ;;  %v4312_v55 = vpop.permute.xlu0 %4311 }
0x19ad   :  { %v4320_v5 = vrot.slane %v4312_v55, %v12332_v46  ;;  %v10618_v55 = vld [vmem:[%s15342_s0 + $0x6] sm:$0x3] }
0x19ae   :  { %10965 = vmatmul.mubr.msk.f32.vlgmr.msra.gmra.mrb[18].mxu0 %vm775_vm8, %v10618_v55 }
0x19af   :  { %v4565_v26 = vpop.permute.xlu1 %4564  ;;  %v4321_v40 = vsel %vm336_vm2, %v4320_v5, %v4316_v60  ;;  %11270 = vmatpush3.bf16.msra.mxu0 %v12472_v31  ;;  %v15468_v5 = vmov 0.0  }
0x19b0   :  { %v4573_v27 = vrot.slane %v4565_v26, %v12332_v46  ;;  %v4562_v58 = vpop.permute.xlu0 %4561  ;;  %v4323_v38 = vsel %vm339_vm4, %v4321_v40, 0.0  ;;  %10971 = vmatprep.mubr.msk.f32.mxu0 %vm12017_vm5, %v15468_v5  ;;  %v15469_v26 = vmov 0.0|0.0  }
0x19b1   :  { %v4569_v19 = vrot.slane %v4562_v58, %v12332_v46  ;;  %4324 = vadd.xlane.f32.xlu0 %v4323_v38  ;;  %11274 = vmatprep.subr.bf16.mxu0 %v15469_v26 }
0x19b3   :  { %v4574_v13 = vsel %vm336_vm2, %v4573_v27, %v4569_v19 }
0x19b4   :  { %v4576_v47 = vsel %vm486_vm3, %v4574_v13, 0.0 }
0x19b5   :  { %4577 = vadd.xlane.f32.xlu0 %v4576_v47 }
0x19e1   :  { %v4464_v6 = vpop.xlane.xlu1 %4463 }
0x19e2   :  { %v4469_v22 = vrot.slane %v4464_v6, %v12224_v21  ;;  %v4473_v61 = vrot.slane %v4464_v6, %v12270_v48 }
0x19e4   :  { %11556 = vrcp.f32 %v4469_v22 }
0x19e5   :  { %11558 = vrcp.f32 %v4473_v61 }
0x19ee   :  { %v11557_v7 = vpop.eup %11556 }
0x19ef   :  { %v11559_v20 = vpop.eup %11558  ;;  %v4477_v45 = vmul.f32 %v11557_v7, %v11545_v23 }
0x19f0   :  { %v4479_v60 = vmul.f32 %v11559_v20, %v11547_v30 }
0x19f1   :  { %4482 = vperm.xlu1 %11405, %v4477_v45   ;;  %v10619_v45 = vld [vmem:[%s15457_s4 + $0x6] sm:$0x3] }
0x19f2   :  { %4487 = vperm.xlu0 %11404, %v4479_v60   ;;  %vm5412_vm14 = vcmp.gt.f32.partialorder %v10619_v45, 0.5 }
0x1a3e   :  { %v4325_v40 = vpop.xlane.xlu0 %4324 }
0x1a3f   :  { %v4330_v27 = vrot.slane %v4325_v40, %v12224_v21  ;;  %v4334_v23 = vrot.slane %v4325_v40, %v12270_v48 }
0x1a41   :  { %11560 = vrcp.f32 %v4330_v27 }
0x1a42   :  { %11562 = vrcp.f32 %v4334_v23  ;;  %v4578_v30 = vpop.xlane.xlu0 %4577 }
0x1a43   :  { %v4583_v58 = vrot.slane %v4578_v30, %v12224_v21  ;;  %v4587_v38 = vrot.slane %v4578_v30, %v12270_v48 }
0x1a45   :  { %11564 = vrcp.f32 %v4583_v58 }
0x1a46   :  { %11566 = vrcp.f32 %v4587_v38 }
0x1a4b   :  { %v11561_v19 = vpop.eup %11560 }
0x1a4c   :  { %v11563_v13 = vpop.eup %11562  ;;  %v4338_v47 = vmul.f32 %v11561_v19, %v11549_v41 }
0x1a4d   :  { %v4340_v6 = vmul.f32 %v11563_v13, %v11551_v3  ;;  %v15470_v3 = vmov 0  }
0x1a4e   :  { %4343 = vperm.xlu0 %11404, %v4338_v47   ;;  %v5413_v41 = vsel %vm5412_vm14, 1, %v15470_v3 }
0x1a4f   :  { %v11565_v22 = vpop.eup %11564  ;;  %4348 = vperm.xlu1 %11405, %v4340_v6  }
0x1a50   :  { %v11567_v61 = vpop.eup %11566  ;;  %v4591_v7 = vmul.f32 %v11565_v22, %v11555_v42 }
0x1a51   :  { %v4593_v20 = vmul.f32 %v11567_v61, %v11553_v32 }
0x1a53   :  { %4601 = vperm.xlu0 %11404, %v4593_v20   ;;  %4596 = vperm.xlu1 %11405, %v4591_v7  }
0x1a57   :  { %4928 = vrot.lane.b32.xlu0 %v12918_v53, %s12018_s15  ;;  %3657 = vrot.lane.b32.xlu1 %v12901_v50, %s12012_s29 }
0x1a5b   :  { %5415 = vperm.xlu0 %11404, %v5413_v41  }
0x1a70   :  { %v4483_v60 = vpop.permute.xlu1 %4482 }
0x1a71   :  { %v4490_v42 = vmul.f32 %v12820_v11, %v4483_v60  ;;  %v4488_v32 = vpop.permute.xlu0 %4487 }
0x1a72   :  { %v4491_v55 = vmul.f32 %v12826_v57, %v4488_v32 }
0x1a73   :  { %v4492_v40 = vsel %vm555_vm7, %v4490_v42, 0.0 }
0x1a74   :  { %v4493_v27 = vrot.slane %v4492_v40, 4  ;;  %v4499_v23 = vsel %vm555_vm7, %v4491_v55, 0.0 }
0x1a75   :  { %v4500_v30 = vrot.slane %v4499_v23, 4 }
0x1a76   :  { %v4494_v58 = vadd.f32 %v4493_v27, %v4492_v40 }
0x1a77   :  { %v4501_v38 = vadd.f32 %v4500_v30, %v4499_v23 }
0x1a78   :  { %v4495_v19 = vrot.slane %v4494_v58, 2 }
0x1a79   :  { %v4502_v13 = vrot.slane %v4501_v38, 2 }
0x1a7a   :  { %v4496_v47 = vadd.f32 %v4495_v19, %v4494_v58 }
0x1a7b   :  { %v4503_v6 = vadd.f32 %v4502_v13, %v4501_v38 }
0x1a7c   :  { %v4497_v22 = vrot.slane %v4496_v47, 1 }
0x1a7d   :  { %v4504_v61 = vrot.slane %v4503_v6, 1 }
0x1a7e   :  { %v4498_v7 = vadd.f32 %v4497_v22, %v4496_v47 }
0x1a7f   :  { %v4505_v20 = vadd.f32 %v4504_v61, %v4503_v6 }
0x1a81   :  { %v4770_v11 = vsel %vm336_vm2, %v4505_v20, %v4498_v7  ;;  %v4764_v19 = vpop.f32.mrb[18].mxu0 }
0x1a82   :  { %10972 = vmatmul.mubr.msk.f32.vlgmr.msra.gmra.mrb[20].mxu0 %vm775_vm8, %v4770_v11  ;;  %v10966_v47 = vpop.f32.mrb[19].mxu0 }
0x1a83   :  { %11276 = vmatpush3.bf16.msra.mxu0 %v12623_v43  ;;  %10989 = vmatprep.mubr.msk.f32.mxu0 %vm12017_vm5, %v15468_v5 }
0x1a84   :  { %11277 = vmatprep.subr.bf16.mxu0 %v15469_v26 }
0x1a87   :  { %11279 = vmatpush3.bf16.msra.mxu0 %v12637_v63 }
0x1a88   :  { %11288 = vmatprep.subr.bf16.mxu0 %v15469_v26 }
0x1acd   :  { %v4344_v57 = vpop.permute.xlu0 %4343 }
0x1ace   :  { %v4349_v45 = vpop.permute.xlu1 %4348  ;;  %v4351_v41 = vmul.f32 %v12842_v36, %v4344_v57 }
0x1acf   :  { %v4352_v60 = vmul.f32 %v12848_v52, %v4349_v45 }
0x1ad0   :  { %v4353_v42 = vsel %vm155_vm0, %v4351_v41, 0.0 }
0x1ad1   :  { %v4360_v32 = vsel %vm155_vm0, %v4352_v60, 0.0  ;;  %v4354_v55 = vrot.slane %v4353_v42, 4 }
0x1ad2   :  { %v4361_v40 = vrot.slane %v4360_v32, 4  ;;  %v4597_v27 = vpop.permute.xlu1 %4596  ;;  %v4602_v23 = vpop.permute.xlu0 %4601 }
0x1ad3   :  { %v4355_v30 = vadd.f32 %v4354_v55, %v4353_v42  ;;  %v4604_v58 = vmul.f32 %v12856_v28, %v4597_v27  ;;  %v4605_v38 = vmul.f32 %v12862_v17, %v4602_v23 }
0x1ad4   :  { %v4362_v13 = vadd.f32 %v4361_v40, %v4360_v32 }
0x1ad5   :  { %v4356_v6 = vrot.slane %v4355_v30, 2  ;;  %v4606_v36 = vsel %vm555_vm7, %v4604_v58, 0.0  ;;  %v4613_v52 = vsel %vm555_vm7, %v4605_v38, 0.0 }
0x1ad6   :  { %v4363_v22 = vrot.slane %v4362_v13, 2  ;;  %v4607_v61 = vrot.slane %v4606_v36, 4  ;;  %v4614_v7 = vrot.slane %v4613_v52, 4  ;;  %v3658_v20 = vpop.permute.xlu1 %3657 }
0x1ad7   :  { %v4357_v11 = vadd.f32 %v4356_v6, %v4355_v30  ;;  %10947 = vmatmul.mubr.msk.f32.vlgmr.msra.gmra.mrb[18].mxu1 %vm155_vm0, %v3658_v20 }
0x1ad8   :  { %v4364_v57 = vadd.f32 %v4363_v22, %v4362_v13  ;;  %v4608_v45 = vadd.f32 %v4607_v61, %v4606_v36  ;;  %v4615_v28 = vadd.f32 %v4614_v7, %v4613_v52  ;;  %11261 = vmatpush3.bf16.msra.mxu1 %v12380_v56  ;;  %10957 = vmatprep.mubr.msk.f32.mxu1 %vm12017_vm5, %v15468_v5 }
0x1ad9   :  { %v4358_v17 = vrot.slane %v4357_v11, 1  ;;  %11262 = vmatprep.subr.bf16.mxu1 %v15469_v26 }
0x1ada   :  { %v4365_v41 = vrot.slane %v4364_v57, 1  ;;  %v4609_v60 = vrot.slane %v4608_v45, 2  ;;  %v4616_v42 = vrot.slane %v4615_v28, 2 }
0x1adb   :  { %v4359_v32 = vadd.f32 %v4358_v17, %v4357_v11 }
0x1adc   :  { %v4366_v55 = vadd.f32 %v4365_v41, %v4364_v57  ;;  %v4610_v40 = vadd.f32 %v4609_v60, %v4608_v45  ;;  %v4617_v27 = vadd.f32 %v4616_v42, %v4615_v28  ;;  %11264 = vmatpush3.bf16.msra.mxu1 %v12392_v44 }
0x1add   :  { %11271 = vmatprep.subr.bf16.mxu1 %v15469_v26 }
0x1ade   :  { %v4611_v23 = vrot.slane %v4610_v40, 1  ;;  %v4618_v30 = vrot.slane %v4617_v27, 1  ;;  %v4622_v58 = vsel %vm336_vm2, %v4366_v55, %v4359_v32 }
0x1adf   :  { %10958 = vmatmul.mubr.msk.f32.vlgmr.msra.gmra.mrb[20].mxu1 %vm155_vm0, %v4622_v58 }
0x1ae0   :  { %v4612_v38 = vadd.f32 %v4611_v23, %v4610_v40  ;;  %v4619_v13 = vadd.f32 %v4618_v30, %v4617_v27  ;;  %11273 = vmatpush3.bf16.msra.mxu1 %v12416_v2  ;;  %10978 = vmatprep.mubr.msk.f32.mxu1 %vm12017_vm5, %v15468_v5  ;;  %v4929_v40 = vpop.permute.xlu0 %4928 }
0x1ae1   :  { %11281 = vmatprep.subr.bf16.mxu1 %v12174_v4 }
0x1ae2   :  { %v4846_v47 = vsel %vm336_vm2, %v4619_v13, %v4612_v38 }
0x1ae3   :  { %10979 = vmatmul.mubr.msk.f32.vlgmr.msra.gmra.mrb[22].mxu1 %vm775_vm8, %v4846_v47 }
0x1ae4   :  { %11283 = vmatpush1.bf16.msra.mxu1 %v12185_v8  ;;  %5495 = vmatprep.mubr.f32.mxu1 %v15468_v5  ;;  %v13054_v38 = vpop.permute.xlu0 %5415 }
0x1ae5   :  { %11285 = vmatprep.subr.bf16.mxu1 %v12187_v9  ;;  %15472 = vst [vmem:[#allocation25_spill] sm:$0xff] %v13054_v38  ;;  %vm5417_vm15 = vcmp.eq.s32.totalorder %v13054_v38, 1 }
0x1ae8   :  { %11287 = vmatpush1.bf16.msra.mxu1 %v12203_v14 }
0x1ae9   :  { %11294 = vmatprep.subr.bf16.mxu1 %v15469_v26 }
0x1b55   :  { %v4839_v6 = vpop.f32.mrb[20].mxu0 }
0x1b56   :  { %v10973_v36 = vpop.f32.mrb[21].mxu0 }
0x1baa   :  { %v13048_v52 = vpop.f32.mrb[18].mxu1 }
0x1bab   :  { %15471 = vst [vmem:[#allocation24_spill] sm:$0xff] %v13048_v52  ;;  %v10948_v22 = vpop.f32.mrb[19].mxu1 }
0x1bb2   :  { %v4691_v61 = vpop.f32.mrb[20].mxu1 }
0x1bb3   :  { %v4765_v7 = vadd.f32 %v4764_v19, %v4691_v61  ;;  %v10959_v20 = vpop.f32.mrb[21].mxu1 }
0x1bb5   :  { %v4843_v11 = vadd.f32 %v4839_v6, %v4765_v7 }
0x1bb6   :  { %v4915_v57 = vpop.f32.mrb[22].mxu1 }
0x1bb7   :  { %v4919_v45 = vadd.f32 %v4915_v57, %v4843_v11  ;;  %v10980_v28 = vpop.f32.mrb[23].mxu1 }
0x1bb9   :  { %v4920_v17 = vadd.f32 %v12892_v37, %v4919_v45 }
0x1bbb   :  { %v4921_v41 = vadd.f32 %v4920_v17, %v12918_v53 }
0x1bbd   :  { %v10625_v60 = vmul.f32 -1.442695, %v4921_v41 }
0x1bbf   :  { %11568 = vpow2.f32 %v10625_v60 }
0x1bc9   :  { %v11569_v42 = vpop.eup %11568 }
0x1bca   :  { %v4925_v32 = vadd.f32 1.0, %v11569_v42 }
0x1bcc   :  { %11570 = vrcp.f32 %v4925_v32 }
0x1bd6   :  { %v11571_v55 = vpop.eup %11570 }
0x1bd7   :  { %v4931_v27 = vmul.f32 %v11571_v55, %v4929_v40  ;;  %v4938_v58 = vsub.f32 1.0, %v11571_v55  ;;  %v4944_v53 = vmul.f32 %v11571_v55, %v12908_v12 }
0x1bd9   :  { %4933 = vrot.lane.b32.xlu1 %v4931_v27, %s12018_s15 }
0x1c4b   :  { %v4934_v19 = vpop.permute.xlu1 %4933 }
0x1c4c   :  { %v4936_v23 = vadd.f32 %v4934_v19, %v4920_v17 }
0x1c4e   :  { %11572 = vtanh.f32 %v4936_v23 }
0x1c58   :  { %v11573_v30 = vpop.eup %11572 }
0x1c59   :  { %4940 = vrot.lane.b32.xlu1 %v11573_v30, %s12012_s29 }
0x1ccb   :  { %v4941_v37 = vpop.permute.xlu1 %4940 }
0x1ccc   :  { %v4943_v13 = vmul.f32 %v4941_v37, %v4938_v58 }
0x1cce   :  { %v13057_v47 = vadd.f32 %v4944_v53, %v4943_v13 }
0x1cd0   :  { %15473 = vst [vmem:[#allocation26_spill] sm:$0xff] %v13057_v47  ;;  %v13064_v6 = vsel %vm5417_vm15, %v13057_v47, %v12908_v12 }
0x1cd1   :  { %5427 = vrot.lane.b32.xlu0 %v13064_v6, %s12012_s29 }
0x1d43   :  { %v5428_v36 = vpop.permute.xlu0 %5427 }
0x1d44   :  { %10630 = vmatmul.mubr.msk.f32.vlgmr.msra.gmra.mrb[24].mxu1 %vm155_vm0, %v5428_v36 }
0x1d45   :  { %11296 = vmatpush3.bf16.msra.mxu1 %v12456_v54  ;;  %11007 = vmatprep.mubr.msk.f32.mxu1 %vm12017_vm5, %v15468_v5 }
0x1d46   :  { %11297 = vmatprep.subr.bf16.mxu1 %v15469_v26 }
0x1e17   :  { %v5497_v22 = vpop.f32.mrb[24].mxu1 }
0x1e18   :  { %v13074_v61 = vadd.f32 %v5497_v22, %v12230_v24  ;;  %v5499_v7 = vpop.f32.mrb[25].mxu1 }
0x1e19   :  { %v5500_v40 = vadd.f32 %v5499_v7, %v12277_v51 }
0x1e1a   :  { %v5509_v12 = vrot.slane %v13074_v61, %v12233_v25 }
0x1e1b   :  { %v5664_v27 = vrot.slane %v5500_v40, %v12233_v25 }
0x1e1c   :  { %v5510_v20 = vcombine.high %v5509_v12, %v5509_v12  ;;  %v5517_v11 = vrot.slane %v5509_v12, %v12233_v25 }
0x1e1d   :  { %v5665_v19 = vcombine.high %v5664_v27, %v5664_v27  ;;  %v5672_v58 = vrot.slane %v5664_v27, %v12233_v25 }
0x1e1e   :  { %v5524_v57 = vrot.slane %v5510_v20, %v12233_v25  ;;  %v5528_v45 = vrot.slane %v5517_v11, %v12224_v21 }
0x1e1f   :  { %v5679_v23 = vrot.slane %v5665_v19, %v12233_v25  ;;  %v5683_v22 = vrot.slane %v5672_v58, %v12224_v21 }
0x1e20   :  { %v5532_v28 = vrot.slane %v5524_v57, %v12224_v21  ;;  %v5535_v17 = vadd.f32 %v5528_v45, %v12238_v29 }
0x1e21   :  { %v5687_v30 = vrot.slane %v5679_v23, %v12224_v21  ;;  %v5796_v12 = vadd.f32 %v5683_v22, %v12286_v62 }
0x1e22   :  { %v5536_v41 = vadd.f32 %v5532_v28, %v12245_v35  ;;  %11574 = vtanh.f32 %v5535_v17  ;;  %v13105_v28 = vld [vmem:[%s15450_s17] sm:$0xf] }
0x1e23   :  { %v5797_v37 = vadd.f32 %v5687_v30, %v12290_v1  ;;  %v5690_v17 = vadd.f32 %v13105_v28, %v5683_v22 }
0x1e24   :  { %11576 = vtanh.f32 %v5536_v41  ;;  %v13111_v41 = vld [vmem:[%s15450_s17 + $0x4] sm:$0xf] }
0x1e25   :  { %11578 = vtanh.f32 %v5797_v37 }
0x1e26   :  { %11580 = vtanh.f32 %v5796_v12 }
0x1e27   :  { %11582 = vtanh.f32 %v5690_v17 }
0x1e2c   :  { %v11575_v60 = vpop.eup %11574 }
0x1e2d   :  { %v5539_v42 = vmul.f32 %v11575_v60, %v12250_v39  ;;  %v5691_v60 = vadd.f32 %v13111_v41, %v5687_v30 }
0x1e2e   :  { %v11577_v32 = vpop.eup %11576 }
0x1e2f   :  { %5543 = vrot.lane.b32.xlu1 %v5539_v42, %s12014_s30  ;;  %v5540_v55 = vmul.f32 %v11577_v32, %v12250_v39  ;;  %v11579_v20 = vpop.eup %11578  ;;  %11584 = vtanh.f32 %v5691_v60 }
0x1e30   :  { %v5801_v11 = vmul.f32 %v11579_v20, %v12295_v10  ;;  %v11581_v57 = vpop.eup %11580 }
0x1e31   :  { %5545 = vrot.lane.b32.xlu0 %v5540_v55, %s12014_s30  ;;  %v5800_v45 = vmul.f32 %v11581_v57, %v12295_v10  ;;  %v11583_v42 = vpop.eup %11582  ;;  %v13117_v55 = vld [vmem:[%s15451_s16] ss:$0 sm:$0xff] }
0x1e32   :  { %v5694_v40 = vmul.f32 %v13117_v55, %v11583_v42 }
0x1e34   :  { %v5696_v19 = vsel %vm467_vm1, %v5694_v40, 0.0 }
0x1e39   :  { %v11585_v32 = vpop.eup %11584 }
0x1e3a   :  { %v5695_v27 = vmul.f32 %v13117_v55, %v11585_v32 }
0x1e3c   :  { %v5699_v23 = vsel %vm467_vm1, %v5695_v27, 0.0 }
0x1ea1   :  { %v5544_v53 = vpop.permute.xlu1 %5543 }
0x1ea2   :  { %v5549_v13 = vsel %vm155_vm0, %v5544_v53, 0.0 }
0x1ea3   :  { %5550 = vadd.xlane.f32.xlu1 %v5549_v13  ;;  %v5546_v36 = vpop.permute.xlu0 %5545 }
0x1ea4   :  { %v5552_v7 = vsel %vm155_vm0, %v5546_v36, 0.0 }
0x1ea5   :  { %5553 = vadd.xlane.f32.xlu0 %v5552_v7 }
0x1eb4   :  { %5806 = vrot.lane.b32.xlu1 %v5801_v11, %s12012_s29 }
0x1ebb   :  { %5804 = vrot.lane.b32.xlu0 %v5800_v45, %s12012_s29 }
0x1ed8   :  { %5697 = vadd.xlane.f32.xlu1 %v5696_v19 }
0x1eda   :  { %5700 = vadd.xlane.f32.xlu0 %v5699_v23 }
0x1f30   :  { %v5551_v30 = vpop.xlane.xlu1 %5550 }
0x1f31   :  { %v5555_v7 = vadd.f32 %v5551_v30, %v12322_v33 }
0x1f32   :  { %v5554_v58 = vpop.xlane.xlu0 %5553 }
0x1f33   :  { %v5556_v22 = vadd.f32 %v5554_v58, %v12324_v34 }
0x1f34   :  { %v5807_v37 = vpop.permute.xlu1 %5806 }
0x1f35   :  { %v5813_v53 = vsel %vm467_vm1, %v5807_v37, 0.0 }
0x1f36   :  { %5814 = vadd.xlane.f32.xlu1 %v5813_v53  ;;  %v5805_v13 = vpop.permute.xlu0 %5804 }
0x1f37   :  { %v5810_v36 = vsel %vm467_vm1, %v5805_v13, 0.0 }
0x1f38   :  { %5811 = vadd.xlane.f32.xlu0 %v5810_v36 }
0x1f47   :  { %5563 = vperm.xlu1 %11405, %v5556_v22  }
0x1f4e   :  { %5560 = vperm.xlu0 %11404, %v5555_v7  }
0x1f65   :  { %v5698_v12 = vpop.xlane.xlu1 %5697 }
0x1f66   :  { %v5707_v11 = vrot.slane %v5698_v12, %v12332_v46 }
0x1f67   :  { %v5701_v20 = vpop.xlane.xlu0 %5700 }
0x1f68   :  { %v5711_v57 = vrot.slane %v5701_v20, %v12332_v46 }
0x1f6a   :  { %v5712_v45 = vsel %vm336_vm2, %v5711_v57, %v5707_v11 }
0x1f6b   :  { %v5714_v17 = vsel %vm486_vm3, %v5712_v45, -inf }
0x1f6d   :  { %5715 = vmax.xlane.f32.xlu0 %v5714_v17 }
0x1fc3   :  { %v5815_v60 = vpop.xlane.xlu1 %5814 }
0x1fc4   :  { %v5825_v32 = vrot.slane %v5815_v60, %v12332_v46 }
0x1fc5   :  { %v5812_v42 = vpop.xlane.xlu0 %5811 }
0x1fc6   :  { %v5821_v40 = vrot.slane %v5812_v42, %v12332_v46 }
0x1fc7   :  { %v5564_v23 = vpop.permute.xlu1 %5563 }
0x1fc8   :  { %v5826_v27 = vsel %vm336_vm2, %v5825_v32, %v5821_v40  ;;  %v5572_v58 = vrot.slane %v5564_v23, %v12332_v46 }
0x1fc9   :  { %v5828_v19 = vsel %vm486_vm3, %v5826_v27, -inf }
0x1fca   :  { %5829 = vmax.xlane.f32.xlu0 %v5828_v19 }
0x1fcd   :  { %v5561_v30 = vpop.permute.xlu0 %5560 }
0x1fce   :  { %v5568_v37 = vrot.slane %v5561_v30, %v12332_v46 }
0x1fd0   :  { %v5573_v53 = vsel %vm336_vm2, %v5572_v58, %v5568_v37 }
0x1fd1   :  { %v5575_v13 = vsel %vm339_vm4, %v5573_v53, -inf }
0x1fd2   :  { %5576 = vmax.xlane.f32.xlu1 %v5575_v13 }
0x1ffa   :  { %v5716_v36 = vpop.xlane.xlu0 %5715 }
0x1ffb   :  { %v5721_v11 = vrot.slane %v5716_v36, %v12224_v21  ;;  %v5725_v57 = vrot.slane %v5716_v36, %v12270_v48 }
0x1ffd   :  { %v5728_v45 = vsub.f32 %v5698_v12, %v5721_v11  ;;  %v5729_v17 = vsub.f32 %v5701_v20, %v5725_v57 }
0x1fff   :  { %v5730_v32 = vmul.f32 1.442695, %v5728_v45  ;;  %v5732_v40 = vmul.f32 1.442695, %v5729_v17 }
0x2001   :  { %11586 = vpow2.f32 %v5730_v32 }
0x2002   :  { %11588 = vpow2.f32 %v5732_v40 }
0x200b   :  { %v11587_v27 = vpop.eup %11586 }
0x200c   :  { %5737 = vperm.xlu1 %11405, %v11587_v27   ;;  %v11589_v19 = vpop.eup %11588 }
0x2010   :  { %5740 = vperm.xlu1 %11405, %v11589_v19  }
0x2057   :  { %v5830_v23 = vpop.xlane.xlu0 %5829 }
0x2058   :  { %v5839_v30 = vrot.slane %v5830_v23, %v12270_v48  ;;  %v5835_v58 = vrot.slane %v5830_v23, %v12224_v21 }
0x205a   :  { %v5843_v12 = vsub.f32 %v5815_v60, %v5839_v30  ;;  %v5842_v11 = vsub.f32 %v5812_v42, %v5835_v58 }
0x205c   :  { %v5846_v17 = vmul.f32 1.442695, %v5843_v12  ;;  %v5844_v32 = vmul.f32 1.442695, %v5842_v11 }
0x205f   :  { %v5577_v37 = vpop.xlane.xlu1 %5576 }
0x2060   :  { %v5582_v53 = vrot.slane %v5577_v37, %v12224_v21  ;;  %v5586_v13 = vrot.slane %v5577_v37, %v12270_v48 }
0x2062   :  { %v5589_v20 = vsub.f32 %v5555_v7, %v5582_v53  ;;  %v5590_v36 = vsub.f32 %v5556_v22, %v5586_v13 }
0x2064   :  { %v5591_v57 = vmul.f32 1.442695, %v5589_v20  ;;  %v5593_v45 = vmul.f32 1.442695, %v5590_v36 }
0x2066   :  { %11590 = vpow2.f32 %v5591_v57 }
0x2067   :  { %11592 = vpow2.f32 %v5593_v45 }
0x2068   :  { %11594 = vpow2.f32 %v5846_v17 }
0x2069   :  { %11596 = vpow2.f32 %v5844_v32 }
0x2070   :  { %v11591_v40 = vpop.eup %11590 }
0x2071   :  { %v11593_v38 = vpop.eup %11592  ;;  %5598 = vperm.xlu1 %11405, %v11591_v40  }
0x2072   :  { %5601 = vperm.xlu0 %11404, %v11593_v38   ;;  %v11595_v23 = vpop.eup %11594 }
0x2073   :  { %v11597_v18 = vpop.eup %11596 }
0x2075   :  { %5854 = vperm.xlu1 %11405, %v11595_v23  }
0x2076   :  { %5851 = vperm.xlu0 %11404, %v11597_v18  }
0x208b   :  { %v5738_v60 = vpop.permute.xlu1 %5737 }
0x208c   :  { %v5745_v42 = vrot.slane %v5738_v60, %v12332_v46 }
0x208f   :  { %v5741_v7 = vpop.permute.xlu1 %5740 }
0x2090   :  { %v5749_v22 = vrot.slane %v5741_v7, %v12332_v46 }
0x2092   :  { %v5750_v30 = vsel %vm336_vm2, %v5749_v22, %v5745_v42 }
0x2093   :  { %v5752_v58 = vsel %vm486_vm3, %v5750_v30, 0.0 }
0x2099   :  { %5753 = vadd.xlane.f32.xlu1 %v5752_v58 }
0x20f0   :  { %v5599_v37 = vpop.permute.xlu1 %5598 }
0x20f1   :  { %v5606_v53 = vrot.slane %v5599_v37, %v12332_v46  ;;  %v5602_v13 = vpop.permute.xlu0 %5601 }
0x20f2   :  { %v5610_v12 = vrot.slane %v5602_v13, %v12332_v46  ;;  %v10628_v13 = vld [vmem:[%s15342_s0 + $0x8] sm:$0x3] }
0x20f3   :  { %11008 = vmatmul.mubr.msk.f32.vlgmr.msra.gmra.mrb[26].mxu1 %vm775_vm8, %v10628_v13 }
0x20f4   :  { %v5855_v20 = vpop.permute.xlu1 %5854  ;;  %v5611_v36 = vsel %vm336_vm2, %v5610_v12, %v5606_v53  ;;  %11299 = vmatpush3.bf16.msra.mxu1 %v12472_v31  ;;  %11014 = vmatprep.mubr.msk.f32.mxu1 %vm12017_vm5, %v15468_v5 }
0x20f5   :  { %v5863_v11 = vrot.slane %v5855_v20, %v12332_v46  ;;  %v5852_v57 = vpop.permute.xlu0 %5851  ;;  %v5613_v45 = vsel %vm339_vm4, %v5611_v36, 0.0  ;;  %11303 = vmatprep.subr.bf16.mxu1 %v15469_v26 }
0x20f6   :  { %v5859_v17 = vrot.slane %v5852_v57, %v12332_v46  ;;  %5614 = vadd.xlane.f32.xlu0 %v5613_v45 }
0x20f8   :  { %v5864_v32 = vsel %vm336_vm2, %v5863_v11, %v5859_v17 }
0x20f9   :  { %v5866_v60 = vsel %vm486_vm3, %v5864_v32, 0.0 }
0x20fa   :  { %5867 = vadd.xlane.f32.xlu0 %v5866_v60 }
0x2126   :  { %v5754_v7 = vpop.xlane.xlu1 %5753 }
0x2127   :  { %v5759_v22 = vrot.slane %v5754_v7, %v12224_v21  ;;  %v5763_v42 = vrot.slane %v5754_v7, %v12270_v48 }
0x2129   :  { %11598 = vrcp.f32 %v5759_v22 }
0x212a   :  { %11600 = vrcp.f32 %v5763_v42 }
0x2133   :  { %v11599_v30 = vpop.eup %11598 }
0x2134   :  { %v11601_v58 = vpop.eup %11600  ;;  %v5767_v37 = vmul.f32 %v11599_v30, %v11587_v27  ;;  %v10629_v30 = vld [vmem:[%s15457_s4 + $0x8] sm:$0x3] }
0x2135   :  { %v5769_v53 = vmul.f32 %v11601_v58, %v11589_v19  ;;  %vm6702_vm6 = vcmp.gt.f32.partialorder %v10629_v30, 0.5 }
0x2136   :  { %5772 = vperm.xlu1 %11405, %v5767_v37   ;;  %v13188_v37 = vld [vmem:[%s15339_s5 + $0x4] sm:$0xf] }
0x2137   :  { %5777 = vperm.xlu0 %11404, %v5769_v53  }
0x2183   :  { %v5615_v12 = vpop.xlane.xlu0 %5614 }
0x2184   :  { %v5620_v20 = vrot.slane %v5615_v12, %v12224_v21  ;;  %v5624_v27 = vrot.slane %v5615_v12, %v12270_v48 }
0x2186   :  { %11602 = vrcp.f32 %v5620_v20 }
0x2187   :  { %11604 = vrcp.f32 %v5624_v27  ;;  %v5868_v19 = vpop.xlane.xlu0 %5867 }
0x2188   :  { %v5873_v36 = vrot.slane %v5868_v19, %v12224_v21  ;;  %v5877_v11 = vrot.slane %v5868_v19, %v12270_v48 }
0x218a   :  { %11606 = vrcp.f32 %v5873_v36 }
0x218b   :  { %11608 = vrcp.f32 %v5877_v11 }
0x2190   :  { %v11603_v57 = vpop.eup %11602 }
0x2191   :  { %v11605_v45 = vpop.eup %11604  ;;  %v5628_v17 = vmul.f32 %v11603_v57, %v11591_v40 }
0x2192   :  { %v5630_v32 = vmul.f32 %v11605_v45, %v11593_v38  ;;  %v6703_v38 = vsel %vm6702_vm6, 1, %v15470_v3 }
0x2193   :  { %5633 = vperm.xlu0 %11404, %v5628_v17  }
0x2194   :  { %v11607_v60 = vpop.eup %11606  ;;  %5638 = vperm.xlu1 %11405, %v5630_v32  }
0x2195   :  { %v11609_v7 = vpop.eup %11608  ;;  %v5881_v22 = vmul.f32 %v11607_v60, %v11597_v18  ;;  %v13182_v18 = vld [vmem:[%s15339_s5] sm:$0xf] }
0x2196   :  { %v5883_v42 = vmul.f32 %v11609_v7, %v11595_v23 }
0x2198   :  { %5891 = vperm.xlu0 %11404, %v5883_v42   ;;  %5886 = vperm.xlu1 %11405, %v5881_v22  }
0x219c   :  { %6218 = vrot.lane.b32.xlu0 %v13074_v61, %s12018_s15  ;;  %4947 = vrot.lane.b32.xlu1 %v13057_v47, %s12012_s29 }
0x21a0   :  { %6705 = vperm.xlu0 %11404, %v6703_v38  }
0x21b5   :  { %v5773_v40 = vpop.permute.xlu1 %5772 }
0x21b6   :  { %v5780_v23 = vmul.f32 %v13182_v18, %v5773_v40  ;;  %v5778_v58 = vpop.permute.xlu0 %5777  ;;  %v13204_v40 = vld [vmem:[%s15338_s2] sm:$0xff] }
0x21b7   :  { %v5781_v53 = vmul.f32 %v13188_v37, %v5778_v58  ;;  %v13210_v58 = vld [vmem:[%s15338_s2 + $0x8] sm:$0xff] }
0x21b8   :  { %v5782_v13 = vsel %vm555_vm7, %v5780_v23, 0.0 }
0x21b9   :  { %v5783_v12 = vrot.slane %v5782_v13, 4  ;;  %v5789_v20 = vsel %vm555_vm7, %v5781_v53, 0.0 }
0x21ba   :  { %v5790_v27 = vrot.slane %v5789_v20, 4 }
0x21bb   :  { %v5784_v19 = vadd.f32 %v5783_v12, %v5782_v13 }
0x21bc   :  { %v5791_v36 = vadd.f32 %v5790_v27, %v5789_v20 }
0x21bd   :  { %v5785_v11 = vrot.slane %v5784_v19, 2 }
0x21be   :  { %v5792_v57 = vrot.slane %v5791_v36, 2 }
0x21bf   :  { %v5786_v45 = vadd.f32 %v5785_v11, %v5784_v19 }
0x21c0   :  { %v5793_v17 = vadd.f32 %v5792_v57, %v5791_v36  ;;  %v13218_v57 = vld [vmem:[%s15343_s7] sm:$0xf] }
0x21c1   :  { %v5787_v32 = vrot.slane %v5786_v45, 1 }
0x21c2   :  { %v5794_v60 = vrot.slane %v5793_v17, 1 }
0x21c3   :  { %v5788_v7 = vadd.f32 %v5787_v32, %v5786_v45 }
0x21c4   :  { %v5795_v22 = vadd.f32 %v5794_v60, %v5793_v17  ;;  %v13224_v17 = vld [vmem:[%s15343_s7 + $0x4] sm:$0xf] }
0x21c6   :  { %v6060_v42 = vsel %vm336_vm2, %v5795_v22, %v5788_v7  ;;  %v6054_v60 = vpop.f32.mrb[26].mxu1 }
0x21c7   :  { %11015 = vmatmul.mubr.msk.f32.vlgmr.msra.gmra.mrb[28].mxu1 %vm775_vm8, %v6060_v42  ;;  %v11009_v22 = vpop.f32.mrb[27].mxu1 }
0x21c8   :  { %11305 = vmatpush3.bf16.msra.mxu1 %v12623_v43  ;;  %11032 = vmatprep.mubr.msk.f32.mxu1 %vm12017_vm5, %v15468_v5 }
0x21c9   :  { %11306 = vmatprep.subr.bf16.mxu1 %v15469_v26 }
0x21cc   :  { %11308 = vmatpush3.bf16.msra.mxu1 %v12637_v63 }
0x21cd   :  { %11317 = vmatprep.subr.bf16.mxu1 %v15469_v26 }
0x2212   :  { %v5634_v30 = vpop.permute.xlu0 %5633 }
0x2213   :  { %v5639_v38 = vpop.permute.xlu1 %5638  ;;  %v5641_v23 = vmul.f32 %v13204_v40, %v5634_v30 }
0x2214   :  { %v5642_v53 = vmul.f32 %v13210_v58, %v5639_v38 }
0x2215   :  { %v5643_v13 = vsel %vm155_vm0, %v5641_v23, 0.0 }
0x2216   :  { %v5650_v12 = vsel %vm155_vm0, %v5642_v53, 0.0  ;;  %v5644_v20 = vrot.slane %v5643_v13, 4 }
0x2217   :  { %v5651_v27 = vrot.slane %v5650_v12, 4  ;;  %v5887_v19 = vpop.permute.xlu1 %5886  ;;  %v5892_v36 = vpop.permute.xlu0 %5891 }
0x2218   :  { %v5645_v11 = vadd.f32 %v5644_v20, %v5643_v13  ;;  %v5894_v45 = vmul.f32 %v13218_v57, %v5887_v19  ;;  %v5895_v32 = vmul.f32 %v13224_v17, %v5892_v36 }
0x2219   :  { %v5652_v7 = vadd.f32 %v5651_v27, %v5650_v12 }
0x221a   :  { %v5646_v42 = vrot.slane %v5645_v11, 2  ;;  %v5896_v30 = vsel %vm555_vm7, %v5894_v45, 0.0  ;;  %v5903_v38 = vsel %vm555_vm7, %v5895_v32, 0.0 }
0x221b   :  { %v5653_v23 = vrot.slane %v5652_v7, 2  ;;  %v5897_v53 = vrot.slane %v5896_v30, 4  ;;  %v5904_v13 = vrot.slane %v5903_v38, 4  ;;  %v4948_v20 = vpop.permute.xlu1 %4947 }
0x221c   :  { %v5647_v19 = vadd.f32 %v5646_v42, %v5645_v11  ;;  %10990 = vmatmul.mubr.msk.f32.vlgmr.msra.gmra.mrb[22].mxu0 %vm155_vm0, %v4948_v20 }
0x221d   :  { %v5654_v47 = vadd.f32 %v5653_v23, %v5652_v7  ;;  %v5898_v52 = vadd.f32 %v5897_v53, %v5896_v30  ;;  %v5905_v50 = vadd.f32 %v5904_v13, %v5903_v38  ;;  %11290 = vmatpush3.bf16.msra.mxu0 %v12380_v56  ;;  %11000 = vmatprep.mubr.msk.f32.mxu0 %vm12017_vm5, %v15468_v5 }
0x221e   :  { %v5648_v12 = vrot.slane %v5647_v19, 1  ;;  %11291 = vmatprep.subr.bf16.mxu0 %v15469_v26 }
0x221f   :  { %v5655_v27 = vrot.slane %v5654_v47, 1  ;;  %v5899_v36 = vrot.slane %v5898_v52, 2  ;;  %v5906_v45 = vrot.slane %v5905_v50, 2 }
0x2220   :  { %v5649_v32 = vadd.f32 %v5648_v12, %v5647_v19 }
0x2221   :  { %v5656_v22 = vadd.f32 %v5655_v27, %v5654_v47  ;;  %v5900_v0 = vadd.f32 %v5899_v36, %v5898_v52  ;;  %v5907_v11 = vadd.f32 %v5906_v45, %v5905_v50  ;;  %11293 = vmatpush3.bf16.msra.mxu0 %v12392_v44 }
0x2222   :  { %11300 = vmatprep.subr.bf16.mxu0 %v15469_v26 }
0x2223   :  { %v5901_v7 = vrot.slane %v5900_v0, 1  ;;  %v5908_v42 = vrot.slane %v5907_v11, 1  ;;  %v5912_v30 = vsel %vm336_vm2, %v5656_v22, %v5649_v32  ;;  %v13254_v32 = vld [vmem:[%s15344_s25] ss:$0 sm:$0xff] }
0x2224   :  { %11001 = vmatmul.mubr.msk.f32.vlgmr.msra.gmra.mrb[24].mxu0 %vm155_vm0, %v5912_v30 }
0x2225   :  { %v5902_v38 = vadd.f32 %v5901_v7, %v5900_v0  ;;  %v5909_v23 = vadd.f32 %v5908_v42, %v5907_v11  ;;  %11302 = vmatpush3.bf16.msra.mxu0 %v12416_v2  ;;  %11021 = vmatprep.mubr.msk.f32.mxu0 %vm12017_vm5, %v15468_v5 }
0x2226   :  { %11310 = vmatprep.subr.bf16.mxu0 %v12174_v4 }
0x2227   :  { %v6136_v50 = vsel %vm336_vm2, %v5909_v23, %v5902_v38  ;;  %v6219_v38 = vpop.permute.xlu0 %6218 }
0x2228   :  { %11022 = vmatmul.mubr.msk.f32.vlgmr.msra.gmra.mrb[26].mxu0 %vm775_vm8, %v6136_v50 }
0x2229   :  { %11312 = vmatpush1.bf16.msra.mxu0 %v12185_v8  ;;  %6785 = vmatprep.mubr.f32.mxu0 %v15468_v5 }
0x222a   :  { %11314 = vmatprep.subr.bf16.mxu0 %v12187_v9 }
0x222d   :  { %11316 = vmatpush1.bf16.msra.mxu0 %v12203_v14 }
0x222e   :  { %11323 = vmatprep.subr.bf16.mxu0 %v15469_v26 }
0x229a   :  { %v6129_v0 = vpop.f32.mrb[28].mxu1 }
0x229b   :  { %v11016_v52 = vpop.f32.mrb[29].mxu1 }
0x22ef   :  { %v13249_v47 = vpop.f32.mrb[22].mxu0 }
0x22f0   :  { %15474 = vst [vmem:[#allocation27_spill] sm:$0xff] %v13249_v47  ;;  %v10991_v53 = vpop.f32.mrb[23].mxu0 }
0x22f7   :  { %v5981_v13 = vpop.f32.mrb[24].mxu0 }
0x22f8   :  { %v6055_v20 = vadd.f32 %v6054_v60, %v5981_v13  ;;  %v11002_v19 = vpop.f32.mrb[25].mxu0 }
0x22fa   :  { %v6133_v12 = vadd.f32 %v6129_v0, %v6055_v20  ;;  %v13260_v20 = vpop.permute.xlu0 %6705 }
0x22fb   :  { %v6205_v27 = vpop.f32.mrb[26].mxu0  ;;  %15475 = vst [vmem:[#allocation28_spill] sm:$0xff] %v13260_v20  ;;  %vm6707_vm10 = vcmp.eq.s32.totalorder %v13260_v20, 1 }
0x22fc   :  { %v6209_v36 = vadd.f32 %v6205_v27, %v6133_v12  ;;  %v11023_v45 = vpop.f32.mrb[27].mxu0 }
0x22fe   :  { %v6210_v22 = vadd.f32 %v13254_v32, %v6209_v36 }
0x2300   :  { %v6211_v11 = vadd.f32 %v6210_v22, %v13074_v61 }
0x2302   :  { %v10635_v7 = vmul.f32 -1.442695, %v6211_v11 }
0x2304   :  { %11610 = vpow2.f32 %v10635_v7 }
0x230e   :  { %v11611_v42 = vpop.eup %11610 }
0x230f   :  { %v6215_v30 = vadd.f32 1.0, %v11611_v42 }
0x2311   :  { %11612 = vrcp.f32 %v6215_v30 }
0x231b   :  { %v11613_v60 = vpop.eup %11612 }
0x231c   :  { %v6221_v23 = vmul.f32 %v11613_v60, %v6219_v38  ;;  %v6228_v53 = vsub.f32 1.0, %v11613_v60  ;;  %v6234_v61 = vmul.f32 %v11613_v60, %v13064_v6 }
0x231e   :  { %6223 = vrot.lane.b32.xlu1 %v6221_v23, %s12018_s15 }
0x2390   :  { %v6224_v50 = vpop.permute.xlu1 %6223 }
0x2391   :  { %v6226_v0 = vadd.f32 %v6224_v50, %v6210_v22 }
0x2393   :  { %11614 = vtanh.f32 %v6226_v0 }
0x239d   :  { %v11615_v52 = vpop.eup %11614 }
0x239e   :  { %6230 = vrot.lane.b32.xlu1 %v11615_v52, %s12012_s29 }
0x2410   :  { %v6231_v13 = vpop.permute.xlu1 %6230 }
0x2411   :  { %v6233_v19 = vmul.f32 %v6231_v13, %v6228_v53 }
0x2413   :  { %v13263_v12 = vadd.f32 %v6234_v61, %v6233_v19 }
0x2415   :  { %15476 = vst [vmem:[#allocation29_spill] sm:$0xff] %v13263_v12  ;;  %v13270_v27 = vsel %vm6707_vm10, %v13263_v12, %v13064_v6 }
0x2416   :  { %6717 = vrot.lane.b32.xlu0 %v13270_v27, %s12012_s29 }
0x2488   :  { %v6718_v36 = vpop.permute.xlu0 %6717 }
0x2489   :  { %10640 = vmatmul.mubr.msk.f32.vlgmr.msra.gmra.mrb[28].mxu0 %vm155_vm0, %v6718_v36 }
0x248a   :  { %11325 = vmatpush3.bf16.msra.mxu0 %v12456_v54  ;;  %11050 = vmatprep.mubr.msk.f32.mxu0 %vm12017_vm5, %v15468_v5 }
0x248b   :  { %11326 = vmatprep.subr.bf16.mxu0 %v15469_v26 }
0x255c   :  { %v6787_v45 = vpop.f32.mrb[28].mxu0 }
0x255d   :  { %v13280_v22 = vadd.f32 %v6787_v45, %v12230_v24  ;;  %v6789_v11 = vpop.f32.mrb[29].mxu0 }
0x255e   :  { %v6790_v61 = vadd.f32 %v6789_v11, %v12277_v51 }
0x255f   :  { %v6799_v6 = vrot.slane %v13280_v22, %v12233_v25 }
0x2560   :  { %v6954_v19 = vrot.slane %v6790_v61, %v12233_v25 }
0x2561   :  { %v6800_v7 = vcombine.high %v6799_v6, %v6799_v6  ;;  %v6807_v42 = vrot.slane %v6799_v6, %v12233_v25 }
0x2562   :  { %v6955_v36 = vcombine.high %v6954_v19, %v6954_v19 }
0x2563   :  { %v6814_v30 = vrot.slane %v6800_v7, %v12233_v25  ;;  %v6818_v60 = vrot.slane %v6807_v42, %v12224_v21  ;;  %v6962_v7 = vrot.slane %v6954_v19, %v12233_v25 }
0x2564   :  { %v6969_v45 = vrot.slane %v6955_v36, %v12233_v25 }
0x2565   :  { %v6822_v38 = vrot.slane %v6814_v30, %v12224_v21  ;;  %v6825_v23 = vadd.f32 %v6818_v60, %v12238_v29 }
0x2566   :  { %v6977_v6 = vrot.slane %v6969_v45, %v12224_v21 }
0x2567   :  { %v6826_v50 = vadd.f32 %v6822_v38, %v12245_v35  ;;  %11616 = vtanh.f32 %v6825_v23  ;;  %v6973_v23 = vrot.slane %v6962_v7, %v12224_v21 }
0x2568   :  { %v7087_v42 = vadd.f32 %v6977_v6, %v12290_v1  ;;  %v6981_v19 = vadd.f32 %v13111_v41, %v6977_v6 }
0x2569   :  { %11618 = vtanh.f32 %v6826_v50  ;;  %v7086_v50 = vadd.f32 %v6973_v23, %v12286_v62  ;;  %v6980_v61 = vadd.f32 %v13105_v28, %v6973_v23 }
0x256a   :  { %11620 = vtanh.f32 %v7087_v42 }
0x256b   :  { %11622 = vtanh.f32 %v7086_v50 }
0x256c   :  { %11624 = vtanh.f32 %v6980_v61 }
0x256d   :  { %11626 = vtanh.f32 %v6981_v19 }
0x2571   :  { %v11617_v0 = vpop.eup %11616 }
0x2572   :  { %v6829_v52 = vmul.f32 %v11617_v0, %v12250_v39 }
0x2573   :  { %v11619_v53 = vpop.eup %11618 }
0x2574   :  { %6833 = vrot.lane.b32.xlu1 %v6829_v52, %s12014_s30  ;;  %v6830_v13 = vmul.f32 %v11619_v53, %v12250_v39  ;;  %v11621_v0 = vpop.eup %11620 }
0x2575   :  { %v7091_v52 = vmul.f32 %v11621_v0, %v12295_v10  ;;  %v11623_v53 = vpop.eup %11622 }
0x2576   :  { %6835 = vrot.lane.b32.xlu0 %v6830_v13, %s12014_s30  ;;  %v7090_v13 = vmul.f32 %v11623_v53, %v12295_v10  ;;  %v11625_v36 = vpop.eup %11624 }
0x2577   :  { %v11627_v45 = vpop.eup %11626  ;;  %v6984_v7 = vmul.f32 %v13117_v55, %v11625_v36 }
0x2578   :  { %v6985_v42 = vmul.f32 %v13117_v55, %v11627_v45 }
0x25e6   :  { %v6834_v30 = vpop.permute.xlu1 %6833 }
0x25e7   :  { %v6839_v60 = vsel %vm155_vm0, %v6834_v30, 0.0  ;;  %v6986_v30 = vsel %vm467_vm1, %v6984_v7, 0.0 }
0x25e8   :  { %6840 = vadd.xlane.f32.xlu1 %v6839_v60  ;;  %v6836_v38 = vpop.permute.xlu0 %6835  ;;  %v6989_v60 = vsel %vm467_vm1, %v6985_v42, 0.0 }
0x25e9   :  { %v6842_v11 = vsel %vm155_vm0, %v6836_v38, 0.0 }
0x25ea   :  { %6843 = vadd.xlane.f32.xlu0 %v6842_v11 }
0x25f9   :  { %7096 = vrot.lane.b32.xlu1 %v7091_v52, %s12012_s29 }
0x2600   :  { %7094 = vrot.lane.b32.xlu0 %v7090_v13, %s12012_s29 }
0x261d   :  { %6987 = vadd.xlane.f32.xlu1 %v6986_v30 }
0x261f   :  { %6990 = vadd.xlane.f32.xlu0 %v6989_v60 }
0x2675   :  { %v6841_v38 = vpop.xlane.xlu1 %6840 }
0x2676   :  { %v6845_v55 = vadd.f32 %v6841_v38, %v12322_v33 }
0x2677   :  { %v6844_v11 = vpop.xlane.xlu0 %6843 }
0x2678   :  { %v6846_v23 = vadd.f32 %v6844_v11, %v12324_v34 }
0x2679   :  { %v7097_v50 = vpop.permute.xlu1 %7096 }
0x267a   :  { %v7103_v28 = vsel %vm467_vm1, %v7097_v50, 0.0 }
0x267b   :  { %7104 = vadd.xlane.f32.xlu1 %v7103_v28  ;;  %v7095_v41 = vpop.permute.xlu0 %7094 }
0x267c   :  { %v7100_v6 = vsel %vm467_vm1, %v7095_v41, 0.0 }
0x267d   :  { %7101 = vadd.xlane.f32.xlu0 %v7100_v6 }
0x268c   :  { %6853 = vperm.xlu1 %11405, %v6846_v23  }
0x2693   :  { %6850 = vperm.xlu0 %11404, %v6845_v55  }
0x26aa   :  { %v6988_v0 = vpop.xlane.xlu1 %6987 }
0x26ab   :  { %v6997_v53 = vrot.slane %v6988_v0, %v12332_v46 }
0x26ac   :  { %v6991_v52 = vpop.xlane.xlu0 %6990 }
0x26ad   :  { %v7001_v13 = vrot.slane %v6991_v52, %v12332_v46 }
0x26af   :  { %v7002_v61 = vsel %vm336_vm2, %v7001_v13, %v6997_v53 }
0x26b0   :  { %v7004_v19 = vsel %vm486_vm3, %v7002_v61, -inf }
0x26b2   :  { %7005 = vmax.xlane.f32.xlu0 %v7004_v19 }
0x2708   :  { %v7105_v36 = vpop.xlane.xlu1 %7104 }
0x2709   :  { %v7115_v7 = vrot.slane %v7105_v36, %v12332_v46 }
0x270a   :  { %v7102_v45 = vpop.xlane.xlu0 %7101 }
0x270b   :  { %v7111_v42 = vrot.slane %v7102_v45, %v12332_v46 }
0x270c   :  { %v6854_v38 = vpop.permute.xlu1 %6853 }
0x270d   :  { %v7116_v30 = vsel %vm336_vm2, %v7115_v7, %v7111_v42  ;;  %v6862_v50 = vrot.slane %v6854_v38, %v12332_v46 }
0x270e   :  { %v7118_v60 = vsel %vm486_vm3, %v7116_v30, -inf }
0x270f   :  { %7119 = vmax.xlane.f32.xlu0 %v7118_v60 }
0x2712   :  { %v6851_v11 = vpop.permute.xlu0 %6850 }
0x2713   :  { %v6858_v28 = vrot.slane %v6851_v11, %v12332_v46 }
0x2715   :  { %v6863_v41 = vsel %vm336_vm2, %v6862_v50, %v6858_v28 }
0x2716   :  { %v6865_v6 = vsel %vm339_vm4, %v6863_v41, -inf }
0x2717   :  { %6866 = vmax.xlane.f32.xlu1 %v6865_v6 }
0x273f   :  { %v7006_v53 = vpop.xlane.xlu0 %7005 }
0x2740   :  { %v7011_v13 = vrot.slane %v7006_v53, %v12224_v21  ;;  %v7015_v61 = vrot.slane %v7006_v53, %v12270_v48 }
0x2742   :  { %v7018_v19 = vsub.f32 %v6988_v0, %v7011_v13  ;;  %v7019_v7 = vsub.f32 %v6991_v52, %v7015_v61 }
0x2744   :  { %v7020_v42 = vmul.f32 1.442695, %v7018_v19  ;;  %v7022_v30 = vmul.f32 1.442695, %v7019_v7 }
0x2746   :  { %11628 = vpow2.f32 %v7020_v42 }
0x2747   :  { %11630 = vpow2.f32 %v7022_v30 }
0x2750   :  { %v11629_v60 = vpop.eup %11628 }
0x2751   :  { %7027 = vperm.xlu1 %11405, %v11629_v60   ;;  %v11631_v38 = vpop.eup %11630 }
0x2755   :  { %7030 = vperm.xlu1 %11405, %v11631_v38  }
0x279c   :  { %v7120_v11 = vpop.xlane.xlu0 %7119 }
0x279d   :  { %v7129_v50 = vrot.slane %v7120_v11, %v12270_v48  ;;  %v7125_v28 = vrot.slane %v7120_v11, %v12224_v21 }
0x279f   :  { %v7133_v0 = vsub.f32 %v7105_v36, %v7129_v50  ;;  %v7132_v61 = vsub.f32 %v7102_v45, %v7125_v28 }
0x27a1   :  { %v7136_v42 = vmul.f32 1.442695, %v7133_v0  ;;  %v7134_v30 = vmul.f32 1.442695, %v7132_v61 }
0x27a4   :  { %v6867_v41 = vpop.xlane.xlu1 %6866 }
0x27a5   :  { %v6872_v6 = vrot.slane %v6867_v41, %v12224_v21  ;;  %v6876_v53 = vrot.slane %v6867_v41, %v12270_v48 }
0x27a7   :  { %v6879_v52 = vsub.f32 %v6845_v55, %v6872_v6  ;;  %v6880_v13 = vsub.f32 %v6846_v23, %v6876_v53 }
0x27a9   :  { %v6881_v19 = vmul.f32 1.442695, %v6879_v52  ;;  %v6883_v7 = vmul.f32 1.442695, %v6880_v13 }
0x27ab   :  { %11632 = vpow2.f32 %v6881_v19 }
0x27ac   :  { %11634 = vpow2.f32 %v6883_v7 }
0x27ad   :  { %11636 = vpow2.f32 %v7136_v42 }
0x27ae   :  { %11638 = vpow2.f32 %v7134_v30 }
0x27b5   :  { %v11633_v20 = vpop.eup %11632 }
0x27b6   :  { %v11635_v47 = vpop.eup %11634  ;;  %6888 = vperm.xlu1 %11405, %v11633_v20  }
0x27b7   :  { %6891 = vperm.xlu0 %11404, %v11635_v47   ;;  %v11637_v11 = vpop.eup %11636 }
0x27b8   :  { %v11639_v33 = vpop.eup %11638 }
0x27ba   :  { %7144 = vperm.xlu1 %11405, %v11637_v11  }
0x27bb   :  { %7141 = vperm.xlu0 %11404, %v11639_v33  }
0x27d0   :  { %v7028_v36 = vpop.permute.xlu1 %7027 }
0x27d1   :  { %v7035_v45 = vrot.slane %v7028_v36, %v12332_v46 }
0x27d4   :  { %v7031_v55 = vpop.permute.xlu1 %7030 }
0x27d5   :  { %v7039_v23 = vrot.slane %v7031_v55, %v12332_v46 }
0x27d7   :  { %v7040_v50 = vsel %vm336_vm2, %v7039_v23, %v7035_v45 }
0x27d8   :  { %v7042_v28 = vsel %vm486_vm3, %v7040_v50, 0.0 }
0x27de   :  { %7043 = vadd.xlane.f32.xlu1 %v7042_v28 }
0x2835   :  { %v6889_v41 = vpop.permute.xlu1 %6888 }
0x2836   :  { %v6896_v6 = vrot.slane %v6889_v41, %v12332_v46  ;;  %v6892_v53 = vpop.permute.xlu0 %6891 }
0x2837   :  { %v6900_v0 = vrot.slane %v6892_v53, %v12332_v46  ;;  %v10638_v53 = vld [vmem:[%s15342_s0 + $0xa] sm:$0x3] }
0x2838   :  { %11051 = vmatmul.mubr.msk.f32.vlgmr.msra.gmra.mrb[30].mxu0 %vm775_vm8, %v10638_v53 }
0x2839   :  { %v7145_v52 = vpop.permute.xlu1 %7144  ;;  %v6901_v13 = vsel %vm336_vm2, %v6900_v0, %v6896_v6  ;;  %11328 = vmatpush3.bf16.msra.mxu0 %v12472_v31  ;;  %11057 = vmatprep.mubr.msk.f32.mxu0 %vm12017_vm5, %v15468_v5 }
0x283a   :  { %v7153_v61 = vrot.slane %v7145_v52, %v12332_v46  ;;  %v7142_v19 = vpop.permute.xlu0 %7141  ;;  %v6903_v7 = vsel %vm339_vm4, %v6901_v13, 0.0  ;;  %11332 = vmatprep.subr.bf16.mxu0 %v15469_v26 }
0x283b   :  { %v7149_v42 = vrot.slane %v7142_v19, %v12332_v46  ;;  %6904 = vadd.xlane.f32.xlu0 %v6903_v7 }
0x283d   :  { %v7154_v30 = vsel %vm336_vm2, %v7153_v61, %v7149_v42 }
0x283e   :  { %v7156_v36 = vsel %vm486_vm3, %v7154_v30, 0.0 }
0x283f   :  { %7157 = vadd.xlane.f32.xlu0 %v7156_v36 }
0x286b   :  { %v7044_v55 = vpop.xlane.xlu1 %7043 }
0x286c   :  { %v7049_v23 = vrot.slane %v7044_v55, %v12224_v21  ;;  %v7053_v45 = vrot.slane %v7044_v55, %v12270_v48 }
0x286e   :  { %11640 = vrcp.f32 %v7049_v23 }
0x286f   :  { %11642 = vrcp.f32 %v7053_v45 }
0x2878   :  { %v11641_v50 = vpop.eup %11640 }
0x2879   :  { %v11643_v28 = vpop.eup %11642  ;;  %v7057_v41 = vmul.f32 %v11641_v50, %v11629_v60 }
0x287a   :  { %v7059_v6 = vmul.f32 %v11643_v28, %v11631_v38 }
0x287b   :  { %7062 = vperm.xlu1 %11405, %v7057_v41  }
0x287c   :  { %7067 = vperm.xlu0 %11404, %v7059_v6  }
0x28c8   :  { %v6905_v0 = vpop.xlane.xlu0 %6904 }
0x28c9   :  { %v6910_v52 = vrot.slane %v6905_v0, %v12224_v21  ;;  %v6914_v60 = vrot.slane %v6905_v0, %v12270_v48 }
0x28cb   :  { %11644 = vrcp.f32 %v6910_v52 }
0x28cc   :  { %11646 = vrcp.f32 %v6914_v60  ;;  %v7158_v38 = vpop.xlane.xlu0 %7157 }
0x28cd   :  { %v7163_v13 = vrot.slane %v7158_v38, %v12224_v21  ;;  %v7167_v61 = vrot.slane %v7158_v38, %v12270_v48 }
0x28cf   :  { %11648 = vrcp.f32 %v7163_v13 }
0x28d0   :  { %11650 = vrcp.f32 %v7167_v61 }
0x28d5   :  { %v11645_v19 = vpop.eup %11644 }
0x28d6   :  { %v11647_v7 = vpop.eup %11646  ;;  %v6918_v42 = vmul.f32 %v11645_v19, %v11633_v20 }
0x28d7   :  { %v6920_v30 = vmul.f32 %v11647_v7, %v11635_v47 }
0x28d8   :  { %6923 = vperm.xlu0 %11404, %v6918_v42  }
0x28d9   :  { %v11649_v36 = vpop.eup %11648  ;;  %6928 = vperm.xlu1 %11405, %v6920_v30  }
0x28da   :  { %v11651_v55 = vpop.eup %11650  ;;  %v7171_v23 = vmul.f32 %v11649_v36, %v11639_v33 }
0x28db   :  { %v7173_v45 = vmul.f32 %v11651_v55, %v11637_v11 }
0x28dd   :  { %7181 = vperm.xlu0 %11404, %v7173_v45   ;;  %7176 = vperm.xlu1 %11405, %v7171_v23  }
0x28e1   :  { %6237 = vrot.lane.b32.xlu1 %v13263_v12, %s12012_s29  ;;  %1151 = vrot.lane.b32.xlu0 %v13204_v40, %s12014_s30 }
0x28e5   :  { %1153 = vrot.lane.b32.xlu1 %v13210_v58, %s12014_s30 }
0x28fa   :  { %v7063_v50 = vpop.permute.xlu1 %7062 }
0x28fb   :  { %v7070_v47 = vmul.f32 %v13182_v18, %v7063_v50  ;;  %v7068_v20 = vpop.permute.xlu0 %7067 }
0x28fc   :  { %v7071_v28 = vmul.f32 %v13188_v37, %v7068_v20  ;;  %v1123_v37 = vrot.slane %v12516_v16, %v12233_v25 }
0x28fd   :  { %v7072_v33 = vsel %vm555_vm7, %v7070_v47, 0.0 }
0x28fe   :  { %v7073_v11 = vrot.slane %v7072_v33, 4  ;;  %v7079_v41 = vsel %vm555_vm7, %v7071_v28, 0.0  ;;  %v1131_v45 = vrot.slane %v1123_v37, %v12233_v25  ;;  %v1124_v47 = vcombine.high %v1123_v37, %v1123_v37 }
0x28ff   :  { %v7080_v6 = vrot.slane %v7079_v41, 4 }
0x2900   :  { %v7074_v53 = vadd.f32 %v7073_v11, %v7072_v33 }
0x2901   :  { %v7081_v0 = vadd.f32 %v7080_v6, %v7079_v41 }
0x2902   :  { %v7075_v52 = vrot.slane %v7074_v53, 2 }
0x2903   :  { %v7082_v60 = vrot.slane %v7081_v0, 2 }
0x2904   :  { %v7076_v38 = vadd.f32 %v7075_v52, %v7074_v53 }
0x2905   :  { %v7083_v13 = vadd.f32 %v7082_v60, %v7081_v0 }
0x2906   :  { %v7077_v61 = vrot.slane %v7076_v38, 1 }
0x2907   :  { %v7084_v19 = vrot.slane %v7083_v13, 1 }
0x2908   :  { %v7078_v7 = vadd.f32 %v7077_v61, %v7076_v38  ;;  %v1138_v61 = vrot.slane %v1124_v47, %v12233_v25 }
0x2909   :  { %v7085_v42 = vadd.f32 %v7084_v19, %v7083_v13 }
0x290b   :  { %v7350_v18 = vsel %vm336_vm2, %v7085_v42, %v7078_v7  ;;  %v13389_v0 = vpop.f32.mrb[30].mxu0 }
0x290c   :  { %11058 = vmatmul.mubr.msk.f32.vlgmr.msra.gmra.mrb[32].mxu0 %vm775_vm8, %v7350_v18  ;;  %v11052_v52 = vpop.f32.mrb[31].mxu0 }
0x290d   :  { %11334 = vmatpush3.bf16.msra.mxu0 %v12623_v43  ;;  %11075 = vmatprep.mubr.msk.f32.mxu0 %vm12017_vm5, %v15468_v5 }
0x290e   :  { %11335 = vmatprep.subr.bf16.mxu0 %v15469_v26 }
0x2911   :  { %11337 = vmatpush3.bf16.msra.mxu0 %v12637_v63 }
0x2912   :  { %11346 = vmatprep.subr.bf16.mxu0 %v15469_v26 }
0x2957   :  { %v6924_v30 = vpop.permute.xlu0 %6923 }
0x2958   :  { %v6929_v36 = vpop.permute.xlu1 %6928  ;;  %v6931_v55 = vmul.f32 %v13204_v40, %v6924_v30 }
0x2959   :  { %v6932_v23 = vmul.f32 %v13210_v58, %v6929_v36  ;;  %v1142_v58 = vrot.slane %v1131_v45, %v12224_v21  ;;  %v1146_v45 = vrot.slane %v1138_v61, %v12224_v21 }
0x295a   :  { %v6933_v50 = vsel %vm155_vm0, %v6931_v55, 0.0 }
0x295b   :  { %v6940_v20 = vsel %vm155_vm0, %v6932_v23, 0.0  ;;  %v6934_v28 = vrot.slane %v6933_v50, 4 }
0x295c   :  { %v6941_v33 = vrot.slane %v6940_v20, 4  ;;  %v7177_v11 = vpop.permute.xlu1 %7176  ;;  %v7182_v41 = vpop.permute.xlu0 %7181 }
0x295d   :  { %v6935_v6 = vadd.f32 %v6934_v28, %v6933_v50  ;;  %v7184_v16 = vmul.f32 %v13218_v57, %v7177_v11  ;;  %v7185_v53 = vmul.f32 %v13224_v17, %v7182_v41 }
0x295e   :  { %v6942_v40 = vadd.f32 %v6941_v33, %v6940_v20 }
0x295f   :  { %v6936_v60 = vrot.slane %v6935_v6, 2  ;;  %v7186_v38 = vsel %vm555_vm7, %v7184_v16, 0.0  ;;  %v7193_v13 = vsel %vm555_vm7, %v7185_v53, 0.0 }
0x2960   :  { %v6943_v19 = vrot.slane %v6942_v40, 2  ;;  %v7187_v7 = vrot.slane %v7186_v38, 4  ;;  %v7194_v42 = vrot.slane %v7193_v13, 4  ;;  %v6238_v18 = vpop.permute.xlu1 %6237  ;;  %v13395_v57 = vpop.permute.xlu0 %1151 }
0x2961   :  { %v6937_v17 = vadd.f32 %v6936_v60, %v6935_v6  ;;  %11033 = vmatmul.mubr.msk.f32.vlgmr.msra.gmra.mrb[30].mxu1 %vm155_vm0, %v6238_v18  ;;  %v1157_v37 = vmul.f32 %v13395_v57, %v1142_v58 }
0x2962   :  { %v6944_v30 = vadd.f32 %v6943_v19, %v6942_v40  ;;  %v7188_v36 = vadd.f32 %v7187_v7, %v7186_v38  ;;  %v7195_v55 = vadd.f32 %v7194_v42, %v7193_v13  ;;  %11319 = vmatpush3.bf16.msra.mxu1 %v12380_v56  ;;  %11043 = vmatprep.mubr.msk.f32.mxu1 %vm12017_vm5, %v15468_v5 }
0x2963   :  { %v6938_v23 = vrot.slane %v6937_v17, 1  ;;  %1161 = vrot.lane.b32.xlu0 %v1157_v37, %s12012_s29  ;;  %11320 = vmatprep.subr.bf16.mxu1 %v15469_v26  ;;  %v10597_v37 = vld [vmem:[%s15347_s18] ss:$0 sm:$0xff] }
0x2964   :  { %v6945_v50 = vrot.slane %v6944_v30, 1  ;;  %v7189_v47 = vrot.slane %v7188_v36, 2  ;;  %v7196_v20 = vrot.slane %v7195_v55, 2  ;;  %v13405_v28 = vpop.permute.xlu1 %1153 }
0x2965   :  { %v6939_v33 = vadd.f32 %v6938_v23, %v6937_v17  ;;  %v1158_v11 = vmul.f32 %v13405_v28, %v1146_v45  ;;  %v102_v17 = vld [vmem:[%s15346_s9] sm:$0xf] }
0x2966   :  { %v6946_v41 = vadd.f32 %v6945_v50, %v6944_v30  ;;  %v7190_v6 = vadd.f32 %v7189_v47, %v7188_v36  ;;  %v7197_v16 = vadd.f32 %v7196_v20, %v7195_v55  ;;  %11322 = vmatpush3.bf16.msra.mxu1 %v12392_v44  ;;  %v103_v30 = vld [vmem:[%s15346_s9 + $0x4] sm:$0xf] }
0x2967   :  { %1163 = vrot.lane.b32.xlu1 %v1158_v11, %s12012_s29  ;;  %11329 = vmatprep.subr.bf16.mxu1 %v15469_v26 }
0x2968   :  { %v7191_v53 = vrot.slane %v7190_v6, 1  ;;  %v7198_v40 = vrot.slane %v7197_v16, 1  ;;  %v7202_v58 = vsel %vm336_vm2, %v6946_v41, %v6939_v33  ;;  %v13446_v41 = vld [vmem:[%s15348_s27] ss:$0 sm:$0xff] }
0x2969   :  { %11044 = vmatmul.mubr.msk.f32.vlgmr.msra.gmra.mrb[32].mxu1 %vm155_vm0, %v7202_v58 }
0x296a   :  { %v7192_v52 = vadd.f32 %v7191_v53, %v7190_v6  ;;  %v7199_v60 = vadd.f32 %v7198_v40, %v7197_v16  ;;  %11331 = vmatpush3.bf16.msra.mxu1 %v12416_v2  ;;  %11064 = vmatprep.mubr.msk.f32.mxu1 %vm12017_vm5, %v15468_v5  ;;  %v13450_v6 = vadd.f32 %v13446_v41, %v12686_v15 }
0x296b   :  { %11339 = vmatprep.subr.bf16.mxu1 %v12174_v4 }
0x296c   :  { %v7426_v38 = vsel %vm336_vm2, %v7199_v60, %v7192_v52  ;;  %v1180_v16 = vrot.slane %v13450_v6, %v12233_v25 }
0x296d   :  { %11065 = vmatmul.mubr.msk.f32.vlgmr.msra.gmra.mrb[34].mxu1 %vm775_vm8, %v7426_v38 }
0x296e   :  { %11341 = vmatpush1.bf16.msra.mxu1 %v12185_v8  ;;  %8075 = vmatprep.mubr.f32.mxu1 %v15468_v5  ;;  %v1181_v53 = vcombine.high %v1180_v16, %v1180_v16 }
0x296f   :  { %11343 = vmatprep.subr.bf16.mxu1 %v12187_v9 }
0x2970   :  { %v1195_v58 = vrot.slane %v1181_v53, %v12233_v25 }
0x2972   :  { %11345 = vmatpush1.bf16.msra.mxu1 %v12203_v14  ;;  %v1203_v15 = vrot.slane %v1195_v58, %v12224_v21 }
0x2973   :  { %11352 = vmatprep.subr.bf16.mxu1 %v15469_v26 }
0x29d5   :  { %v1162_v13 = vpop.permute.xlu0 %1161 }
0x29d6   :  { %v1167_v61 = vsel %vm155_vm0, %v1162_v13, 0.0 }
0x29d7   :  { %1168 = vadd.xlane.f32.xlu0 %v1167_v61 }
0x29d9   :  { %v1164_v19 = vpop.permute.xlu1 %1163 }
0x29da   :  { %v1170_v7 = vsel %vm155_vm0, %v1164_v19, 0.0 }
0x29db   :  { %1171 = vadd.xlane.f32.xlu1 %v1170_v7 }
0x29df   :  { %v7419_v42 = vpop.f32.mrb[32].mxu0 }
0x29e0   :  { %v11059_v18 = vpop.f32.mrb[33].mxu0 }
0x29ec   :  { %7508 = vrot.lane.b32.xlu1 %v13280_v22, %s12018_s15 }
0x29ed   :  { %1208 = vrot.lane.b32.xlu0 %v102_v17, %s12018_s15 }
0x29f0   :  { %1223 = vrot.lane.b32.xlu1 %v10597_v37, %s12018_s15 }
0x29f1   :  { %1210 = vrot.lane.b32.xlu0 %v103_v30, %s12018_s15 }
0x2a34   :  { %v13440_v36 = vpop.f32.mrb[30].mxu1 }
0x2a35   :  { %15477 = vst [vmem:[#allocation30_spill] sm:$0xff] %v13440_v36  ;;  %v11034_v55 = vpop.f32.mrb[31].mxu1 }
0x2a3c   :  { %v7271_v23 = vpop.f32.mrb[32].mxu1 }
0x2a3d   :  { %v7345_v45 = vadd.f32 %v13389_v0, %v7271_v23  ;;  %v11045_v50 = vpop.f32.mrb[33].mxu1  ;;  %v1188_v0 = vrot.slane %v1180_v16, %v12233_v25 }
0x2a3f   :  { %v7423_v47 = vadd.f32 %v7419_v42, %v7345_v45  ;;  %v1199_v52 = vrot.slane %v1188_v0, %v12224_v21 }
0x2a40   :  { %v7495_v20 = vpop.f32.mrb[34].mxu1 }
0x2a41   :  { %v7499_v33 = vadd.f32 %v7495_v20, %v7423_v47  ;;  %v11066_v11 = vpop.f32.mrb[35].mxu1  ;;  %v105_v47 = vld [vmem:[%s15349_s10 + $0x4] sm:$0xf]  ;;  %v104_v20 = vld [vmem:[%s15349_s10] sm:$0xf] }
0x2a64   :  { %v13455_v40 = vpop.xlane.xlu0 %1168 }
0x2a68   :  { %v13459_v60 = vpop.permute.xlu0 %1208  ;;  %v13461_v38 = vpop.xlane.xlu1 %1171 }
0x2a69   :  { %v1214_v13 = vadd.f32 %v13459_v60, %v1199_v52 }
0x2a6b   :  { %11652 = vtanh.f32 %v1214_v13 }
0x2a6c   :  { %v13465_v61 = vpop.permute.xlu0 %1210  ;;  %v7509_v7 = vpop.permute.xlu1 %7508 }
0x2a6d   :  { %v1215_v19 = vadd.f32 %v13465_v61, %v1203_v15 }
0x2a6f   :  { %11654 = vtanh.f32 %v1215_v19 }
0x2a70   :  { %v13468_v42 = vpop.permute.xlu1 %1223 }
0x2a75   :  { %v11653_v18 = vpop.eup %11652 }
0x2a76   :  { %v1226_v17 = vmul.f32 %v11653_v18, %v13468_v42 }
0x2a78   :  { %1230 = vrot.lane.b32.xlu0 %v1226_v17, %s12018_s15 }
0x2a79   :  { %v11655_v37 = vpop.eup %11654 }
0x2a7a   :  { %v1227_v30 = vmul.f32 %v11655_v37, %v13468_v42 }
0x2a7c   :  { %1232 = vrot.lane.b32.xlu1 %v1227_v30, %s12018_s15  ;;  %v13499_v30 = vadd.f32 %v13254_v32, %v7499_v33 }
0x2aea   :  { %v1231_v55 = vpop.permute.xlu0 %1230 }
0x2aeb   :  { %v1236_v23 = vsel %vm467_vm1, %v1231_v55, 0.0 }
0x2aec   :  { %1237 = vadd.xlane.f32.xlu0 %v1236_v23 }
0x2aee   :  { %v1233_v45 = vpop.permute.xlu1 %1232 }
0x2aef   :  { %v1239_v50 = vsel %vm467_vm1, %v1233_v45, 0.0  ;;  %v1283_v45 = vrot.slane %v13461_v38, %v12332_v46 }
0x2af0   :  { %1240 = vadd.xlane.f32.xlu1 %v1239_v50 }
0x2b01   :  { %1246 = vrot.lane.b32.xlu1 %v105_v47, %s12018_s15  ;;  %v1279_v47 = vrot.slane %v13455_v40, %v12332_v46 }
0x2b02   :  { %1244 = vrot.lane.b32.xlu0 %v104_v20, %s12018_s15 }
0x2b79   :  { %v13484_v11 = vpop.xlane.xlu0 %1237 }
0x2b7d   :  { %v13486_v16 = vpop.xlane.xlu1 %1240  ;;  %v13488_v53 = vpop.permute.xlu0 %1244 }
0x2b7e   :  { %v1250_v0 = vadd.f32 %v13488_v53, %v1199_v52  ;;  %v7501_v52 = vadd.f32 %v13499_v30, %v13280_v22  ;;  %v1271_v22 = vsel %vm1270_vm12, %v13450_v6, -inf }
0x2b80   :  { %11656 = vtanh.f32 %v1250_v0  ;;  %v10645_v55 = vmul.f32 -1.442695, %v7501_v52  ;;  %v1298_v0 = vrot.slane %v13486_v16, %v12332_v46 }
0x2b81   :  { %v13491_v58 = vpop.permute.xlu1 %1246 }
0x2b82   :  { %15478 = vst [vmem:[#allocation31_spill] sm:$0xff] %v13491_v58  ;;  %v1251_v13 = vadd.f32 %v13491_v58, %v1203_v15 }
0x2b84   :  { %11658 = vtanh.f32 %v1251_v13  ;;  %v1284_v13 = vsel %vm336_vm2, %v1283_v45, %v1279_v47 }
0x2b85   :  { %11660 = vpow2.f32 %v10645_v55 }
0x2b8a   :  { %v11657_v19 = vpop.eup %11656 }
0x2b8b   :  { %v1254_v18 = vmul.f32 %v11657_v19, %v13468_v42  ;;  %v1294_v19 = vrot.slane %v13484_v11, %v12332_v46 }
0x2b8d   :  { %1258 = vrot.lane.b32.xlu0 %v1254_v18, %s12018_s15  ;;  %v1286_v18 = vsel %vm339_vm4, %v1284_v13, -inf }
0x2b8e   :  { %v11659_v17 = vpop.eup %11658 }
0x2b8f   :  { %v1255_v37 = vmul.f32 %v11659_v17, %v13468_v42  ;;  %v11661_v50 = vpop.eup %11660  ;;  %v1299_v17 = vsel %vm336_vm2, %v1298_v0, %v1294_v19 }
0x2b90   :  { %v7505_v33 = vadd.f32 1.0, %v11661_v50 }
0x2b91   :  { %1260 = vrot.lane.b32.xlu1 %v1255_v37, %s12018_s15  ;;  %v1301_v37 = vsel %vm486_vm3, %v1299_v17, -inf }
0x2b92   :  { %11662 = vrcp.f32 %v7505_v33 }
0x2b9c   :  { %v13519_v52 = vpop.eup %11662 }
0x2b9d   :  { %v7511_v55 = vmul.f32 %v13519_v52, %v7509_v7 }
0x2bff   :  { %v1259_v15 = vpop.permute.xlu0 %1258 }
0x2c00   :  { %v1264_v23 = vsel %vm467_vm1, %v1259_v15, 0.0 }
0x2c01   :  { %1265 = vadd.xlane.f32.xlu0 %v1264_v23 }
0x2c03   :  { %v1261_v20 = vpop.permute.xlu1 %1260 }
0x2c04   :  { %v1267_v32 = vsel %vm467_vm1, %v1261_v20, 0.0 }
0x2c05   :  { %1268 = vadd.xlane.f32.xlu1 %v1267_v32  ;;  %1272 = vmax.xlane.f32.xlu0 %v1271_v22 }
0x2c09   :  { %1287 = vmax.xlane.f32.xlu0 %v1286_v18 }
0x2c0d   :  { %1302 = vmax.xlane.f32.xlu0 %v1301_v37 }
0x2c16   :  { %7513 = vrot.lane.b32.xlu1 %v7511_v55, %s12018_s15 }
0x2c8e   :  { %v13523_v15 = vpop.xlane.xlu0 %1265 }
0x2c8f   :  { %v1309_v45 = vrot.slane %v13523_v15, %v12332_v46 }
0x2c92   :  { %v13525_v23 = vpop.xlane.xlu1 %1268  ;;  %v1273_v32 = vpop.xlane.xlu0 %1272 }
0x2c93   :  { %v1313_v50 = vrot.slane %v13525_v23, %v12332_v46 }
0x2c95   :  { %v1314_v47 = vsel %vm336_vm2, %v1313_v50, %v1309_v45 }
0x2c96   :  { %v1316_v20 = vsel %vm486_vm3, %v1314_v47, -inf  ;;  %v1288_v22 = vpop.xlane.xlu0 %1287  ;;  %v7514_v7 = vpop.permute.xlu1 %7513 }
0x2c97   :  { %1317 = vmax.xlane.f32.xlu1 %v1316_v20 }
0x2c9a   :  { %v1303_v33 = vpop.xlane.xlu0 %1302 }
0x2d24   :  { %v1318_v0 = vpop.xlane.xlu1 %1317 }
0x2d25   :  { %v1319_v13 = vmax.f32 %v1303_v33, %v1318_v0 }
0x2d27   :  { %v1320_v19 = vmax.f32 %v1288_v22, %v1319_v13 }
0x2d29   :  { %v1321_v18 = vmax.f32 %v1273_v32, %v1320_v19 }
0x2d2b   :  { %v1322_v17 = vsub.f32 %v13450_v6, %v1321_v18  ;;  %v1329_v37 = vrot.slane %v1321_v18, %v12224_v21  ;;  %v1333_v55 = vrot.slane %v1321_v18, %v12270_v48 }
0x2d2d   :  { %v1323_v36 = vmul.f32 1.442695, %v1322_v17  ;;  %v1336_v45 = vsub.f32 %v13455_v40, %v1329_v37  ;;  %v1337_v50 = vsub.f32 %v13461_v38, %v1333_v55  ;;  %v1342_v12 = vsub.f32 %v13484_v11, %v1329_v37 }
0x2d2e   :  { %v1343_v32 = vsub.f32 %v13486_v16, %v1333_v55 }
0x2d2f   :  { %11664 = vpow2.f32 %v1323_v36  ;;  %v1338_v47 = vmul.f32 1.442695, %v1336_v45  ;;  %v1340_v20 = vmul.f32 1.442695, %v1337_v50  ;;  %v1344_v22 = vmul.f32 1.442695, %v1342_v12 }
0x2d30   :  { %v1346_v33 = vmul.f32 1.442695, %v1343_v32  ;;  %v7516_v36 = vadd.f32 %v7514_v7, %v13499_v30  ;;  %v1348_v32 = vsub.f32 %v13523_v15, %v1329_v37 }
0x2d31   :  { %11666 = vpow2.f32 %v1338_v47 }
0x2d32   :  { %11668 = vpow2.f32 %v1340_v20 }
0x2d33   :  { %11670 = vpow2.f32 %v1344_v22 }
0x2d34   :  { %11672 = vpow2.f32 %v1346_v33  ;;  %v1349_v33 = vsub.f32 %v13525_v23, %v1333_v55 }
0x2d35   :  { %11674 = vtanh.f32 %v7516_v36  ;;  %v1350_v36 = vmul.f32 1.442695, %v1348_v32 }
0x2d37   :  { %11676 = vpow2.f32 %v1350_v36 }
0x2d39   :  { %v13540_v6 = vpop.eup %11664 }
0x2d3a   :  { %v1354_v0 = vsel %vm1270_vm12, %v13540_v6, 0.0 }
0x2d3b   :  { %v13544_v40 = vpop.eup %11666  ;;  %1355 = vadd.xlane.f32.xlu0 %v1354_v0 }
0x2d3c   :  { %1360 = vperm.xlu1 %11405, %v13544_v40   ;;  %v13548_v38 = vpop.eup %11668 }
0x2d3d   :  { %v13551_v12 = vpop.eup %11670 }
0x2d3e   :  { %v13554_v11 = vpop.eup %11672 }
0x2d3f   :  { %v11675_v16 = vpop.eup %11674 }
0x2d40   :  { %1363 = vperm.xlu1 %11405, %v13548_v38  }
0x2d41   :  { %v13575_v23 = vpop.eup %11676 }
0x2d44   :  { %1382 = vperm.xlu1 %11405, %v13551_v12  }
0x2d48   :  { %1385 = vperm.xlu1 %11405, %v13554_v11  }
0x2d4c   :  { %7520 = vrot.lane.b32.xlu1 %v11675_v16, %s12012_s29  ;;  %v1352_v16 = vmul.f32 1.442695, %v1349_v33 }
0x2d4e   :  { %11678 = vpow2.f32 %v1352_v16 }
0x2d58   :  { %v13577_v55 = vpop.eup %11678 }
0x2dbb   :  { %v1361_v13 = vpop.permute.xlu1 %1360 }
0x2dbc   :  { %v1368_v30 = vrot.slane %v1361_v13, %v12332_v46  ;;  %v10639_v13 = vld [vmem:[%s15457_s4 + $0xa] sm:$0x3] }
0x2dbd   :  { %vm7992_vm14 = vcmp.gt.f32.partialorder %v10639_v13, 0.5 }
0x2dbe   :  { %v7993_v15 = vsel %vm7992_vm14, 1, %v15470_v3  ;;  %vm1454_vm14 = vcmask 519168  }
0x2dbf   :  { %v1364_v19 = vpop.permute.xlu1 %1363 }
0x2dc0   :  { %v1372_v7 = vrot.slane %v1364_v19, %v12332_v46  ;;  %v2447_v19 = vrot.slane %v12695_v59, %v12233_v25 }
0x2dc2   :  { %v1373_v18 = vsel %vm336_vm2, %v1372_v7, %v1368_v30  ;;  %v2455_v37 = vrot.slane %v2447_v19, %v12233_v25 }
0x2dc3   :  { %v1383_v17 = vpop.permute.xlu1 %1382  ;;  %v1375_v45 = vsel %vm339_vm4, %v1373_v18, 0.0  ;;  %v13588_v18 = vadd.f32 %v13446_v41, %v12887_v49 }
0x2dc4   :  { %1376 = vadd.xlane.f32.xlu0 %v1375_v45  ;;  %v1390_v47 = vrot.slane %v1383_v17, %v12332_v46  ;;  %v2466_v30 = vrot.slane %v2455_v37, %v12224_v21 }
0x2dc6   :  { %v2473_v7 = vmul.f32 %v2466_v30, %v13395_v57 }
0x2dc7   :  { %v1386_v50 = vpop.permute.xlu1 %1385 }
0x2dc8   :  { %v1394_v20 = vrot.slane %v1386_v50, %v12332_v46  ;;  %v13584_v59 = vpop.xlane.xlu0 %1355  ;;  %v2496_v50 = vrot.slane %v13588_v18, %v12233_v25 }
0x2dca   :  { %v1395_v22 = vsel %vm336_vm2, %v1394_v20, %v1390_v47  ;;  %v2504_v32 = vrot.slane %v2496_v50, %v12233_v25 }
0x2dcb   :  { %v1397_v0 = vsel %vm486_vm3, %v1395_v22, 0.0  ;;  %v7521_v17 = vpop.permute.xlu1 %7520 }
0x2dcc   :  { %1398 = vadd.xlane.f32.xlu1 %v1397_v0  ;;  %v2515_v49 = vrot.slane %v2504_v32, %v12224_v21  ;;  %v7518_v32 = vsub.f32 1.0, %v13519_v52 }
0x2dce   :  { %v2522_v37 = vadd.f32 %v2515_v49, %v13459_v60 }
0x2dd0   :  { %11680 = vtanh.f32 %v2522_v37 }
0x2dda   :  { %7995 = vperm.xlu0 %11404, %v7993_v15   ;;  %v11681_v3 = vpop.eup %11680 }
0x2ddd   :  { %1404 = vperm.xlu1 %11405, %v13575_v23  }
0x2dde   :  { %1407 = vperm.xlu0 %11404, %v13577_v55  }
0x2de1   :  { %2477 = vrot.lane.b32.xlu1 %v2473_v7, %s12012_s29  ;;  %v2448_v7 = vcombine.high %v2447_v19, %v2447_v19 }
0x2e51   :  { %v13590_v45 = vpop.xlane.xlu0 %1376 }
0x2e59   :  { %v13594_v47 = vpop.xlane.xlu1 %1398  ;;  %v13596_v20 = vpop.permute.xlu0 %7995 }
0x2e5a   :  { %15479 = vst [vmem:[#allocation32_spill] sm:$0xff] %v13596_v20  ;;  %vm15385_vm6 = vcmp.eq.s32.totalorder %v13596_v20, 1 }
0x2e5d   :  { %v1405_v22 = vpop.permute.xlu1 %1404  ;;  %v1408_v33 = vpop.permute.xlu0 %1407 }
0x2e5e   :  { %v1412_v0 = vrot.slane %v1405_v22, %v12332_v46  ;;  %v1416_v36 = vrot.slane %v1408_v33, %v12332_v46  ;;  %v2462_v22 = vrot.slane %v2448_v7, %v12233_v25  ;;  %v2526_v33 = vmul.f32 %v11681_v3, %v13468_v42 }
0x2e60   :  { %v1417_v16 = vsel %vm336_vm2, %v1416_v36, %v1412_v0  ;;  %v2470_v0 = vrot.slane %v2462_v22, %v12224_v21  ;;  %v7523_v36 = vmul.f32 %v7521_v17, %v7518_v32  ;;  %v2497_v17 = vcombine.high %v2496_v50, %v2496_v50 }
0x2e61   :  { %v2478_v13 = vpop.permute.xlu1 %2477  ;;  %v1419_v15 = vsel %vm486_vm3, %v1417_v16, 0.0 }
0x2e62   :  { %1420 = vadd.xlane.f32.xlu0 %v1419_v15  ;;  %v2483_v30 = vsel %vm155_vm0, %v2478_v13, 0.0  ;;  %v2474_v16 = vmul.f32 %v2470_v0, %v13405_v28  ;;  %v7524_v13 = vmul.f32 %v13519_v52, %v13270_v27  ;;  %v2511_v52 = vrot.slane %v2497_v17, %v12233_v25 }
0x2e63   :  { %2484 = vadd.xlane.f32.xlu1 %v2483_v30 }
0x2e64   :  { %v13616_v19 = vadd.f32 %v7524_v13, %v7523_v36 }
0x2e66   :  { %15480 = vst [vmem:[#allocation33_spill] sm:$0xff] %v13616_v19  ;;  %v13622_v3 = vsel %vm15385_vm6, %v13616_v19, %v13270_v27  ;;  %v2519_v27 = vrot.slane %v2511_v52, %v12224_v21  ;;  %vm1521_vm6 = vcmask 523264  }
0x2e67   :  { %15481 = vst [vmem:[#allocation34_spill] sm:$0xff] %v13622_v3 }
0x2e68   :  { %v2523_v50 = vadd.f32 %v2519_v27, %v13465_v61 }
0x2e74   :  { %2530 = vrot.lane.b32.xlu1 %v2526_v33, %s12018_s15  ;;  %v2542_v33 = vadd.f32 %v2515_v49, %v13488_v53 }
0x2e76   :  { %11682 = vtanh.f32 %v2542_v33 }
0x2e77   :  { %11684 = vtanh.f32 %v2523_v50  ;;  %v2543_v50 = vadd.f32 %v2519_v27, %v13491_v58 }
0x2e78   :  { %2479 = vrot.lane.b32.xlu0 %v2474_v16, %s12012_s29 }
0x2e79   :  { %11686 = vtanh.f32 %v2543_v50 }
0x2e7c   :  { %8007 = vrot.lane.b32.xlu0 %v13622_v3, %s12012_s29 }
0x2e80   :  { %v11683_v49 = vpop.eup %11682 }
0x2e81   :  { %v2546_v36 = vmul.f32 %v11683_v49, %v13468_v42  ;;  %v11685_v16 = vpop.eup %11684  ;;  %v2562_v49 = vsel %vm1270_vm12, %v13588_v18, -inf }
0x2e82   :  { %v2527_v13 = vmul.f32 %v11685_v16, %v13468_v42 }
0x2eef   :  { %v1421_v15 = vpop.xlane.xlu0 %1420 }
0x2ef0   :  { %v13626_v37 = vpop.xlane.xlu1 %2484 }
0x2ef3   :  { %v2480_v30 = vpop.permute.xlu0 %2479 }
0x2ef4   :  { %v2531_v7 = vpop.permute.xlu1 %2530  ;;  %v2486_v22 = vsel %vm155_vm0, %v2480_v30, 0.0 }
0x2ef5   :  { %2487 = vadd.xlane.f32.xlu0 %v2486_v22  ;;  %v2536_v32 = vsel %vm467_vm1, %v2531_v7, 0.0 }
0x2ef6   :  { %2537 = vadd.xlane.f32.xlu1 %v2536_v32 }
0x2ef7   :  { %v8008_v0 = vpop.permute.xlu0 %8007 }
0x2ef8   :  { %10650 = vmatmul.mubr.msk.f32.vlgmr.msra.gmra.mrb[36].mxu1 %vm155_vm0, %v8008_v0  ;;  %v2570_v0 = vrot.slane %v13626_v37, %v12332_v46 }
0x2ef9   :  { %11354 = vmatpush3.bf16.msra.mxu1 %v12456_v54  ;;  %11093 = vmatprep.mubr.msk.f32.mxu1 %vm12017_vm5, %v15468_v5 }
0x2efa   :  { %11355 = vmatprep.subr.bf16.mxu1 %v15469_v26 }
0x2f07   :  { %2550 = vrot.lane.b32.xlu1 %v2546_v36, %s12018_s15 }
0x2f0b   :  { %2532 = vrot.lane.b32.xlu0 %v2527_v13, %s12018_s15  ;;  %v11687_v13 = vpop.eup %11686 }
0x2f82   :  { %v13643_v17 = vpop.xlane.xlu0 %2487 }
0x2f83   :  { %v13645_v52 = vpop.xlane.xlu1 %2537  ;;  %v2574_v32 = vrot.slane %v13643_v17, %v12332_v46 }
0x2f85   :  { %v2575_v36 = vsel %vm336_vm2, %v2574_v32, %v2570_v0 }
0x2f86   :  { %v2533_v30 = vpop.permute.xlu0 %2532  ;;  %v2577_v16 = vsel %vm339_vm4, %v2575_v36, -inf }
0x2f87   :  { %v2551_v7 = vpop.permute.xlu1 %2550  ;;  %v2539_v22 = vsel %vm467_vm1, %v2533_v30, 0.0  ;;  %v2547_v30 = vmul.f32 %v11687_v13, %v13468_v42 }
0x2f88   :  { %2540 = vadd.xlane.f32.xlu0 %v2539_v22  ;;  %v2556_v33 = vsel %vm467_vm1, %v2551_v7, 0.0 }
0x2f89   :  { %2557 = vadd.xlane.f32.xlu1 %v2556_v33  ;;  %v2585_v33 = vrot.slane %v13645_v52, %v12332_v46 }
0x2f8d   :  { %2563 = vmax.xlane.f32.xlu1 %v2562_v49 }
0x2f91   :  { %2578 = vmax.xlane.f32.xlu1 %v2577_v16  ;;  %v1378_v16 = vadd.f32 %v13590_v45, %v13584_v59 }
0x2f93   :  { %v1400_v13 = vadd.f32 %v13594_v47, %v1378_v16 }
0x2f95   :  { %v1422_v20 = vadd.f32 %v1421_v15, %v1400_v13 }
0x2f97   :  { %11688 = vrcp.f32 %v1422_v20 }
0x2f9e   :  { %2552 = vrot.lane.b32.xlu0 %v2547_v30, %s12018_s15 }
0x2fa1   :  { %v13686_v59 = vpop.eup %11688 }
0x2fa2   :  { %v1429_v45 = vrot.slane %v13686_v59, %v12224_v21  ;;  %v1433_v15 = vrot.slane %v13686_v59, %v12270_v48 }
0x2fa4   :  { %v1438_v47 = vmul.f32 %v13551_v12, %v1429_v45  ;;  %v1440_v20 = vmul.f32 %v13575_v23, %v1429_v45  ;;  %v1436_v16 = vmul.f32 %v13544_v40, %v1429_v45  ;;  %v1437_v13 = vmul.f32 %v13548_v38, %v1433_v15 }
0x2fcb   :  { %v13660_v7 = vpop.f32.mrb[36].mxu1 }
0x2fcc   :  { %v13662_v22 = vpop.f32.mrb[37].mxu1 }
0x3015   :  { %v13664_v27 = vpop.xlane.xlu0 %2540 }
0x3016   :  { %v2589_v32 = vrot.slane %v13664_v27, %v12332_v46  ;;  %v13676_v30 = vpop.xlane.xlu1 %2557 }
0x3018   :  { %v2590_v0 = vsel %vm336_vm2, %v2589_v32, %v2585_v33  ;;  %v2600_v33 = vrot.slane %v13676_v30, %v12332_v46 }
0x3019   :  { %v2553_v50 = vpop.permute.xlu0 %2552  ;;  %v2592_v49 = vsel %vm486_vm3, %v2590_v0, -inf }
0x301a   :  { %2593 = vmax.xlane.f32.xlu1 %v2592_v49  ;;  %v2559_v36 = vsel %vm467_vm1, %v2553_v50, 0.0  ;;  %v1439_v49 = vmul.f32 %v13554_v11, %v1433_v15  ;;  %v2564_v12 = vpop.xlane.xlu1 %2563  ;;  %v13701_v11 = vld [vmem:[%s15350_s11] sm:$0xf] }
0x301b   :  { %2560 = vadd.xlane.f32.xlu0 %v2559_v36  ;;  %v1441_v36 = vmul.f32 %v13577_v55, %v1433_v15 }
0x30a8   :  { %v13678_v54 = vpop.xlane.xlu0 %2560 }
0x30a9   :  { %v2604_v32 = vrot.slane %v13678_v54, %v12332_v46 }
0x30ab   :  { %v2605_v0 = vsel %vm336_vm2, %v2604_v32, %v2600_v33  ;;  %v2579_v33 = vpop.xlane.xlu1 %2578 }
0x30ac   :  { %v2607_v50 = vsel %vm486_vm3, %v2605_v0, -inf }
0x30ad   :  { %2608 = vmax.xlane.f32.xlu1 %v2607_v50 }
0x30af   :  { %v2594_v32 = vpop.xlane.xlu1 %2593 }
0x30be   :  { %1444 = vperm.xlu1 %11405, %v1438_v47  }
0x30c2   :  { %1449 = vperm.xlu1 %11405, %v1439_v49  }
0x30c6   :  { %1471 = vperm.xlu1 %11405, %v1440_v20  }
0x30ca   :  { %1476 = vperm.xlu1 %11405, %v1441_v36  }
0x30ce   :  { %1511 = vperm.xlu1 %11405, %v1436_v16  }
0x30d2   :  { %1516 = vperm.xlu1 %11405, %v1437_v13   ;;  %v13714_v13 = vld [vmem:[%s15350_s11 + $0x4] sm:$0xf] }
0x30d3   :  { %15482 = vst [vmem:[#allocation35_spill] sm:$0xff] %v13714_v13 }
0x313a   :  { %v2609_v0 = vpop.xlane.xlu1 %2608 }
0x313b   :  { %v2610_v50 = vmax.f32 %v2594_v32, %v2609_v0 }
0x313d   :  { %v2611_v23 = vmax.f32 %v2579_v33, %v2610_v50 }
0x313e   :  { %v1445_v55 = vpop.permute.xlu1 %1444 }
0x313f   :  { %v2612_v47 = vmax.f32 %v2564_v12, %v2611_v23  ;;  %v1452_v40 = vmul.f32 %v1445_v55, %v13701_v11  ;;  %v13727_v23 = vld [vmem:[%s15351_s12 + $0x4] sm:$0xf] }
0x3141   :  { %v2613_v45 = vsub.f32 %v13588_v18, %v2612_v47  ;;  %v13706_v38 = vrot.slane %v2612_v47, %v12224_v21  ;;  %v1455_v15 = vsel %vm1454_vm14, %v1452_v40, 0.0  ;;  %v13719_v18 = vld [vmem:[%s15351_s12] sm:$0xf] }
0x3142   :  { %v1456_v49 = vrot.slane %v1455_v15, 4  ;;  %v1450_v20 = vpop.permute.xlu1 %1449  ;;  %15483 = vst [vmem:[#allocation36_spill] sm:$0xff] %v13719_v18 }
0x3143   :  { %v2614_v36 = vmul.f32 1.442695, %v2613_v45  ;;  %v2627_v16 = vsub.f32 %v13626_v37, %v13706_v38  ;;  %v1453_v32 = vmul.f32 %v1450_v20, %v13714_v13  ;;  %v2633_v31 = vsub.f32 %v13645_v52, %v13706_v38 }
0x3144   :  { %v1457_v33 = vadd.f32 %v1456_v49, %v1455_v15  ;;  %v1424_v52 = vmul.f32 %v13686_v59, %v13540_v6 }
0x3145   :  { %11690 = vpow2.f32 %v2614_v36  ;;  %v2629_v12 = vmul.f32 1.442695, %v2627_v16  ;;  %v1462_v37 = vsel %vm1454_vm14, %v1453_v32, 0.0 }
0x3146   :  { %v1472_v0 = vpop.permute.xlu1 %1471  ;;  %v1463_v55 = vrot.slane %v1462_v37, 4  ;;  %v1458_v45 = vrot.slane %v1457_v33, 2 }
0x3147   :  { %11692 = vpow2.f32 %v2629_v12  ;;  %v1479_v50 = vmul.f32 %v1472_v0, %v13719_v18  ;;  %v13734_v12 = vld [vmem:[%s15352_s13] sm:$0xff] }
0x3148   :  { %v1464_v15 = vadd.f32 %v1463_v55, %v1462_v37  ;;  %15484 = vst [vmem:[#allocation37_spill] sm:$0xff] %v13734_v12  ;;  %v1459_v3 = vadd.f32 %v1458_v45, %v1457_v33  ;;  %v13740_v37 = vrot.slane %v2612_v47, %v12270_v48  ;;  %v13748_v33 = vld [vmem:[%s15352_s13 + $0x8] sm:$0xff] }
0x3149   :  { %v1481_v40 = vsel %vm1454_vm14, %v1479_v50, 0.0 }
0x314a   :  { %v1482_v36 = vrot.slane %v1481_v40, 4  ;;  %v1477_v16 = vpop.permute.xlu1 %1476  ;;  %v1465_v32 = vrot.slane %v1464_v15, 2  ;;  %v1460_v47 = vrot.slane %v1459_v3, 1 }
0x314b   :  { %v1480_v49 = vmul.f32 %v1477_v16, %v13727_v23 }
0x314c   :  { %v1483_v20 = vadd.f32 %v1482_v36, %v1481_v40  ;;  %v1466_v55 = vadd.f32 %v1465_v32, %v1464_v15  ;;  %v1461_v56 = vadd.f32 %v1460_v47, %v1459_v3  ;;  %v2635_v3 = vmul.f32 1.442695, %v2633_v31 }
0x314d   :  { %v1488_v0 = vsel %vm1454_vm14, %v1480_v49, 0.0 }
0x314e   :  { %v1484_v14 = vrot.slane %v1483_v20, 2  ;;  %v1489_v9 = vrot.slane %v1488_v0, 4  ;;  %v1512_v50 = vpop.permute.xlu1 %1511  ;;  %v1467_v49 = vrot.slane %v1466_v55, 1  ;;  %v1495_v13 = vmul.f32 0.5, %v1461_v56 }
0x314f   :  { %v13737_v8 = vpop.eup %11690  ;;  %v1519_v40 = vmul.f32 %v1512_v50, %v13734_v12 }
0x3150   :  { %15485 = vst [vmem:[#allocation38_spill] sm:$0xff] %v13737_v8  ;;  %v1485_v36 = vadd.f32 %v1484_v14, %v1483_v20  ;;  %v1490_v16 = vadd.f32 %v1489_v9, %v1488_v0  ;;  %v2645_v63 = vsel %vm1270_vm12, %v13737_v8, 0.0  ;;  %v2628_v14 = vsub.f32 %v13643_v17, %v13740_v37 }
0x3151   :  { %v13750_v45 = vpop.eup %11692  ;;  %v1522_v4 = vsel %vm1521_vm6, %v1519_v40, 0.0  ;;  %2646 = vadd.xlane.f32.xlu0 %v2645_v63  ;;  %v1468_v50 = vadd.f32 %v1467_v49, %v1466_v55 }
0x3152   :  { %v1491_v15 = vrot.slane %v1490_v16, 2  ;;  %v1523_v32 = vrot.slane %v1522_v4, 4  ;;  %2651 = vperm.xlu1 %11405, %v13750_v45   ;;  %v1517_v9 = vpop.permute.xlu1 %1516  ;;  %v1486_v20 = vrot.slane %v1485_v36, 1  ;;  %v2631_v5 = vmul.f32 1.442695, %v2628_v14 }
0x3153   :  { %v1520_v0 = vmul.f32 %v1517_v9, %v13748_v33  ;;  %v1496_v8 = vmul.f32 0.5, %v1468_v50 }
0x3154   :  { %v1492_v2 = vadd.f32 %v1491_v15, %v1490_v16  ;;  %v1524_v43 = vadd.f32 %v1523_v32, %v1522_v4  ;;  %v1487_v19 = vadd.f32 %v1486_v20, %v1485_v36  ;;  %11694 = vpow2.f32 %v2631_v5 }
0x3155   :  { %v1529_v44 = vsel %vm1521_vm6, %v1520_v0, 0.0  ;;  %v2634_v4 = vsub.f32 %v13664_v27, %v13740_v37  ;;  %v1499_v16 = vsel %vm336_vm2, %v1496_v8, %v1495_v13  ;;  %11696 = vpow2.f32 %v2635_v3 }
0x3156   :  { %v1493_v40 = vrot.slane %v1492_v2, 1  ;;  %v1525_v63 = vrot.slane %v1524_v43, 2  ;;  %v1530_v26 = vrot.slane %v1529_v44, 4  ;;  %v1502_v49 = vmul.f32 0.3, %v1487_v19 }
0x3157   :  { %v2637_v56 = vmul.f32 1.442695, %v2634_v4 }
0x3158   :  { %v1494_v12 = vadd.f32 %v1493_v40, %v1492_v2  ;;  %v1526_v17 = vadd.f32 %v1525_v63, %v1524_v43  ;;  %v1531_v18 = vadd.f32 %v1530_v26, %v1529_v44  ;;  %v1501_v44 = vadd.f32 %v1499_v16, %v1424_v52  ;;  %v15487_v52 = vld [vmem:[#allocation23_spill] sm:$0xff] }
0x3159   :  { %11698 = vpow2.f32 %v2637_v56  ;;  %v2639_v40 = vsub.f32 %v13676_v30, %v13706_v38  ;;  %v2640_v30 = vsub.f32 %v13678_v54, %v13740_v37 }
0x315a   :  { %v1503_v9 = vmul.f32 0.3, %v1494_v12  ;;  %v1532_v55 = vrot.slane %v1531_v18, 2  ;;  %v1527_v47 = vrot.slane %v1526_v17, 1 }
0x315b   :  { %v2643_v38 = vmul.f32 1.442695, %v2640_v30 }
0x315c   :  { %v1533_v15 = vadd.f32 %v1532_v55, %v1531_v18  ;;  %v1506_v2 = vsel %vm336_vm2, %v1503_v9, %v1502_v49  ;;  %v1528_v26 = vadd.f32 %v1527_v47, %v1526_v17  ;;  %v2641_v55 = vmul.f32 1.442695, %v2639_v40 }
0x315d   :  { %v1508_v12 = vadd.f32 %v1506_v2, %v1501_v44  ;;  %v3737_v2 = vrot.slane %v15487_v52, %v12233_v25 }
0x315e   :  { %v1534_v43 = vrot.slane %v1533_v15, 1  ;;  %v13767_v8 = vpop.eup %11694 }
0x315f   :  { %v13770_v19 = vpop.eup %11696  ;;  %v3745_v44 = vrot.slane %v3737_v2, %v12233_v25 }
0x3160   :  { %v1535_v5 = vadd.f32 %v1534_v43, %v1533_v15  ;;  %v3738_v43 = vcombine.high %v3737_v2, %v3737_v2 }
0x3162   :  { %v1538_v27 = vsel %vm336_vm2, %v1535_v5, %v1528_v26  ;;  %v3756_v26 = vrot.slane %v3745_v44, %v12224_v21  ;;  %v3752_v54 = vrot.slane %v3738_v43, %v12233_v25  ;;  %v8080_v44 = vadd.f32 %v13662_v22, %v12277_v51 }
0x3163   :  { %v1540_v31 = vadd.f32 %v1538_v27, %v1508_v12  ;;  %v13773_v6 = vpop.eup %11698  ;;  %v15488_v27 = vld [vmem:[#allocation24_spill] sm:$0xff] }
0x3164   :  { %v3763_v37 = vmul.f32 %v3756_v26, %v13395_v57  ;;  %v3760_v5 = vrot.slane %v3752_v54, %v12224_v21  ;;  %v13844_v26 = vadd.f32 %v13660_v7, %v12230_v24  ;;  %v8244_v54 = vrot.slane %v8080_v44, %v12233_v25 }
0x3165   :  { %11700 = vlog2.f32 %v1540_v31  ;;  %v13814_v31 = vadd.f32 %v13446_v41, %v15488_v27 }
0x3166   :  { %11702 = vpow2.f32 %v2641_v55  ;;  %v3764_v12 = vmul.f32 %v3760_v5, %v13405_v28  ;;  %v8245_v5 = vcombine.high %v8244_v54, %v8244_v54 }
0x3167   :  { %2654 = vperm.xlu0 %11404, %v13767_v8   ;;  %11704 = vpow2.f32 %v2643_v38 }
0x316b   :  { %2673 = vperm.xlu0 %11404, %v13770_v19  }
0x316f   :  { %v11701_v59 = vpop.eup %11700  ;;  %2676 = vperm.xlu0 %11404, %v13773_v6  }
0x3170   :  { %v1542_v13 = vmul.f32 0.6931472, %v11701_v59  ;;  %v13796_v15 = vpop.eup %11702 }
0x3171   :  { %v13802_v56 = vpop.eup %11704 }
0x3172   :  { %v1549_v36 = vsel %vm1548_vm9, %v1542_v13, 0.0  ;;  %v3786_v13 = vrot.slane %v13814_v31, %v12233_v25 }
0x3173   :  { %1550 = vst.msk [vmem:[%s15353_s28] sm:$0x3] %vm1270_vm12, %v1549_v36 }
0x3174   :  { %v3787_v36 = vcombine.high %v3786_v13, %v3786_v13 }
0x31d1   :  { %v2652_v14 = vpop.permute.xlu1 %2651 }
0x31d2   :  { %v2659_v0 = vrot.slane %v2652_v14, %v12332_v46  ;;  %v3794_v14 = vrot.slane %v3786_v13, %v12233_v25 }
0x31d4   :  { %v13821_v40 = vrot.slane %v3794_v14, %v12224_v21  ;;  %v8259_v14 = vrot.slane %v8245_v5, %v12233_v25 }
0x31de   :  { %v13782_v32 = vpop.xlane.xlu0 %2646 }
0x31e6   :  { %v2655_v20 = vpop.permute.xlu0 %2654 }
0x31e7   :  { %v2663_v50 = vrot.slane %v2655_v20, %v12332_v46 }
0x31e9   :  { %v2664_v63 = vsel %vm336_vm2, %v2663_v50, %v2659_v0  ;;  %v3801_v50 = vrot.slane %v3787_v36, %v12233_v25 }
0x31ea   :  { %v2674_v17 = vpop.permute.xlu0 %2673  ;;  %v2666_v9 = vsel %vm339_vm4, %v2664_v63, 0.0 }
0x31eb   :  { %2667 = vadd.xlane.f32.xlu1 %v2666_v9  ;;  %v2681_v3 = vrot.slane %v2674_v17, %v12332_v46  ;;  %v3812_v9 = vadd.f32 %v13821_v40, %v13459_v60 }
0x31ed   :  { %11706 = vtanh.f32 %v3812_v9 }
0x31ee   :  { %v2677_v4 = vpop.permute.xlu0 %2676 }
0x31ef   :  { %v2685_v16 = vrot.slane %v2677_v4, %v12332_v46 }
0x31f1   :  { %v2686_v49 = vsel %vm336_vm2, %v2685_v16, %v2681_v3  ;;  %v13830_v3 = vrot.slane %v3801_v50, %v12224_v21  ;;  %v8252_v50 = vrot.slane %v8244_v54, %v12233_v25 }
0x31f2   :  { %v2688_v47 = vsel %vm486_vm3, %v2686_v49, 0.0 }
0x31f3   :  { %2689 = vadd.xlane.f32.xlu0 %v2688_v47  ;;  %v3813_v49 = vadd.f32 %v13830_v3, %v13465_v61 }
0x31f5   :  { %11708 = vtanh.f32 %v3813_v49 }
0x31f7   :  { %v11707_v38 = vpop.eup %11706 }
0x31f8   :  { %v3816_v52 = vmul.f32 %v11707_v38, %v13468_v42 }
0x31fc   :  { %2695 = vperm.xlu1 %11405, %v13796_v15  }
0x31ff   :  { %v11709_v2 = vpop.eup %11708 }
0x3200   :  { %v3817_v43 = vmul.f32 %v11709_v2, %v13468_v42 }
0x3209   :  { %2698 = vperm.xlu0 %11404, %v13802_v56  }
0x320d   :  { %3767 = vrot.lane.b32.xlu0 %v3763_v37, %s12012_s29  ;;  %v8089_v37 = vrot.slane %v13844_v26, %v12233_v25 }
0x320f   :  { %v8097_v13 = vrot.slane %v8089_v37, %v12233_v25 }
0x3211   :  { %3769 = vrot.lane.b32.xlu0 %v3764_v12, %s12012_s29  ;;  %v8108_v7 = vrot.slane %v8097_v13, %v12224_v21 }
0x3278   :  { %v2668_v59 = vpop.xlane.xlu1 %2667 }
0x3279   :  { %v2669_v12 = vadd.f32 %v2668_v59, %v13782_v32 }
0x327c   :  { %v2696_v20 = vpop.permute.xlu1 %2695 }
0x327d   :  { %v2703_v63 = vrot.slane %v2696_v20, %v12332_v46 }
0x3280   :  { %v2690_v18 = vpop.xlane.xlu0 %2689 }
0x3281   :  { %v2691_v36 = vadd.f32 %v2690_v18, %v2669_v12  ;;  %v8115_v18 = vadd.f32 %v8108_v7, %v12238_v29 }
0x3288   :  { %v2699_v0 = vpop.permute.xlu0 %2698 }
0x3289   :  { %v2707_v41 = vrot.slane %v2699_v0, %v12332_v46  ;;  %v8090_v0 = vcombine.high %v8089_v37, %v8089_v37 }
0x328b   :  { %v2708_v17 = vsel %vm336_vm2, %v2707_v41, %v2703_v63  ;;  %v13856_v41 = vrot.slane %v8259_v14, %v12224_v21  ;;  %v8104_v59 = vrot.slane %v8090_v0, %v12233_v25  ;;  %v3833_v14 = vadd.f32 %v13830_v3, %v13491_v58 }
0x328c   :  { %v3768_v55 = vpop.permute.xlu0 %3767  ;;  %v2710_v4 = vsel %vm486_vm3, %v2708_v17, 0.0  ;;  %v8263_v17 = vrot.slane %v8252_v50, %v12224_v21  ;;  %v3832_v50 = vadd.f32 %v13821_v40, %v13488_v53 }
0x328d   :  { %2711 = vadd.xlane.f32.xlu1 %v2710_v4  ;;  %v3773_v16 = vsel %vm155_vm0, %v3768_v55, 0.0  ;;  %v8377_v55 = vadd.f32 %v13856_v41, %v12290_v1  ;;  %v8112_v4 = vrot.slane %v8104_v59, %v12224_v21 }
0x328e   :  { %3774 = vadd.xlane.f32.xlu0 %v3773_v16  ;;  %v8376_v16 = vadd.f32 %v8263_v17, %v12286_v62 }
0x328f   :  { %v8116_v49 = vadd.f32 %v8112_v4, %v12245_v35 }
0x3290   :  { %v3770_v47 = vpop.permute.xlu0 %3769 }
0x3291   :  { %v3776_v30 = vsel %vm155_vm0, %v3770_v47, 0.0 }
0x3292   :  { %3777 = vadd.xlane.f32.xlu0 %v3776_v30 }
0x329e   :  { %3820 = vrot.lane.b32.xlu1 %v3816_v52, %s12018_s15 }
0x32a2   :  { %3822 = vrot.lane.b32.xlu1 %v3817_v43, %s12018_s15 }
0x331a   :  { %v2712_v27 = vpop.xlane.xlu1 %2711 }
0x331b   :  { %v2713_v20 = vadd.f32 %v2712_v27, %v2691_v36 }
0x331d   :  { %11710 = vrcp.f32 %v2713_v20 }
0x331e   :  { %v3821_v22 = vpop.permute.xlu1 %3820  ;;  %11712 = vtanh.f32 %v8115_v18  ;;  %v11970_v18 = vld [vmem:[%s15450_s17] sm:$0xf] }
0x331f   :  { %v3826_v63 = vsel %vm467_vm1, %v3821_v22, 0.0  ;;  %11714 = vtanh.f32 %v8377_v55 }
0x3320   :  { %3827 = vadd.xlane.f32.xlu0 %v3826_v63  ;;  %11716 = vtanh.f32 %v8376_v16  ;;  %v11971_v16 = vld [vmem:[%s15451_s16] ss:$0 sm:$0xff] }
0x3321   :  { %11718 = vtanh.f32 %v8116_v49 }
0x3322   :  { %v3823_v32 = vpop.permute.xlu1 %3822  ;;  %11720 = vtanh.f32 %v3833_v14 }
0x3323   :  { %v3829_v9 = vsel %vm467_vm1, %v3823_v32, 0.0  ;;  %11722 = vtanh.f32 %v3832_v50 }
0x3324   :  { %3830 = vadd.xlane.f32.xlu1 %v3829_v9  ;;  %v8270_v9 = vadd.f32 %v11970_v18, %v8263_v17  ;;  %v11972_v17 = vld [vmem:[%s15450_s17 + $0x4] sm:$0xf] }
0x3326   :  { %11724 = vtanh.f32 %v8270_v9 }
0x3327   :  { %v13867_v47 = vpop.eup %11710 }
0x3328   :  { %v13871_v30 = vrot.slane %v13867_v47, %v12270_v48  ;;  %v11713_v38 = vpop.eup %11712 }
0x3329   :  { %v11715_v2 = vpop.eup %11714  ;;  %v8119_v43 = vmul.f32 %v11713_v38, %v12250_v39 }
0x332a   :  { %v2732_v52 = vmul.f32 %v13802_v56, %v13871_v30  ;;  %v11717_v44 = vpop.eup %11716  ;;  %v8381_v54 = vmul.f32 %v11715_v2, %v12295_v10  ;;  %v13883_v56 = vpop.xlane.xlu0 %3774 }
0x332b   :  { %v8380_v37 = vmul.f32 %v11717_v44, %v12295_v10  ;;  %v11719_v5 = vpop.eup %11718 }
0x332c   :  { %v8120_v12 = vmul.f32 %v11719_v5, %v12250_v39  ;;  %v11721_v63 = vpop.eup %11720 }
0x332d   :  { %v3837_v32 = vmul.f32 %v11721_v63, %v13468_v42  ;;  %v11723_v59 = vpop.eup %11722 }
0x332e   :  { %v13885_v27 = vpop.xlane.xlu0 %3777  ;;  %v3836_v3 = vmul.f32 %v11723_v59, %v13468_v42 }
0x3330   :  { %v11725_v40 = vpop.eup %11724 }
0x3331   :  { %v8274_v49 = vmul.f32 %v11971_v16, %v11725_v40  ;;  %v2728_v40 = vmul.f32 %v13767_v8, %v13871_v30 }
0x3333   :  { %v8276_v38 = vsel %vm467_vm1, %v8274_v49, 0.0 }
0x3335   :  { %2766 = vperm.xlu1 %11405, %v2732_v52  }
0x3336   :  { %8123 = vrot.lane.b32.xlu0 %v8119_v43, %s12014_s30  ;;  %v8271_v43 = vadd.f32 %v11972_v17, %v13856_v41 }
0x3338   :  { %11726 = vtanh.f32 %v8271_v43 }
0x3339   :  { %8386 = vrot.lane.b32.xlu1 %v8381_v54, %s12012_s29 }
0x333a   :  { %8384 = vrot.lane.b32.xlu0 %v8380_v37, %s12012_s29 }
0x333e   :  { %8125 = vrot.lane.b32.xlu0 %v8120_v12, %s12014_s30 }
0x3342   :  { %v11727_v37 = vpop.eup %11726 }
0x33ad   :  { %v13887_v13 = vpop.xlane.xlu0 %3827 }
0x33b1   :  { %v8124_v36 = vpop.permute.xlu0 %8123  ;;  %v13902_v55 = vpop.xlane.xlu1 %3830 }
0x33b2   :  { %v8129_v20 = vsel %vm155_vm0, %v8124_v36, 0.0  ;;  %v8275_v36 = vmul.f32 %v11971_v16, %v11727_v37  ;;  %v3879_v50 = vrot.slane %v13902_v55, %v12332_v46  ;;  %v15489_v16 = vld [vmem:[#allocation11_spill] sm:$0xff] }
0x33b3   :  { %8130 = vadd.xlane.f32.xlu1 %v8129_v20 }
0x33b4   :  { %v8279_v14 = vsel %vm467_vm1, %v8275_v36, 0.0 }
0x33b5   :  { %v8385_v22 = vpop.permute.xlu0 %8384  ;;  %v2767_v4 = vpop.permute.xlu1 %2766 }
0x33b6   :  { %v8390_v20 = vsel %vm467_vm1, %v8385_v22, 0.0  ;;  %v2730_v22 = vmul.f32 %v13773_v6, %v13871_v30  ;;  %v3864_v6 = vrot.slane %v13885_v27, %v12332_v46 }
0x33b9   :  { %v8126_v0 = vpop.permute.xlu0 %8125  ;;  %v8387_v52 = vpop.permute.xlu1 %8386 }
0x33ba   :  { %v8132_v7 = vsel %vm155_vm0, %v8126_v0, 0.0  ;;  %v8393_v2 = vsel %vm467_vm1, %v8387_v52, 0.0  ;;  %v2720_v0 = vrot.slane %v13867_v47, %v12224_v21 }
0x33bb   :  { %8133 = vadd.xlane.f32.xlu0 %v8132_v7 }
0x33bc   :  { %v2729_v7 = vmul.f32 %v13770_v19, %v2720_v0  ;;  %v2731_v19 = vmul.f32 %v13796_v15, %v2720_v0  ;;  %v2727_v9 = vmul.f32 %v13750_v45, %v2720_v0  ;;  %v3860_v15 = vrot.slane %v13883_v56, %v12332_v46  ;;  %v15490_v0 = vld [vmem:[#allocation35_spill] sm:$0xff] }
0x33be   :  { %v3865_v45 = vsel %vm336_vm2, %v3864_v6, %v3860_v15 }
0x33bf   :  { %v3867_v8 = vsel %vm339_vm4, %v3865_v45, -inf }
0x33c4   :  { %3842 = vrot.lane.b32.xlu1 %v3837_v32, %s12018_s15  ;;  %v3875_v32 = vrot.slane %v13887_v13, %v12332_v46 }
0x33d1   :  { %3840 = vrot.lane.b32.xlu0 %v3836_v3, %s12018_s15  ;;  %v3880_v3 = vsel %vm336_vm2, %v3879_v50, %v3875_v32 }
0x33d2   :  { %v3882_v18 = vsel %vm486_vm3, %v3880_v3, -inf  ;;  %v15491_v3 = vld [vmem:[#allocation36_spill] sm:$0xff] }
0x33e8   :  { %8277 = vadd.xlane.f32.xlu1 %v8276_v38  ;;  %v3852_v38 = vsel %vm1270_vm12, %v13814_v31, -inf }
0x33ec   :  { %8394 = vadd.xlane.f32.xlu1 %v8393_v2  ;;  %v2770_v2 = vmul.f32 %v2767_v4, %v13727_v23 }
0x33ee   :  { %v2778_v43 = vsel %vm1454_vm14, %v2770_v2, 0.0 }
0x33ef   :  { %v2779_v37 = vrot.slane %v2778_v43, 4 }
0x3440   :  { %v8131_v41 = vpop.xlane.xlu1 %8130 }
0x3441   :  { %v13937_v49 = vadd.f32 %v8131_v41, %v15489_v16  ;;  %v2780_v41 = vadd.f32 %v2779_v37, %v2778_v43  ;;  %v14242_v16 = vld [vmem:[%s15352_s13 + $0x8] sm:$0xff] }
0x3444   :  { %v3843_v63 = vpop.permute.xlu1 %3842 }
0x3445   :  { %v3849_v59 = vsel %vm467_vm1, %v3843_v63, 0.0 }
0x3448   :  { %v8134_v44 = vpop.xlane.xlu0 %8133 }
0x3449   :  { %v13914_v54 = vadd.f32 %v8134_v44, %v12324_v34 }
0x344b   :  { %8143 = vperm.xlu1 %11405, %v13914_v54  }
0x344c   :  { %v3841_v5 = vpop.permute.xlu0 %3840 }
0x344d   :  { %v3846_v12 = vsel %vm467_vm1, %v3841_v5, 0.0 }
0x344e   :  { %3847 = vadd.xlane.f32.xlu0 %v3846_v12 }
0x3452   :  { %8280 = vadd.xlane.f32.xlu0 %v8279_v14 }
0x3456   :  { %8391 = vadd.xlane.f32.xlu0 %v8390_v20 }
0x346c   :  { %2735 = vperm.xlu0 %11404, %v2729_v7  }
0x346f   :  { %3850 = vadd.xlane.f32.xlu1 %v3849_v59  ;;  %v2781_v59 = vrot.slane %v2780_v41, 2 }
0x3470   :  { %2740 = vperm.xlu0 %11404, %v2730_v22  }
0x3473   :  { %3883 = vmax.xlane.f32.xlu1 %v3882_v18 }
0x3474   :  { %2761 = vperm.xlu0 %11404, %v2731_v19  }
0x3475   :  { %v13957_v12 = vpop.xlane.xlu1 %8277 }
0x3478   :  { %2801 = vperm.xlu0 %11404, %v2727_v9  }
0x3479   :  { %v13962_v22 = vpop.xlane.xlu1 %8394 }
0x347c   :  { %2806 = vperm.xlu0 %11404, %v2728_v40  }
0x3480   :  { %8140 = vperm.xlu0 %11404, %v13937_v49  }
0x349f   :  { %3853 = vmax.xlane.f32.xlu0 %v3852_v38  ;;  %v2782_v38 = vadd.f32 %v2781_v59, %v2780_v41 }
0x34a3   :  { %3868 = vmax.xlane.f32.xlu0 %v3867_v8  ;;  %v15492_v8 = vld [vmem:[#allocation37_spill] sm:$0xff] }
0x34ca   :  { %v13966_v45 = vpop.permute.xlu1 %8143 }
0x34db   :  { %v13948_v30 = vpop.xlane.xlu0 %3847 }
0x34dc   :  { %v3890_v59 = vrot.slane %v13948_v30, %v12332_v46 }
0x34df   :  { %v13950_v52 = vpop.xlane.xlu0 %8280 }
0x34e3   :  { %v13953_v17 = vpop.xlane.xlu0 %8391 }
0x34eb   :  { %v2736_v44 = vpop.permute.xlu0 %2735 }
0x34ec   :  { %v2743_v5 = vmul.f32 %v2736_v44, %v13701_v11 }
0x34ee   :  { %v2745_v36 = vsel %vm1454_vm14, %v2743_v5, 0.0 }
0x34ef   :  { %v2746_v14 = vrot.slane %v2745_v36, 4  ;;  %v2741_v20 = vpop.permute.xlu0 %2740 }
0x34f0   :  { %v2744_v7 = vmul.f32 %v2741_v20, %v15490_v0 }
0x34f1   :  { %v2747_v50 = vadd.f32 %v2746_v14, %v2745_v36 }
0x34f2   :  { %v2752_v23 = vsel %vm1454_vm14, %v2744_v7, 0.0  ;;  %v2783_v7 = vrot.slane %v2782_v38, 1 }
0x34f3   :  { %v2748_v4 = vrot.slane %v2747_v50, 2  ;;  %v2753_v63 = vrot.slane %v2752_v23, 4  ;;  %v2762_v32 = vpop.permute.xlu0 %2761 }
0x34f4   :  { %v2769_v11 = vmul.f32 %v2762_v32, %v15491_v3 }
0x34f5   :  { %v2754_v18 = vadd.f32 %v2753_v63, %v2752_v23  ;;  %v2749_v9 = vadd.f32 %v2748_v4, %v2747_v50 }
0x34f6   :  { %v2771_v19 = vsel %vm1454_vm14, %v2769_v11, 0.0 }
0x34f7   :  { %v2755_v40 = vrot.slane %v2754_v18, 2  ;;  %v2772_v6 = vrot.slane %v2771_v19, 4  ;;  %v2802_v15 = vpop.permute.xlu0 %2801  ;;  %v2750_v5 = vrot.slane %v2749_v9, 1 }
0x34f8   :  { %v2809_v2 = vmul.f32 %v2802_v15, %v15492_v8 }
0x34f9   :  { %v2756_v43 = vadd.f32 %v2755_v40, %v2754_v18  ;;  %v2773_v44 = vadd.f32 %v2772_v6, %v2771_v19  ;;  %v2751_v11 = vadd.f32 %v2750_v5, %v2749_v9  ;;  %v2784_v6 = vadd.f32 %v2783_v7, %v2782_v38 }
0x34fa   :  { %v2811_v37 = vsel %vm1521_vm6, %v2809_v2, 0.0 }
0x34fb   :  { %v2757_v36 = vrot.slane %v2756_v43, 1  ;;  %v2774_v14 = vrot.slane %v2773_v44, 2  ;;  %v2812_v20 = vrot.slane %v2811_v37, 4  ;;  %v2807_v0 = vpop.permute.xlu0 %2806 }
0x34fc   :  { %v2810_v50 = vmul.f32 %v2807_v0, %v13748_v33  ;;  %v13971_v23 = vpop.xlane.xlu1 %3850 }
0x34fd   :  { %v2758_v4 = vadd.f32 %v2757_v36, %v2756_v43  ;;  %v2775_v41 = vadd.f32 %v2774_v14, %v2773_v44  ;;  %v2813_v63 = vadd.f32 %v2812_v20, %v2811_v37  ;;  %v3894_v32 = vrot.slane %v13971_v23, %v12332_v46 }
0x34fe   :  { %v2818_v3 = vsel %vm1521_vm6, %v2810_v50, 0.0  ;;  %v2785_v37 = vmul.f32 0.5, %v2751_v11  ;;  %v2793_v20 = vmul.f32 0.3, %v2784_v6  ;;  %v15493_v50 = vld [vmem:[#allocation38_spill] sm:$0xff] }
0x34ff   :  { %v2776_v18 = vrot.slane %v2775_v41, 1  ;;  %v2814_v19 = vrot.slane %v2813_v63, 2  ;;  %v2819_v40 = vrot.slane %v2818_v3, 4  ;;  %v3895_v33 = vsel %vm336_vm2, %v3894_v32, %v3890_v59 }
0x3500   :  { %v2786_v15 = vmul.f32 0.5, %v2758_v4  ;;  %v3897_v44 = vsel %vm486_vm3, %v3895_v33, -inf  ;;  %v2715_v38 = vmul.f32 %v13867_v47, %v15493_v50  ;;  %v8141_v47 = vpop.permute.xlu0 %8140 }
0x3501   :  { %v2777_v8 = vadd.f32 %v2776_v18, %v2775_v41  ;;  %v2815_v2 = vadd.f32 %v2814_v19, %v2813_v63  ;;  %v2820_v43 = vadd.f32 %v2819_v40, %v2818_v3  ;;  %3898 = vmax.xlane.f32.xlu0 %v3897_v44 }
0x3502   :  { %v2789_v0 = vsel %vm336_vm2, %v2786_v15, %v2785_v37 }
0x3503   :  { %v2792_v36 = vmul.f32 0.3, %v2777_v8  ;;  %v2821_v14 = vrot.slane %v2820_v43, 2  ;;  %v2816_v9 = vrot.slane %v2815_v2, 1  ;;  %v2791_v41 = vadd.f32 %v2789_v0, %v2715_v38  ;;  %v3884_v8 = vpop.xlane.xlu1 %3883 }
0x3504   :  { %v8287_v38 = vrot.slane %v13957_v12, %v12332_v46 }
0x3505   :  { %v2822_v5 = vadd.f32 %v2821_v14, %v2820_v43  ;;  %v2796_v7 = vsel %vm336_vm2, %v2793_v20, %v2792_v36  ;;  %v2817_v63 = vadd.f32 %v2816_v9, %v2815_v2 }
0x3506   :  { %v2798_v59 = vadd.f32 %v2796_v7, %v2791_v41  ;;  %v8152_v41 = vrot.slane %v13966_v45, %v12332_v46 }
0x3507   :  { %v2823_v4 = vrot.slane %v2822_v5, 1 }
0x3509   :  { %v2824_v32 = vadd.f32 %v2823_v4, %v2822_v5  ;;  %v8291_v5 = vrot.slane %v13950_v52, %v12332_v46  ;;  %v8148_v4 = vrot.slane %v8141_v47, %v12332_v46 }
0x350b   :  { %v2827_v3 = vsel %vm336_vm2, %v2824_v32, %v2817_v63  ;;  %v8401_v32 = vrot.slane %v13953_v17, %v12332_v46 }
0x350c   :  { %v2829_v11 = vadd.f32 %v2827_v3, %v2798_v59  ;;  %v8153_v59 = vsel %vm336_vm2, %v8152_v41, %v8148_v4  ;;  %v8405_v3 = vrot.slane %v13962_v22, %v12332_v46 }
0x350e   :  { %11728 = vlog2.f32 %v2829_v11 }
0x3518   :  { %v11729_v18 = vpop.eup %11728 }
0x3519   :  { %v2831_v19 = vmul.f32 0.6931472, %v11729_v18  ;;  %v8155_v18 = vsel %vm339_vm4, %v8153_v59, -inf }
0x351b   :  { %v2838_v6 = vsel %vm2837_vm11, %v2831_v19, 0.0  ;;  %v8406_v19 = vsel %vm336_vm2, %v8405_v3, %v8401_v32 }
0x351c   :  { %10607 = vst.msk [vmem:[%s15353_s28 + $0x2] sm:$0x3] %vm1270_vm12, %v2838_v6  ;;  %v8408_v40 = vsel %vm486_vm3, %v8406_v19, -inf }
0x352c   :  { %v3854_v33 = vpop.xlane.xlu0 %3853 }
0x3530   :  { %v3869_v15 = vpop.xlane.xlu0 %3868 }
0x358e   :  { %v3899_v2 = vpop.xlane.xlu0 %3898 }
0x358f   :  { %v3900_v43 = vmax.f32 %v3884_v8, %v3899_v2 }
0x3591   :  { %v3901_v44 = vmax.f32 %v3869_v15, %v3900_v43 }
0x3593   :  { %v3902_v37 = vmax.f32 %v3854_v33, %v3901_v44 }
0x3595   :  { %v3903_v36 = vsub.f32 %v13814_v31, %v3902_v37  ;;  %v13993_v14 = vrot.slane %v3902_v37, %v12224_v21  ;;  %v14019_v11 = vrot.slane %v3902_v37, %v12270_v48 }
0x3597   :  { %v3904_v20 = vmul.f32 1.442695, %v3903_v36  ;;  %v3917_v0 = vsub.f32 %v13883_v56, %v13993_v14  ;;  %v8292_v56 = vsel %vm336_vm2, %v8291_v5, %v8287_v38  ;;  %v3918_v45 = vsub.f32 %v13885_v27, %v14019_v11 }
0x3598   :  { %v8294_v63 = vsel %vm486_vm3, %v8292_v56, -inf  ;;  %v3923_v47 = vsub.f32 %v13887_v13, %v13993_v14 }
0x3599   :  { %11730 = vpow2.f32 %v3904_v20  ;;  %v3919_v9 = vmul.f32 1.442695, %v3917_v0  ;;  %v3921_v6 = vmul.f32 1.442695, %v3918_v45 }
0x359a   :  { %v3925_v33 = vmul.f32 1.442695, %v3923_v47 }
0x359b   :  { %11732 = vpow2.f32 %v3919_v9 }
0x359c   :  { %11734 = vpow2.f32 %v3921_v6 }
0x359d   :  { %11736 = vpow2.f32 %v3925_v33  ;;  %v3929_v33 = vsub.f32 %v13948_v30, %v13993_v14 }
0x35a3   :  { %v13999_v50 = vpop.eup %11730 }
0x35a4   :  { %v3935_v31 = vsel %vm1270_vm12, %v13999_v50, 0.0 }
0x35a5   :  { %v14005_v7 = vpop.eup %11732  ;;  %3936 = vadd.xlane.f32.xlu1 %v3935_v31 }
0x35a6   :  { %3941 = vperm.xlu0 %11404, %v14005_v7   ;;  %v14028_v15 = vpop.eup %11734 }
0x35a7   :  { %v14031_v8 = vpop.eup %11736 }
0x35a9   :  { %8295 = vmax.xlane.f32.xlu1 %v8294_v63 }
0x35ad   :  { %8156 = vmax.xlane.f32.xlu1 %v8155_v18 }
0x35b1   :  { %8409 = vmax.xlane.f32.xlu1 %v8408_v40 }
0x35c2   :  { %3944 = vperm.xlu1 %11405, %v14028_v15  }
0x35c6   :  { %3963 = vperm.xlu1 %11405, %v14031_v8  }
0x3625   :  { %v3942_v4 = vpop.permute.xlu0 %3941 }
0x3632   :  { %v14034_v2 = vpop.xlane.xlu1 %3936 }
0x3636   :  { %v8296_v27 = vpop.xlane.xlu1 %8295 }
0x3637   :  { %v8301_v43 = vrot.slane %v8296_v27, %v12224_v21  ;;  %v8305_v44 = vrot.slane %v8296_v27, %v12270_v48 }
0x3639   :  { %v8308_v13 = vsub.f32 %v13957_v12, %v8301_v43  ;;  %v8309_v37 = vsub.f32 %v13950_v52, %v8305_v44  ;;  %v3949_v52 = vrot.slane %v3942_v4, %v12332_v46  ;;  %v3931_v44 = vmul.f32 1.442695, %v3929_v33 }
0x363a   :  { %v8157_v36 = vpop.xlane.xlu1 %8156 }
0x363b   :  { %v8310_v20 = vmul.f32 1.442695, %v8308_v13  ;;  %v8162_v0 = vrot.slane %v8157_v36, %v12224_v21  ;;  %v8312_v9 = vmul.f32 1.442695, %v8309_v37  ;;  %v8166_v5 = vrot.slane %v8157_v36, %v12270_v48 }
0x363d   :  { %11738 = vpow2.f32 %v8310_v20  ;;  %v8169_v38 = vsub.f32 %v13937_v49, %v8162_v0  ;;  %v8170_v56 = vsub.f32 %v13914_v54, %v8166_v5  ;;  %v3924_v54 = vsub.f32 %v13902_v55, %v14019_v11 }
0x363e   :  { %v8410_v31 = vpop.xlane.xlu1 %8409  ;;  %11740 = vpow2.f32 %v8312_v9  ;;  %v3930_v55 = vsub.f32 %v13971_v23, %v14019_v11  ;;  %v15495_v23 = vld [vmem:[#allocation26_spill] sm:$0xff] }
0x363f   :  { %v8171_v41 = vmul.f32 1.442695, %v8169_v38  ;;  %v8415_v12 = vrot.slane %v8410_v31, %v12224_v21  ;;  %v8173_v59 = vmul.f32 1.442695, %v8170_v56  ;;  %v8419_v49 = vrot.slane %v8410_v31, %v12270_v48 }
0x3640   :  { %v3933_v13 = vmul.f32 1.442695, %v3930_v55  ;;  %v5027_v11 = vrot.slane %v15495_v23, %v12233_v25 }
0x3641   :  { %11742 = vpow2.f32 %v8171_v41  ;;  %v8422_v3 = vsub.f32 %v13953_v17, %v8415_v12  ;;  %v8423_v6 = vsub.f32 %v13962_v22, %v8419_v49  ;;  %v3927_v17 = vmul.f32 1.442695, %v3924_v54 }
0x3642   :  { %v3945_v63 = vpop.permute.xlu1 %3944  ;;  %11744 = vpow2.f32 %v8173_v59  ;;  %v5035_v20 = vrot.slane %v5027_v11, %v12233_v25 }
0x3643   :  { %v3953_v32 = vrot.slane %v3945_v63, %v12332_v46  ;;  %v8424_v40 = vmul.f32 1.442695, %v8422_v3  ;;  %v8426_v27 = vmul.f32 1.442695, %v8423_v6 }
0x3644   :  { %v5046_v9 = vrot.slane %v5035_v20, %v12224_v21 }
0x3645   :  { %v3954_v18 = vsel %vm336_vm2, %v3953_v32, %v3949_v52  ;;  %11746 = vpow2.f32 %v8424_v40 }
0x3646   :  { %v3956_v19 = vsel %vm339_vm4, %v3954_v18, 0.0  ;;  %11748 = vpow2.f32 %v3927_v17  ;;  %v5053_v5 = vmul.f32 %v5046_v9, %v13395_v57  ;;  %v3964_v38 = vpop.permute.xlu1 %3963 }
0x3647   :  { %v14051_v45 = vpop.eup %11738  ;;  %3957 = vadd.xlane.f32.xlu0 %v3956_v19  ;;  %11750 = vpow2.f32 %v8426_v27  ;;  %v3971_v32 = vrot.slane %v3964_v38, %v12332_v46 }
0x3648   :  { %8317 = vperm.xlu1 %11405, %v14051_v45   ;;  %v14057_v47 = vpop.eup %11740  ;;  %11752 = vpow2.f32 %v3931_v44 }
0x3649   :  { %11754 = vpow2.f32 %v3933_v13 }
0x364b   :  { %v14062_v43 = vpop.eup %11742 }
0x364c   :  { %8320 = vperm.xlu1 %11405, %v14057_v47   ;;  %v14067_v22 = vpop.eup %11744 }
0x364f   :  { %v14070_v37 = vpop.eup %11746 }
0x3650   :  { %8178 = vperm.xlu1 %11405, %v14062_v43   ;;  %v14073_v30 = vpop.eup %11748 }
0x3651   :  { %v14075_v14 = vpop.eup %11750 }
0x3652   :  { %v14081_v36 = vpop.eup %11752 }
0x3653   :  { %v14085_v0 = vpop.eup %11754 }
0x3654   :  { %8181 = vperm.xlu1 %11405, %v14067_v22  }
0x3658   :  { %8431 = vperm.xlu1 %11405, %v14070_v37  }
0x365c   :  { %3966 = vperm.xlu1 %11405, %v14073_v30  }
0x365d   :  { %8434 = vperm.xlu0 %11404, %v14075_v14  }
0x3661   :  { %3985 = vperm.xlu0 %11404, %v14081_v36  }
0x3665   :  { %3988 = vperm.xlu0 %11404, %v14085_v0  }
0x3669   :  { %5057 = vrot.lane.b32.xlu0 %v5053_v5, %s12012_s29 }
0x36c7   :  { %v8318_v31 = vpop.permute.xlu1 %8317 }
0x36c8   :  { %v8325_v49 = vrot.slane %v8318_v31, %v12332_v46 }
0x36cb   :  { %v8321_v4 = vpop.permute.xlu1 %8320 }
0x36cc   :  { %v8329_v59 = vrot.slane %v8321_v4, %v12332_v46 }
0x36ce   :  { %v8330_v6 = vsel %vm336_vm2, %v8329_v59, %v8325_v49 }
0x36cf   :  { %v8179_v56 = vpop.permute.xlu1 %8178  ;;  %v8332_v17 = vsel %vm486_vm3, %v8330_v6, 0.0  ;;  %v14120_v6 = vld [vmem:[%s15348_s27] ss:$0 sm:$0xff] }
0x36d0   :  { %v8186_v9 = vrot.slane %v8179_v56, %v12332_v46 }
0x36d3   :  { %v8182_v41 = vpop.permute.xlu1 %8181 }
0x36d4   :  { %v3958_v63 = vpop.xlane.xlu0 %3957  ;;  %v8190_v13 = vrot.slane %v8182_v41, %v12332_v46 }
0x36d7   :  { %v8432_v12 = vpop.permute.xlu1 %8431 }
0x36d8   :  { %v8439_v23 = vrot.slane %v8432_v12, %v12332_v46  ;;  %v5028_v12 = vcombine.high %v5027_v11, %v5027_v11  ;;  %v15496_v11 = vld [vmem:[#allocation27_spill] sm:$0xff] }
0x36da   :  { %v5042_v56 = vrot.slane %v5028_v12, %v12233_v25 }
0x36db   :  { %v3967_v52 = vpop.permute.xlu1 %3966 }
0x36dc   :  { %v3975_v3 = vrot.slane %v3967_v52, %v12332_v46  ;;  %v8435_v18 = vpop.permute.xlu0 %8434  ;;  %v8191_v52 = vsel %vm336_vm2, %v8190_v13, %v8186_v9  ;;  %v5050_v59 = vrot.slane %v5042_v56, %v12224_v21 }
0x36dd   :  { %v8443_v27 = vrot.slane %v8435_v18, %v12332_v46  ;;  %v8193_v41 = vsel %vm339_vm4, %v8191_v52, 0.0 }
0x36de   :  { %v3976_v19 = vsel %vm336_vm2, %v3975_v3, %v3971_v32  ;;  %v5054_v3 = vmul.f32 %v5050_v59, %v13405_v28 }
0x36df   :  { %v3978_v54 = vsel %vm486_vm3, %v3976_v19, 0.0  ;;  %v8444_v4 = vsel %vm336_vm2, %v8443_v27, %v8439_v23  ;;  %v3959_v19 = vadd.f32 %v3958_v63, %v14034_v2 }
0x36e0   :  { %v3986_v40 = vpop.permute.xlu0 %3985  ;;  %3979 = vadd.xlane.f32.xlu1 %v3978_v54  ;;  %v8446_v32 = vsel %vm486_vm3, %v8444_v4, 0.0 }
0x36e1   :  { %v3993_v55 = vrot.slane %v3986_v40, %v12332_v46 }
0x36e4   :  { %v3989_v33 = vpop.permute.xlu0 %3988  ;;  %8333 = vadd.xlane.f32.xlu1 %v8332_v17  ;;  %v14124_v17 = vadd.f32 %v14120_v6, %v15496_v11 }
0x36e5   :  { %v3997_v44 = vrot.slane %v3989_v33, %v12332_v46 }
0x36e6   :  { %v5076_v2 = vrot.slane %v14124_v17, %v12233_v25 }
0x36e7   :  { %v3998_v20 = vsel %vm336_vm2, %v3997_v44, %v3993_v55 }
0x36e8   :  { %v5058_v5 = vpop.permute.xlu0 %5057  ;;  %v4000_v38 = vsel %vm486_vm3, %v3998_v20, 0.0  ;;  %v5077_v20 = vcombine.high %v5076_v2, %v5076_v2 }
0x36e9   :  { %4001 = vadd.xlane.f32.xlu1 %v4000_v38  ;;  %v5063_v31 = vsel %vm155_vm0, %v5058_v5, 0.0 }
0x36ea   :  { %5064 = vadd.xlane.f32.xlu0 %v5063_v31  ;;  %v5091_v31 = vrot.slane %v5077_v20, %v12233_v25 }
0x36ed   :  { %8447 = vadd.xlane.f32.xlu1 %v8446_v32 }
0x36ee   :  { %8194 = vadd.xlane.f32.xlu0 %v8193_v41  ;;  %v14141_v41 = vrot.slane %v5091_v31, %v12224_v21 }
0x36f0   :  { %v5103_v12 = vadd.f32 %v14141_v41, %v13465_v61 }
0x36fe   :  { %5059 = vrot.lane.b32.xlu1 %v5054_v3, %s12012_s29 }
0x376d   :  { %v3980_v18 = vpop.xlane.xlu1 %3979 }
0x376e   :  { %v3981_v54 = vadd.f32 %v3980_v18, %v3959_v19 }
0x3771   :  { %v8334_v49 = vpop.xlane.xlu1 %8333 }
0x3772   :  { %v8339_v55 = vrot.slane %v8334_v49, %v12224_v21 }
0x3776   :  { %v4002_v40 = vpop.xlane.xlu1 %4001 }
0x3777   :  { %v4003_v33 = vadd.f32 %v4002_v40, %v3981_v54  ;;  %v14126_v27 = vpop.xlane.xlu0 %5064  ;;  %v8343_v54 = vrot.slane %v8334_v49, %v12270_v48 }
0x3779   :  { %11756 = vrcp.f32 %v4003_v33 }
0x377a   :  { %v8448_v44 = vpop.xlane.xlu1 %8447  ;;  %11758 = vrcp.f32 %v8339_v55 }
0x377b   :  { %v8453_v63 = vrot.slane %v8448_v44, %v12224_v21  ;;  %v8195_v13 = vpop.xlane.xlu0 %8194  ;;  %v8457_v49 = vrot.slane %v8448_v44, %v12270_v48 }
0x377c   :  { %v8200_v5 = vrot.slane %v8195_v13, %v12224_v21 }
0x377d   :  { %11760 = vrcp.f32 %v8453_v63 }
0x377e   :  { %v5060_v23 = vpop.permute.xlu1 %5059  ;;  %11762 = vrcp.f32 %v8200_v5 }
0x377f   :  { %v5066_v9 = vsel %vm155_vm0, %v5060_v23, 0.0  ;;  %11764 = vtanh.f32 %v5103_v12 }
0x3780   :  { %5067 = vadd.xlane.f32.xlu1 %v5066_v9  ;;  %11766 = vrcp.f32 %v8343_v54 }
0x3783   :  { %v14134_v38 = vpop.eup %11756 }
0x3784   :  { %v4014_v4 = vrot.slane %v14134_v38, %v12270_v48  ;;  %v11759_v32 = vpop.eup %11758  ;;  %v4010_v3 = vrot.slane %v14134_v38, %v12224_v21 }
0x3785   :  { %v8347_v56 = vmul.f32 %v11759_v32, %v14051_v45  ;;  %v8204_v45 = vrot.slane %v8195_v13, %v12270_v48 }
0x3786   :  { %v4020_v52 = vmul.f32 %v14073_v30, %v4014_v4  ;;  %v4019_v30 = vmul.f32 %v14031_v8, %v4010_v3  ;;  %v4021_v11 = vmul.f32 %v14081_v36, %v4010_v3  ;;  %v4022_v55 = vmul.f32 %v14085_v0, %v4014_v4  ;;  %v15497_v8 = vld [vmem:[#allocation33_spill] sm:$0xff] }
0x3787   :  { %v11761_v59 = vpop.eup %11760  ;;  %11768 = vrcp.f32 %v8204_v45  ;;  %v4017_v36 = vmul.f32 %v14005_v7, %v4010_v3 }
0x3788   :  { %4030 = vperm.xlu0 %11404, %v4020_v52   ;;  %v8461_v18 = vmul.f32 %v11761_v59, %v14070_v37  ;;  %v11763_v19 = vpop.eup %11762  ;;  %v5084_v37 = vrot.slane %v5076_v2, %v12233_v25  ;;  %11770 = vrcp.f32 %v8457_v49  ;;  %v4018_v2 = vmul.f32 %v14028_v15, %v4014_v4  ;;  %v10648_v15 = vld [vmem:[%s15342_s0 + $0xc] sm:$0x3]  ;;  %v14184_v52 = vld [vmem:[%s15350_s11 + $0x4] sm:$0xf] }
0x3789   :  { %v8208_v40 = vmul.f32 %v11763_v19, %v14062_v43  ;;  %v11765_v33 = vpop.eup %11764  ;;  %11094 = vmatmul.mubr.msk.f32.vlgmr.msra.gmra.mrb[38].mxu1 %vm775_vm8, %v10648_v15  ;;  %v15499_v4 = vmov 0.0  }
0x378a   :  { %v5107_v43 = vmul.f32 %v11765_v33, %v13468_v42  ;;  %v14162_v63 = vrot.slane %v5084_v37, %v12224_v21  ;;  %v11767_v13 = vpop.eup %11766  ;;  %11100 = vmatprep.mubr.msk.f32.mxu1 %vm12017_vm5, %v15499_v4  ;;  %v11976_v33 = vld [vmem:[%s15339_s5] sm:$0xf] }
0x378b   :  { %v8349_v44 = vmul.f32 %v11767_v13, %v14057_v47  ;;  %v15498_v47 = vld [vmem:[#allocation17_spill] sm:$0xff] }
0x378c   :  { %8352 = vperm.xlu0 %11404, %v8347_v56   ;;  %v5102_v0 = vadd.f32 %v14162_v63, %v13459_v60  ;;  %11357 = vmatpush3.bf16.msra.mxu1 %v15498_v47 }
0x378e   :  { %11772 = vtanh.f32 %v5102_v0 }
0x3790   :  { %8466 = vperm.xlu0 %11404, %v8461_v18  }
0x3791   :  { %4025 = vperm.xlu1 %11405, %v4019_v30   ;;  %v11769_v23 = vpop.eup %11768  ;;  %v14193_v30 = vld [vmem:[%s15350_s11] sm:$0xf] }
0x3792   :  { %v8210_v7 = vmul.f32 %v11769_v23, %v14067_v22  ;;  %v11771_v20 = vpop.eup %11770  ;;  %v15500_v22 = vmov 0.0|0.0  }
0x3793   :  { %v8463_v9 = vmul.f32 %v11771_v20, %v14075_v14  ;;  %11361 = vmatprep.subr.bf16.mxu1 %v15500_v22 }
0x3794   :  { %8213 = vperm.xlu0 %11404, %v8208_v40  }
0x3795   :  { %4051 = vperm.xlu1 %11405, %v4021_v11  }
0x3798   :  { %7527 = vrot.lane.b32.xlu0 %v15497_v8, %s12012_s29  ;;  %v11773_v5 = vpop.eup %11772 }
0x3799   :  { %4056 = vperm.xlu1 %11405, %v4022_v55   ;;  %v5106_v31 = vmul.f32 %v11773_v5, %v13468_v42  ;;  %v15501_v5 = vld [vmem:[#allocation13_spill] sm:$0xff] }
0x379c   :  { %5112 = vrot.lane.b32.xlu0 %v5107_v43, %s12018_s15  ;;  %v14203_v43 = vld [vmem:[%s15351_s12] sm:$0xf] }
0x379d   :  { %4091 = vperm.xlu1 %11405, %v4017_v36  }
0x37a1   :  { %4096 = vperm.xlu1 %11405, %v4018_v2  }
0x37a5   :  { %8357 = vperm.xlu1 %11405, %v8349_v44  }
0x37a9   :  { %8218 = vperm.xlu1 %11405, %v8210_v7  }
0x37ad   :  { %8471 = vperm.xlu1 %11405, %v8463_v9  }
0x37b1   :  { %5110 = vrot.lane.b32.xlu1 %v5106_v31, %s12018_s15  ;;  %v14215_v31 = vld [vmem:[%s15351_s12 + $0x4] sm:$0xf] }
0x3807   :  { %v4031_v14 = vpop.permute.xlu0 %4030 }
0x3808   :  { %v4034_v32 = vmul.f32 %v14184_v52, %v4031_v14 }
0x380a   :  { %v4042_v56 = vsel %vm1454_vm14, %v4034_v32, 0.0  ;;  %v11979_v32 = vld [vmem:[%s15338_s2] sm:$0xff] }
0x380b   :  { %v8353_v12 = vpop.permute.xlu0 %8352  ;;  %v4043_v18 = vrot.slane %v4042_v56, 4 }
0x380c   :  { %v8360_v55 = vmul.f32 %v11976_v33, %v8353_v12 }
0x380d   :  { %v14188_v59 = vpop.xlane.xlu1 %5067  ;;  %v4044_v11 = vadd.f32 %v4043_v18, %v4042_v56 }
0x380e   :  { %v8362_v23 = vsel %vm555_vm7, %v8360_v55, 0.0 }
0x380f   :  { %v8467_v3 = vpop.permute.xlu0 %8466  ;;  %v4045_v13 = vrot.slane %v4044_v11, 2 }
0x3811   :  { %v4026_v19 = vpop.permute.xlu1 %4025 }
0x3812   :  { %v4033_v54 = vmul.f32 %v14193_v30, %v4026_v19  ;;  %v4046_v19 = vadd.f32 %v4045_v13, %v4044_v11  ;;  %v5122_v11 = vadd.f32 %v14162_v63, %v13488_v53  ;;  %v11981_v13 = vld [vmem:[%s15343_s7] sm:$0xf] }
0x3813   :  { %v8214_v40 = vpop.permute.xlu0 %8213 }
0x3814   :  { %v4035_v45 = vsel %vm1454_vm14, %v4033_v54, 0.0  ;;  %v8221_v12 = vmul.f32 %v11979_v32, %v8214_v40  ;;  %v8363_v54 = vrot.slane %v8362_v23, 4  ;;  %11774 = vtanh.f32 %v5122_v11 }
0x3815   :  { %v4036_v37 = vrot.slane %v4035_v45, 4  ;;  %v4052_v49 = vpop.permute.xlu1 %4051 }
0x3816   :  { %v4059_v36 = vmul.f32 %v14203_v43, %v4052_v49  ;;  %v8364_v32 = vadd.f32 %v8363_v54, %v8362_v23 }
0x3817   :  { %v4037_v0 = vadd.f32 %v4036_v37, %v4035_v45  ;;  %v7528_v2 = vpop.permute.xlu0 %7527 }
0x3818   :  { %v4061_v44 = vsel %vm1454_vm14, %v4059_v36, 0.0  ;;  %11076 = vmatmul.mubr.msk.f32.vlgmr.msra.gmra.mrb[34].mxu0 %vm155_vm0, %v7528_v2  ;;  %v15502_v36 = vld [vmem:[#allocation14_spill] sm:$0xff] }
0x3819   :  { %v4038_v7 = vrot.slane %v4037_v0, 2  ;;  %v4062_v20 = vrot.slane %v4061_v44, 4  ;;  %v4057_v9 = vpop.permute.xlu1 %4056  ;;  %11348 = vmatpush3.bf16.msra.mxu0 %v15501_v5  ;;  %11086 = vmatprep.mubr.msk.f32.mxu0 %vm12017_vm5, %v15499_v4  ;;  %v14228_v2 = vld [vmem:[%s15352_s13] sm:$0xff] }
0x381a   :  { %v4060_v15 = vmul.f32 %v14215_v31, %v4057_v9  ;;  %11349 = vmatprep.subr.bf16.mxu0 %v15500_v22 }
0x381b   :  { %v4039_v14 = vadd.f32 %v4038_v7, %v4037_v0  ;;  %v4063_v56 = vadd.f32 %v4062_v20, %v4061_v44  ;;  %v5113_v18 = vpop.permute.xlu0 %5112  ;;  %v8474_v44 = vmul.f32 %v11981_v13, %v8467_v3  ;;  %v8223_v7 = vsel %vm155_vm0, %v8221_v12, 0.0 }
0x381c   :  { %v4068_v45 = vsel %vm1454_vm14, %v4060_v15, 0.0  ;;  %v5119_v33 = vsel %vm467_vm1, %v5113_v18, 0.0  ;;  %v4047_v15 = vrot.slane %v4046_v19, 1  ;;  %v8224_v63 = vrot.slane %v8223_v7, 4 }
0x381d   :  { %v4064_v55 = vrot.slane %v4063_v56, 2  ;;  %v4069_v37 = vrot.slane %v4068_v45, 4  ;;  %5120 = vadd.xlane.f32.xlu0 %v5119_v33  ;;  %v4092_v49 = vpop.permute.xlu1 %4091  ;;  %11351 = vmatpush3.bf16.msra.mxu0 %v15502_v36  ;;  %v4040_v0 = vrot.slane %v4039_v14, 1  ;;  %v8476_v12 = vsel %vm555_vm7, %v8474_v44, 0.0 }
0x381e   :  { %v4099_v40 = vmul.f32 %v14228_v2, %v4092_v49  ;;  %11358 = vmatprep.subr.bf16.mxu0 %v15500_v22  ;;  %v4048_v54 = vadd.f32 %v4047_v15, %v4046_v19  ;;  %v8477_v1 = vrot.slane %v8476_v12, 4  ;;  %v8225_v36 = vadd.f32 %v8224_v63, %v8223_v7  ;;  %v11984_v63 = vld [vmem:[%s15338_s2 + $0x8] sm:$0xff] }
0x381f   :  { %v4065_v20 = vadd.f32 %v4064_v55, %v4063_v56  ;;  %v4070_v9 = vadd.f32 %v4069_v37, %v4068_v45  ;;  %v4041_v34 = vadd.f32 %v4040_v0, %v4039_v14  ;;  %v8365_v55 = vrot.slane %v8364_v32, 2 }
0x3820   :  { %v4101_v18 = vsel %vm1521_vm6, %v4099_v40, 0.0  ;;  %v4076_v19 = vmul.f32 0.5, %v4048_v54  ;;  %v8478_v39 = vadd.f32 %v8477_v1, %v8476_v12  ;;  %v8226_v7 = vrot.slane %v8225_v36, 2 }
0x3821   :  { %v4071_v33 = vrot.slane %v4070_v9, 2  ;;  %v4102_v49 = vrot.slane %v4101_v18, 4  ;;  %v4097_v47 = vpop.permute.xlu1 %4096  ;;  %v4066_v56 = vrot.slane %v4065_v20, 1  ;;  %v4075_v10 = vmul.f32 0.5, %v4041_v34 }
0x3822   :  { %v4100_v3 = vmul.f32 %v14242_v16, %v4097_v47  ;;  %v11983_v47 = vld [vmem:[%s15339_s5 + $0x4] sm:$0xf]  ;;  %v8366_v15 = vadd.f32 %v8365_v55, %v8364_v32  ;;  %v11775_v32 = vpop.eup %11774 }
0x3823   :  { %v4072_v45 = vadd.f32 %v4071_v33, %v4070_v9  ;;  %v4103_v23 = vadd.f32 %v4102_v49, %v4101_v18  ;;  %v4067_v44 = vadd.f32 %v4066_v56, %v4065_v20  ;;  %v4079_v34 = vsel %vm336_vm2, %v4076_v19, %v4075_v10 }
0x3824   :  { %v4108_v37 = vsel %vm1521_vm6, %v4100_v3, 0.0  ;;  %v8367_v55 = vrot.slane %v8366_v15, 1 }
0x3825   :  { %v4073_v40 = vrot.slane %v4072_v45, 1  ;;  %v4104_v14 = vrot.slane %v4103_v23, 2  ;;  %v4109_v0 = vrot.slane %v4108_v37, 4  ;;  %v8358_v13 = vpop.permute.xlu1 %8357  ;;  %v4082_v56 = vmul.f32 0.3, %v4067_v44 }
0x3826   :  { %v8361_v11 = vmul.f32 %v11983_v47, %v8358_v13 }
0x3827   :  { %v4074_v62 = vadd.f32 %v4073_v40, %v4072_v45  ;;  %v4105_v9 = vadd.f32 %v4104_v14, %v4103_v23  ;;  %v4110_v18 = vadd.f32 %v4109_v0, %v4108_v37  ;;  %v8479_v0 = vrot.slane %v8478_v39, 2 }
0x3828   :  { %v8369_v33 = vsel %vm555_vm7, %v8361_v11, 0.0 }
0x3829   :  { %v4083_v49 = vmul.f32 0.3, %v4074_v62  ;;  %v4111_v3 = vrot.slane %v4110_v18, 2  ;;  %v8370_v5 = vrot.slane %v8369_v33, 4  ;;  %v8219_v51 = vpop.permute.xlu1 %8218  ;;  %v4106_v45 = vrot.slane %v4105_v9, 1 }
0x382a   :  { %v8222_v20 = vmul.f32 %v11984_v63, %v8219_v51  ;;  %v4005_v62 = vmul.f32 %v14134_v38, %v13999_v50  ;;  %v8227_v51 = vadd.f32 %v8226_v7, %v8225_v36 }
0x382b   :  { %v4112_v23 = vadd.f32 %v4111_v3, %v4110_v18  ;;  %v8371_v54 = vadd.f32 %v8370_v5, %v8369_v33  ;;  %v4086_v1 = vsel %vm336_vm2, %v4083_v49, %v4082_v56  ;;  %v11985_v5 = vld [vmem:[%s15343_s7 + $0x4] sm:$0xf]  ;;  %v4107_v11 = vadd.f32 %v4106_v45, %v4105_v9 }
0x382c   :  { %v8230_v37 = vsel %vm155_vm0, %v8222_v20, 0.0  ;;  %v4081_v13 = vadd.f32 %v4079_v34, %v4005_v62  ;;  %v5126_v33 = vmul.f32 %v11775_v32, %v13468_v42  ;;  %v5123_v49 = vadd.f32 %v14141_v41, %v13491_v58 }
0x382d   :  { %v4113_v10 = vrot.slane %v4112_v23, 1  ;;  %v8372_v12 = vrot.slane %v8371_v54, 2  ;;  %v8231_v40 = vrot.slane %v8230_v37, 4  ;;  %v8472_v14 = vpop.permute.xlu1 %8471  ;;  %v8368_v20 = vadd.f32 %v8367_v55, %v8366_v15 }
0x382e   :  { %v8475_v47 = vmul.f32 %v11985_v5, %v8472_v14  ;;  %v4088_v38 = vadd.f32 %v4086_v1, %v4081_v13  ;;  %v8480_v56 = vadd.f32 %v8479_v0, %v8478_v39  ;;  %v15504_v5 = vld [vmem:[#allocation15_spill] sm:$0xff] }
0x382f   :  { %v4114_v44 = vadd.f32 %v4113_v10, %v4112_v23  ;;  %v8373_v18 = vadd.f32 %v8372_v12, %v8371_v54  ;;  %v8232_v50 = vadd.f32 %v8231_v40, %v8230_v37  ;;  %v8228_v23 = vrot.slane %v8227_v51, 1  ;;  %v15503_v12 = vld [vmem:[#allocation19_spill] sm:$0xff] }
0x3830   :  { %v8483_v19 = vsel %vm555_vm7, %v8475_v47, 0.0  ;;  %v8481_v15 = vrot.slane %v8480_v56, 1  ;;  %v15506_v47 = vld [vmem:[#allocation20_spill] sm:$0xff] }
0x3831   :  { %v4117_v3 = vsel %vm336_vm2, %v4114_v44, %v4107_v11  ;;  %v8374_v36 = vrot.slane %v8373_v18, 1  ;;  %v8233_v34 = vrot.slane %v8232_v50, 2  ;;  %v8484_v7 = vrot.slane %v8483_v19, 4  ;;  %v5111_v63 = vpop.permute.xlu1 %5110 }
0x3832   :  { %v4119_v9 = vadd.f32 %v4117_v3, %v4088_v38  ;;  %v5116_v45 = vsel %vm467_vm1, %v5111_v63, 0.0  ;;  %v8229_v39 = vadd.f32 %v8228_v23, %v8227_v51  ;;  %v8482_v0 = vadd.f32 %v8481_v15, %v8480_v56  ;;  %v15505_v51 = vld [vmem:[#allocation2_spill] sm:$0xff]  ;;  %v15507_v38 = vld [vmem:[#allocation3_spill] sm:$0xff] }
0x3833   :  { %v8375_v54 = vadd.f32 %v8374_v36, %v8373_v18  ;;  %v8234_v62 = vadd.f32 %v8233_v34, %v8232_v50  ;;  %v8485_v37 = vadd.f32 %v8484_v7, %v8483_v19  ;;  %5130 = vrot.lane.b32.xlu0 %v5126_v33, %s12018_s15  ;;  %5117 = vadd.xlane.f32.xlu1 %v5116_v45  ;;  %v15508_v19 = vld [vmem:[#allocation4_spill] sm:$0xff]  ;;  %v15510_v36 = vld [vmem:[#allocation5_spill] sm:$0xff]  ;;  %v5142_v15 = vsel %vm1270_vm12, %v14124_v17, -inf }
0x3834   :  { %11776 = vlog2.f32 %v4119_v9 }
0x3835   :  { %v8235_v41 = vrot.slane %v8234_v62, 1  ;;  %v8486_v32 = vrot.slane %v8485_v37, 2  ;;  %v8640_v1 = vsel %vm336_vm2, %v8375_v54, %v8368_v20  ;;  %11778 = vtanh.f32 %v5123_v49 }
0x3836   :  { %11101 = vmatmul.mubr.msk.f32.vlgmr.msra.gmra.mrb[40].mxu1 %vm775_vm8, %v8640_v1  ;;  %v5150_v1 = vrot.slane %v14126_v27, %v12332_v46 }
0x3837   :  { %v8236_v55 = vadd.f32 %v8235_v41, %v8234_v62  ;;  %v8487_v10 = vadd.f32 %v8486_v32, %v8485_v37  ;;  %11363 = vmatpush3.bf16.msra.mxu1 %v15503_v12  ;;  %11118 = vmatprep.mubr.msk.f32.mxu1 %vm12017_vm5, %v15499_v4  ;;  %v5154_v32 = vrot.slane %v14188_v59, %v12332_v46 }
0x3838   :  { %11364 = vmatprep.subr.bf16.mxu1 %v15500_v22 }
0x3839   :  { %v8488_v40 = vrot.slane %v8487_v10, 1  ;;  %v8492_v14 = vsel %vm336_vm2, %v8236_v55, %v8229_v39  ;;  %v5155_v39 = vsel %vm336_vm2, %v5154_v32, %v5150_v1 }
0x383a   :  { %11087 = vmatmul.mubr.msk.f32.vlgmr.msra.gmra.mrb[36].mxu0 %vm155_vm0, %v8492_v14  ;;  %v5157_v55 = vsel %vm339_vm4, %v5155_v39, -inf }
0x383b   :  { %v8489_v13 = vadd.f32 %v8488_v40, %v8487_v10  ;;  %11360 = vmatpush3.bf16.msra.mxu0 %v15504_v5  ;;  %11107 = vmatprep.mubr.msk.f32.mxu0 %vm12017_vm5, %v15499_v4 }
0x383c   :  { %11368 = vmatprep.subr.bf16.mxu0 %v15505_v51  ;;  %11366 = vmatpush3.bf16.msra.mxu1 %v15506_v47 }
0x383d   :  { %v8716_v11 = vsel %vm336_vm2, %v8489_v13, %v8482_v0  ;;  %11375 = vmatprep.subr.bf16.mxu1 %v15500_v22 }
0x383e   :  { %v11777_v44 = vpop.eup %11776  ;;  %11108 = vmatmul.mubr.msk.f32.vlgmr.msra.gmra.mrb[38].mxu0 %vm775_vm8, %v8716_v11 }
0x383f   :  { %v11779_v18 = vpop.eup %11778  ;;  %v4121_v50 = vmul.f32 0.6931472, %v11777_v44  ;;  %11370 = vmatpush1.bf16.msra.mxu0 %v15507_v38  ;;  %9365 = vmatprep.mubr.f32.mxu0 %v15499_v4 }
0x3840   :  { %11372 = vmatprep.subr.bf16.mxu0 %v15508_v19  ;;  %v5127_v3 = vmul.f32 %v11779_v18, %v13468_v42 }
0x3841   :  { %v4128_v49 = vsel %vm4127_vm13, %v4121_v50, 0.0 }
0x3842   :  { %10617 = vst.msk [vmem:[%s15353_s28 + $0x4] sm:$0x3] %vm1270_vm12, %v4128_v49 }
0x3843   :  { %11374 = vmatpush1.bf16.msra.mxu0 %v15510_v36 }
0x3844   :  { %5132 = vrot.lane.b32.xlu1 %v5127_v3, %s12018_s15  ;;  %11381 = vmatprep.subr.bf16.mxu0 %v15500_v22 }
0x385c   :  { %v8634_v34 = vpop.f32.mrb[38].mxu1 }
0x385d   :  { %v11095_v7 = vpop.f32.mrb[39].mxu1 }
0x38aa   :  { %v5121_v63 = vpop.xlane.xlu0 %5120 }
0x38ab   :  { %v5169_v45 = vrot.slane %v5121_v63, %v12332_v46 }
0x38ae   :  { %v5131_v20 = vpop.permute.xlu0 %5130 }
0x38af   :  { %v5136_v56 = vsel %vm467_vm1, %v5131_v20, 0.0 }
0x38b0   :  { %5137 = vadd.xlane.f32.xlu1 %v5136_v56 }
0x38c0   :  { %v5118_v9 = vpop.xlane.xlu1 %5117 }
0x38c1   :  { %v5165_v23 = vrot.slane %v5118_v9, %v12332_v46 }
0x38c3   :  { %v5170_v54 = vsel %vm336_vm2, %v5169_v45, %v5165_v23 }
0x38c4   :  { %v5133_v62 = vpop.permute.xlu1 %5132  ;;  %v5172_v37 = vsel %vm486_vm3, %v5170_v54, -inf }
0x38c5   :  { %5173 = vmax.xlane.f32.xlu1 %v5172_v37  ;;  %v5139_v41 = vsel %vm467_vm1, %v5133_v62, 0.0 }
0x38c6   :  { %5140 = vadd.xlane.f32.xlu0 %v5139_v41 }
0x38ca   :  { %5143 = vmax.xlane.f32.xlu0 %v5142_v15 }
0x38ce   :  { %5158 = vmax.xlane.f32.xlu0 %v5157_v55 }
0x38eb   :  { %v14312_v10 = vpop.f32.mrb[34].mxu0 }
0x38ec   :  { %v11077_v40 = vpop.f32.mrb[35].mxu0 }
0x3909   :  { %v8709_v14 = vpop.f32.mrb[40].mxu1 }
0x390a   :  { %v11102_v0 = vpop.f32.mrb[41].mxu1 }
0x390d   :  { %v8561_v13 = vpop.f32.mrb[36].mxu0 }
0x390e   :  { %v8635_v51 = vadd.f32 %v8634_v34, %v8561_v13  ;;  %v11088_v11 = vpop.f32.mrb[37].mxu0 }
0x3910   :  { %v8713_v44 = vadd.f32 %v8709_v14, %v8635_v51 }
0x3911   :  { %v8785_v18 = vpop.f32.mrb[38].mxu0 }
0x3912   :  { %v14314_v50 = vadd.f32 %v8785_v18, %v8713_v44  ;;  %v11109_v38 = vpop.f32.mrb[39].mxu0 }
0x393d   :  { %v5138_v19 = vpop.xlane.xlu1 %5137 }
0x393e   :  { %v5180_v49 = vrot.slane %v5138_v19, %v12332_v46 }
0x3952   :  { %v5174_v34 = vpop.xlane.xlu1 %5173 }
0x3953   :  { %v5141_v33 = vpop.xlane.xlu0 %5140 }
0x3954   :  { %v5184_v3 = vrot.slane %v5141_v33, %v12332_v46 }
0x3956   :  { %v5185_v36 = vsel %vm336_vm2, %v5184_v3, %v5180_v49 }
0x3957   :  { %v5187_v7 = vsel %vm486_vm3, %v5185_v36, -inf  ;;  %v5144_v20 = vpop.xlane.xlu0 %5143 }
0x3958   :  { %5188 = vmax.xlane.f32.xlu0 %v5187_v7 }
0x395b   :  { %v5159_v56 = vpop.xlane.xlu0 %5158 }
0x39e5   :  { %v5189_v45 = vpop.xlane.xlu0 %5188 }
0x39e6   :  { %v5190_v23 = vmax.f32 %v5174_v34, %v5189_v45 }
0x39e8   :  { %v5191_v54 = vmax.f32 %v5159_v56, %v5190_v23 }
0x39ea   :  { %v5192_v62 = vmax.f32 %v5144_v20, %v5191_v54 }
0x39ec   :  { %v5193_v37 = vsub.f32 %v14124_v17, %v5192_v62  ;;  %v5200_v41 = vrot.slane %v5192_v62, %v12224_v21  ;;  %v5204_v1 = vrot.slane %v5192_v62, %v12270_v48 }
0x39ee   :  { %v5194_v32 = vmul.f32 1.442695, %v5193_v37  ;;  %v5207_v15 = vsub.f32 %v14126_v27, %v5200_v41  ;;  %v5213_v39 = vsub.f32 %v5118_v9, %v5200_v41  ;;  %v5214_v40 = vsub.f32 %v5121_v63, %v5204_v1 }
0x39ef   :  { %v5208_v51 = vsub.f32 %v14188_v59, %v5204_v1  ;;  %v5220_v56 = vsub.f32 %v5141_v33, %v5204_v1  ;;  %v5219_v54 = vsub.f32 %v5138_v19, %v5200_v41 }
0x39f0   :  { %11780 = vpow2.f32 %v5194_v32  ;;  %v5209_v55 = vmul.f32 1.442695, %v5207_v15  ;;  %v5215_v14 = vmul.f32 1.442695, %v5213_v39  ;;  %v5217_v0 = vmul.f32 1.442695, %v5214_v40 }
0x39f1   :  { %v5211_v27 = vmul.f32 1.442695, %v5208_v51  ;;  %v5223_v62 = vmul.f32 1.442695, %v5220_v56  ;;  %v5221_v15 = vmul.f32 1.442695, %v5219_v54 }
0x39f2   :  { %11782 = vpow2.f32 %v5209_v55  ;;  %v15511_v39 = vld [vmem:[#allocation29_spill] sm:$0xff] }
0x39f3   :  { %11784 = vpow2.f32 %v5215_v14  ;;  %v6317_v55 = vrot.slane %v15511_v39, %v12233_v25 }
0x39f4   :  { %11786 = vpow2.f32 %v5217_v0 }
0x39f5   :  { %11788 = vpow2.f32 %v5211_v27  ;;  %v6318_v33 = vcombine.high %v6317_v55, %v6317_v55  ;;  %v6325_v1 = vrot.slane %v6317_v55, %v12233_v25  ;;  %v15512_v27 = vld [vmem:[#allocation30_spill] sm:$0xff] }
0x39f6   :  { %11790 = vpow2.f32 %v5223_v62 }
0x39f7   :  { %11792 = vpow2.f32 %v5221_v15  ;;  %v6336_v41 = vrot.slane %v6325_v1, %v12224_v21  ;;  %v6332_v14 = vrot.slane %v6318_v33, %v12233_v25 }
0x39f9   :  { %v6343_v0 = vmul.f32 %v6336_v41, %v13395_v57  ;;  %v6340_v51 = vrot.slane %v6332_v14, %v12224_v21 }
0x39fa   :  { %v14324_v13 = vpop.eup %11780 }
0x39fb   :  { %v5225_v17 = vsel %vm1270_vm12, %v14324_v13, 0.0 }
0x39fc   :  { %v14329_v11 = vpop.eup %11782  ;;  %5226 = vadd.xlane.f32.xlu1 %v5225_v17  ;;  %v6344_v17 = vmul.f32 %v6340_v51, %v13405_v28 }
0x39fd   :  { %5231 = vperm.xlu0 %11404, %v14329_v11   ;;  %v14332_v9 = vpop.eup %11784 }
0x39fe   :  { %v14335_v63 = vpop.eup %11786 }
0x39ff   :  { %v14338_v59 = vpop.eup %11788 }
0x3a00   :  { %v14353_v40 = vpop.eup %11790 }
0x3a01   :  { %5253 = vperm.xlu0 %11404, %v14332_v9   ;;  %v14357_v19 = vpop.eup %11792 }
0x3a05   :  { %5256 = vperm.xlu0 %11404, %v14335_v63  }
0x3a0d   :  { %5234 = vperm.xlu1 %11405, %v14338_v59  }
0x3a7c   :  { %v5232_v44 = vpop.permute.xlu0 %5231 }
0x3a7d   :  { %v5239_v45 = vrot.slane %v5232_v44, %v12332_v46  ;;  %v14371_v44 = vadd.f32 %v14120_v6, %v15512_v27 }
0x3a80   :  { %v5254_v18 = vpop.permute.xlu0 %5253 }
0x3a81   :  { %v5261_v49 = vrot.slane %v5254_v18, %v12332_v46 }
0x3a84   :  { %v5257_v38 = vpop.permute.xlu0 %5256 }
0x3a85   :  { %v5265_v3 = vrot.slane %v5257_v38, %v12332_v46  ;;  %v6366_v38 = vrot.slane %v14371_v44, %v12233_v25 }
0x3a87   :  { %v5266_v36 = vsel %vm336_vm2, %v5265_v3, %v5261_v49  ;;  %v6374_v6 = vrot.slane %v6366_v38, %v12233_v25 }
0x3a88   :  { %v5268_v7 = vsel %vm486_vm3, %v5266_v36, 0.0  ;;  %v6367_v36 = vcombine.high %v6366_v38, %v6366_v38 }
0x3a89   :  { %5269 = vadd.xlane.f32.xlu0 %v5268_v7  ;;  %v14345_v20 = vpop.xlane.xlu1 %5226  ;;  %v6385_v39 = vrot.slane %v6374_v6, %v12224_v21 }
0x3a8b   :  { %v6392_v41 = vadd.f32 %v6385_v39, %v13459_v60 }
0x3a8d   :  { %v5235_v34 = vpop.permute.xlu1 %5234 }
0x3a8e   :  { %v5243_v23 = vrot.slane %v5235_v34, %v12332_v46  ;;  %v6381_v34 = vrot.slane %v6367_v36, %v12233_v25 }
0x3a90   :  { %v5244_v37 = vsel %vm336_vm2, %v5243_v23, %v5239_v45  ;;  %v6389_v15 = vrot.slane %v6381_v34, %v12224_v21 }
0x3a91   :  { %v5246_v32 = vsel %vm339_vm4, %v5244_v37, 0.0 }
0x3a92   :  { %5247 = vadd.xlane.f32.xlu1 %v5246_v32  ;;  %v6393_v33 = vadd.f32 %v6389_v15, %v13465_v61  ;;  %v6413_v6 = vadd.f32 %v6389_v15, %v13491_v58 }
0x3a94   :  { %11794 = vtanh.f32 %v6393_v33 }
0x3a95   :  { %11796 = vtanh.f32 %v6392_v41 }
0x3a9e   :  { %v11795_v14 = vpop.eup %11794 }
0x3a9f   :  { %5278 = vperm.xlu0 %11404, %v14353_v40   ;;  %v6397_v51 = vmul.f32 %v11795_v14, %v13468_v42 }
0x3aa3   :  { %8798 = vrot.lane.b32.xlu0 %v13844_v26, %s12018_s15  ;;  %5275 = vperm.xlu1 %11405, %v14357_v19  }
0x3aa7   :  { %6347 = vrot.lane.b32.xlu0 %v6343_v0, %s12012_s29  ;;  %v11797_v0 = vpop.eup %11796 }
0x3aab   :  { %6349 = vrot.lane.b32.xlu0 %v6344_v17, %s12012_s29  ;;  %v6396_v17 = vmul.f32 %v11797_v0, %v13468_v42 }
0x3b16   :  { %v14373_v18 = vpop.xlane.xlu0 %5269 }
0x3b1e   :  { %v5279_v49 = vpop.permute.xlu0 %5278 }
0x3b1f   :  { %v14377_v3 = vpop.xlane.xlu1 %5247  ;;  %v5287_v45 = vrot.slane %v5279_v49, %v12332_v46 }
0x3b22   :  { %v14379_v7 = vpop.permute.xlu0 %8798 }
0x3b23   :  { %v5276_v56 = vpop.permute.xlu1 %5275 }
0x3b24   :  { %v5283_v23 = vrot.slane %v5276_v56, %v12332_v46 }
0x3b26   :  { %v6348_v54 = vpop.permute.xlu0 %6347  ;;  %v5288_v62 = vsel %vm336_vm2, %v5287_v45, %v5283_v23  ;;  %v6412_v45 = vadd.f32 %v6385_v39, %v13488_v53  ;;  %v11986_v39 = vld [vmem:[%s15344_s25] ss:$0 sm:$0xff] }
0x3b27   :  { %v6353_v37 = vsel %vm155_vm0, %v6348_v54, 0.0  ;;  %v5290_v32 = vsel %vm486_vm3, %v5288_v62, 0.0  ;;  %v8790_v15 = vadd.f32 %v11986_v39, %v14314_v50  ;;  %v6432_v50 = vsel %vm1270_vm12, %v14371_v44, -inf }
0x3b28   :  { %6354 = vadd.xlane.f32.xlu0 %v6353_v37  ;;  %5291 = vadd.xlane.f32.xlu1 %v5290_v32  ;;  %11798 = vtanh.f32 %v6412_v45 }
0x3b29   :  { %11800 = vtanh.f32 %v6413_v6  ;;  %v8791_v14 = vadd.f32 %v8790_v15, %v13844_v26 }
0x3b2a   :  { %v6350_v55 = vpop.permute.xlu0 %6349 }
0x3b2b   :  { %v6356_v1 = vsel %vm155_vm0, %v6350_v55, 0.0 }
0x3b2c   :  { %6357 = vadd.xlane.f32.xlu1 %v6356_v1 }
0x3b32   :  { %v11799_v54 = vpop.eup %11798 }
0x3b33   :  { %v11801_v62 = vpop.eup %11800  ;;  %v6416_v37 = vmul.f32 %v11799_v54, %v13468_v42 }
0x3b34   :  { %v6417_v32 = vmul.f32 %v11801_v62, %v13468_v42 }
0x3b3d   :  { %6402 = vrot.lane.b32.xlu1 %v6397_v51, %s12018_s15 }
0x3b3e   :  { %6400 = vrot.lane.b32.xlu0 %v6396_v17, %s12018_s15  ;;  %v10655_v17 = vmul.f32 -1.442695, %v8791_v14 }
0x3b40   :  { %11802 = vpow2.f32 %v10655_v17 }
0x3b4a   :  { %v11803_v62 = vpop.eup %11802 }
0x3bb5   :  { %v14397_v27 = vpop.xlane.xlu0 %6354  ;;  %v5292_v38 = vpop.xlane.xlu1 %5291 }
0x3bb9   :  { %v6401_v49 = vpop.permute.xlu0 %6400  ;;  %v14399_v36 = vpop.xlane.xlu1 %6357 }
0x3bba   :  { %v6406_v56 = vsel %vm467_vm1, %v6401_v49, 0.0  ;;  %v6444_v49 = vrot.slane %v14399_v36, %v12332_v46 }
0x3bbb   :  { %6407 = vadd.xlane.f32.xlu0 %v6406_v56  ;;  %v6440_v56 = vrot.slane %v14397_v27, %v12332_v46 }
0x3bbd   :  { %v6403_v34 = vpop.permute.xlu1 %6402  ;;  %v6445_v26 = vsel %vm336_vm2, %v6444_v49, %v6440_v56 }
0x3bbe   :  { %v6409_v23 = vsel %vm467_vm1, %v6403_v34, 0.0 }
0x3bbf   :  { %6410 = vadd.xlane.f32.xlu1 %v6409_v23  ;;  %v6447_v23 = vsel %vm339_vm4, %v6445_v26, -inf }
0x3bd0   :  { %6420 = vrot.lane.b32.xlu1 %v6416_v37, %s12018_s15  ;;  %v8795_v37 = vadd.f32 1.0, %v11803_v62 }
0x3bd1   :  { %6422 = vrot.lane.b32.xlu0 %v6417_v32, %s12018_s15 }
0x3bd2   :  { %11804 = vrcp.f32 %v8795_v37 }
0x3bdc   :  { %v14434_v32 = vpop.eup %11804 }
0x3bdd   :  { %v8801_v39 = vmul.f32 %v14434_v32, %v14379_v7 }
0x3c48   :  { %v14409_v55 = vpop.xlane.xlu0 %6407 }
0x3c49   :  { %v6455_v45 = vrot.slane %v14409_v55, %v12332_v46 }
0x3c4c   :  { %v6423_v33 = vpop.permute.xlu0 %6422  ;;  %v14415_v1 = vpop.xlane.xlu1 %6410 }
0x3c4d   :  { %v6429_v41 = vsel %vm467_vm1, %v6423_v33, 0.0  ;;  %v6459_v34 = vrot.slane %v14415_v1, %v12332_v46  ;;  %v5249_v33 = vadd.f32 %v14377_v3, %v14345_v20 }
0x3c4e   :  { %6430 = vadd.xlane.f32.xlu1 %v6429_v41 }
0x3c4f   :  { %v6460_v6 = vsel %vm336_vm2, %v6459_v34, %v6455_v45  ;;  %v5271_v41 = vadd.f32 %v14373_v18, %v5249_v33 }
0x3c50   :  { %v6421_v0 = vpop.permute.xlu1 %6420  ;;  %v6462_v54 = vsel %vm486_vm3, %v6460_v6, -inf }
0x3c51   :  { %v6426_v51 = vsel %vm467_vm1, %v6421_v0, 0.0  ;;  %v5293_v0 = vadd.f32 %v5292_v38, %v5271_v41 }
0x3c52   :  { %6427 = vadd.xlane.f32.xlu0 %v6426_v51 }
0x3c53   :  { %11806 = vrcp.f32 %v5293_v0 }
0x3c56   :  { %6433 = vmax.xlane.f32.xlu0 %v6432_v50 }
0x3c5a   :  { %6448 = vmax.xlane.f32.xlu0 %v6447_v23 }
0x3c5d   :  { %v14452_v20 = vpop.eup %11806 }
0x3c5e   :  { %6463 = vmax.xlane.f32.xlu0 %v6462_v54  ;;  %v5304_v18 = vrot.slane %v14452_v20, %v12270_v48 }
0x3c60   :  { %v5308_v3 = vmul.f32 %v14338_v59, %v5304_v18 }
0x3c74   :  { %8803 = vrot.lane.b32.xlu0 %v8801_v39, %s12018_s15 }
0x3cdb   :  { %v14442_v14 = vpop.xlane.xlu1 %6430 }
0x3cdc   :  { %v6474_v17 = vrot.slane %v14442_v14, %v12332_v46 }
0x3cdf   :  { %v14444_v51 = vpop.xlane.xlu0 %6427 }
0x3ce0   :  { %v6470_v49 = vrot.slane %v14444_v51, %v12332_v46 }
0x3ce2   :  { %v6475_v7 = vsel %vm336_vm2, %v6474_v17, %v6470_v49 }
0x3ce3   :  { %v6477_v56 = vsel %vm486_vm3, %v6475_v7, -inf  ;;  %v6434_v38 = vpop.xlane.xlu0 %6433 }
0x3ce4   :  { %6478 = vmax.xlane.f32.xlu1 %v6477_v56 }
0x3ce7   :  { %v6449_v50 = vpop.xlane.xlu0 %6448 }
0x3ceb   :  { %v6464_v34 = vpop.xlane.xlu0 %6463 }
0x3cef   :  { %v8804_v59 = vpop.permute.xlu0 %8803 }
0x3cf0   :  { %v8806_v41 = vadd.f32 %v8804_v59, %v8790_v15 }
0x3cf5   :  { %5386 = vperm.xlu1 %11405, %v5308_v3   ;;  %v15513_v3 = vmov 0  }
0x3d71   :  { %v6479_v26 = vpop.xlane.xlu1 %6478 }
0x3d72   :  { %v6480_v45 = vmax.f32 %v6464_v34, %v6479_v26  ;;  %v5300_v26 = vrot.slane %v14452_v20, %v12224_v21 }
0x3d74   :  { %v6481_v23 = vmax.f32 %v6449_v50, %v6480_v45  ;;  %v5309_v45 = vmul.f32 %v14332_v9, %v5300_v26 }
0x3d75   :  { %v5387_v9 = vpop.permute.xlu1 %5386 }
0x3d76   :  { %v6482_v6 = vmax.f32 %v6434_v38, %v6481_v23 }
0x3d78   :  { %v6483_v54 = vsub.f32 %v14371_v44, %v6482_v6  ;;  %v14459_v62 = vrot.slane %v6482_v6, %v12224_v21  ;;  %v14464_v0 = vrot.slane %v6482_v6, %v12270_v48  ;;  %v10649_v44 = vld [vmem:[%s15457_s4 + $0xc] sm:$0x3]  ;;  %v5310_v6 = vmul.f32 %v14335_v63, %v5304_v18 }
0x3d79   :  { %vm9282_vm9 = vcmp.gt.f32.partialorder %v10649_v44, 0.5 }
0x3d7a   :  { %v6484_v37 = vmul.f32 1.442695, %v6483_v54  ;;  %v6497_v39 = vsub.f32 %v14397_v27, %v14459_v62  ;;  %v6503_v17 = vsub.f32 %v14409_v55, %v14459_v62  ;;  %v6504_v27 = vsub.f32 %v14415_v1, %v14464_v0 }
0x3d7b   :  { %v9283_v38 = vsel %vm9282_vm9, 1, %v15513_v3  ;;  %v6498_v23 = vsub.f32 %v14399_v36, %v14464_v0 }
0x3d7c   :  { %11808 = vpow2.f32 %v6484_v37  ;;  %v6499_v33 = vmul.f32 1.442695, %v6497_v39  ;;  %v6505_v7 = vmul.f32 1.442695, %v6503_v17  ;;  %v6507_v55 = vmul.f32 1.442695, %v6504_v27 }
0x3d7d   :  { %v6501_v54 = vmul.f32 1.442695, %v6498_v23  ;;  %v5311_v37 = vmul.f32 %v14357_v19, %v5300_v26  ;;  %v5312_v39 = vmul.f32 %v14353_v40, %v5304_v18  ;;  %v8808_v23 = vsub.f32 1.0, %v14434_v32 }
0x3d7e   :  { %11810 = vpow2.f32 %v6499_v33  ;;  %v5307_v33 = vmul.f32 %v14329_v11, %v5300_v26 }
0x3d7f   :  { %11812 = vtanh.f32 %v8806_v41 }
0x3d80   :  { %11814 = vpow2.f32 %v6505_v7 }
0x3d81   :  { %11816 = vpow2.f32 %v6507_v55  ;;  %v5390_v55 = vmul.f32 %v14242_v16, %v5387_v9 }
0x3d82   :  { %11818 = vpow2.f32 %v6501_v54  ;;  %v14517_v54 = vrot.slane %v15497_v8, %v12233_v25 }
0x3d86   :  { %v14471_v49 = vpop.eup %11808 }
0x3d87   :  { %v6515_v15 = vsel %vm1270_vm12, %v14471_v49, 0.0 }
0x3d88   :  { %v14477_v56 = vpop.eup %11810  ;;  %6516 = vadd.xlane.f32.xlu0 %v6515_v15 }
0x3d89   :  { %6521 = vperm.xlu1 %11405, %v14477_v56   ;;  %v11813_v50 = vpop.eup %11812 }
0x3d8a   :  { %v14482_v1 = vpop.eup %11814 }
0x3d8b   :  { %v14485_v34 = vpop.eup %11816 }
0x3d8c   :  { %v14497_v59 = vpop.eup %11818 }
0x3d8d   :  { %9285 = vperm.xlu1 %11405, %v9283_v38  }
0x3d91   :  { %8810 = vrot.lane.b32.xlu1 %v11813_v50, %s12012_s29 }
0x3d95   :  { %6543 = vperm.xlu1 %11405, %v14482_v1  }
0x3d99   :  { %6546 = vperm.xlu1 %11405, %v14485_v34  }
0x3d9e   :  { %5315 = vperm.xlu0 %11404, %v5309_v45  }
0x3da2   :  { %5320 = vperm.xlu0 %11404, %v5310_v6  }
0x3da6   :  { %5341 = vperm.xlu0 %11404, %v5311_v37   ;;  %v5398_v37 = vsel %vm1521_vm6, %v5390_v55, 0.0 }
0x3daa   :  { %5346 = vperm.xlu0 %11404, %v5312_v39  }
0x3dae   :  { %5381 = vperm.xlu0 %11404, %v5307_v33  }
0x3db2   :  { %6524 = vperm.xlu0 %11404, %v14497_v59  }
0x3e08   :  { %v14500_v36 = vpop.permute.xlu1 %6521 }
0x3e0c   :  { %v14502_v63 = vpop.permute.xlu1 %9285 }
0x3e0d   :  { %15514 = vst [vmem:[#allocation18_spill] sm:$0xff] %v14502_v63  ;;  %vm9287_vm11 = vcmp.eq.s32.totalorder %v14502_v63, 1 }
0x3e10   :  { %v8811_v41 = vpop.permute.xlu1 %8810 }
0x3e14   :  { %v6544_v17 = vpop.permute.xlu1 %6543 }
0x3e15   :  { %v6551_v44 = vrot.slane %v6544_v17, %v12332_v46  ;;  %v14505_v27 = vpop.xlane.xlu0 %6516 }
0x3e18   :  { %v6547_v19 = vpop.permute.xlu1 %6546 }
0x3e19   :  { %v6555_v40 = vrot.slane %v6547_v19, %v12332_v46  ;;  %v5399_v19 = vrot.slane %v5398_v37, 4 }
0x3e1b   :  { %v6556_v11 = vsel %vm336_vm2, %v6555_v40, %v6551_v44  ;;  %v15515_v44 = vld [vmem:[#allocation34_spill] sm:$0xff] }
0x3e1c   :  { %v6558_v18 = vsel %vm486_vm3, %v6556_v11, 0.0  ;;  %v7615_v11 = vrot.slane %v14517_v54, %v12233_v25 }
0x3e1d   :  { %v5316_v7 = vpop.permute.xlu0 %5315  ;;  %6559 = vadd.xlane.f32.xlu1 %v6558_v18 }
0x3e1e   :  { %v5323_v15 = vmul.f32 %v14193_v30, %v5316_v7  ;;  %v8813_v30 = vmul.f32 %v8811_v41, %v8808_v23  ;;  %v7626_v23 = vrot.slane %v7615_v11, %v12224_v21 }
0x3e20   :  { %v5325_v38 = vsel %vm1454_vm14, %v5323_v15, 0.0  ;;  %v7633_v11 = vmul.f32 %v7626_v23, %v13395_v57 }
0x3e21   :  { %v5326_v50 = vrot.slane %v5325_v38, 4  ;;  %v5321_v26 = vpop.permute.xlu0 %5320 }
0x3e22   :  { %v5324_v45 = vmul.f32 %v14184_v52, %v5321_v26  ;;  %v8814_v52 = vmul.f32 %v14434_v32, %v15515_v44 }
0x3e23   :  { %v5327_v6 = vadd.f32 %v5326_v50, %v5325_v38  ;;  %v5400_v50 = vadd.f32 %v5399_v19, %v5398_v37 }
0x3e24   :  { %v5332_v39 = vsel %vm1454_vm14, %v5324_v45, 0.0  ;;  %v14527_v7 = vadd.f32 %v8814_v52, %v8813_v30 }
0x3e25   :  { %v5328_v33 = vrot.slane %v5327_v6, 2  ;;  %v5333_v16 = vrot.slane %v5332_v39, 4  ;;  %v5342_v9 = vpop.permute.xlu0 %5341  ;;  %v5401_v37 = vrot.slane %v5400_v50, 2 }
0x3e26   :  { %v5349_v17 = vmul.f32 %v14203_v43, %v5342_v9 }
0x3e27   :  { %v5334_v40 = vadd.f32 %v5333_v16, %v5332_v39  ;;  %v5329_v8 = vadd.f32 %v5328_v33, %v5327_v6  ;;  %v14537_v16 = vsel %vm9287_vm11, %v14527_v7, %v15515_v44  ;;  %v6529_v44 = vrot.slane %v14500_v36, %v12332_v46 }
0x3e28   :  { %v5351_v18 = vsel %vm1454_vm14, %v5349_v17, 0.0  ;;  %15516 = vst [vmem:[#allocation23_spill] sm:$0xff] %v14537_v16 }
0x3e29   :  { %v5335_v15 = vrot.slane %v5334_v40, 2  ;;  %v5352_v41 = vrot.slane %v5351_v18, 4  ;;  %v5347_v55 = vpop.permute.xlu0 %5346  ;;  %v5330_v32 = vrot.slane %v5329_v8, 1 }
0x3e2a   :  { %v5350_v38 = vmul.f32 %v14215_v31, %v5347_v55 }
0x3e2b   :  { %v5336_v43 = vadd.f32 %v5335_v15, %v5334_v40  ;;  %v5353_v26 = vadd.f32 %v5352_v41, %v5351_v18  ;;  %v5331_v52 = vadd.f32 %v5330_v32, %v5329_v8 }
0x3e2c   :  { %v5358_v45 = vsel %vm1454_vm14, %v5350_v38, 0.0  ;;  %v5402_v38 = vadd.f32 %v5401_v37, %v5400_v50  ;;  %v5295_v50 = vmul.f32 %v14452_v20, %v14324_v13  ;;  %v6509_v37 = vsub.f32 %v14444_v51, %v14459_v62 }
0x3e2d   :  { %v5337_v6 = vrot.slane %v5336_v43, 1  ;;  %v5354_v39 = vrot.slane %v5353_v26, 2  ;;  %v5359_v33 = vrot.slane %v5358_v45, 4  ;;  %v5382_v30 = vpop.permute.xlu0 %5381  ;;  %v5365_v8 = vmul.f32 0.5, %v5331_v52 }
0x3e2e   :  { %v5389_v31 = vmul.f32 %v14228_v2, %v5382_v30  ;;  %9297 = vrot.lane.b32.xlu1 %v14537_v16, %s12012_s29  ;;  %v5403_v30 = vrot.slane %v5402_v38, 1 }
0x3e2f   :  { %v5338_v9 = vadd.f32 %v5337_v6, %v5336_v43  ;;  %v5355_v17 = vadd.f32 %v5354_v39, %v5353_v26  ;;  %v5360_v19 = vadd.f32 %v5359_v33, %v5358_v45 }
0x3e30   :  { %v5391_v40 = vsel %vm1521_vm6, %v5389_v31, 0.0 }
0x3e31   :  { %v5356_v18 = vrot.slane %v5355_v17, 1  ;;  %v5361_v15 = vrot.slane %v5360_v19, 2  ;;  %v5392_v41 = vrot.slane %v5391_v40, 4  ;;  %v6525_v55 = vpop.permute.xlu0 %6524  ;;  %v5366_v43 = vmul.f32 0.5, %v5338_v9 }
0x3e32   :  { %v6533_v2 = vrot.slane %v6525_v55, %v12332_v46  ;;  %7637 = vrot.lane.b32.xlu1 %v7633_v11, %s12012_s29 }
0x3e33   :  { %v5362_v26 = vadd.f32 %v5361_v15, %v5360_v19  ;;  %v5393_v45 = vadd.f32 %v5392_v41, %v5391_v40  ;;  %v5357_v6 = vadd.f32 %v5356_v18, %v5355_v17  ;;  %v5369_v36 = vsel %vm336_vm2, %v5366_v43, %v5365_v8 }
0x3e34   :  { %v6534_v32 = vsel %vm336_vm2, %v6533_v2, %v6529_v44  ;;  %v5371_v17 = vadd.f32 %v5369_v36, %v5295_v50  ;;  %v5404_v40 = vadd.f32 %v5403_v30, %v5402_v38  ;;  %v6510_v41 = vsub.f32 %v14442_v14, %v14464_v0  ;;  %v14574_v0 = vld [vmem:[%s15348_s27] ss:$0 sm:$0xff] }
0x3e35   :  { %v5363_v23 = vrot.slane %v5362_v26, 1  ;;  %v5394_v39 = vrot.slane %v5393_v45, 2  ;;  %v6536_v33 = vsel %vm339_vm4, %v6534_v32, 0.0  ;;  %v5372_v9 = vmul.f32 0.3, %v5357_v6 }
0x3e36   :  { %6537 = vadd.xlane.f32.xlu0 %v6536_v33  ;;  %v6511_v44 = vmul.f32 1.442695, %v6509_v37  ;;  %v6513_v13 = vmul.f32 1.442695, %v6510_v41  ;;  %v15518_v33 = vld [vmem:[#allocation16_spill] sm:$0xff] }
0x3e37   :  { %v5364_v31 = vadd.f32 %v5363_v23, %v5362_v26  ;;  %v5395_v55 = vadd.f32 %v5394_v39, %v5393_v45  ;;  %v14578_v45 = vadd.f32 %v14574_v0, %v14312_v10 }
0x3e39   :  { %v5373_v19 = vmul.f32 0.3, %v5364_v31  ;;  %v5396_v52 = vrot.slane %v5395_v55, 1  ;;  %v7656_v8 = vrot.slane %v14578_v45, %v12233_v25 }
0x3e3b   :  { %v5376_v11 = vsel %vm336_vm2, %v5373_v19, %v5372_v9  ;;  %v5397_v18 = vadd.f32 %v5396_v52, %v5395_v55  ;;  %v7664_v32 = vrot.slane %v7656_v8, %v12233_v25 }
0x3e3c   :  { %v5378_v15 = vadd.f32 %v5376_v11, %v5371_v17  ;;  %v7608_v11 = vcombine.high %v14517_v54, %v14517_v54 }
0x3e3d   :  { %v5407_v2 = vsel %vm336_vm2, %v5404_v40, %v5397_v18  ;;  %v7675_v23 = vrot.slane %v7664_v32, %v12224_v21 }
0x3e3e   :  { %v5409_v43 = vadd.f32 %v5407_v2, %v5378_v15  ;;  %v7622_v18 = vrot.slane %v7608_v11, %v12233_v25 }
0x3e3f   :  { %v7682_v10 = vadd.f32 %v7675_v23, %v13459_v60  ;;  %v7702_v2 = vadd.f32 %v7675_v23, %v13488_v53 }
0x3e40   :  { %11820 = vlog2.f32 %v5409_v43  ;;  %v7630_v15 = vrot.slane %v7622_v18, %v12224_v21 }
0x3e41   :  { %11822 = vpow2.f32 %v6511_v44 }
0x3e42   :  { %11824 = vpow2.f32 %v6513_v13  ;;  %v7634_v41 = vmul.f32 %v7630_v15, %v13405_v28 }
0x3e43   :  { %11826 = vtanh.f32 %v7682_v10 }
0x3e44   :  { %11828 = vtanh.f32 %v7702_v2 }
0x3e4a   :  { %v11821_v51 = vpop.eup %11820 }
0x3e4b   :  { %v14559_v20 = vpop.eup %11822  ;;  %v5411_v62 = vmul.f32 0.6931472, %v11821_v51 }
0x3e4c   :  { %6565 = vperm.xlu0 %11404, %v14559_v20   ;;  %v14568_v14 = vpop.eup %11824 }
0x3e4d   :  { %v5418_v26 = vsel %vm5417_vm15, %v5411_v62, 0.0  ;;  %v11827_v31 = vpop.eup %11826  ;;  %v7657_v62 = vcombine.high %v7656_v8, %v7656_v8 }
0x3e4e   :  { %10627 = vst.msk [vmem:[%s15353_s28 + $0x6] sm:$0x3] %vm1270_vm12, %v5418_v26  ;;  %v7686_v55 = vmul.f32 %v11827_v31, %v13468_v42  ;;  %v11829_v51 = vpop.eup %11828 }
0x3e4f   :  { %v7706_v54 = vmul.f32 %v11829_v51, %v13468_v42  ;;  %v7671_v26 = vrot.slane %v7657_v62, %v12233_v25 }
0x3e50   :  { %6568 = vperm.xlu0 %11404, %v14568_v14  }
0x3eaa   :  { %v14583_v6 = vpop.xlane.xlu1 %6559 }
0x3eae   :  { %v9298_v39 = vpop.permute.xlu1 %9297 }
0x3eaf   :  { %10660 = vmatmul.mubr.msk.f32.vlgmr.msra.gmra.mrb[40].mxu0 %vm155_vm0, %v9298_v39  ;;  %v7679_v39 = vrot.slane %v7671_v26, %v12224_v21 }
0x3eb0   :  { %11383 = vmatpush3.bf16.msra.mxu0 %v15518_v33  ;;  %11136 = vmatprep.mubr.msk.f32.mxu0 %vm12017_vm5, %v15499_v4 }
0x3eb1   :  { %11384 = vmatprep.subr.bf16.mxu0 %v15500_v22  ;;  %v7683_v23 = vadd.f32 %v7679_v39, %v13465_v61 }
0x3eb2   :  { %v7638_v30 = vpop.permute.xlu1 %7637 }
0x3eb3   :  { %v7643_v36 = vsel %vm155_vm0, %v7638_v30, 0.0  ;;  %11830 = vtanh.f32 %v7683_v23 }
0x3eb4   :  { %7644 = vadd.xlane.f32.xlu1 %v7643_v36 }
0x3ebd   :  { %v11831_v10 = vpop.eup %11830 }
0x3ebe   :  { %v7687_v30 = vmul.f32 %v11831_v10, %v13468_v42 }
0x3ec3   :  { %v14595_v50 = vpop.xlane.xlu0 %6537 }
0x3ec5   :  { %7690 = vrot.lane.b32.xlu1 %v7686_v55, %s12018_s15 }
0x3ecb   :  { %v6566_v37 = vpop.permute.xlu0 %6565 }
0x3ecc   :  { %v6573_v19 = vrot.slane %v6566_v37, %v12332_v46 }
0x3ecf   :  { %v6569_v9 = vpop.permute.xlu0 %6568 }
0x3ed0   :  { %v6577_v52 = vrot.slane %v6569_v9, %v12332_v46  ;;  %v7722_v9 = vsel %vm1270_vm12, %v14578_v45, -inf }
0x3ed2   :  { %v6578_v17 = vsel %vm336_vm2, %v6577_v52, %v6573_v19 }
0x3ed3   :  { %v6580_v40 = vsel %vm486_vm3, %v6578_v17, 0.0 }
0x3ed4   :  { %6581 = vadd.xlane.f32.xlu0 %v6580_v40 }
0x3eea   :  { %7639 = vrot.lane.b32.xlu0 %v7634_v41, %s12012_s29  ;;  %v7703_v41 = vadd.f32 %v7679_v39, %v13491_v58 }
0x3eec   :  { %11832 = vtanh.f32 %v7703_v41 }
0x3ef6   :  { %v11833_v2 = vpop.eup %11832 }
0x3f41   :  { %v14607_v44 = vpop.xlane.xlu1 %7644 }
0x3f42   :  { %v7730_v52 = vrot.slane %v14607_v44, %v12332_v46 }
0x3f45   :  { %v7691_v43 = vpop.permute.xlu1 %7690 }
0x3f46   :  { %v7696_v13 = vsel %vm467_vm1, %v7691_v43, 0.0  ;;  %v7707_v43 = vmul.f32 %v11833_v2, %v13468_v42 }
0x3f47   :  { %7697 = vadd.xlane.f32.xlu1 %v7696_v13 }
0x3f58   :  { %7710 = vrot.lane.b32.xlu1 %v7706_v54, %s12018_s15 }
0x3f61   :  { %v6582_v38 = vpop.xlane.xlu0 %6581 }
0x3f65   :  { %v7640_v32 = vpop.permute.xlu0 %7639 }
0x3f66   :  { %v7646_v33 = vsel %vm155_vm0, %v7640_v32, 0.0 }
0x3f67   :  { %7647 = vadd.xlane.f32.xlu0 %v7646_v33  ;;  %v6539_v33 = vadd.f32 %v14595_v50, %v14505_v27 }
0x3f69   :  { %v6561_v23 = vadd.f32 %v14583_v6, %v6539_v33 }
0x3f7d   :  { %7692 = vrot.lane.b32.xlu0 %v7687_v30, %s12018_s15  ;;  %v6583_v30 = vadd.f32 %v6582_v38, %v6561_v23 }
0x3f7f   :  { %11834 = vrcp.f32 %v6583_v30 }
0x3f82   :  { %v14619_v36 = vpop.f32.mrb[40].mxu0 }
0x3f83   :  { %v14621_v8 = vpop.f32.mrb[41].mxu0 }
0x3f89   :  { %v14662_v27 = vpop.eup %11834 }
0x3f8a   :  { %v6590_v6 = vrot.slane %v14662_v27, %v12224_v21  ;;  %v6594_v38 = vrot.slane %v14662_v27, %v12270_v48 }
0x3f8c   :  { %v6599_v50 = vmul.f32 %v14482_v1, %v6590_v6  ;;  %v6598_v41 = vmul.f32 %v14497_v59, %v6594_v38 }
0x3fd4   :  { %v14623_v31 = vpop.xlane.xlu1 %7697 }
0x3fd5   :  { %v7745_v51 = vrot.slane %v14623_v31, %v12332_v46 }
0x3fd8   :  { %v7711_v55 = vpop.permute.xlu1 %7710 }
0x3fd9   :  { %v7716_v37 = vsel %vm467_vm1, %v7711_v55, 0.0 }
0x3fda   :  { %7717 = vadd.xlane.f32.xlu1 %v7716_v37 }
0x3fde   :  { %7723 = vmax.xlane.f32.xlu1 %v7722_v9 }
0x3ff4   :  { %v14628_v19 = vpop.xlane.xlu0 %7647 }
0x3ff5   :  { %v7734_v17 = vrot.slane %v14628_v19, %v12332_v46 }
0x3ff7   :  { %v7735_v40 = vsel %vm336_vm2, %v7734_v17, %v7730_v52 }
0x3ff8   :  { %v7693_v11 = vpop.permute.xlu0 %7692  ;;  %v7737_v18 = vsel %vm339_vm4, %v7735_v40, -inf  ;;  %v6600_v40 = vmul.f32 %v14485_v34, %v6594_v38 }
0x3ff9   :  { %7738 = vmax.xlane.f32.xlu1 %v7737_v18  ;;  %v7699_v15 = vsel %vm467_vm1, %v7693_v11, 0.0  ;;  %v6601_v11 = vmul.f32 %v14559_v20, %v6590_v6  ;;  %v6602_v18 = vmul.f32 %v14568_v14, %v6594_v38  ;;  %v14677_v20 = vld [vmem:[%s15350_s11] sm:$0xf] }
0x3ffa   :  { %7700 = vadd.xlane.f32.xlu0 %v7699_v15  ;;  %v6597_v15 = vmul.f32 %v14477_v56, %v6590_v6  ;;  %v14696_v6 = vld [vmem:[%s15351_s12] sm:$0xf] }
0x4010   :  { %7712 = vrot.lane.b32.xlu0 %v7707_v43, %s12018_s15 }
0x4067   :  { %v14652_v10 = vpop.xlane.xlu1 %7717 }
0x4068   :  { %v7760_v37 = vrot.slane %v14652_v10, %v12332_v46 }
0x406b   :  { %v7724_v1 = vpop.xlane.xlu1 %7723 }
0x4086   :  { %v7739_v2 = vpop.xlane.xlu1 %7738 }
0x4087   :  { %v14640_v13 = vpop.xlane.xlu0 %7700 }
0x4088   :  { %v7749_v54 = vrot.slane %v14640_v13, %v12332_v46 }
0x408a   :  { %v7750_v62 = vsel %vm336_vm2, %v7749_v54, %v7745_v51 }
0x408b   :  { %v7713_v26 = vpop.permute.xlu0 %7712  ;;  %v7752_v32 = vsel %vm486_vm3, %v7750_v62, -inf }
0x408c   :  { %7753 = vmax.xlane.f32.xlu1 %v7752_v32  ;;  %v7719_v39 = vsel %vm467_vm1, %v7713_v26, 0.0 }
0x408d   :  { %7720 = vadd.xlane.f32.xlu0 %v7719_v39 }
0x4119   :  { %v7754_v43 = vpop.xlane.xlu1 %7753 }
0x411a   :  { %v14654_v55 = vpop.xlane.xlu0 %7720 }
0x411b   :  { %v7764_v9 = vrot.slane %v14654_v55, %v12332_v46 }
0x411d   :  { %v7765_v52 = vsel %vm336_vm2, %v7764_v9, %v7760_v37 }
0x411e   :  { %v7767_v17 = vsel %vm486_vm3, %v7765_v52, -inf  ;;  %v14690_v52 = vld [vmem:[%s15350_s11 + $0x4] sm:$0xf] }
0x411f   :  { %7768 = vmax.xlane.f32.xlu1 %v7767_v17 }
0x4130   :  { %6605 = vperm.xlu1 %11405, %v6599_v50  }
0x4134   :  { %6610 = vperm.xlu1 %11405, %v6600_v40  }
0x4138   :  { %6631 = vperm.xlu1 %11405, %v6601_v11  }
0x413c   :  { %6636 = vperm.xlu1 %11405, %v6602_v18  }
0x4140   :  { %6671 = vperm.xlu1 %11405, %v6597_v15  }
0x4144   :  { %6676 = vperm.xlu1 %11405, %v6598_v41  }
0x41ac   :  { %v7769_v51 = vpop.xlane.xlu1 %7768 }
0x41ad   :  { %v7770_v54 = vmax.f32 %v7754_v43, %v7769_v51 }
0x41af   :  { %v7771_v62 = vmax.f32 %v7739_v2, %v7770_v54 }
0x41b0   :  { %v6606_v34 = vpop.permute.xlu1 %6605 }
0x41b1   :  { %v7772_v26 = vmax.f32 %v7724_v1, %v7771_v62  ;;  %v6613_v14 = vmul.f32 %v14677_v20, %v6606_v34  ;;  %v14704_v1 = vld [vmem:[%s15351_s12 + $0x4] sm:$0xf] }
0x41b3   :  { %v7773_v56 = vsub.f32 %v14578_v45, %v7772_v26  ;;  %v14682_v59 = vrot.slane %v7772_v26, %v12224_v21  ;;  %v6615_v32 = vsel %vm1454_vm14, %v6613_v14, 0.0 }
0x41b4   :  { %v6616_v39 = vrot.slane %v6615_v32, 4  ;;  %v6611_v33 = vpop.permute.xlu1 %6610 }
0x41b5   :  { %v7774_v23 = vmul.f32 1.442695, %v7773_v56  ;;  %v7787_v30 = vsub.f32 %v14607_v44, %v14682_v59  ;;  %v6614_v45 = vmul.f32 %v14690_v52, %v6611_v33 }
0x41b6   :  { %v6617_v9 = vadd.f32 %v6616_v39, %v6615_v32  ;;  %v14711_v39 = vrot.slane %v7772_v26, %v12270_v48 }
0x41b7   :  { %11836 = vpow2.f32 %v7774_v23  ;;  %v7789_v37 = vmul.f32 1.442695, %v7787_v30  ;;  %v6622_v44 = vsel %vm1454_vm14, %v6614_v45, 0.0  ;;  %v14716_v23 = vld [vmem:[%s15352_s13] sm:$0xff] }
0x41b8   :  { %v6632_v17 = vpop.permute.xlu1 %6631  ;;  %v6623_v38 = vrot.slane %v6622_v44, 4  ;;  %v6618_v11 = vrot.slane %v6617_v9, 2 }
0x41b9   :  { %11838 = vpow2.f32 %v7789_v37  ;;  %v6639_v50 = vmul.f32 %v14696_v6, %v6632_v17 }
0x41ba   :  { %v6624_v41 = vadd.f32 %v6623_v38, %v6622_v44  ;;  %v6619_v62 = vadd.f32 %v6618_v11, %v6617_v9 }
0x41bb   :  { %v6641_v40 = vsel %vm1454_vm14, %v6639_v50, 0.0 }
0x41bc   :  { %v6642_v18 = vrot.slane %v6641_v40, 4  ;;  %v6637_v15 = vpop.permute.xlu1 %6636  ;;  %v6625_v51 = vrot.slane %v6624_v41, 2  ;;  %v6620_v26 = vrot.slane %v6619_v62, 1 }
0x41bd   :  { %v6640_v2 = vmul.f32 %v14704_v1, %v6637_v15 }
0x41be   :  { %v6643_v43 = vadd.f32 %v6642_v18, %v6641_v40  ;;  %v6626_v33 = vadd.f32 %v6625_v51, %v6624_v41  ;;  %v7788_v18 = vsub.f32 %v14628_v19, %v14711_v39  ;;  %v14730_v41 = vld [vmem:[%s15352_s13 + $0x8] sm:$0xff]  ;;  %v7793_v19 = vsub.f32 %v14623_v31, %v14682_v59 }
0x41bf   :  { %v6648_v54 = vsel %vm1454_vm14, %v6640_v2, 0.0  ;;  %v6585_v31 = vmul.f32 %v14662_v27, %v14471_v49 }
0x41c0   :  { %v6644_v34 = vrot.slane %v6643_v43, 2  ;;  %v6649_v14 = vrot.slane %v6648_v54, 4  ;;  %v6672_v56 = vpop.permute.xlu1 %6671  ;;  %v6627_v50 = vrot.slane %v6626_v33, 1  ;;  %v7791_v3 = vmul.f32 1.442695, %v7788_v18 }
0x41c1   :  { %v14708_v32 = vpop.eup %11836  ;;  %v6679_v30 = vmul.f32 %v14716_v23, %v6672_v56 }
0x41c2   :  { %v6645_v37 = vadd.f32 %v6644_v34, %v6643_v43  ;;  %v6650_v45 = vadd.f32 %v6649_v14, %v6648_v54  ;;  %v7805_v9 = vsel %vm1270_vm12, %v14708_v32, 0.0  ;;  %v6628_v43 = vadd.f32 %v6627_v50, %v6626_v33 }
0x41c3   :  { %v14721_v17 = vpop.eup %11838  ;;  %v6681_v44 = vsel %vm1521_vm6, %v6679_v30, 0.0  ;;  %7806 = vadd.xlane.f32.xlu0 %v7805_v9  ;;  %v6621_v14 = vadd.f32 %v6620_v26, %v6619_v62  ;;  %11840 = vpow2.f32 %v7791_v3  ;;  %v7795_v62 = vmul.f32 1.442695, %v7793_v19 }
0x41c4   :  { %v6651_v38 = vrot.slane %v6650_v45, 2  ;;  %v6682_v40 = vrot.slane %v6681_v44, 4  ;;  %7811 = vperm.xlu1 %11405, %v14721_v17   ;;  %v6677_v11 = vpop.permute.xlu1 %6676  ;;  %v6646_v15 = vrot.slane %v6645_v37, 1  ;;  %v6656_v63 = vmul.f32 0.5, %v6628_v43 }
0x41c5   :  { %v6680_v2 = vmul.f32 %v14730_v41, %v6677_v11  ;;  %v6655_v58 = vmul.f32 0.5, %v6621_v14  ;;  %11842 = vpow2.f32 %v7795_v62 }
0x41c6   :  { %v6652_v51 = vadd.f32 %v6651_v38, %v6650_v45  ;;  %v6683_v54 = vadd.f32 %v6682_v40, %v6681_v44  ;;  %v6647_v16 = vadd.f32 %v6646_v15, %v6645_v37  ;;  %v7794_v45 = vsub.f32 %v14640_v13, %v14711_v39 }
0x41c7   :  { %v6688_v34 = vsel %vm1521_vm6, %v6680_v2, 0.0  ;;  %v6659_v50 = vsel %vm336_vm2, %v6656_v63, %v6655_v58 }
0x41c8   :  { %v6653_v56 = vrot.slane %v6652_v51, 1  ;;  %v6684_v30 = vrot.slane %v6683_v54, 2  ;;  %v6689_v9 = vrot.slane %v6688_v34, 4  ;;  %v6662_v44 = vmul.f32 0.3, %v6647_v16 }
0x41c9   :  { %v6661_v18 = vadd.f32 %v6659_v50, %v6585_v31 }
0x41ca   :  { %v6654_v5 = vadd.f32 %v6653_v56, %v6652_v51  ;;  %v6685_v47 = vadd.f32 %v6684_v30, %v6683_v54  ;;  %v6690_v12 = vadd.f32 %v6689_v9, %v6688_v34  ;;  %v7799_v30 = vsub.f32 %v14652_v10, %v14682_v59 }
0x41cb   :  { %v7800_v10 = vsub.f32 %v14654_v55, %v14711_v39 }
0x41cc   :  { %v6663_v11 = vmul.f32 0.3, %v6654_v5  ;;  %v6691_v33 = vrot.slane %v6690_v12, 2  ;;  %v6686_v26 = vrot.slane %v6685_v47, 1  ;;  %v7797_v5 = vmul.f32 1.442695, %v7794_v45 }
0x41cd   :  { %v14743_v58 = vpop.eup %11840  ;;  %v7803_v59 = vmul.f32 1.442695, %v7800_v10 }
0x41ce   :  { %v6692_v38 = vadd.f32 %v6691_v33, %v6690_v12  ;;  %v6666_v37 = vsel %vm336_vm2, %v6663_v11, %v6662_v44  ;;  %v6687_v15 = vadd.f32 %v6686_v26, %v6685_v47  ;;  %11844 = vpow2.f32 %v7797_v5 }
0x41cf   :  { %v6668_v2 = vadd.f32 %v6666_v37, %v6661_v18  ;;  %v11843_v12 = vpop.eup %11842  ;;  %v7801_v33 = vmul.f32 1.442695, %v7799_v30 }
0x41d0   :  { %v6693_v40 = vrot.slane %v6692_v38, 1 }
0x41d2   :  { %v6694_v3 = vadd.f32 %v6693_v40, %v6692_v38 }
0x41d4   :  { %v6697_v13 = vsel %vm336_vm2, %v6694_v3, %v6687_v15 }
0x41d5   :  { %v6699_v43 = vadd.f32 %v6697_v13, %v6668_v2 }
0x41d7   :  { %11846 = vlog2.f32 %v6699_v43 }
0x41d8   :  { %v11845_v49 = vpop.eup %11844  ;;  %11848 = vpow2.f32 %v7801_v33 }
0x41d9   :  { %7814 = vperm.xlu0 %11404, %v14743_v58   ;;  %11850 = vpow2.f32 %v7803_v59 }
0x41dd   :  { %7833 = vperm.xlu0 %11404, %v11843_v12  }
0x41e1   :  { %v11847_v63 = vpop.eup %11846  ;;  %7836 = vperm.xlu0 %11404, %v11845_v49  }
0x41e2   :  { %v6701_v16 = vmul.f32 0.6931472, %v11847_v63  ;;  %v11849_v38 = vpop.eup %11848 }
0x41e3   :  { %v14764_v31 = vpop.eup %11850 }
0x41e4   :  { %v6708_v47 = vsel %vm6707_vm10, %v6701_v16, 0.0  ;;  %v14773_v16 = vadd.f32 %v14619_v36, %v12230_v24 }
0x41e5   :  { %10637 = vst.msk [vmem:[%s15353_s28 + $0x8] sm:$0x3] %vm1270_vm12, %v6708_v47 }
0x41e6   :  { %v9379_v27 = vrot.slane %v14773_v16, %v12233_v25 }
0x41e8   :  { %v9380_v47 = vcombine.high %v9379_v27, %v9379_v27 }
0x4243   :  { %v7812_v54 = vpop.permute.xlu1 %7811 }
0x4244   :  { %v7819_v14 = vrot.slane %v7812_v54, %v12332_v46  ;;  %v9387_v54 = vrot.slane %v9379_v27, %v12233_v25 }
0x4250   :  { %v7807_v51 = vpop.xlane.xlu0 %7806 }
0x4258   :  { %v7815_v34 = vpop.permute.xlu0 %7814 }
0x4259   :  { %v7823_v56 = vrot.slane %v7815_v34, %v12332_v46 }
0x425b   :  { %v7824_v9 = vsel %vm336_vm2, %v7823_v56, %v7819_v14  ;;  %v9398_v56 = vrot.slane %v9387_v54, %v12224_v21 }
0x425c   :  { %v7834_v19 = vpop.permute.xlu0 %7833  ;;  %v7826_v11 = vsel %vm339_vm4, %v7824_v9, 0.0 }
0x425d   :  { %7827 = vadd.xlane.f32.xlu1 %v7826_v11  ;;  %v7841_v62 = vrot.slane %v7834_v19, %v12332_v46  ;;  %v9405_v9 = vadd.f32 %v9398_v56, %v12238_v29  ;;  %v8897_v29 = vrot.slane %v14527_v7, %v12233_v25  ;;  %v15524_v56 = vld [vmem:[#allocation14_spill] sm:$0xff] }
0x4260   :  { %v7837_v45 = vpop.permute.xlu0 %7836 }
0x4261   :  { %v7845_v50 = vrot.slane %v7837_v45, %v12332_v46 }
0x4263   :  { %v7846_v44 = vsel %vm336_vm2, %v7845_v50, %v7841_v62  ;;  %v15520_v50 = vld [vmem:[#allocation6_spill] sm:$0xff] }
0x4264   :  { %v7848_v26 = vsel %vm486_vm3, %v7846_v44, 0.0 }
0x4265   :  { %7849 = vadd.xlane.f32.xlu0 %v7848_v26  ;;  %v8905_v26 = vrot.slane %v8897_v29, %v12233_v25 }
0x426e   :  { %7855 = vperm.xlu1 %11405, %v11849_v38  }
0x427b   :  { %7858 = vperm.xlu0 %11404, %v14764_v31  }
0x42ea   :  { %v7828_v37 = vpop.xlane.xlu1 %7827 }
0x42eb   :  { %v7829_v39 = vadd.f32 %v7828_v37, %v7807_v51  ;;  %v9394_v51 = vrot.slane %v9380_v47, %v12233_v25  ;;  %v15522_v47 = vld [vmem:[#allocation13_spill] sm:$0xff] }
0x42ed   :  { %v9402_v36 = vrot.slane %v9394_v51, %v12224_v21 }
0x42ee   :  { %v7856_v18 = vpop.permute.xlu1 %7855 }
0x42ef   :  { %v7863_v15 = vrot.slane %v7856_v18, %v12332_v46  ;;  %v9406_v11 = vadd.f32 %v9402_v36, %v12245_v35  ;;  %v8898_v35 = vcombine.high %v8897_v29, %v8897_v29  ;;  %v15525_v36 = vld [vmem:[#allocation10_spill] sm:$0xff] }
0x42f2   :  { %v7850_v40 = vpop.xlane.xlu0 %7849 }
0x42f3   :  { %v7851_v13 = vadd.f32 %v7850_v40, %v7829_v39 }
0x42fa   :  { %v7859_v5 = vpop.permute.xlu0 %7858 }
0x42fb   :  { %v7867_v3 = vrot.slane %v7859_v5, %v12332_v46 }
0x42fd   :  { %v7868_v2 = vsel %vm336_vm2, %v7867_v3, %v7863_v15  ;;  %v15521_v3 = vld [vmem:[#allocation7_spill] sm:$0xff] }
0x42fe   :  { %v7870_v55 = vsel %vm486_vm3, %v7868_v2, 0.0 }
0x42ff   :  { %7871 = vadd.xlane.f32.xlu1 %v7870_v55 }
0x438c   :  { %v7872_v43 = vpop.xlane.xlu1 %7871 }
0x438d   :  { %v7873_v63 = vadd.f32 %v7872_v43, %v7851_v13 }
0x438f   :  { %11852 = vrcp.f32 %v7873_v63 }
0x4390   :  { %11854 = vtanh.f32 %v9405_v9 }
0x4391   :  { %11856 = vtanh.f32 %v9406_v11 }
0x4399   :  { %v14778_v34 = vpop.eup %11852 }
0x439a   :  { %v7880_v14 = vrot.slane %v14778_v34, %v12224_v21  ;;  %v14786_v24 = vrot.slane %v14778_v34, %v12270_v48  ;;  %v11855_v62 = vpop.eup %11854 }
0x439b   :  { %v11857_v44 = vpop.eup %11856 }
0x439c   :  { %v7889_v30 = vmul.f32 %v11843_v12, %v7880_v14  ;;  %v7890_v19 = vmul.f32 %v11845_v49, %v14786_v24  ;;  %v7891_v33 = vmul.f32 %v11849_v38, %v7880_v14  ;;  %v7887_v12 = vmul.f32 %v14721_v17, %v7880_v14 }
0x439d   :  { %v7888_v45 = vmul.f32 %v14743_v58, %v14786_v24  ;;  %v9409_v49 = vmul.f32 %v11855_v62, %v15520_v50  ;;  %v9410_v10 = vmul.f32 %v11857_v44, %v15520_v50  ;;  %v8916_v17 = vrot.slane %v8905_v26, %v12224_v21  ;;  %v11995_v62 = vld [vmem:[%s15450_s17 + $0x4] sm:$0xf] }
0x439e   :  { %7895 = vperm.xlu0 %11404, %v7889_v30   ;;  %v8912_v58 = vrot.slane %v8898_v35, %v12233_v25  ;;  %v11996_v35 = vld [vmem:[%s15451_s16] ss:$0 sm:$0xff] }
0x439f   :  { %v8923_v59 = vmul.f32 %v8916_v17, %v13395_v57 }
0x43a0   :  { %v8920_v38 = vrot.slane %v8912_v58, %v12224_v21 }
0x43a2   :  { %7900 = vperm.xlu0 %11404, %v7890_v19   ;;  %v8924_v37 = vmul.f32 %v8920_v38, %v13405_v28 }
0x43a6   :  { %7921 = vperm.xlu0 %11404, %v7891_v33  }
0x43aa   :  { %7961 = vperm.xlu0 %11404, %v7887_v12   ;;  %v11994_v12 = vld [vmem:[%s15450_s17] sm:$0xf] }
0x43ae   :  { %7966 = vperm.xlu0 %11404, %v7888_v45  }
0x43b2   :  { %9413 = vrot.lane.b32.xlu0 %v9409_v49, %s12014_s30 }
0x43b6   :  { %9415 = vrot.lane.b32.xlu0 %v9410_v10, %s12014_s30 }
0x43ba   :  { %8817 = vrot.lane.b32.xlu0 %v14527_v7, %s12012_s29  ;;  %v9370_v7 = vadd.f32 %v14621_v8, %v15521_v3  ;;  %v15523_v8 = vld [vmem:[#allocation8_spill] sm:$0xff] }
0x43bc   :  { %v9534_v55 = vrot.slane %v9370_v7, %v12233_v25  ;;  %v7892_v7 = vmul.f32 %v14764_v31, %v14786_v24 }
0x43be   :  { %8927 = vrot.lane.b32.xlu0 %v8923_v59, %s12012_s29  ;;  %v9542_v13 = vrot.slane %v9534_v55, %v12233_v25  ;;  %v9535_v19 = vcombine.high %v9534_v55, %v9534_v55 }
0x43c0   :  { %v9553_v63 = vrot.slane %v9542_v13, %v12224_v21  ;;  %v9549_v11 = vrot.slane %v9535_v19, %v12233_v25 }
0x43c2   :  { %8929 = vrot.lane.b32.xlu0 %v8924_v37, %s12012_s29  ;;  %v9666_v54 = vadd.f32 %v9553_v63, %v15523_v8  ;;  %v9557_v33 = vrot.slane %v9549_v11, %v12224_v21  ;;  %v9560_v45 = vadd.f32 %v11994_v12, %v9553_v63 }
0x43c4   :  { %11858 = vtanh.f32 %v9666_v54  ;;  %v9561_v29 = vadd.f32 %v11995_v62, %v9557_v33  ;;  %v15526_v54 = vld [vmem:[#allocation9_spill] sm:$0xff] }
0x43c5   :  { %11860 = vtanh.f32 %v9560_v45 }
0x43c6   :  { %11862 = vtanh.f32 %v9561_v29 }
0x43ce   :  { %v11859_v30 = vpop.eup %11858 }
0x43cf   :  { %v9670_v9 = vmul.f32 %v11859_v30, %v15525_v36  ;;  %v11861_v50 = vpop.eup %11860 }
0x43d0   :  { %v9564_v26 = vmul.f32 %v11996_v35, %v11861_v50  ;;  %v11863_v10 = vpop.eup %11862 }
0x43d1   :  { %v9565_v58 = vmul.f32 %v11996_v35, %v11863_v10 }
0x43d2   :  { %v9566_v17 = vsel %vm467_vm1, %v9564_v26, 0.0 }
0x43d3   :  { %v9569_v59 = vsel %vm467_vm1, %v9565_v58, 0.0 }
0x441d   :  { %v14811_v40 = vpop.permute.xlu0 %7895 }
0x441e   :  { %v7903_v62 = vmul.f32 %v14677_v20, %v14811_v40 }
0x4420   :  { %v7905_v29 = vsel %vm1454_vm14, %v7903_v62, 0.0 }
0x4421   :  { %v14813_v18 = vpop.permute.xlu0 %7900 }
0x4422   :  { %v7904_v12 = vmul.f32 %v14690_v52, %v14813_v18  ;;  %v7906_v52 = vrot.slane %v7905_v29, 4 }
0x4424   :  { %v7907_v40 = vadd.f32 %v7906_v52, %v7905_v29 }
0x4425   :  { %v14815_v5 = vpop.permute.xlu0 %7921 }
0x4429   :  { %v14817_v15 = vpop.permute.xlu0 %7961 }
0x442a   :  { %v7969_v20 = vmul.f32 %v14716_v23, %v14817_v15 }
0x442c   :  { %v7971_v58 = vsel %vm1521_vm6, %v7969_v20, 0.0 }
0x442d   :  { %v14821_v2 = vpop.permute.xlu0 %7966 }
0x4431   :  { %v14824_v39 = vpop.permute.xlu0 %9413 }
0x4432   :  { %v9419_v19 = vsel %vm155_vm0, %v14824_v39, 0.0  ;;  %v7912_v39 = vsel %vm1454_vm14, %v7904_v12, 0.0 }
0x4433   :  { %v7913_v50 = vrot.slane %v7912_v39, 4 }
0x4435   :  { %v14827_v43 = vpop.permute.xlu0 %9415  ;;  %v7914_v35 = vadd.f32 %v7913_v50, %v7912_v39 }
0x4439   :  { %v8818_v27 = vpop.permute.xlu0 %8817 }
0x443a   :  { %11119 = vmatmul.mubr.msk.f32.vlgmr.msra.gmra.mrb[42].mxu1 %vm155_vm0, %v8818_v27 }
0x443b   :  { %11377 = vmatpush3.bf16.msra.mxu1 %v15522_v47  ;;  %11129 = vmatprep.mubr.msk.f32.mxu1 %vm12017_vm5, %v15499_v4 }
0x443c   :  { %11378 = vmatprep.subr.bf16.mxu1 %v15500_v22 }
0x443d   :  { %v8928_v14 = vpop.permute.xlu0 %8927 }
0x443e   :  { %v8933_v51 = vsel %vm155_vm0, %v8928_v14, 0.0  ;;  %v9667_v14 = vadd.f32 %v9557_v33, %v15526_v54  ;;  %v9422_v33 = vsel %vm155_vm0, %v14827_v43, 0.0  ;;  %v7929_v43 = vmul.f32 %v14696_v6, %v14815_v5 }
0x443f   :  { %8934 = vadd.xlane.f32.xlu1 %v8933_v51  ;;  %11380 = vmatpush3.bf16.msra.mxu1 %v15524_v56  ;;  %v7915_v5 = vrot.slane %v7914_v35, 2 }
0x4440   :  { %11387 = vmatprep.subr.bf16.mxu1 %v15500_v22  ;;  %v7931_v18 = vsel %vm1454_vm14, %v7929_v43, 0.0 }
0x4441   :  { %v8930_v49 = vpop.permute.xlu0 %8929  ;;  %v7932_v26 = vrot.slane %v7931_v18, 4 }
0x4442   :  { %v8936_v44 = vsel %vm155_vm0, %v8930_v49, 0.0 }
0x4450   :  { %9674 = vrot.lane.b32.xlu1 %v9670_v9, %s12012_s29 }
0x4474   :  { %8937 = vadd.xlane.f32.xlu1 %v8936_v44  ;;  %v7970_v44 = vmul.f32 %v14730_v41, %v14821_v2  ;;  %v7916_v2 = vadd.f32 %v7915_v5, %v7914_v35 }
0x4476   :  { %v7917_v54 = vrot.slane %v7916_v2, 1 }
0x4478   :  { %9567 = vadd.xlane.f32.xlu1 %v9566_v17  ;;  %v7978_v17 = vsel %vm1521_vm6, %v7970_v44, 0.0 }
0x447c   :  { %9570 = vadd.xlane.f32.xlu1 %v9569_v59  ;;  %v7908_v59 = vrot.slane %v7907_v40, 2 }
0x447e   :  { %v7909_v23 = vadd.f32 %v7908_v59, %v7907_v40  ;;  %v7875_v40 = vmul.f32 %v14778_v34, %v14708_v32 }
0x44cc   :  { %v14855_v38 = vpop.xlane.xlu1 %8934 }
0x44d0   :  { %v9675_v37 = vpop.permute.xlu1 %9674 }
0x44d1   :  { %v9680_v3 = vsel %vm467_vm1, %v9675_v37, 0.0  ;;  %v7933_v37 = vadd.f32 %v7932_v26, %v7931_v18 }
0x44d2   :  { %9681 = vadd.xlane.f32.xlu1 %v9680_v3  ;;  %v7979_v3 = vrot.slane %v7978_v17, 4 }
0x44d3   :  { %v7934_v15 = vrot.slane %v7933_v37, 2 }
0x44e3   :  { %7926 = vperm.xlu1 %11405, %v7892_v7  }
0x450d   :  { %v8887_v55 = vpop.f32.mrb[42].mxu1 }
0x450e   :  { %v14861_v13 = vadd.f32 %v14574_v0, %v8887_v55  ;;  %v11120_v63 = vpop.f32.mrb[43].mxu1  ;;  %v7972_v55 = vrot.slane %v7971_v58, 4 }
0x450f   :  { %v7980_v63 = vadd.f32 %v7979_v3, %v7978_v17 }
0x4510   :  { %v8946_v27 = vrot.slane %v14861_v13, %v12233_v25 }
0x4512   :  { %v8954_v47 = vrot.slane %v8946_v27, %v12233_v25  ;;  %v8947_v30 = vcombine.high %v8946_v27, %v8946_v27 }
0x4514   :  { %v14867_v8 = vrot.slane %v8954_v47, %v12224_v21  ;;  %v8961_v9 = vrot.slane %v8947_v30, %v12233_v25  ;;  %v7918_v30 = vadd.f32 %v7917_v54, %v7916_v2  ;;  %v15529_v54 = vld [vmem:[#allocation31_spill] sm:$0xff] }
0x4516   :  { %v8972_v51 = vadd.f32 %v14867_v8, %v13459_v60  ;;  %v14880_v11 = vrot.slane %v8961_v9, %v12224_v21  ;;  %v7946_v39 = vmul.f32 0.5, %v7918_v30 }
0x4518   :  { %11864 = vtanh.f32 %v8972_v51  ;;  %v8973_v45 = vadd.f32 %v14880_v11, %v13465_v61 }
0x4519   :  { %11866 = vtanh.f32 %v9667_v14  ;;  %v7973_v14 = vadd.f32 %v7972_v55, %v7971_v58 }
0x451a   :  { %11868 = vtanh.f32 %v8973_v45 }
0x451b   :  { %v7974_v9 = vrot.slane %v7973_v14, 2 }
0x451d   :  { %v7975_v29 = vadd.f32 %v7974_v9, %v7973_v14  ;;  %v8993_v14 = vadd.f32 %v14880_v11, %v15529_v54 }
0x451f   :  { %v7976_v35 = vrot.slane %v7975_v29, 1 }
0x4521   :  { %v7977_v58 = vadd.f32 %v7976_v35, %v7975_v29 }
0x4522   :  { %v11865_v31 = vpop.eup %11864 }
0x4523   :  { %v8976_v0 = vmul.f32 %v11865_v31, %v13468_v42  ;;  %v11867_v24 = vpop.eup %11866  ;;  %v7910_v31 = vrot.slane %v7909_v23, 1 }
0x4524   :  { %v9671_v56 = vmul.f32 %v11867_v24, %v15525_v36  ;;  %v14886_v36 = vpop.xlane.xlu1 %8937  ;;  %v11869_v6 = vpop.eup %11868  ;;  %v7981_v24 = vrot.slane %v7980_v63, 2 }
0x4525   :  { %8980 = vrot.lane.b32.xlu0 %v8976_v0, %s12018_s15  ;;  %v8977_v41 = vmul.f32 %v11869_v6, %v13468_v42  ;;  %v7935_v0 = vadd.f32 %v7934_v15, %v7933_v37 }
0x4526   :  { %v7982_v45 = vadd.f32 %v7981_v24, %v7980_v63 }
0x4527   :  { %v7936_v12 = vrot.slane %v7935_v0, 1 }
0x4528   :  { %v14896_v49 = vpop.xlane.xlu1 %9567  ;;  %v7983_v52 = vrot.slane %v7982_v45, 1 }
0x4529   :  { %9676 = vrot.lane.b32.xlu0 %v9671_v56, %s12012_s29 }
0x452a   :  { %v7984_v17 = vadd.f32 %v7983_v52, %v7982_v45  ;;  %v9577_v45 = vrot.slane %v14896_v49, %v12332_v46 }
0x452c   :  { %v14903_v10 = vpop.xlane.xlu1 %9570  ;;  %v7987_v3 = vsel %vm336_vm2, %v7984_v17, %v7977_v58  ;;  %v9024_v58 = vrot.slane %v14886_v36, %v12332_v46 }
0x4548   :  { %9420 = vadd.xlane.f32.xlu0 %v9419_v19 }
0x454c   :  { %9423 = vadd.xlane.f32.xlu0 %v9422_v33  ;;  %v7911_v33 = vadd.f32 %v7910_v31, %v7909_v23  ;;  %v15527_v23 = vld [vmem:[#allocation32_spill] sm:$0xff]  ;;  %v15530_v31 = vld [vmem:[#allocation11_spill] sm:$0xff] }
0x454d   :  { %vm15528_vm13 = vcmp.eq.s32.totalorder %v15527_v23, 1 }
0x454e   :  { %v7945_v50 = vmul.f32 0.5, %v7911_v33  ;;  %v9581_v33 = vrot.slane %v14903_v10, %v12332_v46 }
0x4550   :  { %v7949_v44 = vsel %vm336_vm2, %v7946_v39, %v7945_v50  ;;  %v9582_v39 = vsel %vm336_vm2, %v9581_v33, %v9577_v45 }
0x4551   :  { %v7951_v5 = vadd.f32 %v7949_v44, %v7875_v40  ;;  %v9584_v29 = vsel %vm486_vm3, %v9582_v39, -inf }
0x455f   :  { %v14907_v7 = vpop.xlane.xlu1 %9681 }
0x4562   :  { %8982 = vrot.lane.b32.xlu0 %v8977_v41, %s12018_s15 }
0x4563   :  { %v7927_v27 = vpop.permute.xlu1 %7926 }
0x4564   :  { %v7930_v47 = vmul.f32 %v14704_v1, %v7927_v27  ;;  %v7937_v1 = vadd.f32 %v7936_v12, %v7935_v0 }
0x4566   :  { %v7938_v51 = vsel %vm1454_vm14, %v7930_v47, 0.0  ;;  %v7952_v26 = vmul.f32 0.3, %v7937_v1  ;;  %v8992_v47 = vadd.f32 %v14867_v8, %v13488_v53 }
0x4567   :  { %v7939_v56 = vrot.slane %v7938_v51, 4 }
0x4569   :  { %v7940_v19 = vadd.f32 %v7939_v56, %v7938_v51  ;;  %v15531_v56 = vld [vmem:[#allocation12_spill] sm:$0xff] }
0x456b   :  { %v7941_v62 = vrot.slane %v7940_v19, 2 }
0x456d   :  { %v7942_v43 = vadd.f32 %v7941_v62, %v7940_v19 }
0x456f   :  { %v7943_v18 = vrot.slane %v7942_v43, 1 }
0x4571   :  { %v7944_v20 = vadd.f32 %v7943_v18, %v7942_v43 }
0x4573   :  { %v7953_v6 = vmul.f32 0.3, %v7944_v20  ;;  %v9691_v20 = vrot.slane %v14907_v7, %v12332_v46 }
0x4575   :  { %v7956_v59 = vsel %vm336_vm2, %v7953_v6, %v7952_v26 }
0x4576   :  { %v7958_v37 = vadd.f32 %v7956_v59, %v7951_v5  ;;  %v9020_v59 = vrot.slane %v14855_v38, %v12332_v46 }
0x4578   :  { %v7989_v41 = vadd.f32 %v7987_v3, %v7958_v37 }
0x457a   :  { %11870 = vlog2.f32 %v7989_v41 }
0x457b   :  { %11872 = vtanh.f32 %v8992_v47 }
0x457c   :  { %11874 = vtanh.f32 %v8993_v14 }
0x4584   :  { %v11871_v2 = vpop.eup %11870 }
0x4585   :  { %v7991_v55 = vmul.f32 0.6931472, %v11871_v2  ;;  %v11873_v9 = vpop.eup %11872  ;;  %v9025_v2 = vsel %vm336_vm2, %v9024_v58, %v9020_v59 }
0x4586   :  { %v8996_v8 = vmul.f32 %v11873_v9, %v13468_v42  ;;  %v11875_v19 = vpop.eup %11874  ;;  %v9027_v23 = vsel %vm339_vm4, %v9025_v2, -inf }
0x4587   :  { %v7998_v15 = vsel %vm15528_vm13, %v7991_v55, 0.0  ;;  %v8997_v11 = vmul.f32 %v11875_v19, %v13468_v42  ;;  %v9012_v55 = vsel %vm1270_vm12, %v14861_v13, -inf }
0x4588   :  { %10647 = vst.msk [vmem:[%s15353_s28 + $0xa] sm:$0x3] %vm1270_vm12, %v7998_v15 }
0x4597   :  { %v8981_v32 = vpop.permute.xlu0 %8980 }
0x4598   :  { %v8986_v34 = vsel %vm467_vm1, %v8981_v32, 0.0 }
0x4599   :  { %8987 = vadd.xlane.f32.xlu0 %v8986_v34 }
0x459b   :  { %v9677_v63 = vpop.permute.xlu0 %9676 }
0x459c   :  { %v9683_v27 = vsel %vm467_vm1, %v9677_v63, 0.0 }
0x459d   :  { %9684 = vadd.xlane.f32.xlu0 %v9683_v27 }
0x45d5   :  { %v9421_v51 = vpop.xlane.xlu0 %9420 }
0x45d6   :  { %v14931_v0 = vadd.f32 %v9421_v51, %v15530_v31 }
0x45d8   :  { %9430 = vperm.xlu1 %11405, %v14931_v0  }
0x45d9   :  { %v9424_v24 = vpop.xlane.xlu0 %9423 }
0x45da   :  { %v14935_v30 = vadd.f32 %v9424_v24, %v15531_v56 }
0x45dc   :  { %9433 = vperm.xlu0 %11404, %v14935_v30  }
0x45dd   :  { %v8983_v12 = vpop.permute.xlu0 %8982 }
0x45de   :  { %v8989_v62 = vsel %vm467_vm1, %v8983_v12, 0.0 }
0x45e0   :  { %9000 = vrot.lane.b32.xlu0 %v8996_v8, %s12018_s15 }
0x45e4   :  { %9002 = vrot.lane.b32.xlu0 %v8997_v11, %s12018_s15 }
0x45fc   :  { %8990 = vadd.xlane.f32.xlu1 %v8989_v62 }
0x4600   :  { %9585 = vmax.xlane.f32.xlu1 %v9584_v29 }
0x4626   :  { %v14949_v43 = vpop.xlane.xlu0 %8987 }
0x4627   :  { %v9035_v32 = vrot.slane %v14949_v43, %v12332_v46 }
0x462a   :  { %v14951_v50 = vpop.xlane.xlu0 %9684 }
0x462b   :  { %v9695_v18 = vrot.slane %v14951_v50, %v12332_v46 }
0x462d   :  { %v9696_v5 = vsel %vm336_vm2, %v9695_v18, %v9691_v20 }
0x462e   :  { %v9698_v3 = vsel %vm486_vm3, %v9696_v5, -inf }
0x4657   :  { %v9431_v1 = vpop.permute.xlu1 %9430 }
0x4658   :  { %v9438_v44 = vrot.slane %v9431_v1, %v12332_v46 }
0x465b   :  { %v9434_v52 = vpop.permute.xlu0 %9433 }
0x465c   :  { %v9442_v35 = vrot.slane %v9434_v52, %v12332_v46 }
0x465e   :  { %v9443_v40 = vsel %vm336_vm2, %v9442_v35, %v9438_v44 }
0x465f   :  { %v9001_v26 = vpop.permute.xlu0 %9000  ;;  %v9445_v17 = vsel %vm339_vm4, %v9443_v40, -inf }
0x4660   :  { %v9006_v6 = vsel %vm467_vm1, %v9001_v26, 0.0  ;;  %9446 = vmax.xlane.f32.xlu1 %v9445_v17 }
0x4661   :  { %9007 = vadd.xlane.f32.xlu0 %v9006_v6 }
0x4663   :  { %v9003_v37 = vpop.permute.xlu0 %9002 }
0x4664   :  { %v9009_v41 = vsel %vm467_vm1, %v9003_v37, 0.0  ;;  %9699 = vmax.xlane.f32.xlu1 %v9698_v3 }
0x4665   :  { %9010 = vadd.xlane.f32.xlu0 %v9009_v41 }
0x4668   :  { %9013 = vmax.xlane.f32.xlu1 %v9012_v55 }
0x4669   :  { %9028 = vmax.xlane.f32.xlu0 %v9027_v23 }
0x4689   :  { %v14973_v15 = vpop.xlane.xlu1 %8990 }
0x468a   :  { %v9039_v34 = vrot.slane %v14973_v15, %v12332_v46 }
0x468c   :  { %v9040_v63 = vsel %vm336_vm2, %v9039_v34, %v9035_v32 }
0x468d   :  { %v9042_v27 = vsel %vm486_vm3, %v9040_v63, -inf  ;;  %v9586_v14 = vpop.xlane.xlu1 %9585 }
0x468e   :  { %9043 = vmax.xlane.f32.xlu1 %v9042_v27  ;;  %v9591_v8 = vrot.slane %v9586_v14, %v12224_v21  ;;  %v9595_v11 = vrot.slane %v9586_v14, %v12270_v48 }
0x4690   :  { %v9598_v33 = vsub.f32 %v14896_v49, %v9591_v8  ;;  %v9599_v45 = vsub.f32 %v14903_v10, %v9595_v11 }
0x4692   :  { %v9600_v62 = vmul.f32 1.442695, %v9598_v33  ;;  %v9602_v29 = vmul.f32 1.442695, %v9599_v45 }
0x4694   :  { %11876 = vpow2.f32 %v9600_v62 }
0x4695   :  { %11878 = vpow2.f32 %v9602_v29 }
0x469e   :  { %v14997_v18 = vpop.eup %11876 }
0x469f   :  { %v15000_v44 = vpop.eup %11878 }
0x46ed   :  { %v9447_v56 = vpop.xlane.xlu1 %9446 }
0x46ee   :  { %v14981_v47 = vpop.xlane.xlu0 %9007  ;;  %v9452_v58 = vrot.slane %v9447_v56, %v12224_v21  ;;  %v9456_v2 = vrot.slane %v9447_v56, %v12270_v48 }
0x46ef   :  { %v9050_v31 = vrot.slane %v14981_v47, %v12332_v46 }
0x46f0   :  { %v9459_v55 = vsub.f32 %v14931_v0, %v9452_v58  ;;  %v9460_v32 = vsub.f32 %v14935_v30, %v9456_v2 }
0x46f1   :  { %v9700_v12 = vpop.xlane.xlu1 %9699 }
0x46f2   :  { %v14983_v51 = vpop.xlane.xlu0 %9010  ;;  %v9705_v39 = vrot.slane %v9700_v12, %v12224_v21  ;;  %v9709_v23 = vrot.slane %v9700_v12, %v12270_v48  ;;  %v9461_v34 = vmul.f32 1.442695, %v9459_v55  ;;  %v9463_v27 = vmul.f32 1.442695, %v9460_v32 }
0x46f3   :  { %v9054_v24 = vrot.slane %v14983_v51, %v12332_v46 }
0x46f4   :  { %v9712_v1 = vsub.f32 %v14907_v7, %v9705_v39 }
0x46f5   :  { %v9055_v9 = vsel %vm336_vm2, %v9054_v24, %v9050_v31  ;;  %v9014_v10 = vpop.xlane.xlu1 %9013 }
0x46f6   :  { %v9057_v19 = vsel %vm486_vm3, %v9055_v9, -inf  ;;  %v9714_v52 = vmul.f32 1.442695, %v9712_v1  ;;  %v9029_v35 = vpop.xlane.xlu0 %9028 }
0x46f7   :  { %9058 = vmax.xlane.f32.xlu0 %v9057_v19 }
0x46f8   :  { %11880 = vpow2.f32 %v9714_v52 }
0x4702   :  { %v15003_v49 = vpop.eup %11880 }
0x470d   :  { %9607 = vperm.xlu0 %11404, %v14997_v18  }
0x4711   :  { %9610 = vperm.xlu0 %11404, %v15000_v44  }
0x4715   :  { %9721 = vperm.xlu0 %11404, %v15003_v49  }
0x471b   :  { %v9044_v20 = vpop.xlane.xlu1 %9043 }
0x4784   :  { %v9059_v40 = vpop.xlane.xlu0 %9058 }
0x4785   :  { %v9060_v7 = vmax.f32 %v9044_v20, %v9059_v40 }
0x4787   :  { %v9061_v26 = vmax.f32 %v9029_v35, %v9060_v7 }
0x4789   :  { %v9062_v17 = vmax.f32 %v9014_v10, %v9061_v26 }
0x478b   :  { %v9063_v6 = vsub.f32 %v14861_v13, %v9062_v17  ;;  %v15008_v5 = vrot.slane %v9062_v17, %v12224_v21  ;;  %v15020_v63 = vrot.slane %v9062_v17, %v12270_v48 }
0x478c   :  { %v9608_v33 = vpop.permute.xlu0 %9607 }
0x478d   :  { %v9064_v59 = vmul.f32 1.442695, %v9063_v6  ;;  %v9077_v37 = vsub.f32 %v14855_v38, %v15008_v5  ;;  %v9083_v3 = vsub.f32 %v14949_v43, %v15008_v5  ;;  %v9713_v38 = vsub.f32 %v14951_v50, %v9709_v23 }
0x478e   :  { %v9078_v0 = vsub.f32 %v14886_v36, %v15020_v63  ;;  %v9084_v50 = vsub.f32 %v14973_v15, %v15020_v63  ;;  %v9615_v2 = vrot.slane %v9608_v33, %v12332_v46 }
0x478f   :  { %11882 = vpow2.f32 %v9064_v59  ;;  %v9079_v41 = vmul.f32 1.442695, %v9077_v37  ;;  %v9085_v13 = vmul.f32 1.442695, %v9083_v3  ;;  %v9716_v30 = vmul.f32 1.442695, %v9713_v38 }
0x4790   :  { %v9081_v24 = vmul.f32 1.442695, %v9078_v0  ;;  %v9087_v36 = vmul.f32 1.442695, %v9084_v50  ;;  %v9611_v12 = vpop.permute.xlu0 %9610  ;;  %v9090_v0 = vsub.f32 %v14983_v51, %v15020_v63 }
0x4791   :  { %11884 = vpow2.f32 %v9079_v41  ;;  %v9619_v58 = vrot.slane %v9611_v12, %v12332_v46 }
0x4792   :  { %11886 = vpow2.f32 %v9085_v13  ;;  %v9089_v13 = vsub.f32 %v14981_v47, %v15008_v5  ;;  %v9093_v5 = vmul.f32 1.442695, %v9090_v0 }
0x4793   :  { %11888 = vpow2.f32 %v9461_v34  ;;  %v9620_v38 = vsel %vm336_vm2, %v9619_v58, %v9615_v2  ;;  %v10658_v58 = vld [vmem:[%s15342_s0 + $0xe] sm:$0x3] }
0x4794   :  { %11890 = vpow2.f32 %v9463_v27  ;;  %v9722_v45 = vpop.permute.xlu0 %9721  ;;  %11137 = vmatmul.mubr.msk.f32.vlgmr.msra.gmra.mrb[42].mxu0 %vm775_vm8, %v10658_v58 }
0x4795   :  { %11892 = vpow2.f32 %v9716_v30  ;;  %v9729_v27 = vrot.slane %v9722_v45, %v12332_v46  ;;  %v9622_v30 = vsel %vm486_vm3, %v9620_v38, 0.0  ;;  %11143 = vmatprep.mubr.msk.f32.mxu0 %vm12017_vm5, %v15499_v4  ;;  %v11998_v38 = vld [vmem:[%s15339_s5] sm:$0xf] }
0x4796   :  { %11894 = vpow2.f32 %v9081_v24 }
0x4797   :  { %11896 = vpow2.f32 %v9087_v36 }
0x4799   :  { %v15023_v43 = vpop.eup %11882 }
0x479a   :  { %v9095_v14 = vsel %vm1270_vm12, %v15023_v43, 0.0 }
0x479b   :  { %v15029_v31 = vpop.eup %11884  ;;  %9096 = vadd.xlane.f32.xlu1 %v9095_v14  ;;  %v9091_v14 = vmul.f32 1.442695, %v9089_v13 }
0x479c   :  { %9101 = vperm.xlu0 %11404, %v15029_v31   ;;  %v15034_v56 = vpop.eup %11886 }
0x479d   :  { %v15037_v9 = vpop.eup %11888  ;;  %11898 = vpow2.f32 %v9091_v14 }
0x479e   :  { %v15040_v8 = vpop.eup %11890  ;;  %11900 = vpow2.f32 %v9093_v5 }
0x479f   :  { %v15043_v19 = vpop.eup %11892 }
0x47a0   :  { %9123 = vperm.xlu0 %11404, %v15034_v56   ;;  %v15045_v11 = vpop.eup %11894 }
0x47a1   :  { %v15049_v15 = vpop.eup %11896 }
0x47a4   :  { %9468 = vperm.xlu0 %11404, %v15037_v9  }
0x47a7   :  { %v15076_v50 = vpop.eup %11898 }
0x47a8   :  { %9471 = vperm.xlu0 %11404, %v15040_v8   ;;  %v15079_v36 = vpop.eup %11900 }
0x47ac   :  { %9724 = vperm.xlu0 %11404, %v15043_v19   ;;  %9104 = vperm.xlu1 %11405, %v15045_v11  }
0x47b0   :  { %9126 = vperm.xlu0 %11404, %v15049_v15  }
0x481b   :  { %v9102_v62 = vpop.permute.xlu0 %9101 }
0x481c   :  { %v9109_v20 = vrot.slane %v9102_v62, %v12332_v46 }
0x481f   :  { %v9124_v39 = vpop.permute.xlu0 %9123 }
0x4820   :  { %v9131_v59 = vrot.slane %v9124_v39, %v12332_v46 }
0x4823   :  { %v9469_v29 = vpop.permute.xlu0 %9468 }
0x4824   :  { %v9476_v26 = vrot.slane %v9469_v29, %v12332_v46 }
0x4827   :  { %v9472_v1 = vpop.permute.xlu0 %9471 }
0x4828   :  { %v9097_v52 = vpop.xlane.xlu1 %9096  ;;  %v9480_v40 = vrot.slane %v9472_v1, %v12332_v46 }
0x482a   :  { %v9481_v41 = vsel %vm336_vm2, %v9480_v40, %v9476_v26 }
0x482b   :  { %v9725_v10 = vpop.permute.xlu0 %9724  ;;  %v9483_v34 = vsel %vm339_vm4, %v9481_v41, 0.0 }
0x482c   :  { %v9105_v35 = vpop.permute.xlu1 %9104  ;;  %v9733_v32 = vrot.slane %v9725_v10, %v12332_v46 }
0x482d   :  { %v9113_v7 = vrot.slane %v9105_v35, %v12332_v46 }
0x482e   :  { %v9734_v47 = vsel %vm336_vm2, %v9733_v32, %v9729_v27 }
0x482f   :  { %v9127_v17 = vpop.permute.xlu0 %9126  ;;  %v9114_v6 = vsel %vm336_vm2, %v9113_v7, %v9109_v20  ;;  %v9736_v24 = vsel %vm486_vm3, %v9734_v47, 0.0 }
0x4830   :  { %v9135_v37 = vrot.slane %v9127_v17, %v12332_v46  ;;  %v9116_v3 = vsel %vm339_vm4, %v9114_v6, 0.0 }
0x4831   :  { %9117 = vadd.xlane.f32.xlu1 %v9116_v3 }
0x4832   :  { %v9136_v55 = vsel %vm336_vm2, %v9135_v37, %v9131_v59  ;;  %v15532_v59 = vld [vmem:[#allocation17_spill] sm:$0xff]  ;;  %v11997_v37 = vld [vmem:[%s15339_s5 + $0x4] sm:$0xf] }
0x4833   :  { %v9138_v23 = vsel %vm486_vm3, %v9136_v55, 0.0  ;;  %11386 = vmatpush3.bf16.msra.mxu0 %v15532_v59 }
0x4834   :  { %9139 = vadd.xlane.f32.xlu0 %v9138_v23  ;;  %11390 = vmatprep.subr.bf16.mxu0 %v15500_v22 }
0x4835   :  { %9484 = vadd.xlane.f32.xlu1 %v9483_v34 }
0x4838   :  { %9623 = vadd.xlane.f32.xlu0 %v9622_v30 }
0x483c   :  { %9737 = vadd.xlane.f32.xlu0 %v9736_v24 }
0x4846   :  { %9145 = vperm.xlu1 %11405, %v15076_v50  }
0x484a   :  { %9148 = vperm.xlu1 %11405, %v15079_v36  }
0x48be   :  { %v9118_v51 = vpop.xlane.xlu1 %9117 }
0x48bf   :  { %v9119_v63 = vadd.f32 %v9118_v51, %v9097_v52 }
0x48c1   :  { %v9140_v33 = vpop.xlane.xlu0 %9139 }
0x48c2   :  { %v9141_v12 = vadd.f32 %v9140_v33, %v9119_v63  ;;  %v9485_v45 = vpop.xlane.xlu1 %9484 }
0x48c3   :  { %v9494_v32 = vrot.slane %v9485_v45, %v12270_v48 }
0x48c5   :  { %v9624_v62 = vpop.xlane.xlu0 %9623 }
0x48c6   :  { %v9633_v39 = vrot.slane %v9624_v62, %v12270_v48  ;;  %v9146_v29 = vpop.permute.xlu1 %9145  ;;  %v9629_v52 = vrot.slane %v9624_v62, %v12224_v21 }
0x48c7   :  { %v9153_v10 = vrot.slane %v9146_v29, %v12332_v46 }
0x48c8   :  { %11902 = vrcp.f32 %v9633_v39 }
0x48c9   :  { %11904 = vrcp.f32 %v9629_v52  ;;  %v9738_v3 = vpop.xlane.xlu0 %9737 }
0x48ca   :  { %v9149_v1 = vpop.permute.xlu1 %9148  ;;  %v9747_v14 = vrot.slane %v9738_v3, %v12270_v48 }
0x48cb   :  { %v9157_v35 = vrot.slane %v9149_v1, %v12332_v46 }
0x48cd   :  { %v9158_v20 = vsel %vm336_vm2, %v9157_v35, %v9153_v10  ;;  %v9743_v35 = vrot.slane %v9738_v3, %v12224_v21  ;;  %v15140_v3 = vld [vmem:[%s15350_s11 + $0x4] sm:$0xf] }
0x48ce   :  { %v9160_v40 = vsel %vm486_vm3, %v9158_v20, 0.0 }
0x48cf   :  { %9161 = vadd.xlane.f32.xlu0 %v9160_v40 }
0x48d2   :  { %v11903_v7 = vpop.eup %11902 }
0x48d3   :  { %v9639_v26 = vmul.f32 %v11903_v7, %v15000_v44  ;;  %v11905_v17 = vpop.eup %11904 }
0x48d4   :  { %v9637_v6 = vmul.f32 %v11905_v17, %v14997_v18 }
0x48d5   :  { %9647 = vperm.xlu1 %11405, %v9639_v26  }
0x48e5   :  { %9642 = vperm.xlu0 %11404, %v9637_v6  }
0x4954   :  { %v9648_v44 = vpop.permute.xlu1 %9647 }
0x4955   :  { %v9651_v18 = vmul.f32 %v11997_v37, %v9648_v44 }
0x4957   :  { %v9659_v41 = vsel %vm555_vm7, %v9651_v18, 0.0 }
0x4958   :  { %v9660_v13 = vrot.slane %v9659_v41, 4 }
0x495a   :  { %v9661_v23 = vadd.f32 %v9660_v13, %v9659_v41 }
0x495c   :  { %v9162_v2 = vpop.xlane.xlu0 %9161  ;;  %v9662_v0 = vrot.slane %v9661_v23, 2 }
0x495d   :  { %v9163_v55 = vadd.f32 %v9162_v2, %v9141_v12  ;;  %v9490_v12 = vrot.slane %v9485_v45, %v12224_v21 }
0x495e   :  { %v9663_v24 = vadd.f32 %v9662_v0, %v9661_v23  ;;  %v15160_v0 = vld [vmem:[%s15351_s12] sm:$0xf] }
0x495f   :  { %11906 = vrcp.f32 %v9163_v55 }
0x4960   :  { %11908 = vrcp.f32 %v9494_v32  ;;  %v9664_v1 = vrot.slane %v9663_v24, 1 }
0x4961   :  { %11910 = vrcp.f32 %v9747_v14 }
0x4962   :  { %11912 = vrcp.f32 %v9490_v12  ;;  %v9665_v45 = vadd.f32 %v9664_v1, %v9663_v24  ;;  %v12003_v1 = vld [vmem:[%s15338_s2 + $0x8] sm:$0xff] }
0x4963   :  { %11914 = vrcp.f32 %v9743_v35  ;;  %v15171_v35 = vld [vmem:[%s15351_s12 + $0x4] sm:$0xf] }
0x4964   :  { %v9643_v34 = vpop.permute.xlu0 %9642 }
0x4965   :  { %v9650_v27 = vmul.f32 %v11998_v38, %v9643_v34  ;;  %v15154_v38 = vld [vmem:[%s15352_s13 + $0x8] sm:$0xff] }
0x4967   :  { %v9652_v30 = vsel %vm555_vm7, %v9650_v27, 0.0 }
0x4968   :  { %v9653_v47 = vrot.slane %v9652_v30, 4 }
0x4969   :  { %v15108_v5 = vpop.eup %11906 }
0x496a   :  { %v9654_v51 = vadd.f32 %v9653_v47, %v9652_v30  ;;  %v9174_v63 = vrot.slane %v15108_v5, %v12270_v48  ;;  %v9170_v33 = vrot.slane %v15108_v5, %v12224_v21  ;;  %v11909_v7 = vpop.eup %11908 }
0x496b   :  { %v11911_v6 = vpop.eup %11910 }
0x496c   :  { %v9655_v62 = vrot.slane %v9654_v51, 2  ;;  %v9180_v39 = vmul.f32 %v15049_v15, %v9174_v63  ;;  %v9179_v29 = vmul.f32 %v15034_v56, %v9170_v33  ;;  %v9178_v40 = vmul.f32 %v15045_v11, %v9174_v63  ;;  %v15533_v11 = vld [vmem:[#allocation19_spill] sm:$0xff]  ;;  %v11913_v59 = vpop.eup %11912 }
0x496d   :  { %v9181_v52 = vmul.f32 %v15076_v50, %v9170_v33  ;;  %v9500_v15 = vmul.f32 %v11909_v7, %v15040_v8  ;;  %v9182_v17 = vmul.f32 %v15079_v36, %v9174_v63  ;;  %v9753_v50 = vmul.f32 %v11911_v6, %v15043_v19  ;;  %v15534_v8 = vld [vmem:[#allocation20_spill] sm:$0xff]  ;;  %v11915_v44 = vpop.eup %11914  ;;  %v15135_v19 = vpop.f32.mrb[42].mxu0 }
0x496e   :  { %v9656_v10 = vadd.f32 %v9655_v62, %v9654_v51  ;;  %9190 = vperm.xlu1 %11405, %v9180_v39   ;;  %9185 = vperm.xlu0 %11404, %v9179_v29   ;;  %v9177_v58 = vmul.f32 %v15029_v31, %v9170_v33  ;;  %v9498_v36 = vmul.f32 %v11913_v59, %v15037_v9  ;;  %v11138_v31 = vpop.f32.mrb[43].mxu0 }
0x496f   :  { %v9751_v37 = vmul.f32 %v11915_v44, %v15003_v49  ;;  %v15146_v49 = vld [vmem:[%s15350_s11] sm:$0xf] }
0x4970   :  { %v9657_v20 = vrot.slane %v9656_v10, 1  ;;  %v15182_v44 = vld [vmem:[%s15352_s13] sm:$0xff] }
0x4972   :  { %v9658_v26 = vadd.f32 %v9657_v20, %v9656_v10  ;;  %9256 = vperm.xlu1 %11405, %v9178_v40   ;;  %9211 = vperm.xlu0 %11404, %v9181_v52  }
0x4974   :  { %v9930_v56 = vsel %vm336_vm2, %v9665_v45, %v9658_v26 }
0x4975   :  { %11144 = vmatmul.mubr.msk.f32.vlgmr.msra.gmra.mrb[44].mxu0 %vm775_vm8, %v9930_v56 }
0x4976   :  { %9508 = vperm.xlu1 %11405, %v9500_v15   ;;  %9216 = vperm.xlu0 %11404, %v9182_v17  }
0x4977   :  { %11392 = vmatpush3.bf16.msra.mxu0 %v15533_v11  ;;  %11161 = vmatprep.mubr.msk.f32.mxu0 %vm12017_vm5, %v15499_v4 }
0x4978   :  { %11393 = vmatprep.subr.bf16.mxu0 %v15500_v22 }
0x497a   :  { %9761 = vperm.xlu1 %11405, %v9753_v50   ;;  %9251 = vperm.xlu0 %11404, %v9177_v58  }
0x497b   :  { %11395 = vmatpush3.bf16.msra.mxu0 %v15534_v8  ;;  %v12005_v8 = vld [vmem:[%s15343_s7 + $0x4] sm:$0xf] }
0x497e   :  { %9503 = vperm.xlu0 %11404, %v9498_v36  }
0x4982   :  { %9756 = vperm.xlu0 %11404, %v9751_v37  }
0x4986   :  { %10088 = vrot.lane.b32.xlu0 %v14773_v16, %s12018_s15 }
0x49ed   :  { %v9191_v18 = vpop.permute.xlu1 %9190  ;;  %v9186_v22 = vpop.permute.xlu0 %9185 }
0x49ee   :  { %v9194_v9 = vmul.f32 %v15140_v3, %v9191_v18  ;;  %v9193_v41 = vmul.f32 %v15146_v49, %v9186_v22 }
0x49f0   :  { %v9202_v2 = vsel %vm1454_vm14, %v9194_v9, 0.0  ;;  %v9195_v55 = vsel %vm1454_vm14, %v9193_v41, 0.0 }
0x49f1   :  { %v9203_v13 = vrot.slane %v9202_v2, 4  ;;  %v9196_v23 = vrot.slane %v9195_v55, 4  ;;  %v9257_v32 = vpop.permute.xlu1 %9256  ;;  %v9212_v34 = vpop.permute.xlu0 %9211 }
0x49f2   :  { %v9260_v27 = vmul.f32 %v15154_v38, %v9257_v32  ;;  %v9219_v14 = vmul.f32 %v15160_v0, %v9212_v34 }
0x49f3   :  { %v9204_v30 = vadd.f32 %v9203_v13, %v9202_v2  ;;  %v9197_v47 = vadd.f32 %v9196_v23, %v9195_v55 }
0x49f4   :  { %v9268_v24 = vsel %vm1521_vm6, %v9260_v27, 0.0  ;;  %v9221_v51 = vsel %vm1454_vm14, %v9219_v14, 0.0 }
0x49f5   :  { %v9205_v63 = vrot.slane %v9204_v30, 2  ;;  %v9198_v33 = vrot.slane %v9197_v47, 2  ;;  %v9269_v12 = vrot.slane %v9268_v24, 4  ;;  %v9222_v62 = vrot.slane %v9221_v51, 4  ;;  %v9509_v39 = vpop.permute.xlu1 %9508  ;;  %v9217_v29 = vpop.permute.xlu0 %9216 }
0x49f6   :  { %v9512_v10 = vmul.f32 %v12003_v1, %v9509_v39  ;;  %v9220_v20 = vmul.f32 %v15171_v35, %v9217_v29 }
0x49f7   :  { %v9206_v40 = vadd.f32 %v9205_v63, %v9204_v30  ;;  %v9199_v52 = vadd.f32 %v9198_v33, %v9197_v47  ;;  %v9223_v7 = vadd.f32 %v9222_v62, %v9221_v51  ;;  %v9270_v17 = vadd.f32 %v9269_v12, %v9268_v24  ;;  %v12007_v47 = vld [vmem:[%s15338_s2] sm:$0xff] }
0x49f8   :  { %v9520_v45 = vsel %vm155_vm0, %v9512_v10, 0.0  ;;  %v9228_v26 = vsel %vm1454_vm14, %v9220_v20, 0.0 }
0x49f9   :  { %v9207_v56 = vrot.slane %v9206_v40, 1  ;;  %v9200_v15 = vrot.slane %v9199_v52, 1  ;;  %v9224_v6 = vrot.slane %v9223_v7, 2  ;;  %v9762_v11 = vpop.permute.xlu1 %9761  ;;  %v9252_v50 = vpop.permute.xlu0 %9251  ;;  %v9521_v58 = vrot.slane %v9520_v45, 4 }
0x49fa   :  { %v9229_v59 = vrot.slane %v9228_v26, 4  ;;  %v9765_v36 = vmul.f32 %v12005_v8, %v9762_v11  ;;  %v9259_v37 = vmul.f32 %v15182_v44, %v9252_v50  ;;  %v9271_v13 = vrot.slane %v9270_v17, 2 }
0x49fb   :  { %v9208_v31 = vadd.f32 %v9207_v56, %v9206_v40  ;;  %v9201_v18 = vadd.f32 %v9200_v15, %v9199_v52  ;;  %v9225_v22 = vadd.f32 %v9224_v6, %v9223_v7  ;;  %v9522_v9 = vadd.f32 %v9521_v58, %v9520_v45  ;;  %v12008_v45 = vld [vmem:[%s15343_s7] sm:$0xf] }
0x49fc   :  { %v9230_v41 = vadd.f32 %v9229_v59, %v9228_v26  ;;  %v9773_v2 = vsel %vm555_vm7, %v9765_v36, 0.0  ;;  %v9261_v55 = vsel %vm1521_vm6, %v9259_v37, 0.0  ;;  %v9272_v62 = vadd.f32 %v9271_v13, %v9270_v17 }
0x49fd   :  { %v9504_v23 = vpop.permute.xlu0 %9503  ;;  %v9226_v32 = vrot.slane %v9225_v22, 1  ;;  %v9774_v27 = vrot.slane %v9773_v2, 4  ;;  %v9262_v14 = vrot.slane %v9261_v55, 4  ;;  %v9523_v30 = vrot.slane %v9522_v9, 2 }
0x49fe   :  { %v9231_v34 = vrot.slane %v9230_v41, 2  ;;  %v9511_v24 = vmul.f32 %v12007_v47, %v9504_v23  ;;  %v9236_v51 = vmul.f32 0.5, %v9208_v31  ;;  %v9235_v63 = vmul.f32 0.5, %v9201_v18 }
0x49ff   :  { %v9775_v12 = vadd.f32 %v9774_v27, %v9773_v2  ;;  %v9263_v39 = vadd.f32 %v9262_v14, %v9261_v55  ;;  %v9227_v10 = vadd.f32 %v9226_v32, %v9225_v22  ;;  %v9524_v52 = vadd.f32 %v9523_v30, %v9522_v9 }
0x4a00   :  { %v9232_v33 = vadd.f32 %v9231_v34, %v9230_v41  ;;  %v9513_v29 = vsel %vm155_vm0, %v9511_v24, 0.0  ;;  %v9239_v56 = vsel %vm336_vm2, %v9236_v51, %v9235_v63  ;;  %v9165_v17 = vmul.f32 %v15108_v5, %v15023_v43 }
0x4a01   :  { %v9757_v1 = vpop.permute.xlu0 %9756  ;;  %v9514_v40 = vrot.slane %v9513_v29, 4  ;;  %v9264_v7 = vrot.slane %v9263_v39, 2  ;;  %v9776_v6 = vrot.slane %v9775_v12, 2  ;;  %v9273_v50 = vrot.slane %v9272_v62, 1 }
0x4a02   :  { %v9233_v20 = vrot.slane %v9232_v33, 1  ;;  %v9764_v26 = vmul.f32 %v12008_v45, %v9757_v1  ;;  %v9242_v8 = vmul.f32 0.3, %v9227_v10  ;;  %v9241_v18 = vadd.f32 %v9239_v56, %v9165_v17  ;;  %v12009_v17 = vld [vmem:[%s15344_s25] ss:$0 sm:$0xff] }
0x4a03   :  { %v9515_v11 = vadd.f32 %v9514_v40, %v9513_v29  ;;  %v9265_v58 = vadd.f32 %v9264_v7, %v9263_v39  ;;  %v9525_v22 = vrot.slane %v9524_v52, 1  ;;  %v9777_v2 = vadd.f32 %v9776_v6, %v9775_v12 }
0x4a04   :  { %v9234_v15 = vadd.f32 %v9233_v20, %v9232_v33  ;;  %v9766_v59 = vsel %vm555_vm7, %v9764_v26, 0.0  ;;  %v9274_v23 = vadd.f32 %v9273_v50, %v9272_v62  ;;  %v15535_v62 = vld [vmem:[#allocation15_spill] sm:$0xff] }
0x4a05   :  { %v9516_v37 = vrot.slane %v9515_v11, 2  ;;  %v9767_v31 = vrot.slane %v9766_v59, 4  ;;  %v9266_v9 = vrot.slane %v9265_v58, 1  ;;  %v9526_v27 = vadd.f32 %v9525_v22, %v9524_v52 }
0x4a06   :  { %v9243_v36 = vmul.f32 0.3, %v9234_v15  ;;  %v9778_v30 = vrot.slane %v9777_v2, 1 }
0x4a07   :  { %v9517_v55 = vadd.f32 %v9516_v37, %v9515_v11  ;;  %v9768_v13 = vadd.f32 %v9767_v31, %v9766_v59  ;;  %v9267_v34 = vadd.f32 %v9266_v9, %v9265_v58  ;;  %v10089_v31 = vpop.permute.xlu0 %10088 }
0x4a08   :  { %v9246_v41 = vsel %vm336_vm2, %v9243_v36, %v9242_v8  ;;  %v9779_v12 = vadd.f32 %v9778_v30, %v9777_v2 }
0x4a09   :  { %v9248_v32 = vadd.f32 %v9246_v41, %v9241_v18  ;;  %v9518_v43 = vrot.slane %v9517_v55, 1  ;;  %v9769_v5 = vrot.slane %v9768_v13, 2  ;;  %v9277_v14 = vsel %vm336_vm2, %v9274_v23, %v9267_v34 }
0x4a0b   :  { %v9279_v47 = vadd.f32 %v9277_v14, %v9248_v32  ;;  %v9519_v24 = vadd.f32 %v9518_v43, %v9517_v55  ;;  %v9770_v51 = vadd.f32 %v9769_v5, %v9768_v13  ;;  %v15537_v55 = vld [vmem:[#allocation23_spill] sm:$0xff] }
0x4a0d   :  { %11916 = vlog2.f32 %v9279_v47  ;;  %v9771_v63 = vrot.slane %v9770_v51, 1  ;;  %v9782_v33 = vsel %vm336_vm2, %v9526_v27, %v9519_v24 }
0x4a0e   :  { %11130 = vmatmul.mubr.msk.f32.vlgmr.msra.gmra.mrb[44].mxu1 %vm155_vm0, %v9782_v33 }
0x4a0f   :  { %v9772_v39 = vadd.f32 %v9771_v63, %v9770_v51  ;;  %11389 = vmatpush3.bf16.msra.mxu1 %v15535_v62  ;;  %11150 = vmatprep.mubr.msk.f32.mxu1 %vm12017_vm5, %v15499_v4 }
0x4a11   :  { %v10006_v29 = vsel %vm336_vm2, %v9779_v12, %v9772_v39  ;;  %v12010_v39 = vld [vmem:[%s15348_s27] ss:$0 sm:$0xff] }
0x4a12   :  { %11151 = vmatmul.mubr.msk.f32.vlgmr.msra.gmra.mrb[46].mxu1 %vm775_vm8, %v10006_v29 }
0x4a17   :  { %v11917_v1 = vpop.eup %11916 }
0x4a18   :  { %v9281_v10 = vmul.f32 0.6931472, %v11917_v1 }
0x4a1a   :  { %v9288_v40 = vsel %vm9287_vm11, %v9281_v10, 0.0 }
0x4a1b   :  { %10657 = vst.msk [vmem:[%s15353_s28 + $0xc] sm:$0x3] %vm1270_vm12, %v9288_v40 }
0x4a48   :  { %v9999_v52 = vpop.f32.mrb[44].mxu0 }
0x4a49   :  { %v11145_v7 = vpop.f32.mrb[45].mxu0 }
0x4ae1   :  { %v9851_v45 = vpop.f32.mrb[44].mxu1 }
0x4ae2   :  { %v9925_v26 = vadd.f32 %v15135_v19, %v9851_v45  ;;  %v11131_v4 = vpop.f32.mrb[45].mxu1 }
0x4ae4   :  { %v10003_v56 = vadd.f32 %v9999_v52, %v9925_v26 }
0x4ae5   :  { %v10075_v15 = vpop.f32.mrb[46].mxu1 }
0x4ae6   :  { %v10079_v6 = vadd.f32 %v10075_v15, %v10003_v56  ;;  %v11152_v11 = vpop.f32.mrb[47].mxu1 }
0x4ae8   :  { %v10080_v50 = vadd.f32 %v12009_v17, %v10079_v6 }
0x4aea   :  { %v10081_v58 = vadd.f32 %v10080_v50, %v14773_v16 }
0x4aec   :  { %v10665_v59 = vmul.f32 -1.442695, %v10081_v58 }
0x4aee   :  { %11918 = vpow2.f32 %v10665_v59 }
0x4af8   :  { %v11919_v8 = vpop.eup %11918 }
0x4af9   :  { %v10085_v36 = vadd.f32 1.0, %v11919_v8 }
0x4afb   :  { %11920 = vrcp.f32 %v10085_v36 }
0x4b05   :  { %v11921_v37 = vpop.eup %11920 }
0x4b06   :  { %v10091_v19 = vmul.f32 %v11921_v37, %v10089_v31  ;;  %v10098_v41 = vsub.f32 1.0, %v11921_v37  ;;  %v10104_v16 = vmul.f32 %v11921_v37, %v15537_v55 }
0x4b08   :  { %10093 = vrot.lane.b32.xlu1 %v10091_v19, %s12018_s15 }
0x4b7a   :  { %v10094_v18 = vpop.permute.xlu1 %10093 }
0x4b7b   :  { %v10096_v22 = vadd.f32 %v10094_v18, %v10080_v50 }
0x4b7d   :  { %11922 = vtanh.f32 %v10096_v22 }
0x4b87   :  { %v11923_v9 = vpop.eup %11922 }
0x4b88   :  { %10100 = vrot.lane.b32.xlu0 %v11923_v9, %s12012_s29 }
0x4bfa   :  { %v10101_v2 = vpop.permute.xlu0 %10100 }
0x4bfb   :  { %v10103_v13 = vmul.f32 %v10101_v2, %v10098_v41 }
0x4bfd   :  { %v10105_v23 = vadd.f32 %v10104_v16, %v10103_v13 }
0x4bff   :  { %v10187_v32 = vrot.slane %v10105_v23, %v12233_v25  ;;  %10107 = vrot.lane.b32.xlu1 %v10105_v23, %s12012_s29 }
0x4c01   :  { %v10188_v34 = vcombine.high %v10187_v32, %v10187_v32  ;;  %v10195_v43 = vrot.slane %v10187_v32, %v12233_v25 }
0x4c03   :  { %v10202_v5 = vrot.slane %v10188_v34, %v12233_v25  ;;  %v10206_v27 = vrot.slane %v10195_v43, %v12224_v21 }
0x4c05   :  { %v10213_v14 = vmul.f32 %v10206_v27, %v13395_v57  ;;  %v10210_v30 = vrot.slane %v10202_v5, %v12224_v21 }
0x4c07   :  { %10217 = vrot.lane.b32.xlu0 %v10213_v14, %s12012_s29  ;;  %v10214_v47 = vmul.f32 %v10210_v30, %v13405_v28 }
0x4c09   :  { %10219 = vrot.lane.b32.xlu1 %v10214_v47, %s12012_s29 }
0x4c71   :  { %v10108_v24 = vpop.permute.xlu1 %10107 }
0x4c72   :  { %11162 = vmatmul.mubr.msk.f32.vlgmr.msra.gmra.mrb[46].mxu0 %vm155_vm0, %v10108_v24 }
0x4c79   :  { %v10218_v51 = vpop.permute.xlu0 %10217 }
0x4c7a   :  { %v10223_v63 = vsel %vm155_vm0, %v10218_v51, 0.0 }
0x4c7b   :  { %10224 = vadd.xlane.f32.xlu0 %v10223_v63  ;;  %v10220_v33 = vpop.permute.xlu1 %10219 }
0x4c7c   :  { %v10226_v12 = vsel %vm155_vm0, %v10220_v33, 0.0 }
0x4c7d   :  { %10227 = vadd.xlane.f32.xlu1 %v10226_v12 }
0x4d0a   :  { %v10228_v17 = vpop.xlane.xlu1 %10227 }
0x4d0b   :  { %v10314_v31 = vrot.slane %v10228_v17, %v12332_v46 }
0x4d45   :  { %v10177_v57 = vpop.f32.mrb[46].mxu0 }
0x4d46   :  { %v15237_v62 = vadd.f32 %v12010_v39, %v10177_v57  ;;  %v11163_v28 = vpop.f32.mrb[47].mxu0 }
0x4d48   :  { %v10236_v29 = vrot.slane %v15237_v62, %v12233_v25  ;;  %v10302_v22 = vsel %vm1270_vm12, %v15237_v62, -inf }
0x4d4a   :  { %v10237_v1 = vcombine.high %v10236_v29, %v10236_v29  ;;  %v10244_v10 = vrot.slane %v10236_v29, %v12233_v25 }
0x4d4c   :  { %v10251_v20 = vrot.slane %v10237_v1, %v12233_v25  ;;  %v10255_v40 = vrot.slane %v10244_v10, %v12224_v21 }
0x4d4e   :  { %v10259_v52 = vrot.slane %v10251_v20, %v12224_v21  ;;  %v10262_v7 = vadd.f32 %v10255_v40, %v13459_v60  ;;  %v10282_v45 = vadd.f32 %v10255_v40, %v13488_v53 }
0x4d50   :  { %v10263_v26 = vadd.f32 %v10259_v52, %v13465_v61  ;;  %11924 = vtanh.f32 %v10262_v7  ;;  %v10283_v4 = vadd.f32 %v10259_v52, %v15529_v54  ;;  %v10225_v54 = vpop.xlane.xlu0 %10224 }
0x4d51   :  { %11926 = vtanh.f32 %v10282_v45  ;;  %v10310_v18 = vrot.slane %v10225_v54, %v12332_v46 }
0x4d52   :  { %11928 = vtanh.f32 %v10263_v26 }
0x4d53   :  { %11930 = vtanh.f32 %v10283_v4  ;;  %v10315_v9 = vsel %vm336_vm2, %v10314_v31, %v10310_v18 }
0x4d54   :  { %v10317_v41 = vsel %vm339_vm4, %v10315_v9, -inf }
0x4d5a   :  { %v11925_v56 = vpop.eup %11924 }
0x4d5b   :  { %v11927_v15 = vpop.eup %11926  ;;  %v10266_v25 = vmul.f32 %v11925_v56, %v13468_v42 }
0x4d5c   :  { %v11929_v6 = vpop.eup %11928  ;;  %v10286_v61 = vmul.f32 %v11927_v15, %v13468_v42 }
0x4d5d   :  { %10270 = vrot.lane.b32.xlu0 %v10266_v25, %s12018_s15  ;;  %v10267_v11 = vmul.f32 %v11929_v6, %v13468_v42  ;;  %v11931_v60 = vpop.eup %11930 }
0x4d5e   :  { %v10287_v53 = vmul.f32 %v11931_v60, %v13468_v42 }
0x4d5f   :  { %10272 = vrot.lane.b32.xlu1 %v10267_v11, %s12018_s15 }
0x4d61   :  { %10290 = vrot.lane.b32.xlu0 %v10286_v61, %s12018_s15 }
0x4d63   :  { %10292 = vrot.lane.b32.xlu1 %v10287_v53, %s12018_s15 }
0x4dcf   :  { %v10271_v50 = vpop.permute.xlu0 %10270 }
0x4dd0   :  { %v10276_v58 = vsel %vm467_vm1, %v10271_v50, 0.0 }
0x4dd1   :  { %10277 = vadd.xlane.f32.xlu0 %v10276_v58  ;;  %v10273_v59 = vpop.permute.xlu1 %10272 }
0x4dd2   :  { %v10279_v8 = vsel %vm467_vm1, %v10273_v59, 0.0 }
0x4dd3   :  { %v10291_v36 = vpop.permute.xlu0 %10290  ;;  %10280 = vadd.xlane.f32.xlu1 %v10279_v8 }
0x4dd4   :  { %v10296_v37 = vsel %vm467_vm1, %v10291_v36, 0.0 }
0x4dd5   :  { %10297 = vadd.xlane.f32.xlu0 %v10296_v37  ;;  %v10293_v19 = vpop.permute.xlu1 %10292 }
0x4dd6   :  { %v10299_v42 = vsel %vm467_vm1, %v10293_v19, 0.0 }
0x4dd7   :  { %10300 = vadd.xlane.f32.xlu1 %v10299_v42 }
0x4dd9   :  { %10303 = vmax.xlane.f32.xlu0 %v10302_v22 }
0x4ddd   :  { %10318 = vmax.xlane.f32.xlu0 %v10317_v41 }
0x4e5e   :  { %v10278_v2 = vpop.xlane.xlu0 %10277 }
0x4e5f   :  { %v10325_v16 = vrot.slane %v10278_v2, %v12332_v46 }
0x4e60   :  { %v10281_v55 = vpop.xlane.xlu1 %10280 }
0x4e61   :  { %v10329_v13 = vrot.slane %v10281_v55, %v12332_v46 }
0x4e62   :  { %v10298_v23 = vpop.xlane.xlu0 %10297 }
0x4e63   :  { %v10330_v32 = vsel %vm336_vm2, %v10329_v13, %v10325_v16  ;;  %v10340_v5 = vrot.slane %v10298_v23, %v12332_v46 }
0x4e64   :  { %v10301_v34 = vpop.xlane.xlu1 %10300  ;;  %v10332_v43 = vsel %vm486_vm3, %v10330_v32, -inf }
0x4e65   :  { %v10344_v27 = vrot.slane %v10301_v34, %v12332_v46  ;;  %10333 = vmax.xlane.f32.xlu1 %v10332_v43 }
0x4e66   :  { %v10304_v47 = vpop.xlane.xlu0 %10303 }
0x4e67   :  { %v10345_v14 = vsel %vm336_vm2, %v10344_v27, %v10340_v5 }
0x4e68   :  { %v10347_v30 = vsel %vm486_vm3, %v10345_v14, -inf }
0x4e69   :  { %10348 = vmax.xlane.f32.xlu0 %v10347_v30 }
0x4e6a   :  { %v10319_v24 = vpop.xlane.xlu0 %10318 }
0x4ef2   :  { %v10334_v51 = vpop.xlane.xlu1 %10333 }
0x4ef6   :  { %v10349_v63 = vpop.xlane.xlu0 %10348 }
0x4ef7   :  { %v10350_v33 = vmax.f32 %v10334_v51, %v10349_v63 }
0x4ef9   :  { %v10351_v12 = vmax.f32 %v10319_v24, %v10350_v33 }
0x4efb   :  { %v10352_v57 = vmax.f32 %v10304_v47, %v10351_v12 }
0x4efd   :  { %v10353_v39 = vsub.f32 %v15237_v62, %v10352_v57  ;;  %v10360_v28 = vrot.slane %v10352_v57, %v12224_v21  ;;  %v10364_v1 = vrot.slane %v10352_v57, %v12270_v48 }
0x4eff   :  { %v10354_v29 = vmul.f32 1.442695, %v10353_v39  ;;  %v10367_v10 = vsub.f32 %v10225_v54, %v10360_v28  ;;  %v10373_v20 = vsub.f32 %v10278_v2, %v10360_v28  ;;  %v10374_v52 = vsub.f32 %v10281_v55, %v10364_v1 }
0x4f00   :  { %v10368_v4 = vsub.f32 %v10228_v17, %v10364_v1  ;;  %v10379_v25 = vsub.f32 %v10298_v23, %v10360_v28  ;;  %v10380_v31 = vsub.f32 %v10301_v34, %v10364_v1  ;;  %v10659_v28 = vld [vmem:[%s15457_s4 + $0xe] sm:$0x3] }
0x4f01   :  { %11932 = vpow2.f32 %v10354_v29  ;;  %v10369_v40 = vmul.f32 1.442695, %v10367_v10  ;;  %v10375_v7 = vmul.f32 1.442695, %v10373_v20  ;;  %v10377_v45 = vmul.f32 1.442695, %v10374_v52 }
0x4f02   :  { %v10371_v15 = vmul.f32 1.442695, %v10368_v4  ;;  %v10381_v11 = vmul.f32 1.442695, %v10379_v25  ;;  %v10383_v22 = vmul.f32 1.442695, %v10380_v31 }
0x4f03   :  { %11934 = vpow2.f32 %v10369_v40  ;;  %vm10572_vm0 = vcmp.gt.f32.partialorder %v10659_v28, 0.5 }
0x4f04   :  { %11936 = vpow2.f32 %v10375_v7 }
0x4f05   :  { %11938 = vpow2.f32 %v10377_v45 }
0x4f06   :  { %11940 = vpow2.f32 %v10371_v15 }
0x4f07   :  { %11942 = vpow2.f32 %v10381_v11 }
0x4f08   :  { %11944 = vpow2.f32 %v10383_v22 }
0x4f0b   :  { %v15278_v26 = vpop.eup %11932 }
0x4f0c   :  { %v10385_v62 = vsel %vm1270_vm12, %v15278_v26, 0.0 }
0x4f0d   :  { %v11935_v56 = vpop.eup %11934  ;;  %10386 = vadd.xlane.f32.xlu1 %v10385_v62 }
0x4f0e   :  { %10391 = vperm.xlu0 %11404, %v11935_v56   ;;  %v11937_v6 = vpop.eup %11936 }
0x4f0f   :  { %v11939_v60 = vpop.eup %11938 }
0x4f10   :  { %v11941_v61 = vpop.eup %11940 }
0x4f11   :  { %v11943_v53 = vpop.eup %11942 }
0x4f12   :  { %10413 = vperm.xlu0 %11404, %v11937_v6   ;;  %v11945_v2 = vpop.eup %11944 }
0x4f16   :  { %10416 = vperm.xlu0 %11404, %v11939_v60  }
0x4f1e   :  { %10394 = vperm.xlu1 %11405, %v11941_v61  }
0x4f22   :  { %10435 = vperm.xlu1 %11405, %v11943_v53  }
0x4f8d   :  { %v10392_v54 = vpop.permute.xlu0 %10391 }
0x4f8e   :  { %v10399_v42 = vrot.slane %v10392_v54, %v12332_v46 }
0x4f91   :  { %v10414_v17 = vpop.permute.xlu0 %10413 }
0x4f92   :  { %v10421_v58 = vrot.slane %v10414_v17, %v12332_v46 }
0x4f95   :  { %v10417_v50 = vpop.permute.xlu0 %10416 }
0x4f96   :  { %v10425_v59 = vrot.slane %v10417_v50, %v12332_v46 }
0x4f98   :  { %v10426_v8 = vsel %vm336_vm2, %v10425_v59, %v10421_v58 }
0x4f99   :  { %v10428_v36 = vsel %vm486_vm3, %v10426_v8, 0.0 }
0x4f9a   :  { %10429 = vadd.xlane.f32.xlu0 %v10428_v36  ;;  %v10387_v37 = vpop.xlane.xlu1 %10386 }
0x4f9e   :  { %v10395_v19 = vpop.permute.xlu1 %10394 }
0x4f9f   :  { %v10403_v18 = vrot.slane %v10395_v19, %v12332_v46 }
0x4fa1   :  { %v10404_v9 = vsel %vm336_vm2, %v10403_v18, %v10399_v42 }
0x4fa2   :  { %v10406_v41 = vsel %vm339_vm4, %v10404_v9, 0.0  ;;  %v10436_v16 = vpop.permute.xlu1 %10435 }
0x4fa3   :  { %10407 = vadd.xlane.f32.xlu1 %v10406_v41  ;;  %v10443_v23 = vrot.slane %v10436_v16, %v12332_v46 }
0x4fb0   :  { %10438 = vperm.xlu0 %11404, %v11945_v2  }
0x5027   :  { %v10430_v55 = vpop.xlane.xlu0 %10429 }
0x502f   :  { %v10439_v13 = vpop.permute.xlu0 %10438 }
0x5030   :  { %v10447_v32 = vrot.slane %v10439_v13, %v12332_v46  ;;  %v10408_v5 = vpop.xlane.xlu1 %10407 }
0x5031   :  { %v10409_v27 = vadd.f32 %v10408_v5, %v10387_v37 }
0x5032   :  { %v10448_v34 = vsel %vm336_vm2, %v10447_v32, %v10443_v23 }
0x5033   :  { %v10450_v43 = vsel %vm486_vm3, %v10448_v34, 0.0  ;;  %v10431_v14 = vadd.f32 %v10430_v55, %v10409_v27 }
0x5034   :  { %10451 = vadd.xlane.f32.xlu1 %v10450_v43 }
0x50c1   :  { %v10452_v30 = vpop.xlane.xlu1 %10451 }
0x50c2   :  { %v10453_v47 = vadd.f32 %v10452_v30, %v10431_v14 }
0x50c4   :  { %11946 = vrcp.f32 %v10453_v47 }
0x50ce   :  { %v15294_v24 = vpop.eup %11946 }
0x50cf   :  { %v10460_v51 = vrot.slane %v15294_v24, %v12224_v21  ;;  %v10464_v46 = vrot.slane %v15294_v24, %v12270_v48  ;;  %v15538_v21 = vmov 0  }
0x50d0   :  { %v10573_v1 = vsel %vm10572_vm0, 1, %v15538_v21 }
0x50d1   :  { %v10469_v63 = vmul.f32 %v11937_v6, %v10460_v51  ;;  %v10470_v33 = vmul.f32 %v11939_v60, %v10464_v46  ;;  %v10471_v12 = vmul.f32 %v11943_v53, %v10460_v51  ;;  %v10472_v57 = vmul.f32 %v11945_v2, %v10464_v46 }
0x50d2   :  { %v10467_v39 = vmul.f32 %v11935_v56, %v10460_v51  ;;  %v10468_v29 = vmul.f32 %v11941_v61, %v10464_v46 }
0x50d3   :  { %10475 = vperm.xlu0 %11404, %v10469_v63  }
0x50d7   :  { %10480 = vperm.xlu0 %11404, %v10470_v33  }
0x50db   :  { %10501 = vperm.xlu0 %11404, %v10471_v12  }
0x50df   :  { %10506 = vperm.xlu0 %11404, %v10472_v57   ;;  %v10455_v57 = vmul.f32 %v15294_v24, %v15278_v26 }
0x50e3   :  { %10541 = vperm.xlu0 %11404, %v10467_v39  }
0x50e7   :  { %10546 = vperm.xlu0 %11404, %v10468_v29  }
0x50eb   :  { %10575 = vperm.xlu0 %11404, %v10573_v1  }
0x5152   :  { %v10476_v48 = vpop.permute.xlu0 %10475 }
0x5153   :  { %v10483_v10 = vmul.f32 %v15146_v49, %v10476_v48 }
0x5155   :  { %v10485_v20 = vsel %vm1454_vm14, %v10483_v10, 0.0 }
0x5156   :  { %v10486_v40 = vrot.slane %v10485_v20, 4  ;;  %v10481_v52 = vpop.permute.xlu0 %10480 }
0x5157   :  { %v10484_v7 = vmul.f32 %v15140_v3, %v10481_v52 }
0x5158   :  { %v10487_v4 = vadd.f32 %v10486_v40, %v10485_v20 }
0x5159   :  { %v10492_v45 = vsel %vm1454_vm14, %v10484_v7, 0.0 }
0x515a   :  { %v10493_v62 = vrot.slane %v10492_v45, 4  ;;  %v10502_v56 = vpop.permute.xlu0 %10501  ;;  %v10488_v11 = vrot.slane %v10487_v4, 2 }
0x515b   :  { %v10509_v15 = vmul.f32 %v15160_v0, %v10502_v56 }
0x515c   :  { %v10494_v25 = vadd.f32 %v10493_v62, %v10492_v45  ;;  %v10489_v50 = vadd.f32 %v10488_v11, %v10487_v4 }
0x515d   :  { %v10511_v6 = vsel %vm1454_vm14, %v10509_v15, 0.0 }
0x515e   :  { %v10495_v60 = vrot.slane %v10494_v25, 2  ;;  %v10512_v61 = vrot.slane %v10511_v6, 4  ;;  %v10507_v49 = vpop.permute.xlu0 %10506  ;;  %v10490_v42 = vrot.slane %v10489_v50, 1 }
0x515f   :  { %v10510_v53 = vmul.f32 %v15171_v35, %v10507_v49 }
0x5160   :  { %v10496_v54 = vadd.f32 %v10495_v60, %v10494_v25  ;;  %v10513_v17 = vadd.f32 %v10512_v61, %v10511_v6  ;;  %v10491_v23 = vadd.f32 %v10490_v42, %v10489_v50 }
0x5161   :  { %v10518_v3 = vsel %vm1454_vm14, %v10510_v53, 0.0 }
0x5162   :  { %v10514_v58 = vrot.slane %v10513_v17, 2  ;;  %v10519_v59 = vrot.slane %v10518_v3, 4  ;;  %v10542_v8 = vpop.permute.xlu0 %10541  ;;  %v10497_v36 = vrot.slane %v10496_v54, 1  ;;  %v10525_v47 = vmul.f32 0.5, %v10491_v23 }
0x5163   :  { %v10549_v0 = vmul.f32 %v15182_v44, %v10542_v8 }
0x5164   :  { %v10515_v37 = vadd.f32 %v10514_v58, %v10513_v17  ;;  %v10520_v31 = vadd.f32 %v10519_v59, %v10518_v3  ;;  %v10498_v35 = vadd.f32 %v10497_v36, %v10496_v54 }
0x5165   :  { %v10551_v19 = vsel %vm1521_vm6, %v10549_v0, 0.0 }
0x5166   :  { %v10521_v18 = vrot.slane %v10520_v31, 2  ;;  %v10552_v22 = vrot.slane %v10551_v19, 4  ;;  %v10547_v9 = vpop.permute.xlu0 %10546  ;;  %v10516_v2 = vrot.slane %v10515_v37, 1  ;;  %v10526_v43 = vmul.f32 0.5, %v10498_v35 }
0x5167   :  { %v10550_v41 = vmul.f32 %v15154_v38, %v10547_v9 }
0x5168   :  { %v10522_v55 = vadd.f32 %v10521_v18, %v10520_v31  ;;  %v10553_v16 = vadd.f32 %v10552_v22, %v10551_v19  ;;  %v10517_v5 = vadd.f32 %v10516_v2, %v10515_v37  ;;  %v10529_v12 = vsel %vm336_vm2, %v10526_v43, %v10525_v47 }
0x5169   :  { %v10558_v13 = vsel %vm1521_vm6, %v10550_v41, 0.0  ;;  %v10531_v29 = vadd.f32 %v10529_v12, %v10455_v57 }
0x516a   :  { %v10523_v32 = vrot.slane %v10522_v55, 1  ;;  %v10554_v34 = vrot.slane %v10553_v16, 2  ;;  %v10559_v44 = vrot.slane %v10558_v13, 4  ;;  %v10532_v46 = vmul.f32 0.3, %v10517_v5  ;;  %v10576_v40 = vpop.permute.xlu0 %10575 }
0x516b   :  { %vm10577_vm1 = vcmp.eq.s32.totalorder %v10576_v40, 1 }
0x516c   :  { %v10524_v27 = vadd.f32 %v10523_v32, %v10522_v55  ;;  %v10555_v14 = vadd.f32 %v10554_v34, %v10553_v16  ;;  %v10560_v30 = vadd.f32 %v10559_v44, %v10558_v13 }
0x516e   :  { %v10533_v51 = vmul.f32 0.3, %v10524_v27  ;;  %v10561_v63 = vrot.slane %v10560_v30, 2  ;;  %v10556_v33 = vrot.slane %v10555_v14, 1 }
0x5170   :  { %v10562_v38 = vadd.f32 %v10561_v63, %v10560_v30  ;;  %v10536_v28 = vsel %vm336_vm2, %v10533_v51, %v10532_v46  ;;  %v10557_v21 = vadd.f32 %v10556_v33, %v10555_v14 }
0x5171   :  { %v10538_v48 = vadd.f32 %v10536_v28, %v10531_v29 }
0x5172   :  { %v10563_v39 = vrot.slane %v10562_v38, 1 }
0x5174   :  { %v10564_v1 = vadd.f32 %v10563_v39, %v10562_v38 }
0x5176   :  { %v10567_v10 = vsel %vm336_vm2, %v10564_v1, %v10557_v21 }
0x5177   :  { %v10569_v20 = vadd.f32 %v10567_v10, %v10538_v48 }
0x5179   :  { %11948 = vlog2.f32 %v10569_v20 }
0x5183   :  { %v11949_v52 = vpop.eup %11948 }
0x5184   :  { %v10571_v7 = vmul.f32 0.6931472, %v11949_v52 }
0x5186   :  { %v10578_v45 = vsel %vm10577_vm1, %v10571_v7, 0.0 }
0x5187   :  { %10667 = vst.msk [vmem:[%s15353_s28 + $0xe] sm:$0x3] %vm1270_vm12, %v10578_v45 }

</bundles_post_ra>
